<compile_context>
chip_gen: v7x
topology: tpu7x:2x2x1
jax: 0.10.0
libtpu: 0.0.40
codegen_flags: <defaults>
</compile_context>

<pallas_src>
import functools

import jax
import jax.numpy as jnp
import numpy as np
from jax.experimental import pallas as pl
from jax.experimental.pallas import tpu as pltpu

SELU_ALPHA = 1.6732632423543772848170429916717
SELU_SCALE = 1.0507009873554804934193349852946


def _selu(x):
    # exp() clamped at 0 so the (discarded) positive branch can never overflow.
    return SELU_SCALE * jnp.where(
        x > 0, x, SELU_ALPHA * (jnp.exp(jnp.minimum(x, 0.0)) - 1.0)
    )


# ---------------------------------------------------------------------------
# The fused kernel
# ---------------------------------------------------------------------------
def _selunet_kernel(
    x_ref, a1_ref, b1_ref, a2_ref, b2_ref, sel_ref, msk_ref, lsel_ref,
    w1_ref, c1_ref, w2_ref, c2_ref, w3_ref, c3_ref, o_ref,
    *, W, K, R1, R2, Wy1, Wm1, Wy2, Wm2,
):
    x = x_ref[...]                                      # (B*Cin, H*W), lanes = h*W+w

    # ---- conv1 + bias + SELU: 25 taps, each a lane-shifted matmul ---------
    y1 = jnp.zeros((R1, Wy1), jnp.float32)
    for i in range(K):
        for j in range(K):
            off = i * W + j
            y1 = y1 + jnp.dot(a1_ref[i * K + j], x[:, off:off + Wy1],
                              preferred_element_type=jnp.float32)
    y1 = _selu(y1 + b1_ref[...])

    # ---- 2x2/2 max-pool, folded forward (computed at every flat position) --
    m1 = jnp.maximum(
        jnp.maximum(y1[:, 0:Wm1], y1[:, 1:Wm1 + 1]),
        jnp.maximum(y1[:, W:W + Wm1], y1[:, W + 1:W + 1 + Wm1]),
    )

    # ---- conv2 + bias + SELU (stride-2 offsets absorb pool-1 decimation) ---
    y2 = jnp.zeros((R2, Wy2), jnp.float32)
    for i in range(K):
        for j in range(K):
            off = 2 * (i * W + j)
            y2 = y2 + jnp.dot(a2_ref[i * K + j], m1[:, off:off + Wy2],
                              preferred_element_type=jnp.float32)
    y2 = _selu(y2 + b2_ref[...])

    # ---- second 2x2/2 max-pool, folded forward -----------------------------
    m2 = jnp.maximum(
        jnp.maximum(y2[:, 0:Wm2], y2[:, 2:Wm2 + 2]),
        jnp.maximum(y2[:, 2 * W:2 * W + Wm2], y2[:, 2 * W + 2:2 * W + 2 + Wm2]),
    )

    # ---- flatten to torch NCHW order, on the MXU ---------------------------
    #  sel : (Wm2, F)  one-hot lane selection (stride-4 decimation)
    #  msk : (R2, F)   keep only the feature block matching each row's channel
    #  lsel: (B, R2)   sum the rows belonging to each batch element
    gathered = jnp.dot(m2, sel_ref[...], preferred_element_type=jnp.float32)
    feat = jnp.dot(lsel_ref[...], gathered * msk_ref[...],
                   preferred_element_type=jnp.float32)   # (B, C2*Hp2*Wp2)

    # ---- FC head ------------------------------------------------------------
    h = _selu(jnp.dot(feat, w1_ref[...], preferred_element_type=jnp.float32)
              + c1_ref[...])
    h = _selu(jnp.dot(h, w2_ref[...], preferred_element_type=jnp.float32)
              + c2_ref[...])
    o_ref[...] = (jnp.dot(h, w3_ref[...], preferred_element_type=jnp.float32)
                  + c3_ref[...])


def _full_spec(shape):
    n = len(shape)
    return pl.BlockSpec(tuple(shape), lambda i, _n=n: (0,) * _n)


def selunet_forward(kparams, x):
    """Fused SeluNet forward pass.  `kparams` comes from prepare_params()."""
    B, Cin, H, W = x.shape
    R1 = kparams["a1"].shape[1]           # B * 6
    R2 = kparams["a2"].shape[1]           # B * 16
    K = int(round(kparams["a1"].shape[0] ** 0.5))
    num_classes = kparams["w3t"].shape[1]

    # Lane widths of the intermediate flat maps (see prepare_params).
    Wm2 = kparams["sel"].shape[0]
    Wy2 = Wm2 + 2 * W + 2
    Wm1 = Wy2 + 2 * (K - 1) * (W + 1)
    Wy1 = Wm1 + W + 1
    assert Wy1 + (K - 1) * (W + 1) <= H * W, "input too small for fused layout"
    assert kparams["a1"].shape[2] == B * Cin, "prepare_params batch/channels mismatch"

    # Pure reshape (contiguous): rows are (b, c), lanes are h*W + w.
    x2d = x.reshape(B * Cin, H * W)

    operands = (
        x2d, kparams["a1"], kparams["b1"], kparams["a2"], kparams["b2"],
        kparams["sel"], kparams["msk"], kparams["lsel"],
        kparams["w1t"], kparams["fb1"], kparams["w2t"], kparams["fb2"],
        kparams["w3t"], kparams["fb3"],
    )
    kernel = functools.partial(
        _selunet_kernel, W=W, K=K, R1=R1, R2=R2,
        Wy1=Wy1, Wm1=Wm1, Wy2=Wy2, Wm2=Wm2,
    )
    return pl.pallas_call(
        kernel,
        out_shape=jax.ShapeDtypeStruct((B, num_classes), jnp.float32),
        grid=(1,),
        in_specs=[_full_spec(op.shape) for op in operands],
        out_specs=pl.BlockSpec((B, num_classes), lambda i: (0, 0)),
        compiler_params=pltpu.CompilerParams(dimension_semantics=("arbitrary",)),
    )(*operands)


# ---------------------------------------------------------------------------
# One-time weight preparation (kept out of the per-step path)
# ---------------------------------------------------------------------------
def prepare_params(params, batch, height=32, width=32):
    """Convert torch-layout params into the fused-kernel layout (done once)."""
    w1, w2 = params["conv1_w"], params["conv2_w"]
    c1, cin, k, _ = w1.shape
    c2 = w2.shape[0]
    B, W = batch, width

    # Block-diagonal (Kronecker) expansion so one 2-D matmul per tap handles
    # every batch element: rows/cols are ordered (b major, channel minor).
    eye_b = jnp.eye(B, dtype=jnp.float32)
    a1 = jnp.einsum("ocuv,bd->uvbodc", w1, eye_b).reshape(k * k, B * c1, B * cin)
    a2 = jnp.einsum("ocuv,bd->uvbodc", w2, eye_b).reshape(k * k, B * c2, B * c1)
    b1 = jnp.tile(params["conv1_b"], B).reshape(B * c1, 1)
    b2 = jnp.tile(params["conv2_b"], B).reshape(B * c2, 1)

    # Geometry (stride-1 valid convs, 2x2/2 pools).
    ho1, wo1 = height - k + 1, width - k + 1
    hp1, wp1 = ho1 // 2, wo1 // 2
    ho2, wo2 = hp1 - k + 1, wp1 - k + 1
    hp2, wp2 = ho2 // 2, wo2 // 2
    f_dim = c2 * hp2 * wp2
    wm2 = 4 * ((hp2 - 1) * W + (wp2 - 1)) + 1

    # sel[p, f] = 1 iff lane p holds feature f's spatial position (f = c*HW + py*W2 + px).
    sel = np.zeros((wm2, f_dim), np.float32)
    for py in range(hp2):
        for px in range(wp2):
            p = 4 * (py * W + px)
            for c in range(c2):
                sel[p, c * hp2 * wp2 + py * wp2 + px] = 1.0
    rows = np.arange(B * c2)[:, None]
    cols = np.arange(f_dim)[None, :]
    msk = (cols // (hp2 * wp2) == rows % c2).astype(np.float32)
    lsel = (np.arange(B * c2)[None, :] // c2 == np.arange(B)[:, None]).astype(np.float32)

    return {
        "a1": a1, "b1": b1, "a2": a2, "b2": b2,
        "sel": jnp.asarray(sel), "msk": jnp.asarray(msk), "lsel": jnp.asarray(lsel),
        "w1t": params["fc1_w"].T, "fb1": params["fc1_b"].reshape(1, -1),
        "w2t": params["fc2_w"].T, "fb2": params["fc2_b"].reshape(1, -1),
        "w3t": params["fc3_w"].T, "fb3": params["fc3_b"].reshape(1, -1),
    }


# ---------------------------------------------------------------------------
# Torch-layout params + pure-JAX reference (for the correctness check)
# ---------------------------------------------------------------------------
def init_params(key, channels_in=3, num_classes=20, conv_out_shape=5):
    ks = jax.random.split(key, 10)

    def u(k, shape, fan_in):
        bound = 1.0 / np.sqrt(fan_in)
        return jax.random.uniform(k, shape, jnp.float32, -bound, bound)

    fin = conv_out_shape * conv_out_shape * 16
    return {
        "conv1_w": u(ks[0], (6, channels_in, 5, 5), channels_in * 25),
        "conv1_b": u(ks[1], (6,), channels_in * 25),
        "conv2_w": u(ks[2], (16, 6, 5, 5), 6 * 25),
        "conv2_b": u(ks[3], (16,), 6 * 25),
        "fc1_w": u(ks[4], (120, fin), fin),
        "fc1_b": u(ks[5], (120,), fin),
        "fc2_w": u(ks[6], (84, 120), 120),
        "fc2_b": u(ks[7], (84,), 120),
        "fc3_w": u(ks[8], (num_classes, 84), 84),
        "fc3_b": u(ks[9], (num_classes,), 84),
    }


def selunet_reference(params, x):
    """Pure-JAX reference (same math as the PyTorch forward())."""
    def conv(v, w, b):
        y = jax.lax.conv_general_dilated(
            v, w, (1, 1), "VALID", dimension_numbers=("NCHW", "OIHW", "NCHW")
        )
        return y + b.reshape(1, -1, 1, 1)

    def pool(v):
        return jax.lax.reduce_window(
            v, -jnp.inf, jax.lax.max, (1, 1, 2, 2), (1, 1, 2, 2), "VALID"
        )

    x = pool(_selu(conv(x, params["conv1_w"], params["conv1_b"])))
    x = pool(_selu(conv(x, params["conv2_w"], params["conv2_b"])))
    x = x.reshape(x.shape[0], -1)
    x = _selu(x @ params["fc1_w"].T + params["fc1_b"])
    x = _selu(x @ params["fc2_w"].T + params["fc2_b"])
    return x @ params["fc3_w"].T + params["fc3_b"]


if __name__ == "__main__":
    key = jax.random.PRNGKey(0)
    k_param, k_x = jax.random.split(key)

    params = init_params(k_param, channels_in=3, num_classes=20, conv_out_shape=5)
    # 32x32 input so that two (conv5 + pool2) stages end at 5x5 spatial, as in the module.
    x = jax.random.normal(k_x, (2, 3, 32, 32), dtype=jnp.float32)

    # One-time weight prep (block-diagonal conv weights, pre-transposed FC weights, etc.).
    kparams = prepare_params(params, batch=x.shape[0], height=x.shape[2], width=x.shape[3])

    out = jax.block_until_ready(jax.jit(selunet_forward)(kparams, x))

    ref = jax.block_until_ready(selunet_reference(params, x))
    assert out.shape == (2, 20), out.shape
    max_err = np.max(np.abs(np.asarray(out) - np.asarray(ref)))
    assert np.allclose(np.asarray(out), np.asarray(ref), rtol=2e-3, atol=2e-3), max_err

    print("KERNEL_OK")
</pallas_src>

<mosaic_0001>
module attributes {stable_mosaic.version = 11 : i64} {
  func.func @_selunet_kernel(%arg0: i32, %arg1: memref<6x1024xf32, #tpu.memory_space<vmem>>, %arg2: memref<25x12x6xf32, #tpu.memory_space<vmem>>, %arg3: memref<12x1xf32, #tpu.memory_space<vmem>>, %arg4: memref<25x32x12xf32, #tpu.memory_space<vmem>>, %arg5: memref<32x1xf32, #tpu.memory_space<vmem>>, %arg6: memref<529x400xf32, #tpu.memory_space<vmem>>, %arg7: memref<32x400xf32, #tpu.memory_space<vmem>>, %arg8: memref<2x32xf32, #tpu.memory_space<vmem>>, %arg9: memref<400x120xf32, #tpu.memory_space<vmem>>, %arg10: memref<1x120xf32, #tpu.memory_space<vmem>>, %arg11: memref<120x84xf32, #tpu.memory_space<vmem>>, %arg12: memref<1x84xf32, #tpu.memory_space<vmem>>, %arg13: memref<84x20xf32, #tpu.memory_space<vmem>>, %arg14: memref<1x20xf32, #tpu.memory_space<vmem>>, %arg15: memref<2x20xf32, #tpu.memory_space<vmem>>) attributes {dimension_semantics = [#tpu.dimension_semantics<arbitrary>], iteration_bounds = array<i64: 1>, scalar_prefetch = 0 : i64, scratch_operands = 0 : i64, tpu.core_type = #tpu.core_type<tc>, window_params = [{pipeline_mode = #tpu.pipeline_mode<synchronous>, transform_indices = @transform_0, window_bounds = array<i64: 6, 1024>}, {pipeline_mode = #tpu.pipeline_mode<synchronous>, transform_indices = @transform_1, window_bounds = array<i64: 25, 12, 6>}, {pipeline_mode = #tpu.pipeline_mode<synchronous>, transform_indices = @transform_2, window_bounds = array<i64: 12, 1>}, {pipeline_mode = #tpu.pipeline_mode<synchronous>, transform_indices = @transform_3, window_bounds = array<i64: 25, 32, 12>}, {pipeline_mode = #tpu.pipeline_mode<synchronous>, transform_indices = @transform_4, window_bounds = array<i64: 32, 1>}, {pipeline_mode = #tpu.pipeline_mode<synchronous>, transform_indices = @transform_5, window_bounds = array<i64: 529, 400>}, {pipeline_mode = #tpu.pipeline_mode<synchronous>, transform_indices = @transform_6, window_bounds = array<i64: 32, 400>}, {pipeline_mode = #tpu.pipeline_mode<synchronous>, transform_indices = @transform_7, window_bounds = array<i64: 2, 32>}, {pipeline_mode = #tpu.pipeline_mode<synchronous>, transform_indices = @transform_8, window_bounds = array<i64: 400, 120>}, {pipeline_mode = #tpu.pipeline_mode<synchronous>, transform_indices = @transform_9, window_bounds = array<i64: 1, 120>}, {pipeline_mode = #tpu.pipeline_mode<synchronous>, transform_indices = @transform_10, window_bounds = array<i64: 120, 84>}, {pipeline_mode = #tpu.pipeline_mode<synchronous>, transform_indices = @transform_11, window_bounds = array<i64: 1, 84>}, {pipeline_mode = #tpu.pipeline_mode<synchronous>, transform_indices = @transform_12, window_bounds = array<i64: 84, 20>}, {pipeline_mode = #tpu.pipeline_mode<synchronous>, transform_indices = @transform_13, window_bounds = array<i64: 1, 20>}, {pipeline_mode = #tpu.pipeline_mode<synchronous>, transform_indices = @transform_14, window_bounds = array<i64: 2, 20>}]} {
    %c0 = arith.constant 0 : index
    %c0_0 = arith.constant 0 : index
    %0 = vector.load %arg1[%c0, %c0_0] : memref<6x1024xf32, #tpu.memory_space<vmem>>, vector<6x1024xf32>
    %cst = arith.constant 0.000000e+00 : f32
    %1 = vector.broadcast %cst : f32 to vector<12x892xf32>
    %c0_1 = arith.constant 0 : index
    %c0_2 = arith.constant 0 : index
    %c0_3 = arith.constant 0 : index
    %2 = vector.load %arg2[%c0_1, %c0_2, %c0_3] : memref<25x12x6xf32, #tpu.memory_space<vmem>>, vector<1x12x6xf32>
    %3 = vector.shape_cast %2 : vector<1x12x6xf32> to vector<12x6xf32>
    %4 = vector.extract_strided_slice %0 {offsets = [0, 0], sizes = [6, 892], strides = [1, 1]} : vector<6x1024xf32> to vector<6x892xf32>
    %cst_4 = arith.constant dense<0.000000e+00> : vector<12x892xf32>
    %5 = tpu.matmul %3, %4, %cst_4 {dimension_numbers = #tpu.dot_dimension_numbers<[1], [0], [0], [1], [0, 0, 1, 1], [], []>} : vector<12x6xf32>, vector<6x892xf32>, vector<12x892xf32> -> vector<12x892xf32>
    %6 = arith.addf %1, %5 : vector<12x892xf32>
    %c1 = arith.constant 1 : index
    %c0_5 = arith.constant 0 : index
    %c0_6 = arith.constant 0 : index
    %7 = vector.load %arg2[%c1, %c0_5, %c0_6] : memref<25x12x6xf32, #tpu.memory_space<vmem>>, vector<1x12x6xf32>
    %8 = vector.shape_cast %7 : vector<1x12x6xf32> to vector<12x6xf32>
    %9 = vector.extract_strided_slice %0 {offsets = [0, 1], sizes = [6, 892], strides = [1, 1]} : vector<6x1024xf32> to vector<6x892xf32>
    %cst_7 = arith.constant dense<0.000000e+00> : vector<12x892xf32>
    %10 = tpu.matmul %8, %9, %cst_7 {dimension_numbers = #tpu.dot_dimension_numbers<[1], [0], [0], [1], [0, 0, 1, 1], [], []>} : vector<12x6xf32>, vector<6x892xf32>, vector<12x892xf32> -> vector<12x892xf32>
    %11 = arith.addf %6, %10 : vector<12x892xf32>
    %c2 = arith.constant 2 : index
    %c0_8 = arith.constant 0 : index
    %c0_9 = arith.constant 0 : index
    %12 = vector.load %arg2[%c2, %c0_8, %c0_9] : memref<25x12x6xf32, #tpu.memory_space<vmem>>, vector<1x12x6xf32>
    %13 = vector.shape_cast %12 : vector<1x12x6xf32> to vector<12x6xf32>
    %14 = vector.extract_strided_slice %0 {offsets = [0, 2], sizes = [6, 892], strides = [1, 1]} : vector<6x1024xf32> to vector<6x892xf32>
    %cst_10 = arith.constant dense<0.000000e+00> : vector<12x892xf32>
    %15 = tpu.matmul %13, %14, %cst_10 {dimension_numbers = #tpu.dot_dimension_numbers<[1], [0], [0], [1], [0, 0, 1, 1], [], []>} : vector<12x6xf32>, vector<6x892xf32>, vector<12x892xf32> -> vector<12x892xf32>
    %16 = arith.addf %11, %15 : vector<12x892xf32>
    %c3 = arith.constant 3 : index
    %c0_11 = arith.constant 0 : index
    %c0_12 = arith.constant 0 : index
    %17 = vector.load %arg2[%c3, %c0_11, %c0_12] : memref<25x12x6xf32, #tpu.memory_space<vmem>>, vector<1x12x6xf32>
    %18 = vector.shape_cast %17 : vector<1x12x6xf32> to vector<12x6xf32>
    %19 = vector.extract_strided_slice %0 {offsets = [0, 3], sizes = [6, 892], strides = [1, 1]} : vector<6x1024xf32> to vector<6x892xf32>
    %cst_13 = arith.constant dense<0.000000e+00> : vector<12x892xf32>
    %20 = tpu.matmul %18, %19, %cst_13 {dimension_numbers = #tpu.dot_dimension_numbers<[1], [0], [0], [1], [0, 0, 1, 1], [], []>} : vector<12x6xf32>, vector<6x892xf32>, vector<12x892xf32> -> vector<12x892xf32>
    %21 = arith.addf %16, %20 : vector<12x892xf32>
    %c4 = arith.constant 4 : index
    %c0_14 = arith.constant 0 : index
    %c0_15 = arith.constant 0 : index
    %22 = vector.load %arg2[%c4, %c0_14, %c0_15] : memref<25x12x6xf32, #tpu.memory_space<vmem>>, vector<1x12x6xf32>
    %23 = vector.shape_cast %22 : vector<1x12x6xf32> to vector<12x6xf32>
    %24 = vector.extract_strided_slice %0 {offsets = [0, 4], sizes = [6, 892], strides = [1, 1]} : vector<6x1024xf32> to vector<6x892xf32>
    %cst_16 = arith.constant dense<0.000000e+00> : vector<12x892xf32>
    %25 = tpu.matmul %23, %24, %cst_16 {dimension_numbers = #tpu.dot_dimension_numbers<[1], [0], [0], [1], [0, 0, 1, 1], [], []>} : vector<12x6xf32>, vector<6x892xf32>, vector<12x892xf32> -> vector<12x892xf32>
    %26 = arith.addf %21, %25 : vector<12x892xf32>
    %c5 = arith.constant 5 : index
    %c0_17 = arith.constant 0 : index
    %c0_18 = arith.constant 0 : index
    %27 = vector.load %arg2[%c5, %c0_17, %c0_18] : memref<25x12x6xf32, #tpu.memory_space<vmem>>, vector<1x12x6xf32>
    %28 = vector.shape_cast %27 : vector<1x12x6xf32> to vector<12x6xf32>
    %29 = vector.extract_strided_slice %0 {offsets = [0, 32], sizes = [6, 892], strides = [1, 1]} : vector<6x1024xf32> to vector<6x892xf32>
    %cst_19 = arith.constant dense<0.000000e+00> : vector<12x892xf32>
    %30 = tpu.matmul %28, %29, %cst_19 {dimension_numbers = #tpu.dot_dimension_numbers<[1], [0], [0], [1], [0, 0, 1, 1], [], []>} : vector<12x6xf32>, vector<6x892xf32>, vector<12x892xf32> -> vector<12x892xf32>
    %31 = arith.addf %26, %30 : vector<12x892xf32>
    %c6 = arith.constant 6 : index
    %c0_20 = arith.constant 0 : index
    %c0_21 = arith.constant 0 : index
    %32 = vector.load %arg2[%c6, %c0_20, %c0_21] : memref<25x12x6xf32, #tpu.memory_space<vmem>>, vector<1x12x6xf32>
    %33 = vector.shape_cast %32 : vector<1x12x6xf32> to vector<12x6xf32>
    %34 = vector.extract_strided_slice %0 {offsets = [0, 33], sizes = [6, 892], strides = [1, 1]} : vector<6x1024xf32> to vector<6x892xf32>
    %cst_22 = arith.constant dense<0.000000e+00> : vector<12x892xf32>
    %35 = tpu.matmul %33, %34, %cst_22 {dimension_numbers = #tpu.dot_dimension_numbers<[1], [0], [0], [1], [0, 0, 1, 1], [], []>} : vector<12x6xf32>, vector<6x892xf32>, vector<12x892xf32> -> vector<12x892xf32>
    %36 = arith.addf %31, %35 : vector<12x892xf32>
    %c7 = arith.constant 7 : index
    %c0_23 = arith.constant 0 : index
    %c0_24 = arith.constant 0 : index
    %37 = vector.load %arg2[%c7, %c0_23, %c0_24] : memref<25x12x6xf32, #tpu.memory_space<vmem>>, vector<1x12x6xf32>
    %38 = vector.shape_cast %37 : vector<1x12x6xf32> to vector<12x6xf32>
    %39 = vector.extract_strided_slice %0 {offsets = [0, 34], sizes = [6, 892], strides = [1, 1]} : vector<6x1024xf32> to vector<6x892xf32>
    %cst_25 = arith.constant dense<0.000000e+00> : vector<12x892xf32>
    %40 = tpu.matmul %38, %39, %cst_25 {dimension_numbers = #tpu.dot_dimension_numbers<[1], [0], [0], [1], [0, 0, 1, 1], [], []>} : vector<12x6xf32>, vector<6x892xf32>, vector<12x892xf32> -> vector<12x892xf32>
    %41 = arith.addf %36, %40 : vector<12x892xf32>
    %c8 = arith.constant 8 : index
    %c0_26 = arith.constant 0 : index
    %c0_27 = arith.constant 0 : index
    %42 = vector.load %arg2[%c8, %c0_26, %c0_27] : memref<25x12x6xf32, #tpu.memory_space<vmem>>, vector<1x12x6xf32>
    %43 = vector.shape_cast %42 : vector<1x12x6xf32> to vector<12x6xf32>
    %44 = vector.extract_strided_slice %0 {offsets = [0, 35], sizes = [6, 892], strides = [1, 1]} : vector<6x1024xf32> to vector<6x892xf32>
    %cst_28 = arith.constant dense<0.000000e+00> : vector<12x892xf32>
    %45 = tpu.matmul %43, %44, %cst_28 {dimension_numbers = #tpu.dot_dimension_numbers<[1], [0], [0], [1], [0, 0, 1, 1], [], []>} : vector<12x6xf32>, vector<6x892xf32>, vector<12x892xf32> -> vector<12x892xf32>
    %46 = arith.addf %41, %45 : vector<12x892xf32>
    %c9 = arith.constant 9 : index
    %c0_29 = arith.constant 0 : index
    %c0_30 = arith.constant 0 : index
    %47 = vector.load %arg2[%c9, %c0_29, %c0_30] : memref<25x12x6xf32, #tpu.memory_space<vmem>>, vector<1x12x6xf32>
    %48 = vector.shape_cast %47 : vector<1x12x6xf32> to vector<12x6xf32>
    %49 = vector.extract_strided_slice %0 {offsets = [0, 36], sizes = [6, 892], strides = [1, 1]} : vector<6x1024xf32> to vector<6x892xf32>
    %cst_31 = arith.constant dense<0.000000e+00> : vector<12x892xf32>
    %50 = tpu.matmul %48, %49, %cst_31 {dimension_numbers = #tpu.dot_dimension_numbers<[1], [0], [0], [1], [0, 0, 1, 1], [], []>} : vector<12x6xf32>, vector<6x892xf32>, vector<12x892xf32> -> vector<12x892xf32>
    %51 = arith.addf %46, %50 : vector<12x892xf32>
    %c10 = arith.constant 10 : index
    %c0_32 = arith.constant 0 : index
    %c0_33 = arith.constant 0 : index
    %52 = vector.load %arg2[%c10, %c0_32, %c0_33] : memref<25x12x6xf32, #tpu.memory_space<vmem>>, vector<1x12x6xf32>
    %53 = vector.shape_cast %52 : vector<1x12x6xf32> to vector<12x6xf32>
    %54 = vector.extract_strided_slice %0 {offsets = [0, 64], sizes = [6, 892], strides = [1, 1]} : vector<6x1024xf32> to vector<6x892xf32>
    %cst_34 = arith.constant dense<0.000000e+00> : vector<12x892xf32>
    %55 = tpu.matmul %53, %54, %cst_34 {dimension_numbers = #tpu.dot_dimension_numbers<[1], [0], [0], [1], [0, 0, 1, 1], [], []>} : vector<12x6xf32>, vector<6x892xf32>, vector<12x892xf32> -> vector<12x892xf32>
    %56 = arith.addf %51, %55 : vector<12x892xf32>
    %c11 = arith.constant 11 : index
    %c0_35 = arith.constant 0 : index
    %c0_36 = arith.constant 0 : index
    %57 = vector.load %arg2[%c11, %c0_35, %c0_36] : memref<25x12x6xf32, #tpu.memory_space<vmem>>, vector<1x12x6xf32>
    %58 = vector.shape_cast %57 : vector<1x12x6xf32> to vector<12x6xf32>
    %59 = vector.extract_strided_slice %0 {offsets = [0, 65], sizes = [6, 892], strides = [1, 1]} : vector<6x1024xf32> to vector<6x892xf32>
    %cst_37 = arith.constant dense<0.000000e+00> : vector<12x892xf32>
    %60 = tpu.matmul %58, %59, %cst_37 {dimension_numbers = #tpu.dot_dimension_numbers<[1], [0], [0], [1], [0, 0, 1, 1], [], []>} : vector<12x6xf32>, vector<6x892xf32>, vector<12x892xf32> -> vector<12x892xf32>
    %61 = arith.addf %56, %60 : vector<12x892xf32>
    %c12 = arith.constant 12 : index
    %c0_38 = arith.constant 0 : index
    %c0_39 = arith.constant 0 : index
    %62 = vector.load %arg2[%c12, %c0_38, %c0_39] : memref<25x12x6xf32, #tpu.memory_space<vmem>>, vector<1x12x6xf32>
    %63 = vector.shape_cast %62 : vector<1x12x6xf32> to vector<12x6xf32>
    %64 = vector.extract_strided_slice %0 {offsets = [0, 66], sizes = [6, 892], strides = [1, 1]} : vector<6x1024xf32> to vector<6x892xf32>
    %cst_40 = arith.constant dense<0.000000e+00> : vector<12x892xf32>
    %65 = tpu.matmul %63, %64, %cst_40 {dimension_numbers = #tpu.dot_dimension_numbers<[1], [0], [0], [1], [0, 0, 1, 1], [], []>} : vector<12x6xf32>, vector<6x892xf32>, vector<12x892xf32> -> vector<12x892xf32>
    %66 = arith.addf %61, %65 : vector<12x892xf32>
    %c13 = arith.constant 13 : index
    %c0_41 = arith.constant 0 : index
    %c0_42 = arith.constant 0 : index
    %67 = vector.load %arg2[%c13, %c0_41, %c0_42] : memref<25x12x6xf32, #tpu.memory_space<vmem>>, vector<1x12x6xf32>
    %68 = vector.shape_cast %67 : vector<1x12x6xf32> to vector<12x6xf32>
    %69 = vector.extract_strided_slice %0 {offsets = [0, 67], sizes = [6, 892], strides = [1, 1]} : vector<6x1024xf32> to vector<6x892xf32>
    %cst_43 = arith.constant dense<0.000000e+00> : vector<12x892xf32>
    %70 = tpu.matmul %68, %69, %cst_43 {dimension_numbers = #tpu.dot_dimension_numbers<[1], [0], [0], [1], [0, 0, 1, 1], [], []>} : vector<12x6xf32>, vector<6x892xf32>, vector<12x892xf32> -> vector<12x892xf32>
    %71 = arith.addf %66, %70 : vector<12x892xf32>
    %c14 = arith.constant 14 : index
    %c0_44 = arith.constant 0 : index
    %c0_45 = arith.constant 0 : index
    %72 = vector.load %arg2[%c14, %c0_44, %c0_45] : memref<25x12x6xf32, #tpu.memory_space<vmem>>, vector<1x12x6xf32>
    %73 = vector.shape_cast %72 : vector<1x12x6xf32> to vector<12x6xf32>
    %74 = vector.extract_strided_slice %0 {offsets = [0, 68], sizes = [6, 892], strides = [1, 1]} : vector<6x1024xf32> to vector<6x892xf32>
    %cst_46 = arith.constant dense<0.000000e+00> : vector<12x892xf32>
    %75 = tpu.matmul %73, %74, %cst_46 {dimension_numbers = #tpu.dot_dimension_numbers<[1], [0], [0], [1], [0, 0, 1, 1], [], []>} : vector<12x6xf32>, vector<6x892xf32>, vector<12x892xf32> -> vector<12x892xf32>
    %76 = arith.addf %71, %75 : vector<12x892xf32>
    %c15 = arith.constant 15 : index
    %c0_47 = arith.constant 0 : index
    %c0_48 = arith.constant 0 : index
    %77 = vector.load %arg2[%c15, %c0_47, %c0_48] : memref<25x12x6xf32, #tpu.memory_space<vmem>>, vector<1x12x6xf32>
    %78 = vector.shape_cast %77 : vector<1x12x6xf32> to vector<12x6xf32>
    %79 = vector.extract_strided_slice %0 {offsets = [0, 96], sizes = [6, 892], strides = [1, 1]} : vector<6x1024xf32> to vector<6x892xf32>
    %cst_49 = arith.constant dense<0.000000e+00> : vector<12x892xf32>
    %80 = tpu.matmul %78, %79, %cst_49 {dimension_numbers = #tpu.dot_dimension_numbers<[1], [0], [0], [1], [0, 0, 1, 1], [], []>} : vector<12x6xf32>, vector<6x892xf32>, vector<12x892xf32> -> vector<12x892xf32>
    %81 = arith.addf %76, %80 : vector<12x892xf32>
    %c16 = arith.constant 16 : index
    %c0_50 = arith.constant 0 : index
    %c0_51 = arith.constant 0 : index
    %82 = vector.load %arg2[%c16, %c0_50, %c0_51] : memref<25x12x6xf32, #tpu.memory_space<vmem>>, vector<1x12x6xf32>
    %83 = vector.shape_cast %82 : vector<1x12x6xf32> to vector<12x6xf32>
    %84 = vector.extract_strided_slice %0 {offsets = [0, 97], sizes = [6, 892], strides = [1, 1]} : vector<6x1024xf32> to vector<6x892xf32>
    %cst_52 = arith.constant dense<0.000000e+00> : vector<12x892xf32>
    %85 = tpu.matmul %83, %84, %cst_52 {dimension_numbers = #tpu.dot_dimension_numbers<[1], [0], [0], [1], [0, 0, 1, 1], [], []>} : vector<12x6xf32>, vector<6x892xf32>, vector<12x892xf32> -> vector<12x892xf32>
    %86 = arith.addf %81, %85 : vector<12x892xf32>
    %c17 = arith.constant 17 : index
    %c0_53 = arith.constant 0 : index
    %c0_54 = arith.constant 0 : index
    %87 = vector.load %arg2[%c17, %c0_53, %c0_54] : memref<25x12x6xf32, #tpu.memory_space<vmem>>, vector<1x12x6xf32>
    %88 = vector.shape_cast %87 : vector<1x12x6xf32> to vector<12x6xf32>
    %89 = vector.extract_strided_slice %0 {offsets = [0, 98], sizes = [6, 892], strides = [1, 1]} : vector<6x1024xf32> to vector<6x892xf32>
    %cst_55 = arith.constant dense<0.000000e+00> : vector<12x892xf32>
    %90 = tpu.matmul %88, %89, %cst_55 {dimension_numbers = #tpu.dot_dimension_numbers<[1], [0], [0], [1], [0, 0, 1, 1], [], []>} : vector<12x6xf32>, vector<6x892xf32>, vector<12x892xf32> -> vector<12x892xf32>
    %91 = arith.addf %86, %90 : vector<12x892xf32>
    %c18 = arith.constant 18 : index
    %c0_56 = arith.constant 0 : index
    %c0_57 = arith.constant 0 : index
    %92 = vector.load %arg2[%c18, %c0_56, %c0_57] : memref<25x12x6xf32, #tpu.memory_space<vmem>>, vector<1x12x6xf32>
    %93 = vector.shape_cast %92 : vector<1x12x6xf32> to vector<12x6xf32>
    %94 = vector.extract_strided_slice %0 {offsets = [0, 99], sizes = [6, 892], strides = [1, 1]} : vector<6x1024xf32> to vector<6x892xf32>
    %cst_58 = arith.constant dense<0.000000e+00> : vector<12x892xf32>
    %95 = tpu.matmul %93, %94, %cst_58 {dimension_numbers = #tpu.dot_dimension_numbers<[1], [0], [0], [1], [0, 0, 1, 1], [], []>} : vector<12x6xf32>, vector<6x892xf32>, vector<12x892xf32> -> vector<12x892xf32>
    %96 = arith.addf %91, %95 : vector<12x892xf32>
    %c19 = arith.constant 19 : index
    %c0_59 = arith.constant 0 : index
    %c0_60 = arith.constant 0 : index
    %97 = vector.load %arg2[%c19, %c0_59, %c0_60] : memref<25x12x6xf32, #tpu.memory_space<vmem>>, vector<1x12x6xf32>
    %98 = vector.shape_cast %97 : vector<1x12x6xf32> to vector<12x6xf32>
    %99 = vector.extract_strided_slice %0 {offsets = [0, 100], sizes = [6, 892], strides = [1, 1]} : vector<6x1024xf32> to vector<6x892xf32>
    %cst_61 = arith.constant dense<0.000000e+00> : vector<12x892xf32>
    %100 = tpu.matmul %98, %99, %cst_61 {dimension_numbers = #tpu.dot_dimension_numbers<[1], [0], [0], [1], [0, 0, 1, 1], [], []>} : vector<12x6xf32>, vector<6x892xf32>, vector<12x892xf32> -> vector<12x892xf32>
    %101 = arith.addf %96, %100 : vector<12x892xf32>
    %c20 = arith.constant 20 : index
    %c0_62 = arith.constant 0 : index
    %c0_63 = arith.constant 0 : index
    %102 = vector.load %arg2[%c20, %c0_62, %c0_63] : memref<25x12x6xf32, #tpu.memory_space<vmem>>, vector<1x12x6xf32>
    %103 = vector.shape_cast %102 : vector<1x12x6xf32> to vector<12x6xf32>
    %104 = vector.extract_strided_slice %0 {offsets = [0, 128], sizes = [6, 892], strides = [1, 1]} : vector<6x1024xf32> to vector<6x892xf32>
    %cst_64 = arith.constant dense<0.000000e+00> : vector<12x892xf32>
    %105 = tpu.matmul %103, %104, %cst_64 {dimension_numbers = #tpu.dot_dimension_numbers<[1], [0], [0], [1], [0, 0, 1, 1], [], []>} : vector<12x6xf32>, vector<6x892xf32>, vector<12x892xf32> -> vector<12x892xf32>
    %106 = arith.addf %101, %105 : vector<12x892xf32>
    %c21 = arith.constant 21 : index
    %c0_65 = arith.constant 0 : index
    %c0_66 = arith.constant 0 : index
    %107 = vector.load %arg2[%c21, %c0_65, %c0_66] : memref<25x12x6xf32, #tpu.memory_space<vmem>>, vector<1x12x6xf32>
    %108 = vector.shape_cast %107 : vector<1x12x6xf32> to vector<12x6xf32>
    %109 = vector.extract_strided_slice %0 {offsets = [0, 129], sizes = [6, 892], strides = [1, 1]} : vector<6x1024xf32> to vector<6x892xf32>
    %cst_67 = arith.constant dense<0.000000e+00> : vector<12x892xf32>
    %110 = tpu.matmul %108, %109, %cst_67 {dimension_numbers = #tpu.dot_dimension_numbers<[1], [0], [0], [1], [0, 0, 1, 1], [], []>} : vector<12x6xf32>, vector<6x892xf32>, vector<12x892xf32> -> vector<12x892xf32>
    %111 = arith.addf %106, %110 : vector<12x892xf32>
    %c22 = arith.constant 22 : index
    %c0_68 = arith.constant 0 : index
    %c0_69 = arith.constant 0 : index
    %112 = vector.load %arg2[%c22, %c0_68, %c0_69] : memref<25x12x6xf32, #tpu.memory_space<vmem>>, vector<1x12x6xf32>
    %113 = vector.shape_cast %112 : vector<1x12x6xf32> to vector<12x6xf32>
    %114 = vector.extract_strided_slice %0 {offsets = [0, 130], sizes = [6, 892], strides = [1, 1]} : vector<6x1024xf32> to vector<6x892xf32>
    %cst_70 = arith.constant dense<0.000000e+00> : vector<12x892xf32>
    %115 = tpu.matmul %113, %114, %cst_70 {dimension_numbers = #tpu.dot_dimension_numbers<[1], [0], [0], [1], [0, 0, 1, 1], [], []>} : vector<12x6xf32>, vector<6x892xf32>, vector<12x892xf32> -> vector<12x892xf32>
    %116 = arith.addf %111, %115 : vector<12x892xf32>
    %c23 = arith.constant 23 : index
    %c0_71 = arith.constant 0 : index
    %c0_72 = arith.constant 0 : index
    %117 = vector.load %arg2[%c23, %c0_71, %c0_72] : memref<25x12x6xf32, #tpu.memory_space<vmem>>, vector<1x12x6xf32>
    %118 = vector.shape_cast %117 : vector<1x12x6xf32> to vector<12x6xf32>
    %119 = vector.extract_strided_slice %0 {offsets = [0, 131], sizes = [6, 892], strides = [1, 1]} : vector<6x1024xf32> to vector<6x892xf32>
    %cst_73 = arith.constant dense<0.000000e+00> : vector<12x892xf32>
    %120 = tpu.matmul %118, %119, %cst_73 {dimension_numbers = #tpu.dot_dimension_numbers<[1], [0], [0], [1], [0, 0, 1, 1], [], []>} : vector<12x6xf32>, vector<6x892xf32>, vector<12x892xf32> -> vector<12x892xf32>
    %121 = arith.addf %116, %120 : vector<12x892xf32>
    %c24 = arith.constant 24 : index
    %c0_74 = arith.constant 0 : index
    %c0_75 = arith.constant 0 : index
    %122 = vector.load %arg2[%c24, %c0_74, %c0_75] : memref<25x12x6xf32, #tpu.memory_space<vmem>>, vector<1x12x6xf32>
    %123 = vector.shape_cast %122 : vector<1x12x6xf32> to vector<12x6xf32>
    %124 = vector.extract_strided_slice %0 {offsets = [0, 132], sizes = [6, 892], strides = [1, 1]} : vector<6x1024xf32> to vector<6x892xf32>
    %cst_76 = arith.constant dense<0.000000e+00> : vector<12x892xf32>
    %125 = tpu.matmul %123, %124, %cst_76 {dimension_numbers = #tpu.dot_dimension_numbers<[1], [0], [0], [1], [0, 0, 1, 1], [], []>} : vector<12x6xf32>, vector<6x892xf32>, vector<12x892xf32> -> vector<12x892xf32>
    %126 = arith.addf %121, %125 : vector<12x892xf32>
    %c0_77 = arith.constant 0 : index
    %c0_78 = arith.constant 0 : index
    %127 = vector.load %arg3[%c0_77, %c0_78] : memref<12x1xf32, #tpu.memory_space<vmem>>, vector<12x1xf32>
    %128 = vector.broadcast %127 : vector<12x1xf32> to vector<12x892xf32>
    %129 = arith.addf %126, %128 : vector<12x892xf32>
    %cst_79 = arith.constant 0.000000e+00 : f32
    %130 = vector.broadcast %cst_79 : f32 to vector<12x892xf32>
    %131 = arith.cmpf ogt, %129, %130 : vector<12x892xf32>
    %cst_80 = arith.constant 0.000000e+00 : f32
    %132 = vector.broadcast %cst_80 : f32 to vector<12x892xf32>
    %133 = arith.minimumf %129, %132 : vector<12x892xf32>
    %134 = math.exp %133 : vector<12x892xf32>
    %cst_81 = arith.constant 1.000000e+00 : f32
    %135 = vector.broadcast %cst_81 : f32 to vector<12x892xf32>
    %136 = arith.subf %134, %135 : vector<12x892xf32>
    %cst_82 = arith.constant 1.67326319 : f32
    %137 = vector.broadcast %cst_82 : f32 to vector<12x892xf32>
    %138 = arith.mulf %137, %136 : vector<12x892xf32>
    %139 = arith.select %131, %129, %138 : vector<12x892xi1>, vector<12x892xf32>
    %cst_83 = arith.constant 1.05070102 : f32
    %140 = vector.broadcast %cst_83 : f32 to vector<12x892xf32>
    %141 = arith.mulf %140, %139 : vector<12x892xf32>
    %142 = vector.extract_strided_slice %141 {offsets = [0, 0], sizes = [12, 859], strides = [1, 1]} : vector<12x892xf32> to vector<12x859xf32>
    %143 = vector.extract_strided_slice %141 {offsets = [0, 1], sizes = [12, 859], strides = [1, 1]} : vector<12x892xf32> to vector<12x859xf32>
    %144 = arith.maximumf %142, %143 : vector<12x859xf32>
    %145 = vector.extract_strided_slice %141 {offsets = [0, 32], sizes = [12, 859], strides = [1, 1]} : vector<12x892xf32> to vector<12x859xf32>
    %146 = vector.extract_strided_slice %141 {offsets = [0, 33], sizes = [12, 859], strides = [1, 1]} : vector<12x892xf32> to vector<12x859xf32>
    %147 = arith.maximumf %145, %146 : vector<12x859xf32>
    %148 = arith.maximumf %144, %147 : vector<12x859xf32>
    %cst_84 = arith.constant 0.000000e+00 : f32
    %149 = vector.broadcast %cst_84 : f32 to vector<32x595xf32>
    %c0_85 = arith.constant 0 : index
    %c0_86 = arith.constant 0 : index
    %c0_87 = arith.constant 0 : index
    %150 = vector.load %arg4[%c0_85, %c0_86, %c0_87] : memref<25x32x12xf32, #tpu.memory_space<vmem>>, vector<1x32x12xf32>
    %151 = vector.shape_cast %150 : vector<1x32x12xf32> to vector<32x12xf32>
    %152 = vector.extract_strided_slice %148 {offsets = [0, 0], sizes = [12, 595], strides = [1, 1]} : vector<12x859xf32> to vector<12x595xf32>
    %cst_88 = arith.constant dense<0.000000e+00> : vector<32x595xf32>
    %153 = tpu.matmul %151, %152, %cst_88 {dimension_numbers = #tpu.dot_dimension_numbers<[1], [0], [0], [1], [0, 0, 1, 1], [], []>} : vector<32x12xf32>, vector<12x595xf32>, vector<32x595xf32> -> vector<32x595xf32>
    %154 = arith.addf %149, %153 : vector<32x595xf32>
    %c1_89 = arith.constant 1 : index
    %c0_90 = arith.constant 0 : index
    %c0_91 = arith.constant 0 : index
    %155 = vector.load %arg4[%c1_89, %c0_90, %c0_91] : memref<25x32x12xf32, #tpu.memory_space<vmem>>, vector<1x32x12xf32>
    %156 = vector.shape_cast %155 : vector<1x32x12xf32> to vector<32x12xf32>
    %157 = vector.extract_strided_slice %148 {offsets = [0, 2], sizes = [12, 595], strides = [1, 1]} : vector<12x859xf32> to vector<12x595xf32>
    %cst_92 = arith.constant dense<0.000000e+00> : vector<32x595xf32>
    %158 = tpu.matmul %156, %157, %cst_92 {dimension_numbers = #tpu.dot_dimension_numbers<[1], [0], [0], [1], [0, 0, 1, 1], [], []>} : vector<32x12xf32>, vector<12x595xf32>, vector<32x595xf32> -> vector<32x595xf32>
    %159 = arith.addf %154, %158 : vector<32x595xf32>
    %c2_93 = arith.constant 2 : index
    %c0_94 = arith.constant 0 : index
    %c0_95 = arith.constant 0 : index
    %160 = vector.load %arg4[%c2_93, %c0_94, %c0_95] : memref<25x32x12xf32, #tpu.memory_space<vmem>>, vector<1x32x12xf32>
    %161 = vector.shape_cast %160 : vector<1x32x12xf32> to vector<32x12xf32>
    %162 = vector.extract_strided_slice %148 {offsets = [0, 4], sizes = [12, 595], strides = [1, 1]} : vector<12x859xf32> to vector<12x595xf32>
    %cst_96 = arith.constant dense<0.000000e+00> : vector<32x595xf32>
    %163 = tpu.matmul %161, %162, %cst_96 {dimension_numbers = #tpu.dot_dimension_numbers<[1], [0], [0], [1], [0, 0, 1, 1], [], []>} : vector<32x12xf32>, vector<12x595xf32>, vector<32x595xf32> -> vector<32x595xf32>
    %164 = arith.addf %159, %163 : vector<32x595xf32>
    %c3_97 = arith.constant 3 : index
    %c0_98 = arith.constant 0 : index
    %c0_99 = arith.constant 0 : index
    %165 = vector.load %arg4[%c3_97, %c0_98, %c0_99] : memref<25x32x12xf32, #tpu.memory_space<vmem>>, vector<1x32x12xf32>
    %166 = vector.shape_cast %165 : vector<1x32x12xf32> to vector<32x12xf32>
    %167 = vector.extract_strided_slice %148 {offsets = [0, 6], sizes = [12, 595], strides = [1, 1]} : vector<12x859xf32> to vector<12x595xf32>
    %cst_100 = arith.constant dense<0.000000e+00> : vector<32x595xf32>
    %168 = tpu.matmul %166, %167, %cst_100 {dimension_numbers = #tpu.dot_dimension_numbers<[1], [0], [0], [1], [0, 0, 1, 1], [], []>} : vector<32x12xf32>, vector<12x595xf32>, vector<32x595xf32> -> vector<32x595xf32>
    %169 = arith.addf %164, %168 : vector<32x595xf32>
    %c4_101 = arith.constant 4 : index
    %c0_102 = arith.constant 0 : index
    %c0_103 = arith.constant 0 : index
    %170 = vector.load %arg4[%c4_101, %c0_102, %c0_103] : memref<25x32x12xf32, #tpu.memory_space<vmem>>, vector<1x32x12xf32>
    %171 = vector.shape_cast %170 : vector<1x32x12xf32> to vector<32x12xf32>
    %172 = vector.extract_strided_slice %148 {offsets = [0, 8], sizes = [12, 595], strides = [1, 1]} : vector<12x859xf32> to vector<12x595xf32>
    %cst_104 = arith.constant dense<0.000000e+00> : vector<32x595xf32>
    %173 = tpu.matmul %171, %172, %cst_104 {dimension_numbers = #tpu.dot_dimension_numbers<[1], [0], [0], [1], [0, 0, 1, 1], [], []>} : vector<32x12xf32>, vector<12x595xf32>, vector<32x595xf32> -> vector<32x595xf32>
    %174 = arith.addf %169, %173 : vector<32x595xf32>
    %c5_105 = arith.constant 5 : index
    %c0_106 = arith.constant 0 : index
    %c0_107 = arith.constant 0 : index
    %175 = vector.load %arg4[%c5_105, %c0_106, %c0_107] : memref<25x32x12xf32, #tpu.memory_space<vmem>>, vector<1x32x12xf32>
    %176 = vector.shape_cast %175 : vector<1x32x12xf32> to vector<32x12xf32>
    %177 = vector.extract_strided_slice %148 {offsets = [0, 64], sizes = [12, 595], strides = [1, 1]} : vector<12x859xf32> to vector<12x595xf32>
    %cst_108 = arith.constant dense<0.000000e+00> : vector<32x595xf32>
    %178 = tpu.matmul %176, %177, %cst_108 {dimension_numbers = #tpu.dot_dimension_numbers<[1], [0], [0], [1], [0, 0, 1, 1], [], []>} : vector<32x12xf32>, vector<12x595xf32>, vector<32x595xf32> -> vector<32x595xf32>
    %179 = arith.addf %174, %178 : vector<32x595xf32>
    %c6_109 = arith.constant 6 : index
    %c0_110 = arith.constant 0 : index
    %c0_111 = arith.constant 0 : index
    %180 = vector.load %arg4[%c6_109, %c0_110, %c0_111] : memref<25x32x12xf32, #tpu.memory_space<vmem>>, vector<1x32x12xf32>
    %181 = vector.shape_cast %180 : vector<1x32x12xf32> to vector<32x12xf32>
    %182 = vector.extract_strided_slice %148 {offsets = [0, 66], sizes = [12, 595], strides = [1, 1]} : vector<12x859xf32> to vector<12x595xf32>
    %cst_112 = arith.constant dense<0.000000e+00> : vector<32x595xf32>
    %183 = tpu.matmul %181, %182, %cst_112 {dimension_numbers = #tpu.dot_dimension_numbers<[1], [0], [0], [1], [0, 0, 1, 1], [], []>} : vector<32x12xf32>, vector<12x595xf32>, vector<32x595xf32> -> vector<32x595xf32>
    %184 = arith.addf %179, %183 : vector<32x595xf32>
    %c7_113 = arith.constant 7 : index
    %c0_114 = arith.constant 0 : index
    %c0_115 = arith.constant 0 : index
    %185 = vector.load %arg4[%c7_113, %c0_114, %c0_115] : memref<25x32x12xf32, #tpu.memory_space<vmem>>, vector<1x32x12xf32>
    %186 = vector.shape_cast %185 : vector<1x32x12xf32> to vector<32x12xf32>
    %187 = vector.extract_strided_slice %148 {offsets = [0, 68], sizes = [12, 595], strides = [1, 1]} : vector<12x859xf32> to vector<12x595xf32>
    %cst_116 = arith.constant dense<0.000000e+00> : vector<32x595xf32>
    %188 = tpu.matmul %186, %187, %cst_116 {dimension_numbers = #tpu.dot_dimension_numbers<[1], [0], [0], [1], [0, 0, 1, 1], [], []>} : vector<32x12xf32>, vector<12x595xf32>, vector<32x595xf32> -> vector<32x595xf32>
    %189 = arith.addf %184, %188 : vector<32x595xf32>
    %c8_117 = arith.constant 8 : index
    %c0_118 = arith.constant 0 : index
    %c0_119 = arith.constant 0 : index
    %190 = vector.load %arg4[%c8_117, %c0_118, %c0_119] : memref<25x32x12xf32, #tpu.memory_space<vmem>>, vector<1x32x12xf32>
    %191 = vector.shape_cast %190 : vector<1x32x12xf32> to vector<32x12xf32>
    %192 = vector.extract_strided_slice %148 {offsets = [0, 70], sizes = [12, 595], strides = [1, 1]} : vector<12x859xf32> to vector<12x595xf32>
    %cst_120 = arith.constant dense<0.000000e+00> : vector<32x595xf32>
    %193 = tpu.matmul %191, %192, %cst_120 {dimension_numbers = #tpu.dot_dimension_numbers<[1], [0], [0], [1], [0, 0, 1, 1], [], []>} : vector<32x12xf32>, vector<12x595xf32>, vector<32x595xf32> -> vector<32x595xf32>
    %194 = arith.addf %189, %193 : vector<32x595xf32>
    %c9_121 = arith.constant 9 : index
    %c0_122 = arith.constant 0 : index
    %c0_123 = arith.constant 0 : index
    %195 = vector.load %arg4[%c9_121, %c0_122, %c0_123] : memref<25x32x12xf32, #tpu.memory_space<vmem>>, vector<1x32x12xf32>
    %196 = vector.shape_cast %195 : vector<1x32x12xf32> to vector<32x12xf32>
    %197 = vector.extract_strided_slice %148 {offsets = [0, 72], sizes = [12, 595], strides = [1, 1]} : vector<12x859xf32> to vector<12x595xf32>
    %cst_124 = arith.constant dense<0.000000e+00> : vector<32x595xf32>
    %198 = tpu.matmul %196, %197, %cst_124 {dimension_numbers = #tpu.dot_dimension_numbers<[1], [0], [0], [1], [0, 0, 1, 1], [], []>} : vector<32x12xf32>, vector<12x595xf32>, vector<32x595xf32> -> vector<32x595xf32>
    %199 = arith.addf %194, %198 : vector<32x595xf32>
    %c10_125 = arith.constant 10 : index
    %c0_126 = arith.constant 0 : index
    %c0_127 = arith.constant 0 : index
    %200 = vector.load %arg4[%c10_125, %c0_126, %c0_127] : memref<25x32x12xf32, #tpu.memory_space<vmem>>, vector<1x32x12xf32>
    %201 = vector.shape_cast %200 : vector<1x32x12xf32> to vector<32x12xf32>
    %202 = vector.extract_strided_slice %148 {offsets = [0, 128], sizes = [12, 595], strides = [1, 1]} : vector<12x859xf32> to vector<12x595xf32>
    %cst_128 = arith.constant dense<0.000000e+00> : vector<32x595xf32>
    %203 = tpu.matmul %201, %202, %cst_128 {dimension_numbers = #tpu.dot_dimension_numbers<[1], [0], [0], [1], [0, 0, 1, 1], [], []>} : vector<32x12xf32>, vector<12x595xf32>, vector<32x595xf32> -> vector<32x595xf32>
    %204 = arith.addf %199, %203 : vector<32x595xf32>
    %c11_129 = arith.constant 11 : index
    %c0_130 = arith.constant 0 : index
    %c0_131 = arith.constant 0 : index
    %205 = vector.load %arg4[%c11_129, %c0_130, %c0_131] : memref<25x32x12xf32, #tpu.memory_space<vmem>>, vector<1x32x12xf32>
    %206 = vector.shape_cast %205 : vector<1x32x12xf32> to vector<32x12xf32>
    %207 = vector.extract_strided_slice %148 {offsets = [0, 130], sizes = [12, 595], strides = [1, 1]} : vector<12x859xf32> to vector<12x595xf32>
    %cst_132 = arith.constant dense<0.000000e+00> : vector<32x595xf32>
    %208 = tpu.matmul %206, %207, %cst_132 {dimension_numbers = #tpu.dot_dimension_numbers<[1], [0], [0], [1], [0, 0, 1, 1], [], []>} : vector<32x12xf32>, vector<12x595xf32>, vector<32x595xf32> -> vector<32x595xf32>
    %209 = arith.addf %204, %208 : vector<32x595xf32>
    %c12_133 = arith.constant 12 : index
    %c0_134 = arith.constant 0 : index
    %c0_135 = arith.constant 0 : index
    %210 = vector.load %arg4[%c12_133, %c0_134, %c0_135] : memref<25x32x12xf32, #tpu.memory_space<vmem>>, vector<1x32x12xf32>
    %211 = vector.shape_cast %210 : vector<1x32x12xf32> to vector<32x12xf32>
    %212 = vector.extract_strided_slice %148 {offsets = [0, 132], sizes = [12, 595], strides = [1, 1]} : vector<12x859xf32> to vector<12x595xf32>
    %cst_136 = arith.constant dense<0.000000e+00> : vector<32x595xf32>
    %213 = tpu.matmul %211, %212, %cst_136 {dimension_numbers = #tpu.dot_dimension_numbers<[1], [0], [0], [1], [0, 0, 1, 1], [], []>} : vector<32x12xf32>, vector<12x595xf32>, vector<32x595xf32> -> vector<32x595xf32>
    %214 = arith.addf %209, %213 : vector<32x595xf32>
    %c13_137 = arith.constant 13 : index
    %c0_138 = arith.constant 0 : index
    %c0_139 = arith.constant 0 : index
    %215 = vector.load %arg4[%c13_137, %c0_138, %c0_139] : memref<25x32x12xf32, #tpu.memory_space<vmem>>, vector<1x32x12xf32>
    %216 = vector.shape_cast %215 : vector<1x32x12xf32> to vector<32x12xf32>
    %217 = vector.extract_strided_slice %148 {offsets = [0, 134], sizes = [12, 595], strides = [1, 1]} : vector<12x859xf32> to vector<12x595xf32>
    %cst_140 = arith.constant dense<0.000000e+00> : vector<32x595xf32>
    %218 = tpu.matmul %216, %217, %cst_140 {dimension_numbers = #tpu.dot_dimension_numbers<[1], [0], [0], [1], [0, 0, 1, 1], [], []>} : vector<32x12xf32>, vector<12x595xf32>, vector<32x595xf32> -> vector<32x595xf32>
    %219 = arith.addf %214, %218 : vector<32x595xf32>
    %c14_141 = arith.constant 14 : index
    %c0_142 = arith.constant 0 : index
    %c0_143 = arith.constant 0 : index
    %220 = vector.load %arg4[%c14_141, %c0_142, %c0_143] : memref<25x32x12xf32, #tpu.memory_space<vmem>>, vector<1x32x12xf32>
    %221 = vector.shape_cast %220 : vector<1x32x12xf32> to vector<32x12xf32>
    %222 = vector.extract_strided_slice %148 {offsets = [0, 136], sizes = [12, 595], strides = [1, 1]} : vector<12x859xf32> to vector<12x595xf32>
    %cst_144 = arith.constant dense<0.000000e+00> : vector<32x595xf32>
    %223 = tpu.matmul %221, %222, %cst_144 {dimension_numbers = #tpu.dot_dimension_numbers<[1], [0], [0], [1], [0, 0, 1, 1], [], []>} : vector<32x12xf32>, vector<12x595xf32>, vector<32x595xf32> -> vector<32x595xf32>
    %224 = arith.addf %219, %223 : vector<32x595xf32>
    %c15_145 = arith.constant 15 : index
    %c0_146 = arith.constant 0 : index
    %c0_147 = arith.constant 0 : index
    %225 = vector.load %arg4[%c15_145, %c0_146, %c0_147] : memref<25x32x12xf32, #tpu.memory_space<vmem>>, vector<1x32x12xf32>
    %226 = vector.shape_cast %225 : vector<1x32x12xf32> to vector<32x12xf32>
    %227 = vector.extract_strided_slice %148 {offsets = [0, 192], sizes = [12, 595], strides = [1, 1]} : vector<12x859xf32> to vector<12x595xf32>
    %cst_148 = arith.constant dense<0.000000e+00> : vector<32x595xf32>
    %228 = tpu.matmul %226, %227, %cst_148 {dimension_numbers = #tpu.dot_dimension_numbers<[1], [0], [0], [1], [0, 0, 1, 1], [], []>} : vector<32x12xf32>, vector<12x595xf32>, vector<32x595xf32> -> vector<32x595xf32>
    %229 = arith.addf %224, %228 : vector<32x595xf32>
    %c16_149 = arith.constant 16 : index
    %c0_150 = arith.constant 0 : index
    %c0_151 = arith.constant 0 : index
    %230 = vector.load %arg4[%c16_149, %c0_150, %c0_151] : memref<25x32x12xf32, #tpu.memory_space<vmem>>, vector<1x32x12xf32>
    %231 = vector.shape_cast %230 : vector<1x32x12xf32> to vector<32x12xf32>
    %232 = vector.extract_strided_slice %148 {offsets = [0, 194], sizes = [12, 595], strides = [1, 1]} : vector<12x859xf32> to vector<12x595xf32>
    %cst_152 = arith.constant dense<0.000000e+00> : vector<32x595xf32>
    %233 = tpu.matmul %231, %232, %cst_152 {dimension_numbers = #tpu.dot_dimension_numbers<[1], [0], [0], [1], [0, 0, 1, 1], [], []>} : vector<32x12xf32>, vector<12x595xf32>, vector<32x595xf32> -> vector<32x595xf32>
    %234 = arith.addf %229, %233 : vector<32x595xf32>
    %c17_153 = arith.constant 17 : index
    %c0_154 = arith.constant 0 : index
    %c0_155 = arith.constant 0 : index
    %235 = vector.load %arg4[%c17_153, %c0_154, %c0_155] : memref<25x32x12xf32, #tpu.memory_space<vmem>>, vector<1x32x12xf32>
    %236 = vector.shape_cast %235 : vector<1x32x12xf32> to vector<32x12xf32>
    %237 = vector.extract_strided_slice %148 {offsets = [0, 196], sizes = [12, 595], strides = [1, 1]} : vector<12x859xf32> to vector<12x595xf32>
    %cst_156 = arith.constant dense<0.000000e+00> : vector<32x595xf32>
    %238 = tpu.matmul %236, %237, %cst_156 {dimension_numbers = #tpu.dot_dimension_numbers<[1], [0], [0], [1], [0, 0, 1, 1], [], []>} : vector<32x12xf32>, vector<12x595xf32>, vector<32x595xf32> -> vector<32x595xf32>
    %239 = arith.addf %234, %238 : vector<32x595xf32>
    %c18_157 = arith.constant 18 : index
    %c0_158 = arith.constant 0 : index
    %c0_159 = arith.constant 0 : index
    %240 = vector.load %arg4[%c18_157, %c0_158, %c0_159] : memref<25x32x12xf32, #tpu.memory_space<vmem>>, vector<1x32x12xf32>
    %241 = vector.shape_cast %240 : vector<1x32x12xf32> to vector<32x12xf32>
    %242 = vector.extract_strided_slice %148 {offsets = [0, 198], sizes = [12, 595], strides = [1, 1]} : vector<12x859xf32> to vector<12x595xf32>
    %cst_160 = arith.constant dense<0.000000e+00> : vector<32x595xf32>
    %243 = tpu.matmul %241, %242, %cst_160 {dimension_numbers = #tpu.dot_dimension_numbers<[1], [0], [0], [1], [0, 0, 1, 1], [], []>} : vector<32x12xf32>, vector<12x595xf32>, vector<32x595xf32> -> vector<32x595xf32>
    %244 = arith.addf %239, %243 : vector<32x595xf32>
    %c19_161 = arith.constant 19 : index
    %c0_162 = arith.constant 0 : index
    %c0_163 = arith.constant 0 : index
    %245 = vector.load %arg4[%c19_161, %c0_162, %c0_163] : memref<25x32x12xf32, #tpu.memory_space<vmem>>, vector<1x32x12xf32>
    %246 = vector.shape_cast %245 : vector<1x32x12xf32> to vector<32x12xf32>
    %247 = vector.extract_strided_slice %148 {offsets = [0, 200], sizes = [12, 595], strides = [1, 1]} : vector<12x859xf32> to vector<12x595xf32>
    %cst_164 = arith.constant dense<0.000000e+00> : vector<32x595xf32>
    %248 = tpu.matmul %246, %247, %cst_164 {dimension_numbers = #tpu.dot_dimension_numbers<[1], [0], [0], [1], [0, 0, 1, 1], [], []>} : vector<32x12xf32>, vector<12x595xf32>, vector<32x595xf32> -> vector<32x595xf32>
    %249 = arith.addf %244, %248 : vector<32x595xf32>
    %c20_165 = arith.constant 20 : index
    %c0_166 = arith.constant 0 : index
    %c0_167 = arith.constant 0 : index
    %250 = vector.load %arg4[%c20_165, %c0_166, %c0_167] : memref<25x32x12xf32, #tpu.memory_space<vmem>>, vector<1x32x12xf32>
    %251 = vector.shape_cast %250 : vector<1x32x12xf32> to vector<32x12xf32>
    %252 = vector.extract_strided_slice %148 {offsets = [0, 256], sizes = [12, 595], strides = [1, 1]} : vector<12x859xf32> to vector<12x595xf32>
    %cst_168 = arith.constant dense<0.000000e+00> : vector<32x595xf32>
    %253 = tpu.matmul %251, %252, %cst_168 {dimension_numbers = #tpu.dot_dimension_numbers<[1], [0], [0], [1], [0, 0, 1, 1], [], []>} : vector<32x12xf32>, vector<12x595xf32>, vector<32x595xf32> -> vector<32x595xf32>
    %254 = arith.addf %249, %253 : vector<32x595xf32>
    %c21_169 = arith.constant 21 : index
    %c0_170 = arith.constant 0 : index
    %c0_171 = arith.constant 0 : index
    %255 = vector.load %arg4[%c21_169, %c0_170, %c0_171] : memref<25x32x12xf32, #tpu.memory_space<vmem>>, vector<1x32x12xf32>
    %256 = vector.shape_cast %255 : vector<1x32x12xf32> to vector<32x12xf32>
    %257 = vector.extract_strided_slice %148 {offsets = [0, 258], sizes = [12, 595], strides = [1, 1]} : vector<12x859xf32> to vector<12x595xf32>
    %cst_172 = arith.constant dense<0.000000e+00> : vector<32x595xf32>
    %258 = tpu.matmul %256, %257, %cst_172 {dimension_numbers = #tpu.dot_dimension_numbers<[1], [0], [0], [1], [0, 0, 1, 1], [], []>} : vector<32x12xf32>, vector<12x595xf32>, vector<32x595xf32> -> vector<32x595xf32>
    %259 = arith.addf %254, %258 : vector<32x595xf32>
    %c22_173 = arith.constant 22 : index
    %c0_174 = arith.constant 0 : index
    %c0_175 = arith.constant 0 : index
    %260 = vector.load %arg4[%c22_173, %c0_174, %c0_175] : memref<25x32x12xf32, #tpu.memory_space<vmem>>, vector<1x32x12xf32>
    %261 = vector.shape_cast %260 : vector<1x32x12xf32> to vector<32x12xf32>
    %262 = vector.extract_strided_slice %148 {offsets = [0, 260], sizes = [12, 595], strides = [1, 1]} : vector<12x859xf32> to vector<12x595xf32>
    %cst_176 = arith.constant dense<0.000000e+00> : vector<32x595xf32>
    %263 = tpu.matmul %261, %262, %cst_176 {dimension_numbers = #tpu.dot_dimension_numbers<[1], [0], [0], [1], [0, 0, 1, 1], [], []>} : vector<32x12xf32>, vector<12x595xf32>, vector<32x595xf32> -> vector<32x595xf32>
    %264 = arith.addf %259, %263 : vector<32x595xf32>
    %c23_177 = arith.constant 23 : index
    %c0_178 = arith.constant 0 : index
    %c0_179 = arith.constant 0 : index
    %265 = vector.load %arg4[%c23_177, %c0_178, %c0_179] : memref<25x32x12xf32, #tpu.memory_space<vmem>>, vector<1x32x12xf32>
    %266 = vector.shape_cast %265 : vector<1x32x12xf32> to vector<32x12xf32>
    %267 = vector.extract_strided_slice %148 {offsets = [0, 262], sizes = [12, 595], strides = [1, 1]} : vector<12x859xf32> to vector<12x595xf32>
    %cst_180 = arith.constant dense<0.000000e+00> : vector<32x595xf32>
    %268 = tpu.matmul %266, %267, %cst_180 {dimension_numbers = #tpu.dot_dimension_numbers<[1], [0], [0], [1], [0, 0, 1, 1], [], []>} : vector<32x12xf32>, vector<12x595xf32>, vector<32x595xf32> -> vector<32x595xf32>
    %269 = arith.addf %264, %268 : vector<32x595xf32>
    %c24_181 = arith.constant 24 : index
    %c0_182 = arith.constant 0 : index
    %c0_183 = arith.constant 0 : index
    %270 = vector.load %arg4[%c24_181, %c0_182, %c0_183] : memref<25x32x12xf32, #tpu.memory_space<vmem>>, vector<1x32x12xf32>
    %271 = vector.shape_cast %270 : vector<1x32x12xf32> to vector<32x12xf32>
    %272 = vector.extract_strided_slice %148 {offsets = [0, 264], sizes = [12, 595], strides = [1, 1]} : vector<12x859xf32> to vector<12x595xf32>
    %cst_184 = arith.constant dense<0.000000e+00> : vector<32x595xf32>
    %273 = tpu.matmul %271, %272, %cst_184 {dimension_numbers = #tpu.dot_dimension_numbers<[1], [0], [0], [1], [0, 0, 1, 1], [], []>} : vector<32x12xf32>, vector<12x595xf32>, vector<32x595xf32> -> vector<32x595xf32>
    %274 = arith.addf %269, %273 : vector<32x595xf32>
    %c0_185 = arith.constant 0 : index
    %c0_186 = arith.constant 0 : index
    %275 = vector.load %arg5[%c0_185, %c0_186] : memref<32x1xf32, #tpu.memory_space<vmem>>, vector<32x1xf32>
    %276 = vector.broadcast %275 : vector<32x1xf32> to vector<32x595xf32>
    %277 = arith.addf %274, %276 : vector<32x595xf32>
    %cst_187 = arith.constant 0.000000e+00 : f32
    %278 = vector.broadcast %cst_187 : f32 to vector<32x595xf32>
    %279 = arith.cmpf ogt, %277, %278 : vector<32x595xf32>
    %cst_188 = arith.constant 0.000000e+00 : f32
    %280 = vector.broadcast %cst_188 : f32 to vector<32x595xf32>
    %281 = arith.minimumf %277, %280 : vector<32x595xf32>
    %282 = math.exp %281 : vector<32x595xf32>
    %cst_189 = arith.constant 1.000000e+00 : f32
    %283 = vector.broadcast %cst_189 : f32 to vector<32x595xf32>
    %284 = arith.subf %282, %283 : vector<32x595xf32>
    %cst_190 = arith.constant 1.67326319 : f32
    %285 = vector.broadcast %cst_190 : f32 to vector<32x595xf32>
    %286 = arith.mulf %285, %284 : vector<32x595xf32>
    %287 = arith.select %279, %277, %286 : vector<32x595xi1>, vector<32x595xf32>
    %cst_191 = arith.constant 1.05070102 : f32
    %288 = vector.broadcast %cst_191 : f32 to vector<32x595xf32>
    %289 = arith.mulf %288, %287 : vector<32x595xf32>
    %290 = vector.extract_strided_slice %289 {offsets = [0, 0], sizes = [32, 529], strides = [1, 1]} : vector<32x595xf32> to vector<32x529xf32>
    %291 = vector.extract_strided_slice %289 {offsets = [0, 2], sizes = [32, 529], strides = [1, 1]} : vector<32x595xf32> to vector<32x529xf32>
    %292 = arith.maximumf %290, %291 : vector<32x529xf32>
    %293 = vector.extract_strided_slice %289 {offsets = [0, 64], sizes = [32, 529], strides = [1, 1]} : vector<32x595xf32> to vector<32x529xf32>
    %294 = vector.extract_strided_slice %289 {offsets = [0, 66], sizes = [32, 529], strides = [1, 1]} : vector<32x595xf32> to vector<32x529xf32>
    %295 = arith.maximumf %293, %294 : vector<32x529xf32>
    %296 = arith.maximumf %292, %295 : vector<32x529xf32>
    %c0_192 = arith.constant 0 : index
    %c0_193 = arith.constant 0 : index
    %297 = vector.load %arg6[%c0_192, %c0_193] : memref<529x400xf32, #tpu.memory_space<vmem>>, vector<529x400xf32>
    %cst_194 = arith.constant dense<0.000000e+00> : vector<32x400xf32>
    %298 = tpu.matmul %296, %297, %cst_194 {dimension_numbers = #tpu.dot_dimension_numbers<[1], [0], [0], [1], [0, 0, 1, 1], [], []>} : vector<32x529xf32>, vector<529x400xf32>, vector<32x400xf32> -> vector<32x400xf32>
    %c0_195 = arith.constant 0 : index
    %c0_196 = arith.constant 0 : index
    %299 = vector.load %arg8[%c0_195, %c0_196] : memref<2x32xf32, #tpu.memory_space<vmem>>, vector<2x32xf32>
    %c0_197 = arith.constant 0 : index
    %c0_198 = arith.constant 0 : index
    %300 = vector.load %arg7[%c0_197, %c0_198] : memref<32x400xf32, #tpu.memory_space<vmem>>, vector<32x400xf32>
    %301 = arith.mulf %298, %300 : vector<32x400xf32>
    %cst_199 = arith.constant dense<0.000000e+00> : vector<2x400xf32>
    %302 = tpu.matmul %299, %301, %cst_199 {dimension_numbers = #tpu.dot_dimension_numbers<[1], [0], [0], [1], [0, 0, 1, 1], [], []>} : vector<2x32xf32>, vector<32x400xf32>, vector<2x400xf32> -> vector<2x400xf32>
    %c0_200 = arith.constant 0 : index
    %c0_201 = arith.constant 0 : index
    %303 = vector.load %arg9[%c0_200, %c0_201] : memref<400x120xf32, #tpu.memory_space<vmem>>, vector<400x120xf32>
    %cst_202 = arith.constant dense<0.000000e+00> : vector<2x120xf32>
    %304 = tpu.matmul %302, %303, %cst_202 {dimension_numbers = #tpu.dot_dimension_numbers<[1], [0], [0], [1], [0, 0, 1, 1], [], []>} : vector<2x400xf32>, vector<400x120xf32>, vector<2x120xf32> -> vector<2x120xf32>
    %c0_203 = arith.constant 0 : index
    %c0_204 = arith.constant 0 : index
    %305 = vector.load %arg10[%c0_203, %c0_204] : memref<1x120xf32, #tpu.memory_space<vmem>>, vector<1x120xf32>
    %306 = vector.broadcast %305 : vector<1x120xf32> to vector<2x120xf32>
    %307 = arith.addf %304, %306 : vector<2x120xf32>
    %cst_205 = arith.constant 0.000000e+00 : f32
    %308 = vector.broadcast %cst_205 : f32 to vector<2x120xf32>
    %309 = arith.cmpf ogt, %307, %308 : vector<2x120xf32>
    %cst_206 = arith.constant 0.000000e+00 : f32
    %310 = vector.broadcast %cst_206 : f32 to vector<2x120xf32>
    %311 = arith.minimumf %307, %310 : vector<2x120xf32>
    %312 = math.exp %311 : vector<2x120xf32>
    %cst_207 = arith.constant 1.000000e+00 : f32
    %313 = vector.broadcast %cst_207 : f32 to vector<2x120xf32>
    %314 = arith.subf %312, %313 : vector<2x120xf32>
    %cst_208 = arith.constant 1.67326319 : f32
    %315 = vector.broadcast %cst_208 : f32 to vector<2x120xf32>
    %316 = arith.mulf %315, %314 : vector<2x120xf32>
    %317 = arith.select %309, %307, %316 : vector<2x120xi1>, vector<2x120xf32>
    %cst_209 = arith.constant 1.05070102 : f32
    %318 = vector.broadcast %cst_209 : f32 to vector<2x120xf32>
    %319 = arith.mulf %318, %317 : vector<2x120xf32>
    %c0_210 = arith.constant 0 : index
    %c0_211 = arith.constant 0 : index
    %320 = vector.load %arg11[%c0_210, %c0_211] : memref<120x84xf32, #tpu.memory_space<vmem>>, vector<120x84xf32>
    %cst_212 = arith.constant dense<0.000000e+00> : vector<2x84xf32>
    %321 = tpu.matmul %319, %320, %cst_212 {dimension_numbers = #tpu.dot_dimension_numbers<[1], [0], [0], [1], [0, 0, 1, 1], [], []>} : vector<2x120xf32>, vector<120x84xf32>, vector<2x84xf32> -> vector<2x84xf32>
    %c0_213 = arith.constant 0 : index
    %c0_214 = arith.constant 0 : index
    %322 = vector.load %arg12[%c0_213, %c0_214] : memref<1x84xf32, #tpu.memory_space<vmem>>, vector<1x84xf32>
    %323 = vector.broadcast %322 : vector<1x84xf32> to vector<2x84xf32>
    %324 = arith.addf %321, %323 : vector<2x84xf32>
    %cst_215 = arith.constant 0.000000e+00 : f32
    %325 = vector.broadcast %cst_215 : f32 to vector<2x84xf32>
    %326 = arith.cmpf ogt, %324, %325 : vector<2x84xf32>
    %cst_216 = arith.constant 0.000000e+00 : f32
    %327 = vector.broadcast %cst_216 : f32 to vector<2x84xf32>
    %328 = arith.minimumf %324, %327 : vector<2x84xf32>
    %329 = math.exp %328 : vector<2x84xf32>
    %cst_217 = arith.constant 1.000000e+00 : f32
    %330 = vector.broadcast %cst_217 : f32 to vector<2x84xf32>
    %331 = arith.subf %329, %330 : vector<2x84xf32>
    %cst_218 = arith.constant 1.67326319 : f32
    %332 = vector.broadcast %cst_218 : f32 to vector<2x84xf32>
    %333 = arith.mulf %332, %331 : vector<2x84xf32>
    %334 = arith.select %326, %324, %333 : vector<2x84xi1>, vector<2x84xf32>
    %cst_219 = arith.constant 1.05070102 : f32
    %335 = vector.broadcast %cst_219 : f32 to vector<2x84xf32>
    %336 = arith.mulf %335, %334 : vector<2x84xf32>
    %c0_220 = arith.constant 0 : index
    %c0_221 = arith.constant 0 : index
    %337 = vector.load %arg13[%c0_220, %c0_221] : memref<84x20xf32, #tpu.memory_space<vmem>>, vector<84x20xf32>
    %cst_222 = arith.constant dense<0.000000e+00> : vector<2x20xf32>
    %338 = tpu.matmul %336, %337, %cst_222 {dimension_numbers = #tpu.dot_dimension_numbers<[1], [0], [0], [1], [0, 0, 1, 1], [], []>} : vector<2x84xf32>, vector<84x20xf32>, vector<2x20xf32> -> vector<2x20xf32>
    %c0_223 = arith.constant 0 : index
    %c0_224 = arith.constant 0 : index
    %339 = vector.load %arg14[%c0_223, %c0_224] : memref<1x20xf32, #tpu.memory_space<vmem>>, vector<1x20xf32>
    %340 = vector.broadcast %339 : vector<1x20xf32> to vector<2x20xf32>
    %341 = arith.addf %338, %340 : vector<2x20xf32>
    %c0_225 = arith.constant 0 : index
    %c0_226 = arith.constant 0 : index
    %342 = vector.load %arg15[%c0_225, %c0_226] : memref<2x20xf32, #tpu.memory_space<vmem>>, vector<2x20xf32>
    tpu.vector_store %arg15[%c0_225, %c0_226], %341 {strides = array<i32>} : memref<2x20xf32, #tpu.memory_space<vmem>>, vector<2x20xf32>,
    return
  }
  func.func @transform_0(%arg0: i32) -> (i32, i32) {
    %c0_i32 = arith.constant 0 : i32
    %c0_i32_0 = arith.constant 0 : i32
    %c0_i32_1 = arith.constant 0 : i32
    return %c0_i32, %c0_i32_0 : i32, i32
  }
  func.func @transform_1(%arg0: i32) -> (i32, i32, i32) {
    %c0_i32 = arith.constant 0 : i32
    %c0_i32_0 = arith.constant 0 : i32
    %c0_i32_1 = arith.constant 0 : i32
    %c0_i32_2 = arith.constant 0 : i32
    return %c0_i32, %c0_i32_0, %c0_i32_1 : i32, i32, i32
  }
  func.func @transform_2(%arg0: i32) -> (i32, i32) {
    %c0_i32 = arith.constant 0 : i32
    %c0_i32_0 = arith.constant 0 : i32
    %c0_i32_1 = arith.constant 0 : i32
    return %c0_i32, %c0_i32_0 : i32, i32
  }
  func.func @transform_3(%arg0: i32) -> (i32, i32, i32) {
    %c0_i32 = arith.constant 0 : i32
    %c0_i32_0 = arith.constant 0 : i32
    %c0_i32_1 = arith.constant 0 : i32
    %c0_i32_2 = arith.constant 0 : i32
    return %c0_i32, %c0_i32_0, %c0_i32_1 : i32, i32, i32
  }
  func.func @transform_4(%arg0: i32) -> (i32, i32) {
    %c0_i32 = arith.constant 0 : i32
    %c0_i32_0 = arith.constant 0 : i32
    %c0_i32_1 = arith.constant 0 : i32
    return %c0_i32, %c0_i32_0 : i32, i32
  }
  func.func @transform_5(%arg0: i32) -> (i32, i32) {
    %c0_i32 = arith.constant 0 : i32
    %c0_i32_0 = arith.constant 0 : i32
    %c0_i32_1 = arith.constant 0 : i32
    return %c0_i32, %c0_i32_0 : i32, i32
  }
  func.func @transform_6(%arg0: i32) -> (i32, i32) {
    %c0_i32 = arith.constant 0 : i32
    %c0_i32_0 = arith.constant 0 : i32
    %c0_i32_1 = arith.constant 0 : i32
    return %c0_i32, %c0_i32_0 : i32, i32
  }
  func.func @transform_7(%arg0: i32) -> (i32, i32) {
    %c0_i32 = arith.constant 0 : i32
    %c0_i32_0 = arith.constant 0 : i32
    %c0_i32_1 = arith.constant 0 : i32
    return %c0_i32, %c0_i32_0 : i32, i32
  }
  func.func @transform_8(%arg0: i32) -> (i32, i32) {
    %c0_i32 = arith.constant 0 : i32
    %c0_i32_0 = arith.constant 0 : i32
    %c0_i32_1 = arith.constant 0 : i32
    return %c0_i32, %c0_i32_0 : i32, i32
  }
  func.func @transform_9(%arg0: i32) -> (i32, i32) {
    %c0_i32 = arith.constant 0 : i32
    %c0_i32_0 = arith.constant 0 : i32
    %c0_i32_1 = arith.constant 0 : i32
    return %c0_i32, %c0_i32_0 : i32, i32
  }
  func.func @transform_10(%arg0: i32) -> (i32, i32) {
    %c0_i32 = arith.constant 0 : i32
    %c0_i32_0 = arith.constant 0 : i32
    %c0_i32_1 = arith.constant 0 : i32
    return %c0_i32, %c0_i32_0 : i32, i32
  }
  func.func @transform_11(%arg0: i32) -> (i32, i32) {
    %c0_i32 = arith.constant 0 : i32
    %c0_i32_0 = arith.constant 0 : i32
    %c0_i32_1 = arith.constant 0 : i32
    return %c0_i32, %c0_i32_0 : i32, i32
  }
  func.func @transform_12(%arg0: i32) -> (i32, i32) {
    %c0_i32 = arith.constant 0 : i32
    %c0_i32_0 = arith.constant 0 : i32
    %c0_i32_1 = arith.constant 0 : i32
    return %c0_i32, %c0_i32_0 : i32, i32
  }
  func.func @transform_13(%arg0: i32) -> (i32, i32) {
    %c0_i32 = arith.constant 0 : i32
    %c0_i32_0 = arith.constant 0 : i32
    %c0_i32_1 = arith.constant 0 : i32
    return %c0_i32, %c0_i32_0 : i32, i32
  }
  func.func @transform_14(%arg0: i32) -> (i32, i32) {
    %c0_i32 = arith.constant 0 : i32
    %c0_i32_0 = arith.constant 0 : i32
    %c0_i32_1 = arith.constant 0 : i32
    return %c0_i32, %c0_i32_0 : i32, i32
  }
}

</mosaic_0001>

<bundles_post_ra>
// kernel: selunet_forward.1
= control target key start
LH: loop header
LB: loop body
LE: loop exit
PB: predicated region body
PF: predicated region fallthrough
CT: control target
= control target key end

     0   :  { %s23251_s17 = smov 127   ;;  %v29322_v6 = vmov 0.0   ;;  %s29307_s0 = inlined_call_operand.vmem [shape: f32[6,1024], index: 0, kind: input, shape index: {}]   ;;  %s29308_s1 = inlined_call_operand.vmem [shape: f32[25,12,6], index: 1, kind: input, shape index: {}]   ;;  %s29309_s2 = inlined_call_operand.vmem [shape: f32[12,1], index: 2, kind: input, shape index: {}]   ;;  %s29310_s3 = inlined_call_operand.vmem [shape: f32[25,32,12], index: 3, kind: input, shape index: {}]   ;;  %s29311_s4 = inlined_call_operand.vmem [shape: f32[32,1], index: 4, kind: input, shape index: {}]   ;;  %s29312_s5 = inlined_call_operand.vmem [shape: f32[529,400], index: 5, kind: input, shape index: {}]   ;;  %s29313_s6 = inlined_call_operand.vmem [shape: f32[32,400], index: 6, kind: input, shape index: {}]   ;;  %s29314_s7 = inlined_call_operand.vmem [shape: f32[2,32], index: 7, kind: input, shape index: {}]   ;;  %s29315_s8 = inlined_call_operand.vmem [shape: f32[400,120], index: 8, kind: input, shape index: {}]   ;;  %s29316_s9 = inlined_call_operand.vmem [shape: f32[1,120], index: 9, kind: input, shape index: {}]   ;;  %s29317_s10 = inlined_call_operand.vmem [shape: f32[120,84], index: 10, kind: input, shape index: {}]   ;;  %s29318_s11 = inlined_call_operand.vmem [shape: f32[1,84], index: 11, kind: input, shape index: {}]   ;;  %s29319_s12 = inlined_call_operand.vmem [shape: f32[84,20], index: 12, kind: input, shape index: {}]   ;;  %s29320_s13 = inlined_call_operand.vmem [shape: f32[1,20], index: 13, kind: input, shape index: {}]   ;;  %s29321_s14 = inlined_call_operand.hbm [shape: f32[2,20], index: 14, kind: output, shape index: {}]  }
   0x1   :  { %v23358_v0 = vld [vmem:[%s29307_s0 + $0x8] sm:$0x3f]  ;;  %v23363_v1 = vld [vmem:[%s29307_s0] sm:$0x3f]  ;;  %v23372_v2 = vld [vmem:[%s29307_s0 + $0x10] sm:$0x3f]  ;;  %175 = vmatprep.mubr.f32.mxu0 %v29322_v6  ;;  %252 = vmatprep.mubr.f32.mxu1 %v29322_v6 }
   0x2   :  { %70 = vrot.lane.b32.xlu0 %v23358_v0, %s23251_s17  ;;  %68 = vrot.lane.b32.xlu1 %v23363_v1, %s23251_s17  ;;  %v23377_v3 = vld [vmem:[%s29307_s0 + $0x28] sm:$0x3f]  ;;  %v23386_v4 = vld [vmem:[%s29307_s0 + $0x30] sm:$0x3f] }
   0x3   :  { %v23391_v5 = vld [vmem:[%s29307_s0 + $0x20] sm:$0x3f] }
   0x6   :  { %72 = vrot.lane.b32.xlu0 %v23372_v2, %s23251_s17  ;;  %78 = vrot.lane.b32.xlu1 %v23377_v3, %s23251_s17 }
   0x7   :  { %19 = vsyncpa [#allocation3], 0  ;;  %s23253_s26 = smov 126   ;;  %s23254_s27 = smov 125   ;;  %v23454_v7 = vld [vmem:[%s29307_s0 + $0x18] sm:$0x3f] }
   0x8   :  { %s23255_s28 = smov 124   ;;  %s23256_s29 = smov 96   ;;  %vm82_vm0 = vcmask 1039360   ;;  %vm96_vm1 = vcmask 1045504   ;;  %v23521_v13 = vld [vmem:[%s29308_s1 + $0x10] sm:$0xff]  ;;  %vm89_vm2 = vcmask 48128  }
   0x9   :  { %s23257_s30 = smov 95   ;;  %s23258_s18 = smov 94   ;;  %v23534_v15 = vld [vmem:[%s29307_s0 + $0x38] sm:$0x3f]  ;;  %vm760_vm3 = vcmask 1031168   ;;  %v23596_v27 = vld [vmem:[%s29308_s1] sm:$0xff] }
   0xa   :  { %80 = vrot.lane.b32.xlu0 %v23386_v4, %s23251_s17  ;;  %76 = vrot.lane.b32.xlu1 %v23391_v5, %s23251_s17  ;;  %s23259_s19 = smov 93   ;;  %s23260_s20 = smov 92   ;;  %v23554_v20 = vld [vmem:[%s29308_s1 + $0x18] sm:$0xf]  ;;  %v23614_v31 = vld [vmem:[%s29308_s1 + $0x8] sm:$0xf] }
   0xb   :  { %s23261_s21 = smov 64   ;;  %s23262_s22 = smov 63   ;;  %vm1124_vm4 = vcmask 1022976   ;;  %v23658_v40 = vld [vmem:[%s29308_s1 + $0x20] sm:$0xff]  ;;  %v23682_v45 = vld [vmem:[%s29308_s1 + $0x28] sm:$0xf] }
   0xc   :  { %s23263_s23 = smov 62   ;;  %vm1488_vm5 = vcmask 1014784   ;;  %v23730_v54 = vld [vmem:[%s29308_s1 + $0x30] sm:$0xff]  ;;  %v23756_v59 = vld [vmem:[%s29308_s1 + $0x38] sm:$0xf]  ;;  %s23265_s24 = smov 60  }
   0xd   :  { %vm1855_vm6 = vcmask 785408   ;;  %vm2222_vm7 = vcmask 777216   ;;  %vm2589_vm8 = vcmask 769024   ;;  %vm2956_vm9 = vcmask 760832   ;;  %s23269_s15 = smov 29   ;;  %s23279_s16 = smov [#allocation2]  }
   0xe   :  { %748 = vrot.lane.b32.xlu0 %v23358_v0, %s23253_s26  ;;  %750 = vrot.lane.b32.xlu1 %v23372_v2, %s23253_s26  ;;  %vm3323_vm10 = vcmask 752640   ;;  %vm3690_vm11 = vcmask 523264   ;;  %vm4057_vm12 = vcmask 515072   ;;  %vm4424_vm13 = vcmask 506880  }
   0xf   :  { %vm4791_vm14 = vcmask 498688   ;;  %vm5158_vm15 = vcmask 490496  }
  0x12   :  { %746 = vrot.lane.b32.xlu0 %v23363_v1, %s23253_s26  ;;  %756 = vrot.lane.b32.xlu1 %v23377_v3, %s23253_s26 }
  0x16   :  { %758 = vrot.lane.b32.xlu0 %v23386_v4, %s23253_s26  ;;  %754 = vrot.lane.b32.xlu1 %v23391_v5, %s23253_s26 }
  0x1a   :  { %1112 = vrot.lane.b32.xlu0 %v23358_v0, %s23254_s27  ;;  %1114 = vrot.lane.b32.xlu1 %v23372_v2, %s23254_s27 }
  0x1e   :  { %1110 = vrot.lane.b32.xlu0 %v23363_v1, %s23254_s27  ;;  %1120 = vrot.lane.b32.xlu1 %v23377_v3, %s23254_s27 }
  0x22   :  { %1122 = vrot.lane.b32.xlu0 %v23386_v4, %s23254_s27  ;;  %1118 = vrot.lane.b32.xlu1 %v23391_v5, %s23254_s27 }
  0x26   :  { %1476 = vrot.lane.b32.xlu0 %v23358_v0, %s23255_s28  ;;  %1478 = vrot.lane.b32.xlu1 %v23372_v2, %s23255_s28 }
  0x2a   :  { %1474 = vrot.lane.b32.xlu0 %v23363_v1, %s23255_s28  ;;  %1484 = vrot.lane.b32.xlu1 %v23377_v3, %s23255_s28 }
  0x2e   :  { %1486 = vrot.lane.b32.xlu0 %v23386_v4, %s23255_s28  ;;  %1482 = vrot.lane.b32.xlu1 %v23391_v5, %s23255_s28 }
  0x32   :  { %1841 = vrot.lane.b32.xlu0 %v23358_v0, %s23256_s29  ;;  %1843 = vrot.lane.b32.xlu1 %v23372_v2, %s23256_s29 }
  0x36   :  { %1839 = vrot.lane.b32.xlu0 %v23363_v1, %s23256_s29  ;;  %1849 = vrot.lane.b32.xlu1 %v23377_v3, %s23256_s29 }
  0x3a   :  { %1851 = vrot.lane.b32.xlu0 %v23386_v4, %s23256_s29  ;;  %1847 = vrot.lane.b32.xlu1 %v23391_v5, %s23256_s29 }
  0x3e   :  { %2208 = vrot.lane.b32.xlu0 %v23358_v0, %s23257_s30  ;;  %2210 = vrot.lane.b32.xlu1 %v23372_v2, %s23257_s30 }
  0x42   :  { %2206 = vrot.lane.b32.xlu0 %v23363_v1, %s23257_s30  ;;  %74 = vrot.lane.b32.xlu1 %v23454_v7, %s23251_s17 }
  0x46   :  { %2216 = vrot.lane.b32.xlu0 %v23377_v3, %s23257_s30  ;;  %2218 = vrot.lane.b32.xlu1 %v23386_v4, %s23257_s30 }
  0x4a   :  { %2214 = vrot.lane.b32.xlu0 %v23391_v5, %s23257_s30  ;;  %2575 = vrot.lane.b32.xlu1 %v23358_v0, %s23258_s18 }
  0x4e   :  { %2577 = vrot.lane.b32.xlu0 %v23372_v2, %s23258_s18  ;;  %2573 = vrot.lane.b32.xlu1 %v23363_v1, %s23258_s18 }
  0x52   :  { %2583 = vrot.lane.b32.xlu0 %v23377_v3, %s23258_s18  ;;  %2585 = vrot.lane.b32.xlu1 %v23386_v4, %s23258_s18 }
  0x56   :  { %2581 = vrot.lane.b32.xlu0 %v23391_v5, %s23258_s18  ;;  %752 = vrot.lane.b32.xlu1 %v23454_v7, %s23253_s26 }
  0x5a   :  { %2942 = vrot.lane.b32.xlu0 %v23358_v0, %s23259_s19  ;;  %2944 = vrot.lane.b32.xlu1 %v23372_v2, %s23259_s19 }
  0x5e   :  { %2940 = vrot.lane.b32.xlu0 %v23363_v1, %s23259_s19  ;;  %1116 = vrot.lane.b32.xlu1 %v23454_v7, %s23254_s27 }
  0x62   :  { %2950 = vrot.lane.b32.xlu0 %v23377_v3, %s23259_s19  ;;  %2952 = vrot.lane.b32.xlu1 %v23386_v4, %s23259_s19 }
  0x66   :  { %2948 = vrot.lane.b32.xlu0 %v23391_v5, %s23259_s19  ;;  %3309 = vrot.lane.b32.xlu1 %v23358_v0, %s23260_s20 }
  0x6a   :  { %3311 = vrot.lane.b32.xlu0 %v23372_v2, %s23260_s20  ;;  %3307 = vrot.lane.b32.xlu1 %v23363_v1, %s23260_s20 }
  0x6e   :  { %1480 = vrot.lane.b32.xlu0 %v23454_v7, %s23255_s28  ;;  %3317 = vrot.lane.b32.xlu1 %v23377_v3, %s23260_s20 }
  0x72   :  { %3319 = vrot.lane.b32.xlu0 %v23386_v4, %s23260_s20  ;;  %3315 = vrot.lane.b32.xlu1 %v23391_v5, %s23260_s20 }
  0x74   :  { %v71_v8 = vpop.permute.xlu0 %70  ;;  %v69_v9 = vpop.permute.xlu1 %68 }
  0x75   :  { %v83_v14 = vsel %vm82_vm0, %v69_v9, %v71_v8 }
  0x76   :  { %1845 = vrot.lane.b32.xlu0 %v23454_v7, %s23256_s29  ;;  %3676 = vrot.lane.b32.xlu1 %v23358_v0, %s23261_s21 }
  0x78   :  { %v23512_v10 = vpop.permute.xlu0 %72  ;;  %v79_v11 = vpop.permute.xlu1 %78 }
  0x79   :  { %v23516_v12 = vsel %vm82_vm0, %v71_v8, %v23512_v10 }
  0x7a   :  { %19236 = vmatprep.subr.msk.mxu0 %vm96_vm1, %v23516_v12  ;;  %3678 = vrot.lane.b32.xlu0 %v23372_v2, %s23261_s21 }
  0x7b   :  { %3674 = vrot.lane.b32.xlu1 %v23363_v1, %s23261_s21  ;;  %19237 = vmatpush1.msk.msra.mxu0 %vm96_vm1, %v83_v14 }
  0x7c   :  { %v23536_v16 = vpop.permute.xlu0 %80  ;;  %19238 = vmatmul.mubr.msk.f32.vlgmr.msra.gmra.mrb[0].mxu0 %vm89_vm2, %v23521_v13  ;;  %v23540_v17 = vpop.permute.xlu1 %76 }
  0x7d   :  { %v23544_v18 = vsel %vm82_vm0, %v23540_v17, %v79_v11  ;;  %v23548_v19 = vsel %vm82_vm0, %v79_v11, %v23536_v16  ;;  %181 = vmatprep.mubr.f32.mxu0 %v29322_v6 }
  0x7e   :  { %1853 = vrot.lane.b32.xlu0 %v23534_v15, %s23256_s29  ;;  %19244 = vmatprep.subr.msk.mxu0 %vm96_vm1, %v23548_v19 }
  0x7f   :  { %3684 = vrot.lane.b32.xlu1 %v23377_v3, %s23261_s21  ;;  %19245 = vmatpush1.msk.msra.mxu0 %vm96_vm1, %v23544_v18 }
  0x80   :  { %v749_v21 = vpop.permute.xlu0 %748  ;;  %19239 = vmatmul.mubr.msk.f32.gmra.mrb[2].mxu0 %vm89_vm2, %v23554_v20  ;;  %v23566_v22 = vpop.permute.xlu1 %750  ;;  %19251 = vmatprep.subr.msk.mxu0 %vm96_vm1, %v23358_v0 }
  0x81   :  { %329 = vmatprep.mubr.f32.mxu0 %v29322_v6  ;;  %v23604_v28 = vsel %vm760_vm3, %v749_v21, %v23566_v22 }
  0x82   :  { %3686 = vrot.lane.b32.xlu0 %v23386_v4, %s23261_s21 }
  0x83   :  { %3682 = vrot.lane.b32.xlu1 %v23391_v5, %s23261_s21 }
  0x84   :  { %v747_v23 = vpop.permute.xlu0 %746  ;;  %19246 = vmatmul.mubr.msk.f32.vlgmr.msra.gmra.mrb[4].mxu0 %vm89_vm2, %v23521_v13  ;;  %v757_v24 = vpop.permute.xlu1 %756 }
  0x85   :  { %335 = vmatprep.mubr.f32.mxu0 %v29322_v6  ;;  %19252 = vmatpush1.msk.msra.mxu0 %vm96_vm1, %v23363_v1  ;;  %v761_v34 = vsel %vm760_vm3, %v747_v23, %v749_v21  ;;  %v23821_v21 = vld [vmem:[%s29308_s1 + $0x40] sm:$0xff] }
  0x86   :  { %2212 = vrot.lane.b32.xlu0 %v23454_v7, %s23257_s30  ;;  %19259 = vmatprep.subr.msk.mxu0 %vm96_vm1, %v23377_v3 }
  0x87   :  { %4043 = vrot.lane.b32.xlu1 %v23358_v0, %s23262_s22 }
  0x88   :  { %v23586_v25 = vpop.permute.xlu0 %758  ;;  %19247 = vmatmul.mubr.msk.f32.gmra.mrb[6].mxu0 %vm89_vm2, %v23554_v20  ;;  %v23590_v26 = vpop.permute.xlu1 %754 }
  0x89   :  { %501 = vmatprep.mubr.f32.mxu0 %v29322_v6  ;;  %v23634_v35 = vsel %vm760_vm3, %v757_v24, %v23586_v25  ;;  %v23662_v41 = vsel %vm760_vm3, %v23590_v26, %v757_v24 }
  0x8a   :  { %4045 = vrot.lane.b32.xlu0 %v23372_v2, %s23262_s22 }
  0x8b   :  { %4041 = vrot.lane.b32.xlu1 %v23363_v1, %s23262_s22 }
  0x8c   :  { %v1113_v29 = vpop.permute.xlu0 %1112  ;;  %19253 = vmatmul.mubr.msk.f32.vlgmr.msra.gmra.mrb[0].mxu0 %vm89_vm2, %v23596_v27  ;;  %v23608_v30 = vpop.permute.xlu1 %1114 }
  0x8d   :  { %507 = vmatprep.mubr.f32.mxu0 %v29322_v6  ;;  %19260 = vmatpush1.msk.msra.mxu0 %vm96_vm1, %v23391_v5  ;;  %v23670_v42 = vsel %vm1124_vm4, %v1113_v29, %v23608_v30 }
  0x8e   :  { %2220 = vrot.lane.b32.xlu0 %v23534_v15, %s23257_s30  ;;  %19268 = vmatprep.subr.msk.mxu0 %vm96_vm1, %v23604_v28  ;;  %s23268_s30 = smov 30  }
  0x8f   :  { %2579 = vrot.lane.b32.xlu1 %v23454_v7, %s23258_s18 }
  0x90   :  { %v1111_v32 = vpop.permute.xlu0 %1110  ;;  %19254 = vmatmul.mubr.msk.f32.gmra.mrb[2].mxu0 %vm89_vm2, %v23614_v31  ;;  %v1121_v33 = vpop.permute.xlu1 %1120 }
  0x91   :  { %655 = vmatprep.mubr.f32.mxu0 %v29322_v6  ;;  %v1125_v48 = vsel %vm1124_vm4, %v1111_v32, %v1113_v29  ;;  %v23850_v32 = vld [vmem:[%s29308_s1 + $0x48] sm:$0xf] }
  0x92   :  { %4051 = vrot.lane.b32.xlu0 %v23377_v3, %s23262_s22 }
  0x93   :  { %4053 = vrot.lane.b32.xlu1 %v23386_v4, %s23262_s22 }
  0x94   :  { %v23636_v36 = vpop.permute.xlu0 %1122  ;;  %19261 = vmatmul.mubr.msk.f32.vlgmr.msra.gmra.mrb[4].mxu0 %vm89_vm2, %v23596_v27  ;;  %v23640_v37 = vpop.permute.xlu1 %1118 }
  0x95   :  { %29409 = vst [vmem:[#allocation5_spill] sm:$0xff] %v23636_v36  ;;  %19269 = vmatpush1.msk.msra.mxu0 %vm96_vm1, %v761_v34  ;;  %661 = vmatprep.mubr.f32.mxu0 %v29322_v6  ;;  %v23704_v49 = vsel %vm1124_vm4, %v1121_v33, %v23636_v36  ;;  %v23734_v55 = vsel %vm1124_vm4, %v23640_v37, %v1121_v33 }
  0x96   :  { %4049 = vrot.lane.b32.xlu0 %v23391_v5, %s23262_s22  ;;  %19276 = vmatprep.subr.msk.mxu0 %vm96_vm1, %v23634_v35  ;;  %29411 = vst [vmem:[#allocation7_spill] sm:$0xff] %v23704_v49 }
  0x97   :  { %2587 = vrot.lane.b32.xlu1 %v23534_v15, %s23258_s18  ;;  %s23275_s18 = smov 58  }
  0x98   :  { %v1477_v38 = vpop.permute.xlu0 %1476  ;;  %19262 = vmatmul.mubr.msk.f32.gmra.mrb[6].mxu0 %vm89_vm2, %v23614_v31  ;;  %v23652_v39 = vpop.permute.xlu1 %1478 }
  0x99   :  { %851 = vmatprep.mubr.f32.mxu0 %v29322_v6  ;;  %v23742_v56 = vsel %vm1488_vm5, %v1477_v38, %v23652_v39 }
  0x9a   :  { %4410 = vrot.lane.b32.xlu0 %v23358_v0, %s23263_s23  ;;  %29412 = vst [vmem:[#allocation8_spill] sm:$0xff] %v23742_v56 }
  0x9b   :  { %4412 = vrot.lane.b32.xlu1 %v23372_v2, %s23263_s23 }
  0x9c   :  { %v1475_v43 = vpop.permute.xlu0 %1474  ;;  %19270 = vmatmul.mubr.msk.f32.vlgmr.msra.gmra.mrb[0].mxu0 %vm89_vm2, %v23658_v40  ;;  %v23674_v44 = vpop.permute.xlu1 %1484 }
  0x9d   :  { %19277 = vmatpush1.msk.msra.mxu0 %vm96_vm1, %v23662_v41  ;;  %857 = vmatprep.mubr.f32.mxu0 %v29322_v6  ;;  %v1489_v62 = vsel %vm1488_vm5, %v1475_v43, %v1477_v38 }
  0x9e   :  { %4408 = vrot.lane.b32.xlu0 %v23363_v1, %s23263_s23  ;;  %19285 = vmatprep.subr.msk.mxu0 %vm96_vm1, %v23670_v42 }
  0x9f   :  { %2946 = vrot.lane.b32.xlu1 %v23454_v7, %s23259_s19 }
  0xa0   :  { %v23690_v46 = vpop.permute.xlu0 %1486  ;;  %19271 = vmatmul.mubr.msk.f32.gmra.mrb[2].mxu0 %vm89_vm2, %v23682_v45  ;;  %v23694_v47 = vpop.permute.xlu1 %1482 }
  0xa1   :  { %29410 = vst [vmem:[#allocation6_spill] sm:$0xff] %v23690_v46  ;;  %1005 = vmatprep.mubr.f32.mxu0 %v29322_v6  ;;  %v23826_v23 = vsel %vm1488_vm5, %v23694_v47, %v23674_v44 }
  0xa2   :  { %4418 = vrot.lane.b32.xlu0 %v23377_v3, %s23263_s23 }
  0xa3   :  { %4420 = vrot.lane.b32.xlu1 %v23386_v4, %s23263_s23 }
  0xa4   :  { %v23706_v50 = vpop.permute.xlu0 %1841  ;;  %19278 = vmatmul.mubr.msk.f32.vlgmr.msra.gmra.mrb[4].mxu0 %vm89_vm2, %v23658_v40  ;;  %v23710_v51 = vpop.permute.xlu1 %1843 }
  0xa5   :  { %19286 = vmatpush1.msk.msra.mxu0 %vm96_vm1, %v1125_v48  ;;  %1011 = vmatprep.mubr.f32.mxu0 %v29322_v6  ;;  %v1857_v34 = vsel %vm1855_vm6, %v23706_v50, %v23710_v51 }
  0xa6   :  { %4416 = vrot.lane.b32.xlu0 %v23391_v5, %s23263_s23  ;;  %19293 = vmatprep.subr.msk.mxu0 %vm96_vm1, %v23704_v49 }
  0xa7   :  { %2954 = vrot.lane.b32.xlu1 %v23534_v15, %s23259_s19  ;;  %s23264_s19 = smov 61  }
  0xa8   :  { %v23720_v52 = vpop.permute.xlu0 %1839  ;;  %19279 = vmatmul.mubr.msk.f32.gmra.mrb[6].mxu0 %vm89_vm2, %v23682_v45  ;;  %v23724_v53 = vpop.permute.xlu1 %1849 }
  0xa9   :  { %1215 = vmatprep.mubr.f32.mxu0 %v29322_v6 }
  0xaa   :  { %3313 = vrot.lane.b32.xlu0 %v23454_v7, %s23260_s20 }
  0xab   :  { %4777 = vrot.lane.b32.xlu1 %v23358_v0, %s23264_s19 }
  0xac   :  { %v23744_v57 = vpop.permute.xlu0 %1851  ;;  %19287 = vmatmul.mubr.msk.f32.vlgmr.msra.gmra.mrb[0].mxu0 %vm89_vm2, %v23730_v54  ;;  %v23748_v58 = vpop.permute.xlu1 %1847 }
  0xad   :  { %19294 = vmatpush1.msk.msra.mxu0 %vm96_vm1, %v23734_v55  ;;  %1221 = vmatprep.mubr.f32.mxu0 %v29322_v6 }
  0xae   :  { %4779 = vrot.lane.b32.xlu0 %v23372_v2, %s23264_s19  ;;  %19302 = vmatprep.subr.msk.mxu0 %vm96_vm1, %v23742_v56  ;;  %v29414_v56 = vmov 0.0  }
  0xaf   :  { %4775 = vrot.lane.b32.xlu1 %v23363_v1, %s23264_s19 }
  0xb0   :  { %v23764_v60 = vpop.permute.xlu0 %2208  ;;  %19288 = vmatmul.mubr.msk.f32.gmra.mrb[2].mxu0 %vm89_vm2, %v23756_v59  ;;  %v23768_v61 = vpop.permute.xlu1 %2210 }
  0xb1   :  { %1369 = vmatprep.mubr.f32.mxu0 %v29322_v6 }
  0xb2   :  { %3321 = vrot.lane.b32.xlu0 %v23534_v15, %s23260_s20  ;;  %s23267_s20 = smov 31  }
  0xb3   :  { %4785 = vrot.lane.b32.xlu1 %v23377_v3, %s23264_s19 }
  0xb4   :  { %v23776_v63 = vpop.permute.xlu0 %2206  ;;  %19295 = vmatmul.mubr.msk.f32.vlgmr.msra.gmra.mrb[4].mxu0 %vm89_vm2, %v23730_v54  ;;  %v75_v8 = vpop.permute.xlu1 %74 }
  0xb5   :  { %19303 = vmatpush1.msk.msra.mxu0 %vm96_vm1, %v1489_v62  ;;  %v23783_v9 = vsel %vm82_vm0, %v75_v8, %v23540_v17  ;;  %v23787_v11 = vsel %vm82_vm0, %v23512_v10, %v75_v8  ;;  %1375 = vmatprep.mubr.f32.mxu0 %v29322_v6  ;;  %v23813_v17 = vsel %vm1488_vm5, %v23674_v44, %v23690_v46  ;;  %v23918_v62 = vld [vmem:[%s29308_s1 + $0x50] sm:$0xff] }
  0xb6   :  { %4787 = vrot.lane.b32.xlu0 %v23386_v4, %s23264_s19  ;;  %19240 = vmatprep.subr.msk.mxu1 %vm96_vm1, %v23783_v9  ;;  %29413 = vst [vmem:[#allocation9_spill] sm:$0xff] %v23813_v17  ;;  %v1861_v44 = vsel %vm1855_vm6, %v23724_v53, %v23744_v57  ;;  %v1860_v8 = vsel %vm1855_vm6, %v23748_v58, %v23724_v53 }
  0xb7   :  { %4783 = vrot.lane.b32.xlu1 %v23391_v5, %s23264_s19  ;;  %19241 = vmatpush1.msk.msra.mxu1 %vm96_vm1, %v23787_v11 }
  0xb8   :  { %v23798_v14 = vpop.permute.xlu0 %2216  ;;  %19242 = vmatmul.mubr.msk.f32.vlgmr.msra.gmra.mrb[0].mxu1 %vm89_vm2, %v23521_v13  ;;  %20523 = vmatprep.subr.msk.mxu1 %vm96_vm1, %v23536_v16  ;;  %v23804_v10 = vpop.permute.xlu1 %2218 }
  0xb9   :  { %19296 = vmatmul.mubr.msk.f32.gmra.mrb[6].mxu0 %vm89_vm2, %v23756_v59  ;;  %20524 = vmatpush3.msk.msra.mxu1 %vm96_vm1, %v23536_v16 }
  0xba   :  { %3680 = vrot.lane.b32.xlu0 %v23454_v7, %s23261_s21  ;;  %258 = vmatprep.mubr.f32.mxu1 %v29322_v6 }
  0xbb   :  { %5144 = vrot.lane.b32.xlu1 %v23358_v0, %s23265_s24  ;;  %1579 = vmatprep.mubr.f32.mxu0 %v29322_v6 }
  0xbc   :  { %v23831_v24 = vpop.permute.xlu0 %2214  ;;  %19243 = vmatmul.mubr.msk.f32.gmra.mrb[2].mxu1 %vm89_vm2, %v23554_v20  ;;  %19310 = vmatprep.subr.msk.mxu0 %vm96_vm1, %v23813_v17  ;;  %v23837_v29 = vpop.permute.xlu1 %2575 }
  0xbd   :  { %19304 = vmatmul.mubr.msk.f32.vlgmr.msra.gmra.mrb[0].mxu0 %vm89_vm2, %v23821_v21  ;;  %20525 = vmatprep.mubr.msk.f32.mxu1 %vm89_vm2, %v23521_v13 }
  0xbe   :  { %19311 = vmatpush1.msk.msra.mxu0 %vm96_vm1, %v23826_v23  ;;  %5146 = vrot.lane.b32.xlu0 %v23372_v2, %s23265_s24 }
  0xbf   :  { %5142 = vrot.lane.b32.xlu1 %v23363_v1, %s23265_s24  ;;  %1585 = vmatprep.mubr.f32.mxu0 %v29322_v6 }
  0xc0   :  { %v23855_v33 = vpop.permute.xlu0 %2577  ;;  %20526 = vmatmul.mubr.msk.f32.vlgmr.msra.gmra.mrb[4].mxu1 %vm89_vm2, %v23554_v20  ;;  %v23859_v13 = vpop.permute.xlu1 %2573  ;;  %19255 = vmatprep.subr.msk.mxu1 %vm96_vm1, %v23454_v7  ;;  %v1856_v20 = vsel %vm1855_vm6, %v23720_v52, %v23706_v50 }
  0xc1   :  { %19305 = vmatmul.mubr.msk.f32.gmra.mrb[2].mxu0 %vm89_vm2, %v23850_v32  ;;  %19256 = vmatpush1.msk.msra.mxu1 %vm96_vm1, %v23372_v2 }
  0xc2   :  { %3688 = vrot.lane.b32.xlu0 %v23534_v15, %s23261_s21  ;;  %578 = vmatprep.mubr.f32.mxu1 %v29322_v6 }
  0xc3   :  { %4047 = vrot.lane.b32.xlu1 %v23454_v7, %s23262_s22  ;;  %1733 = vmatprep.mubr.f32.mxu0 %v29322_v6 }
  0xc4   :  { %19319 = vmatprep.subr.msk.mxu0 %vm96_vm1, %v1857_v34  ;;  %v23880_v38 = vpop.permute.xlu0 %2583  ;;  %19257 = vmatmul.mubr.msk.f32.vlgmr.msra.gmra.mrb[0].mxu1 %vm89_vm2, %v23596_v27  ;;  %v23884_v43 = vpop.permute.xlu1 %2585 }
  0xc5   :  { %19312 = vmatmul.mubr.msk.f32.vlgmr.msra.gmra.mrb[4].mxu0 %vm89_vm2, %v23821_v21  ;;  %584 = vmatprep.mubr.f32.mxu1 %v29322_v6 }
  0xc6   :  { %19320 = vmatpush1.msk.msra.mxu0 %vm96_vm1, %v1856_v20  ;;  %5152 = vrot.lane.b32.xlu0 %v23377_v3, %s23265_s24 }
  0xc7   :  { %5154 = vrot.lane.b32.xlu1 %v23386_v4, %s23265_s24  ;;  %1739 = vmatprep.mubr.f32.mxu0 %v29322_v6 }
  0xc8   :  { %v23898_v48 = vpop.permute.xlu0 %2581  ;;  %19258 = vmatmul.mubr.msk.f32.gmra.mrb[2].mxu1 %vm89_vm2, %v23614_v31  ;;  %20528 = vmatprep.subr.msk.mxu1 %vm96_vm1, %v23386_v4  ;;  %v753_v50 = vpop.permute.xlu1 %752 }
  0xc9   :  { %19313 = vmatmul.mubr.msk.f32.gmra.mrb[6].mxu0 %vm89_vm2, %v23850_v32  ;;  %20529 = vmatpush3.msk.msra.mxu1 %vm96_vm1, %v23386_v4  ;;  %v23910_v52 = vsel %vm760_vm3, %v753_v50, %v23590_v26  ;;  %v23936_v20 = vsel %vm760_vm3, %v23566_v22, %v753_v50  ;;  %v23952_v22 = vld [vmem:[%s29308_s1 + $0x58] sm:$0xf] }
  0xca   :  { %19327 = vmatprep.subr.msk.mxu0 %vm96_vm1, %v1861_v44  ;;  %5150 = vrot.lane.b32.xlu0 %v23391_v5, %s23265_s24 }
  0xcb   :  { %4055 = vrot.lane.b32.xlu1 %v23534_v15, %s23262_s22  ;;  %19272 = vmatprep.subr.msk.mxu1 %vm96_vm1, %v23910_v52  ;;  %s23266_s22 = smov 32  }
  0xcc   :  { %20530 = vmatprep.mubr.msk.f32.mxu1 %vm89_vm2, %v23596_v27  ;;  %1947 = vmatprep.mubr.f32.mxu0 %v29322_v6  ;;  %v23930_v26 = vpop.permute.xlu0 %2942  ;;  %v23932_v34 = vpop.permute.xlu1 %2944 }
  0xcd   :  { %20531 = vmatmul.mubr.msk.f32.vlgmr.msra.gmra.mrb[4].mxu1 %vm89_vm2, %v23614_v31  ;;  %19321 = vmatmul.mubr.msk.f32.vlgmr.msra.gmra.mrb[0].mxu0 %vm89_vm2, %v23918_v62  ;;  %v2224_v31 = vsel %vm2222_vm7, %v23764_v60, %v23768_v61 }
  0xce   :  { %19273 = vmatpush1.msk.msra.mxu1 %vm96_vm1, %v23936_v20  ;;  %19328 = vmatpush1.msk.msra.mxu0 %vm96_vm1, %v1860_v8  ;;  %v2223_v8 = vsel %vm2222_vm7, %v23776_v63, %v23764_v60 }
  0xcf   :  { %20533 = vmatprep.subr.msk.mxu1 %vm96_vm1, %v23586_v25  ;;  %5511 = vrot.lane.b32.xlu0 %v23358_v0, %s23266_s22 }
  0xd0   :  { %5513 = vrot.lane.b32.xlu1 %v23372_v2, %s23266_s22  ;;  %928 = vmatprep.mubr.f32.mxu1 %v29322_v6  ;;  %v23957_v27 = vpop.permute.xlu0 %2940  ;;  %v1117_v53 = vpop.permute.xlu1 %1116 }
  0xd1   :  { %1953 = vmatprep.mubr.f32.mxu0 %v29322_v6  ;;  %19274 = vmatmul.mubr.msk.f32.vlgmr.msra.gmra.mrb[0].mxu1 %vm89_vm2, %v23658_v40  ;;  %v23967_v44 = vsel %vm1124_vm4, %v1117_v53, %v23640_v37 }
  0xd2   :  { %20534 = vmatpush3.msk.msra.mxu1 %vm96_vm1, %v23586_v25  ;;  %19322 = vmatmul.mubr.msk.f32.gmra.mrb[2].mxu0 %vm89_vm2, %v23952_v22 }
  0xd3   :  { %19336 = vmatprep.subr.msk.mxu0 %vm96_vm1, %v2224_v31  ;;  %5509 = vrot.lane.b32.xlu0 %v23363_v1, %s23266_s22  ;;  %v2228_v31 = vsel %vm2222_vm7, %v23798_v14, %v23804_v10 }
  0xd4   :  { %4414 = vrot.lane.b32.xlu1 %v23454_v7, %s23263_s23  ;;  %19289 = vmatprep.subr.msk.mxu1 %vm96_vm1, %v23967_v44  ;;  %v23980_v50 = vpop.permute.xlu0 %2950  ;;  %v23982_v37 = vpop.permute.xlu1 %2952 }
  0xd5   :  { %934 = vmatprep.mubr.f32.mxu1 %v29322_v6  ;;  %2101 = vmatprep.mubr.f32.mxu0 %v29322_v6 }
  0xd6   :  { %19275 = vmatmul.mubr.msk.f32.gmra.mrb[2].mxu1 %vm89_vm2, %v23682_v45  ;;  %19329 = vmatmul.mubr.msk.f32.vlgmr.msra.gmra.mrb[4].mxu0 %vm89_vm2, %v23918_v62 }
  0xd7   :  { %19337 = vmatpush1.msk.msra.mxu0 %vm96_vm1, %v2223_v8  ;;  %5519 = vrot.lane.b32.xlu0 %v23377_v3, %s23266_s22  ;;  %v24011_v8 = vsel %vm1124_vm4, %v23608_v30, %v1117_v53  ;;  %v2591_v53 = vsel %vm2589_vm8, %v23837_v29, %v23855_v33 }
  0xd8   :  { %5521 = vrot.lane.b32.xlu1 %v23386_v4, %s23266_s22  ;;  %20535 = vmatprep.mubr.msk.f32.mxu1 %vm89_vm2, %v23658_v40  ;;  %v24003_v60 = vpop.permute.xlu0 %2948  ;;  %v24005_v63 = vpop.permute.xlu1 %3309  ;;  %v24024_v40 = vld [vmem:[%s29308_s1 + $0x60] sm:$0xff] }
  0xd9   :  { %2107 = vmatprep.mubr.f32.mxu0 %v29322_v6  ;;  %19344 = vmatprep.subr.msk.mxu0 %vm96_vm1, %v2228_v31  ;;  %v2227_v31 = vsel %vm2222_vm7, %v23831_v24, %v23798_v14  ;;  %v24055_v14 = vld [vmem:[%s29308_s1 + $0x68] sm:$0xf] }
  0xda   :  { %20536 = vmatmul.mubr.msk.f32.vlgmr.msra.gmra.mrb[4].mxu1 %vm89_vm2, %v23682_v45  ;;  %19330 = vmatmul.mubr.msk.f32.gmra.mrb[6].mxu0 %vm89_vm2, %v23952_v22 }
  0xdb   :  { %19290 = vmatpush1.msk.msra.mxu1 %vm96_vm1, %v24011_v8  ;;  %5517 = vrot.lane.b32.xlu0 %v23391_v5, %s23266_s22 }
  0xdc   :  { %20538 = vmatprep.subr.msk.mxu1 %vm96_vm1, %v23636_v36  ;;  %4422 = vrot.lane.b32.xlu1 %v23534_v15, %s23263_s23  ;;  %v24030_v30 = vpop.permute.xlu0 %3311  ;;  %v24032_v45 = vpop.permute.xlu1 %3307 }
  0xdd   :  { %1292 = vmatprep.mubr.f32.mxu1 %v29322_v6  ;;  %2314 = vmatprep.mubr.f32.mxu0 %v29322_v6 }
  0xde   :  { %19291 = vmatmul.mubr.msk.f32.vlgmr.msra.gmra.mrb[0].mxu1 %vm89_vm2, %v23730_v54  ;;  %19338 = vmatmul.mubr.msk.f32.vlgmr.msra.gmra.mrb[0].mxu0 %vm89_vm2, %v24024_v40 }
  0xdf   :  { %20539 = vmatpush3.msk.msra.mxu1 %vm96_vm1, %v23636_v36  ;;  %19345 = vmatpush1.msk.msra.mxu0 %vm96_vm1, %v2227_v31  ;;  %v2590_v36 = vsel %vm2589_vm8, %v23859_v13, %v23837_v29  ;;  %v2958_v13 = vsel %vm2956_vm9, %v23930_v26, %v23932_v34 }
  0xe0   :  { %19353 = vmatprep.subr.msk.mxu0 %vm96_vm1, %v2591_v53  ;;  %4781 = vrot.lane.b32.xlu0 %v23454_v7, %s23264_s19  ;;  %v1481_v6 = vpop.permute.xlu0 %1480  ;;  %v24057_v17 = vpop.permute.xlu1 %3317 }
  0xe1   :  { %5878 = vrot.lane.b32.xlu1 %v23358_v0, %s23267_s20  ;;  %1298 = vmatprep.mubr.f32.mxu1 %v29414_v56  ;;  %v24064_v53 = vsel %vm1488_vm5, %v1481_v6, %v23694_v47  ;;  %v24086_v49 = vsel %vm1488_vm5, %v23652_v39, %v1481_v6 }
  0xe2   :  { %2320 = vmatprep.mubr.f32.mxu0 %v29414_v56  ;;  %19292 = vmatmul.mubr.msk.f32.gmra.mrb[2].mxu1 %vm89_vm2, %v23756_v59  ;;  %29415 = vst [vmem:[#allocation10_spill] sm:$0xff] %v24086_v49 }
  0xe3   :  { %19339 = vmatmul.mubr.msk.f32.gmra.mrb[2].mxu0 %vm89_vm2, %v24055_v14  ;;  %19306 = vmatprep.subr.msk.mxu1 %vm96_vm1, %v24064_v53 }
  0xe4   :  { %5880 = vrot.lane.b32.xlu0 %v23372_v2, %s23267_s20  ;;  %20540 = vmatprep.mubr.msk.f32.mxu1 %vm89_vm2, %v23730_v54  ;;  %v24077_v31 = vpop.permute.xlu0 %3319  ;;  %v24079_v47 = vpop.permute.xlu1 %3315  ;;  %v2595_v54 = vsel %vm2589_vm8, %v23880_v38, %v23884_v43 }
  0xe5   :  { %5876 = vrot.lane.b32.xlu1 %v23363_v1, %s23267_s20  ;;  %2468 = vmatprep.mubr.f32.mxu0 %v29414_v56 }
  0xe6   :  { %20541 = vmatmul.mubr.msk.f32.vlgmr.msra.gmra.mrb[4].mxu1 %vm89_vm2, %v23756_v59 }
  0xe7   :  { %19307 = vmatpush1.msk.msra.mxu1 %vm96_vm1, %v24086_v49  ;;  %19346 = vmatmul.mubr.msk.f32.vlgmr.msra.gmra.mrb[4].mxu0 %vm89_vm2, %v24024_v40 }
  0xe8   :  { %19354 = vmatpush1.msk.msra.mxu0 %vm96_vm1, %v2590_v36  ;;  %20543 = vmatprep.subr.msk.mxu1 %vm96_vm1, %v23690_v46  ;;  %v1846_v6 = vpop.permute.xlu0 %1845  ;;  %v24103_v39 = vpop.permute.xlu1 %3676 }
  0xe9   :  { %19361 = vmatprep.subr.msk.mxu0 %vm96_vm1, %v2595_v54  ;;  %4789 = vrot.lane.b32.xlu0 %v23534_v15, %s23264_s19  ;;  %v1859_v59 = vsel %vm1855_vm6, %v1846_v6, %v23748_v58  ;;  %v24128_v58 = vld [vmem:[%s29308_s1 + $0x70] sm:$0xff]  ;;  %v2594_v54 = vsel %vm2589_vm8, %v23898_v48, %v23880_v38  ;;  %v1858_v38 = vsel %vm1855_vm6, %v23710_v51, %v1846_v6 }
  0xea   :  { %5886 = vrot.lane.b32.xlu1 %v23377_v3, %s23267_s20  ;;  %1656 = vmatprep.mubr.f32.mxu1 %v29414_v56  ;;  %v2962_v51 = vsel %vm2956_vm9, %v23980_v50, %v23982_v37 }
  0xeb   :  { %2474 = vmatprep.mubr.f32.mxu0 %v29414_v56  ;;  %19308 = vmatmul.mubr.msk.f32.vlgmr.msra.gmra.mrb[0].mxu1 %vm89_vm2, %v23821_v21 }
  0xec   :  { %20544 = vmatpush3.msk.msra.mxu1 %vm96_vm1, %v23690_v46  ;;  %19347 = vmatmul.mubr.msk.f32.gmra.mrb[6].mxu0 %vm89_vm2, %v24055_v14  ;;  %v24120_v36 = vpop.permute.xlu0 %3678  ;;  %v24154_v46 = vld [vmem:[%s29308_s1 + $0x78] sm:$0xf] }
  0xed   :  { %5888 = vrot.lane.b32.xlu0 %v23386_v4, %s23267_s20  ;;  %19323 = vmatprep.subr.msk.mxu1 %vm96_vm1, %v1859_v59  ;;  %v24130_v29 = vpop.permute.xlu1 %3674 }
  0xee   :  { %5884 = vrot.lane.b32.xlu1 %v23391_v5, %s23267_s20  ;;  %1662 = vmatprep.mubr.f32.mxu1 %v29414_v56 }
  0xef   :  { %2681 = vmatprep.mubr.f32.mxu0 %v29414_v56  ;;  %19309 = vmatmul.mubr.msk.f32.gmra.mrb[2].mxu1 %vm89_vm2, %v23850_v32 }
  0xf0   :  { %19355 = vmatmul.mubr.msk.f32.vlgmr.msra.gmra.mrb[0].mxu0 %vm89_vm2, %v24128_v58  ;;  %20545 = vmatprep.mubr.msk.f32.mxu1 %vm89_vm2, %v23821_v21  ;;  %v1854_v59 = vpop.permute.xlu0 %1853 }
  0xf1   :  { %19362 = vmatpush1.msk.msra.mxu0 %vm96_vm1, %v2594_v54  ;;  %5148 = vrot.lane.b32.xlu0 %v23454_v7, %s23265_s24  ;;  %v24156_v49 = vpop.permute.xlu1 %3684  ;;  %v1862_v21 = vsel %vm1855_vm6, %v23744_v57, %v1854_v59 }
  0xf2   :  { %19370 = vmatprep.subr.msk.mxu0 %vm96_vm1, %v2958_v13  ;;  %6245 = vrot.lane.b32.xlu1 %v23358_v0, %s23268_s30 }
  0xf3   :  { %2687 = vmatprep.mubr.f32.mxu0 %v29414_v56  ;;  %20546 = vmatmul.mubr.msk.f32.vlgmr.msra.gmra.mrb[4].mxu1 %vm89_vm2, %v23850_v32  ;;  %v2957_v32 = vsel %vm2956_vm9, %v23957_v27, %v23930_v26 }
  0xf4   :  { %19324 = vmatpush1.msk.msra.mxu1 %vm96_vm1, %v1858_v38  ;;  %19356 = vmatmul.mubr.msk.f32.gmra.mrb[2].mxu0 %vm89_vm2, %v24154_v46  ;;  %v24171_v13 = vpop.permute.xlu0 %3686 }
  0xf5   :  { %6247 = vrot.lane.b32.xlu0 %v23372_v2, %s23268_s30  ;;  %20548 = vmatprep.subr.msk.mxu1 %vm96_vm1, %v1862_v21  ;;  %v24176_v57 = vpop.permute.xlu1 %3682 }
  0xf6   :  { %6243 = vrot.lane.b32.xlu1 %v23363_v1, %s23268_s30  ;;  %2024 = vmatprep.mubr.f32.mxu1 %v29414_v56 }
  0xf7   :  { %2835 = vmatprep.mubr.f32.mxu0 %v29414_v56  ;;  %19325 = vmatmul.mubr.msk.f32.vlgmr.msra.gmra.mrb[0].mxu1 %vm89_vm2, %v23918_v62 }
  0xf8   :  { %20549 = vmatpush3.msk.msra.mxu1 %vm96_vm1, %v1862_v21  ;;  %19363 = vmatmul.mubr.msk.f32.vlgmr.msra.gmra.mrb[4].mxu0 %vm89_vm2, %v24128_v58  ;;  %v2213_v6 = vpop.permute.xlu0 %2212  ;;  %v2961_v21 = vsel %vm2956_vm9, %v24003_v60, %v23980_v50 }
  0xf9   :  { %19371 = vmatpush1.msk.msra.mxu0 %vm96_vm1, %v2957_v32  ;;  %5156 = vrot.lane.b32.xlu0 %v23534_v15, %s23265_s24  ;;  %v24196_v54 = vpop.permute.xlu1 %4043  ;;  %v2226_v26 = vsel %vm2222_vm7, %v2213_v6, %v23831_v24  ;;  %v24217_v24 = vld [vmem:[%s29308_s1 + $0x80] sm:$0xff]  ;;  %v2225_v38 = vsel %vm2222_vm7, %v23768_v61, %v2213_v6 }
  0xfa   :  { %19378 = vmatprep.subr.msk.mxu0 %vm96_vm1, %v2962_v51  ;;  %5515 = vrot.lane.b32.xlu1 %v23454_v7, %s23266_s22 }
  0xfb   :  { %2030 = vmatprep.mubr.f32.mxu1 %v29414_v56  ;;  %2841 = vmatprep.mubr.f32.mxu0 %v29414_v56 }
  0xfc   :  { %19326 = vmatmul.mubr.msk.f32.gmra.mrb[2].mxu1 %vm89_vm2, %v23952_v22  ;;  %19364 = vmatmul.mubr.msk.f32.gmra.mrb[6].mxu0 %vm89_vm2, %v24154_v46  ;;  %v24209_v27 = vpop.permute.xlu0 %4045 }
  0xfd   :  { %6253 = vrot.lane.b32.xlu0 %v23377_v3, %s23268_s30  ;;  %19340 = vmatprep.subr.msk.mxu1 %vm96_vm1, %v2226_v26  ;;  %v24219_v59 = vpop.permute.xlu1 %4041 }
  0xfe   :  { %6255 = vrot.lane.b32.xlu1 %v23386_v4, %s23268_s30  ;;  %20550 = vmatprep.mubr.msk.f32.mxu1 %vm89_vm2, %v23918_v62  ;;  %v3325_v62 = vsel %vm3323_vm10, %v24005_v63, %v24030_v30 }
  0xff   :  { %3048 = vmatprep.mubr.f32.mxu0 %v29414_v56 }
 0x100   :  { %20551 = vmatmul.mubr.msk.f32.vlgmr.msra.gmra.mrb[4].mxu1 %vm89_vm2, %v23952_v22  ;;  %19372 = vmatmul.mubr.msk.f32.vlgmr.msra.gmra.mrb[0].mxu0 %vm89_vm2, %v24217_v24  ;;  %v2221_v51 = vpop.permute.xlu0 %2220  ;;  %v24248_v22 = vld [vmem:[%s29308_s1 + $0x88] sm:$0xf] }
 0x101   :  { %19341 = vmatpush1.msk.msra.mxu1 %vm96_vm1, %v2225_v38  ;;  %19379 = vmatpush1.msk.msra.mxu0 %vm96_vm1, %v2961_v21  ;;  %v2580_v32 = vpop.permute.xlu1 %2579  ;;  %v2229_v61 = vsel %vm2222_vm7, %v23804_v10, %v2221_v51  ;;  %v3329_v21 = vsel %vm3323_vm10, %v24057_v17, %v24077_v31  ;;  %vm5525_vm7 = vcmask 261120  }
 0x102   :  { %19387 = vmatprep.subr.msk.mxu0 %vm96_vm1, %v3325_v62  ;;  %6251 = vrot.lane.b32.xlu0 %v23391_v5, %s23268_s30  ;;  %v2593_v6 = vsel %vm2589_vm8, %v2580_v32, %v23898_v48 }
 0x103   :  { %5523 = vrot.lane.b32.xlu1 %v23534_v15, %s23266_s22  ;;  %2391 = vmatprep.mubr.f32.mxu1 %v29414_v56  ;;  %s23270_s22 = smov 28  }
 0x104   :  { %3054 = vmatprep.mubr.f32.mxu0 %v29414_v56  ;;  %19342 = vmatmul.mubr.msk.f32.vlgmr.msra.gmra.mrb[0].mxu1 %vm89_vm2, %v24024_v40  ;;  %v24256_v50 = vpop.permute.xlu0 %4051 }
 0x105   :  { %19373 = vmatmul.mubr.msk.f32.gmra.mrb[2].mxu0 %vm89_vm2, %v24248_v22  ;;  %20553 = vmatprep.subr.msk.mxu1 %vm96_vm1, %v2229_v61  ;;  %v24261_v10 = vpop.permute.xlu1 %4053 }
 0x106   :  { %6612 = vrot.lane.b32.xlu0 %v23358_v0, %s23269_s15  ;;  %2397 = vmatprep.mubr.f32.mxu1 %v29414_v56  ;;  %v3324_v0 = vsel %vm3323_vm10, %v24032_v45, %v24005_v63  ;;  %v2592_v45 = vsel %vm2589_vm8, %v23855_v33, %v2580_v32  ;;  %v3696_v32 = vsel %vm3690_vm11, %v24156_v49, %v24171_v13 }
 0x107   :  { %6614 = vrot.lane.b32.xlu1 %v23372_v2, %s23269_s15  ;;  %20554 = vmatpush3.msk.msra.mxu1 %vm96_vm1, %v2229_v61 }
 0x108   :  { %3202 = vmatprep.mubr.f32.mxu0 %v29414_v56  ;;  %19343 = vmatmul.mubr.msk.f32.gmra.mrb[2].mxu1 %vm89_vm2, %v24055_v14  ;;  %v24274_v26 = vpop.permute.xlu0 %4049 }
 0x109   :  { %19357 = vmatprep.subr.msk.mxu1 %vm96_vm1, %v2593_v6  ;;  %19380 = vmatmul.mubr.msk.f32.vlgmr.msra.gmra.mrb[4].mxu0 %vm89_vm2, %v24217_v24  ;;  %v2588_v2 = vpop.permute.xlu1 %2587  ;;  %v24417_v6 = vld [vmem:[%s29307_s0 + $0x28] sm:$0x3f] }
 0x10a   :  { %19388 = vmatpush1.msk.msra.mxu0 %vm96_vm1, %v3324_v0  ;;  %6610 = vrot.lane.b32.xlu0 %v23363_v1, %s23269_s15  ;;  %v2596_v48 = vsel %vm2589_vm8, %v23884_v43, %v2588_v2  ;;  %v24312_v43 = vld [vmem:[%s29308_s1 + $0x90] sm:$0xff]  ;;  %vm5892_vm8 = vcmask 252928  }
 0x10b   :  { %19395 = vmatprep.subr.msk.mxu0 %vm96_vm1, %v3329_v21  ;;  %5882 = vrot.lane.b32.xlu1 %v23454_v7, %s23267_s20  ;;  %v3695_v21 = vsel %vm3690_vm11, %v24176_v57, %v24156_v49  ;;  %v24452_v49 = vld [vmem:[%s29307_s0 + $0x20] sm:$0x3f] }
 0x10c   :  { %20555 = vmatprep.mubr.msk.f32.mxu1 %vm89_vm2, %v24024_v40  ;;  %3208 = vmatprep.mubr.f32.mxu0 %v29414_v56  ;;  %v24296_v63 = vpop.permute.xlu0 %4410 }
 0x10d   :  { %20556 = vmatmul.mubr.msk.f32.vlgmr.msra.gmra.mrb[4].mxu1 %vm89_vm2, %v24055_v14  ;;  %19381 = vmatmul.mubr.msk.f32.gmra.mrb[6].mxu0 %vm89_vm2, %v24248_v22  ;;  %v24304_v1 = vpop.permute.xlu1 %4412 }
 0x10e   :  { %19358 = vmatpush1.msk.msra.mxu1 %vm96_vm1, %v2592_v45  ;;  %6620 = vrot.lane.b32.xlu0 %v23377_v3, %s23269_s15  ;;  %v3328_v3 = vsel %vm3323_vm10, %v24079_v47, %v24057_v17  ;;  %v24339_v17 = vld [vmem:[%s29308_s1 + $0x98] sm:$0xf]  ;;  %v4059_v45 = vsel %vm4057_vm12, %v24196_v54, %v24209_v27 }
 0x10f   :  { %6622 = vrot.lane.b32.xlu1 %v23386_v4, %s23269_s15  ;;  %20558 = vmatprep.subr.msk.mxu1 %vm96_vm1, %v2596_v48  ;;  %v3692_v4 = vsel %vm3690_vm11, %v24103_v39, %v24120_v36 }
 0x110   :  { %2758 = vmatprep.mubr.f32.mxu1 %v29414_v56  ;;  %3415 = vmatprep.mubr.f32.mxu0 %v29414_v56  ;;  %v24319_v33 = vpop.permute.xlu0 %4408 }
 0x111   :  { %19359 = vmatmul.mubr.msk.f32.vlgmr.msra.gmra.mrb[0].mxu1 %vm89_vm2, %v24128_v58  ;;  %19389 = vmatmul.mubr.msk.f32.vlgmr.msra.gmra.mrb[0].mxu0 %vm89_vm2, %v24312_v43  ;;  %v2947_v40 = vpop.permute.xlu1 %2946 }
 0x112   :  { %20559 = vmatpush3.msk.msra.mxu1 %vm96_vm1, %v2596_v48  ;;  %19396 = vmatpush1.msk.msra.mxu0 %vm96_vm1, %v3328_v3  ;;  %v2960_v14 = vsel %vm2956_vm9, %v2947_v40, %v24003_v60  ;;  %v24363_v60 = vld [vmem:[%s29307_s0 + $0x8] sm:$0x3f]  ;;  %v2959_v62 = vsel %vm2956_vm9, %v23932_v34, %v2947_v40  ;;  %v23189_v34 = vld [vmem:[%s29307_s0] sm:$0x3f]  ;;  %v24444_v3 = vld [vmem:[%s29307_s0 + $0x30] sm:$0x3f] }
 0x113   :  { %19404 = vmatprep.subr.msk.mxu0 %vm96_vm1, %v3692_v4  ;;  %6618 = vrot.lane.b32.xlu0 %v23391_v5, %s23269_s15 }
 0x114   :  { %5890 = vrot.lane.b32.xlu1 %v23534_v15, %s23267_s20  ;;  %2764 = vmatprep.mubr.f32.mxu1 %v29414_v56  ;;  %v24346_v38 = vpop.permute.xlu0 %4418  ;;  %s23272_s20 = smov 122  }
 0x115   :  { %3421 = vmatprep.mubr.f32.mxu0 %v29414_v56  ;;  %19360 = vmatmul.mubr.msk.f32.gmra.mrb[2].mxu1 %vm89_vm2, %v24154_v46  ;;  %v24351_v5 = vpop.permute.xlu1 %4420 }
 0x116   :  { %19390 = vmatmul.mubr.msk.f32.gmra.mrb[2].mxu0 %vm89_vm2, %v24339_v17  ;;  %19374 = vmatprep.subr.msk.mxu1 %vm96_vm1, %v2960_v14 }
 0x117   :  { %6249 = vrot.lane.b32.xlu0 %v23454_v7, %s23268_s30  ;;  %20560 = vmatprep.mubr.msk.f32.mxu1 %vm89_vm2, %v24128_v58  ;;  %v3691_v58 = vsel %vm3690_vm11, %v24130_v29, %v24103_v39 }
 0x118   :  { %6979 = vrot.lane.b32.xlu1 %v24363_v60, %s23270_s22  ;;  %3569 = vmatprep.mubr.f32.mxu0 %v29414_v56  ;;  %v24368_v51 = vpop.permute.xlu0 %4416 }
 0x119   :  { %20561 = vmatmul.mubr.msk.f32.vlgmr.msra.gmra.mrb[4].mxu1 %vm89_vm2, %v24154_v46  ;;  %v2955_v7 = vpop.permute.xlu1 %2954  ;;  %v24387_v46 = vld [vmem:[%s29307_s0 + $0x10] sm:$0x3f] }
 0x11a   :  { %19375 = vmatpush1.msk.msra.mxu1 %vm96_vm1, %v2959_v62  ;;  %19397 = vmatmul.mubr.msk.f32.vlgmr.msra.gmra.mrb[4].mxu0 %vm89_vm2, %v24312_v43  ;;  %v2963_v39 = vsel %vm2956_vm9, %v23982_v37, %v2955_v7  ;;  %v24412_v37 = vld [vmem:[%s29308_s1 + $0xa0] sm:$0xff]  ;;  %v4058_v7 = vsel %vm4057_vm12, %v24219_v59, %v24196_v54  ;;  %v24530_v59 = vld [vmem:[%s29308_s1 + $0xb0] sm:$0xff]  ;;  %vm6259_vm9 = vcmask 244736  }
 0x11b   :  { %19405 = vmatpush1.msk.msra.mxu0 %vm96_vm1, %v3691_v58  ;;  %6981 = vrot.lane.b32.xlu0 %v24387_v46, %s23270_s22 }
 0x11c   :  { %19412 = vmatprep.subr.msk.mxu0 %vm96_vm1, %v3696_v32  ;;  %6977 = vrot.lane.b32.xlu1 %v23189_v34, %s23270_s22  ;;  %v3314_v29 = vpop.permute.xlu0 %3313 }
 0x11d   :  { %3125 = vmatprep.mubr.f32.mxu1 %v29414_v56  ;;  %3575 = vmatprep.mubr.f32.mxu0 %v29414_v56  ;;  %v24400_v61 = vpop.permute.xlu1 %4777  ;;  %v3327_v48 = vsel %vm3323_vm10, %v3314_v29, %v24079_v47  ;;  %v24459_v47 = vld [vmem:[%s29308_s1 + $0xa8] sm:$0xf]  ;;  %v3326_v14 = vsel %vm3323_vm10, %v24030_v30, %v3314_v29  ;;  %v4062_v29 = vsel %vm4057_vm12, %v24274_v26, %v24256_v50 }
 0x11e   :  { %19376 = vmatmul.mubr.msk.f32.vlgmr.msra.gmra.mrb[0].mxu1 %vm89_vm2, %v24217_v24  ;;  %19398 = vmatmul.mubr.msk.f32.gmra.mrb[6].mxu0 %vm89_vm2, %v24339_v17 }
 0x11f   :  { %6257 = vrot.lane.b32.xlu0 %v23534_v15, %s23268_s30  ;;  %20563 = vmatprep.subr.msk.mxu1 %vm96_vm1, %v2963_v39 }
 0x120   :  { %6987 = vrot.lane.b32.xlu1 %v24417_v6, %s23270_s22  ;;  %3131 = vmatprep.mubr.f32.mxu1 %v29414_v56  ;;  %v24422_v0 = vpop.permute.xlu0 %4779 }
 0x121   :  { %20564 = vmatpush3.msk.msra.mxu1 %vm96_vm1, %v2963_v39  ;;  %3782 = vmatprep.mubr.f32.mxu0 %v29414_v56  ;;  %v24426_v2 = vpop.permute.xlu1 %4775  ;;  %v4426_v39 = vsel %vm4424_vm13, %v24296_v63, %v24304_v1 }
 0x122   :  { %19377 = vmatmul.mubr.msk.f32.gmra.mrb[2].mxu1 %vm89_vm2, %v24248_v22  ;;  %19406 = vmatmul.mubr.msk.f32.vlgmr.msra.gmra.mrb[0].mxu0 %vm89_vm2, %v24412_v37 }
 0x123   :  { %19413 = vmatpush1.msk.msra.mxu0 %vm96_vm1, %v3695_v21  ;;  %6989 = vrot.lane.b32.xlu0 %v24444_v3, %s23270_s22 }
 0x124   :  { %19421 = vmatprep.subr.msk.mxu0 %vm96_vm1, %v4059_v45  ;;  %6985 = vrot.lane.b32.xlu1 %v24452_v49, %s23270_s22  ;;  %v3322_v40 = vpop.permute.xlu0 %3321 }
 0x125   :  { %19391 = vmatprep.subr.msk.mxu1 %vm96_vm1, %v3327_v48  ;;  %20565 = vmatprep.mubr.msk.f32.mxu1 %vm89_vm2, %v24217_v24  ;;  %v24464_v4 = vpop.permute.xlu1 %4785  ;;  %v3330_v62 = vsel %vm3323_vm10, %v24077_v31, %v3322_v40  ;;  %v24479_v24 = vld [vmem:[%s29307_s0 + $0x18] sm:$0x3f]  ;;  %v4063_v31 = vsel %vm4057_vm12, %v24256_v50, %v24261_v10  ;;  %vm6626_vm10 = vcmask 236544  }
 0x126   :  { %3788 = vmatprep.mubr.f32.mxu0 %v29414_v56  ;;  %20566 = vmatmul.mubr.msk.f32.vlgmr.msra.gmra.mrb[4].mxu1 %vm89_vm2, %v24248_v22 }
 0x127   :  { %19392 = vmatpush1.msk.msra.mxu1 %vm96_vm1, %v3326_v14  ;;  %19407 = vmatmul.mubr.msk.f32.gmra.mrb[2].mxu0 %vm89_vm2, %v24459_v47  ;;  %v4425_v14 = vsel %vm4424_vm13, %v24319_v33, %v24296_v63 }
 0x128   :  { %6616 = vrot.lane.b32.xlu0 %v24479_v24, %s23269_s15  ;;  %6624 = vrot.lane.b32.xlu1 %v23534_v15, %s23269_s15  ;;  %v24485_v30 = vpop.permute.xlu0 %4787  ;;  %s23273_s15 = smov 120  }
 0x129   :  { %3936 = vmatprep.mubr.f32.mxu0 %v29414_v56  ;;  %3492 = vmatprep.mubr.f32.mxu1 %v29414_v56  ;;  %v24489_v22 = vpop.permute.xlu1 %4783 }
 0x12a   :  { %19393 = vmatmul.mubr.msk.f32.vlgmr.msra.gmra.mrb[0].mxu1 %vm89_vm2, %v24312_v43  ;;  %20568 = vmatprep.subr.msk.mxu1 %vm96_vm1, %v3330_v62 }
 0x12b   :  { %19414 = vmatmul.mubr.msk.f32.vlgmr.msra.gmra.mrb[4].mxu0 %vm89_vm2, %v24412_v37  ;;  %20569 = vmatpush3.msk.msra.mxu1 %vm96_vm1, %v3330_v62 }
 0x12c   :  { %19422 = vmatpush1.msk.msra.mxu0 %vm96_vm1, %v4058_v7  ;;  %6983 = vrot.lane.b32.xlu0 %v24479_v24, %s23270_s22  ;;  %v3681_v58 = vpop.permute.xlu0 %3680  ;;  %v19437_v7 = vld [vmem:[%s29308_s1 + $0xc8] sm:$0xf] }
 0x12d   :  { %19429 = vmatprep.subr.msk.mxu0 %vm96_vm1, %v4063_v31  ;;  %6991 = vrot.lane.b32.xlu1 %v23534_v15, %s23270_s22  ;;  %v24509_v32 = vpop.permute.xlu1 %5144  ;;  %v3694_v54 = vsel %vm3690_vm11, %v3681_v58, %v24176_v57  ;;  %v24522_v15 = vld [vmem:[%s29307_s0 + $0x38] sm:$0x3f]  ;;  %v3693_v21 = vsel %vm3690_vm11, %v24120_v36, %v3681_v58  ;;  %v19436_v31 = vld [vmem:[%s29308_s1 + $0xc0] sm:$0xff] }
 0x12e   :  { %3942 = vmatprep.mubr.f32.mxu0 %v29414_v56  ;;  %3498 = vmatprep.mubr.f32.mxu1 %v29414_v56 }
 0x12f   :  { %19415 = vmatmul.mubr.msk.f32.gmra.mrb[6].mxu0 %vm89_vm2, %v24459_v47  ;;  %19394 = vmatmul.mubr.msk.f32.gmra.mrb[2].mxu1 %vm89_vm2, %v24339_v17 }
 0x130   :  { %7675 = vrot.lane.b32.xlu0 %v24522_v15, %s23251_s17  ;;  %4149 = vmatprep.mubr.f32.mxu0 %v29414_v56  ;;  %v24532_v34 = vpop.permute.xlu0 %5146 }
 0x131   :  { %8011 = vrot.lane.b32.xlu1 %v24522_v15, %s23253_s26  ;;  %20570 = vmatprep.mubr.msk.f32.mxu1 %vm89_vm2, %v24312_v43  ;;  %v24538_v57 = vpop.permute.xlu1 %5142  ;;  %v24559_v43 = vld [vmem:[%s29308_s1 + $0xb8] sm:$0xf] }
 0x132   :  { %19408 = vmatprep.subr.msk.mxu1 %vm96_vm1, %v3694_v54 }
 0x133   :  { %19423 = vmatmul.mubr.msk.f32.vlgmr.msra.gmra.mrb[0].mxu0 %vm89_vm2, %v24530_v59  ;;  %20571 = vmatmul.mubr.msk.f32.vlgmr.msra.gmra.mrb[4].mxu1 %vm89_vm2, %v24339_v17 }
 0x134   :  { %19430 = vmatpush1.msk.msra.mxu0 %vm96_vm1, %v4062_v29  ;;  %8347 = vrot.lane.b32.xlu0 %v24522_v15, %s23254_s27  ;;  %v3689_v50 = vpop.permute.xlu0 %3688 }
 0x135   :  { %19438 = vmatprep.subr.msk.mxu0 %vm96_vm1, %v4426_v39  ;;  %8683 = vrot.lane.b32.xlu1 %v24522_v15, %s23255_s28  ;;  %v4048_v36 = vpop.permute.xlu1 %4047  ;;  %v3697_v17 = vsel %vm3690_vm11, %v24171_v13, %v3689_v50  ;;  %v4430_v13 = vsel %vm4424_vm13, %v24346_v38, %v24351_v5  ;;  %v4792_v50 = vsel %vm4791_vm14, %v24426_v2, %v24400_v61  ;;  %v19453_v2 = vld [vmem:[%s29308_s1 + $0xd0] sm:$0xff] }
 0x136   :  { %19409 = vmatpush1.msk.msra.mxu1 %vm96_vm1, %v3693_v21  ;;  %4155 = vmatprep.mubr.f32.mxu0 %v29414_v56  ;;  %v4061_v40 = vsel %vm4057_vm12, %v4048_v36, %v24274_v26  ;;  %v4060_v33 = vsel %vm4057_vm12, %v24209_v27, %v4048_v36  ;;  %v4797_v21 = vsel %vm4791_vm14, %v24464_v4, %v24485_v30 }
 0x137   :  { %3859 = vmatprep.mubr.f32.mxu1 %v29414_v56  ;;  %19424 = vmatmul.mubr.msk.f32.gmra.mrb[2].mxu0 %vm89_vm2, %v24559_v43 }
 0x138   :  { %19410 = vmatmul.mubr.msk.f32.vlgmr.msra.gmra.mrb[0].mxu1 %vm89_vm2, %v24412_v37  ;;  %4303 = vmatprep.mubr.f32.mxu0 %v29414_v56  ;;  %v24574_v48 = vpop.permute.xlu0 %5152 }
 0x139   :  { %3865 = vmatprep.mubr.f32.mxu1 %v29414_v56  ;;  %20573 = vmatprep.subr.msk.mxu1 %vm96_vm1, %v3697_v17  ;;  %v24578_v45 = vpop.permute.xlu1 %5154 }
 0x13a   :  { %20574 = vmatpush3.msk.msra.mxu1 %vm96_vm1, %v3697_v17 }
 0x13b   :  { %19431 = vmatmul.mubr.msk.f32.vlgmr.msra.gmra.mrb[4].mxu0 %vm89_vm2, %v24530_v59  ;;  %19425 = vmatprep.subr.msk.mxu1 %vm96_vm1, %v4061_v40  ;;  %v19454_v40 = vld [vmem:[%s29308_s1 + $0xd8] sm:$0xf] }
 0x13c   :  { %19439 = vmatpush1.msk.msra.mxu0 %vm96_vm1, %v4425_v14  ;;  %19411 = vmatmul.mubr.msk.f32.gmra.mrb[2].mxu1 %vm89_vm2, %v24459_v47  ;;  %v24595_v62 = vpop.permute.xlu0 %5150 }
 0x13d   :  { %19446 = vmatprep.subr.msk.mxu0 %vm96_vm1, %v4430_v13  ;;  %4309 = vmatprep.mubr.f32.mxu0 %v29414_v56  ;;  %v4056_v26 = vpop.permute.xlu1 %4055 }
 0x13e   :  { %20575 = vmatprep.mubr.msk.f32.mxu1 %vm89_vm2, %v24412_v37  ;;  %v4064_v63 = vsel %vm4057_vm12, %v24261_v10, %v4056_v26  ;;  %v4793_v10 = vsel %vm4791_vm14, %v24400_v61, %v24422_v0  ;;  %v5159_v26 = vsel %vm5158_vm15, %v24538_v57, %v24509_v32  ;;  %vm6993_vm12 = vcmask 228352  }
 0x13f   :  { %19432 = vmatmul.mubr.msk.f32.gmra.mrb[6].mxu0 %vm89_vm2, %v24559_v43 }
 0x140   :  { %20576 = vmatmul.mubr.msk.f32.vlgmr.msra.gmra.mrb[4].mxu1 %vm89_vm2, %v24459_v47  ;;  %4516 = vmatprep.mubr.f32.mxu0 %v29414_v56  ;;  %v4429_v47 = vsel %vm4424_vm13, %v24368_v51, %v24346_v38 }
 0x141   :  { %19426 = vmatpush1.msk.msra.mxu1 %vm96_vm1, %v4060_v33  ;;  %4226 = vmatprep.mubr.f32.mxu1 %v29414_v56  ;;  %v24615_v37 = vpop.permute.xlu0 %5511 }
 0x142   :  { %20578 = vmatprep.subr.msk.mxu1 %vm96_vm1, %v4064_v63  ;;  %v24621_v27 = vpop.permute.xlu1 %5513 }
 0x143   :  { %19440 = vmatmul.mubr.msk.f32.vlgmr.msra.gmra.mrb[0].mxu0 %vm89_vm2, %v19436_v31 }
 0x144   :  { %19447 = vmatpush1.msk.msra.mxu0 %vm96_vm1, %v4429_v47  ;;  %19427 = vmatmul.mubr.msk.f32.vlgmr.msra.gmra.mrb[0].mxu1 %vm89_vm2, %v24530_v59  ;;  %v5163_v47 = vsel %vm5158_vm15, %v24595_v62, %v24574_v48 }
 0x145   :  { %19455 = vmatprep.subr.msk.mxu0 %vm96_vm1, %v4793_v10  ;;  %20579 = vmatpush3.msk.msra.mxu1 %vm96_vm1, %v4064_v63  ;;  %v24635_v58 = vpop.permute.xlu0 %5509  ;;  %v5527_v10 = vsel %vm5525_vm7, %v24615_v37, %v24621_v27 }
 0x146   :  { %4522 = vmatprep.mubr.f32.mxu0 %v29414_v56  ;;  %4232 = vmatprep.mubr.f32.mxu1 %v29414_v56  ;;  %v4415_v38 = vpop.permute.xlu1 %4414 }
 0x147   :  { %19441 = vmatmul.mubr.msk.f32.gmra.mrb[2].mxu0 %vm89_vm2, %v19437_v7  ;;  %v4428_v54 = vsel %vm4424_vm13, %v4415_v38, %v24368_v51  ;;  %v4427_v29 = vsel %vm4424_vm13, %v24304_v1, %v4415_v38 }
 0x148   :  { %19428 = vmatmul.mubr.msk.f32.gmra.mrb[2].mxu1 %vm89_vm2, %v24559_v43  ;;  %4670 = vmatprep.mubr.f32.mxu0 %v29414_v56 }
 0x149   :  { %20580 = vmatprep.mubr.msk.f32.mxu1 %vm89_vm2, %v24530_v59  ;;  %19442 = vmatprep.subr.msk.mxu1 %vm96_vm1, %v4428_v54  ;;  %v24648_v39 = vpop.permute.xlu0 %5519  ;;  %v19471_v54 = vld [vmem:[%s29308_s1 + $0xe8] sm:$0xf] }
 0x14a   :  { %v24655_v51 = vpop.permute.xlu1 %5521 }
 0x14b   :  { %19448 = vmatmul.mubr.msk.f32.vlgmr.msra.gmra.mrb[4].mxu0 %vm89_vm2, %v19436_v31 }
 0x14c   :  { %19456 = vmatpush1.msk.msra.mxu0 %vm96_vm1, %v4792_v50  ;;  %20581 = vmatmul.mubr.msk.f32.vlgmr.msra.gmra.mrb[4].mxu1 %vm89_vm2, %v24559_v43  ;;  %v5160_v43 = vsel %vm5158_vm15, %v24509_v32, %v24532_v34  ;;  %v5526_v50 = vsel %vm5525_vm7, %v24635_v58, %v24615_v37 }
 0x14d   :  { %19463 = vmatprep.subr.msk.mxu0 %vm96_vm1, %v4797_v21  ;;  %19443 = vmatpush1.msk.msra.mxu1 %vm96_vm1, %v4427_v29  ;;  %v24666_v1 = vpop.permute.xlu0 %5517 }
 0x14e   :  { %4676 = vmatprep.mubr.f32.mxu0 %v29414_v56  ;;  %4593 = vmatprep.mubr.f32.mxu1 %v29414_v56  ;;  %v4423_v59 = vpop.permute.xlu1 %4422 }
 0x14f   :  { %19449 = vmatmul.mubr.msk.f32.gmra.mrb[6].mxu0 %vm89_vm2, %v19437_v7  ;;  %v4431_v61 = vsel %vm4424_vm13, %v24351_v5, %v4423_v59  ;;  %v4796_v5 = vsel %vm4791_vm14, %v24489_v22, %v24464_v4 }
 0x150   :  { %19444 = vmatmul.mubr.msk.f32.vlgmr.msra.gmra.mrb[0].mxu1 %vm89_vm2, %v19436_v31  ;;  %4883 = vmatprep.mubr.f32.mxu0 %v29414_v56 }
 0x151   :  { %4599 = vmatprep.mubr.f32.mxu1 %v29414_v56  ;;  %20583 = vmatprep.subr.msk.mxu1 %vm96_vm1, %v4431_v61 }
 0x152   :  { %20584 = vmatpush3.msk.msra.mxu1 %vm96_vm1, %v4431_v61  ;;  %v4782_v36 = vpop.permute.xlu0 %4781 }
 0x153   :  { %19457 = vmatmul.mubr.msk.f32.vlgmr.msra.gmra.mrb[0].mxu0 %vm89_vm2, %v19453_v2  ;;  %v24688_v17 = vpop.permute.xlu1 %5878  ;;  %v4795_v13 = vsel %vm4791_vm14, %v4782_v36, %v24489_v22  ;;  %v4794_v4 = vsel %vm4791_vm14, %v24422_v0, %v4782_v36  ;;  %v5164_v0 = vsel %vm5158_vm15, %v24574_v48, %v24578_v45 }
 0x154   :  { %19464 = vmatpush1.msk.msra.mxu0 %vm96_vm1, %v4796_v5  ;;  %19445 = vmatmul.mubr.msk.f32.gmra.mrb[2].mxu1 %vm89_vm2, %v19437_v7 }
 0x155   :  { %19472 = vmatprep.subr.msk.mxu0 %vm96_vm1, %v5160_v43  ;;  %4889 = vmatprep.mubr.f32.mxu0 %v29414_v56 }
 0x156   :  { %20585 = vmatprep.mubr.msk.f32.mxu1 %vm89_vm2, %v19436_v31  ;;  %19459 = vmatprep.subr.msk.mxu1 %vm96_vm1, %v4795_v13  ;;  %v24703_v22 = vpop.permute.xlu0 %5880  ;;  %v5530_v13 = vsel %vm5525_vm7, %v24666_v1, %v24648_v39 }
 0x157   :  { %19458 = vmatmul.mubr.msk.f32.gmra.mrb[2].mxu0 %vm89_vm2, %v19454_v40  ;;  %v24706_v14 = vpop.permute.xlu1 %5876  ;;  %v5894_v5 = vsel %vm5892_vm8, %v24688_v17, %v24703_v22 }
 0x158   :  { %20586 = vmatmul.mubr.msk.f32.vlgmr.msra.gmra.mrb[4].mxu1 %vm89_vm2, %v19437_v7  ;;  %5037 = vmatprep.mubr.f32.mxu0 %v29414_v56 }
 0x159   :  { %19460 = vmatpush1.msk.msra.mxu1 %vm96_vm1, %v4794_v4  ;;  %4960 = vmatprep.mubr.f32.mxu1 %v29414_v56 }
 0x15b   :  { %19465 = vmatmul.mubr.msk.f32.vlgmr.msra.gmra.mrb[4].mxu0 %vm89_vm2, %v19453_v2  ;;  %v4790_v63 = vpop.permute.xlu0 %4789 }
 0x15c   :  { %19473 = vmatpush1.msk.msra.mxu0 %vm96_vm1, %v5159_v26  ;;  %5043 = vmatprep.mubr.f32.mxu0 %v29414_v56  ;;  %v4798_v33 = vsel %vm4791_vm14, %v24485_v30, %v4790_v63  ;;  %v24723_v31 = vpop.permute.xlu1 %5886  ;;  %v19470_v30 = vld [vmem:[%s29308_s1 + $0xe0] sm:$0xff] }
 0x15d   :  { %19480 = vmatprep.subr.msk.mxu0 %vm96_vm1, %v5164_v0  ;;  %19461 = vmatmul.mubr.msk.f32.vlgmr.msra.gmra.mrb[0].mxu1 %vm89_vm2, %v19453_v2  ;;  %v5893_v0 = vsel %vm5892_vm8, %v24706_v14, %v24688_v17 }
 0x15e   :  { %20588 = vmatprep.subr.msk.mxu1 %vm96_vm1, %v4798_v33  ;;  %4966 = vmatprep.mubr.f32.mxu1 %v29414_v56 }
 0x15f   :  { %19466 = vmatmul.mubr.msk.f32.gmra.mrb[6].mxu0 %vm89_vm2, %v19454_v40  ;;  %20589 = vmatpush3.msk.msra.mxu1 %vm96_vm1, %v4798_v33  ;;  %v24731_v32 = vpop.permute.xlu0 %5888 }
 0x160   :  { %5250 = vmatprep.mubr.f32.mxu0 %v29414_v56  ;;  %v24737_v57 = vpop.permute.xlu1 %5884 }
 0x161   :  { %19462 = vmatmul.mubr.msk.f32.gmra.mrb[2].mxu1 %vm89_vm2, %v19454_v40 }
 0x162   :  { %20590 = vmatprep.mubr.msk.f32.mxu1 %vm89_vm2, %v19453_v2 }
 0x163   :  { %19474 = vmatmul.mubr.msk.f32.vlgmr.msra.gmra.mrb[0].mxu0 %vm89_vm2, %v19470_v30  ;;  %v5149_v7 = vpop.permute.xlu0 %5148 }
 0x164   :  { %19481 = vmatpush1.msk.msra.mxu0 %vm96_vm1, %v5163_v47  ;;  %5256 = vmatprep.mubr.f32.mxu0 %v29414_v56  ;;  %v5161_v38 = vsel %vm5158_vm15, %v24532_v34, %v5149_v7  ;;  %v24755_v29 = vpop.permute.xlu1 %6245  ;;  %v5162_v21 = vsel %vm5158_vm15, %v5149_v7, %v24595_v62  ;;  %v5531_v62 = vsel %vm5525_vm7, %v24648_v39, %v24655_v51 }
 0x165   :  { %19489 = vmatprep.subr.msk.mxu0 %vm96_vm1, %v5527_v10  ;;  %20591 = vmatmul.mubr.msk.f32.vlgmr.msra.gmra.mrb[4].mxu1 %vm89_vm2, %v19454_v40  ;;  %v19488_v40 = vld [vmem:[%s29308_s1 + $0xf8] sm:$0xf]  ;;  %v5897_v10 = vsel %vm5892_vm8, %v24737_v57, %v24723_v31 }
 0x166   :  { %19476 = vmatprep.subr.msk.mxu1 %vm96_vm1, %v5162_v21  ;;  %5327 = vmatprep.mubr.f32.mxu1 %v29414_v56 }
 0x167   :  { %19475 = vmatmul.mubr.msk.f32.gmra.mrb[2].mxu0 %vm89_vm2, %v19471_v54  ;;  %19477 = vmatpush1.msk.msra.mxu1 %vm96_vm1, %v5161_v38  ;;  %v24765_v34 = vpop.permute.xlu0 %6247 }
 0x168   :  { %5404 = vmatprep.mubr.f32.mxu0 %v29414_v56  ;;  %v24768_v48 = vpop.permute.xlu1 %6243  ;;  %v6261_v7 = vsel %vm6259_vm9, %v24755_v29, %v24765_v34 }
 0x169   :  { %19478 = vmatmul.mubr.msk.f32.vlgmr.msra.gmra.mrb[0].mxu1 %vm89_vm2, %v19470_v30  ;;  %v6260_v21 = vsel %vm6259_vm9, %v24768_v48, %v24755_v29  ;;  %v19521_v29 = vld [vmem:[%s29308_s1 + $0x110] sm:$0xff] }
 0x16a   :  { %5333 = vmatprep.mubr.f32.mxu1 %v29414_v56 }
 0x16b   :  { %19482 = vmatmul.mubr.msk.f32.vlgmr.msra.gmra.mrb[4].mxu0 %vm89_vm2, %v19470_v30  ;;  %v5157_v59 = vpop.permute.xlu0 %5156 }
 0x16c   :  { %19490 = vmatpush1.msk.msra.mxu0 %vm96_vm1, %v5526_v50  ;;  %5410 = vmatprep.mubr.f32.mxu0 %v29414_v56  ;;  %v5165_v61 = vsel %vm5158_vm15, %v24578_v45, %v5157_v59  ;;  %v5516_v2 = vpop.permute.xlu1 %5515  ;;  %v19487_v45 = vld [vmem:[%s29308_s1 + $0xf0] sm:$0xff] }
 0x16d   :  { %19497 = vmatprep.subr.msk.mxu0 %vm96_vm1, %v5531_v62  ;;  %19479 = vmatmul.mubr.msk.f32.gmra.mrb[2].mxu1 %vm89_vm2, %v19471_v54  ;;  %v5529_v43 = vsel %vm5525_vm7, %v5516_v2, %v24666_v1  ;;  %v5528_v36 = vsel %vm5525_vm7, %v24621_v27, %v5516_v2  ;;  %v19522_v2 = vld [vmem:[%s29308_s1 + $0x118] sm:$0xf] }
 0x16e   :  { %20593 = vmatprep.subr.msk.mxu1 %vm96_vm1, %v5165_v61  ;;  %20595 = vmatprep.mubr.msk.f32.mxu1 %vm89_vm2, %v19470_v30 }
 0x16f   :  { %19483 = vmatmul.mubr.msk.f32.gmra.mrb[6].mxu0 %vm89_vm2, %v19471_v54  ;;  %20594 = vmatpush3.msk.msra.mxu1 %vm96_vm1, %v5165_v61  ;;  %v24791_v37 = vpop.permute.xlu0 %6253 }
 0x170   :  { %5617 = vmatprep.mubr.f32.mxu0 %v29414_v56  ;;  %19493 = vmatprep.subr.msk.mxu1 %vm96_vm1, %v5529_v43  ;;  %v24798_v58 = vpop.permute.xlu1 %6255  ;;  %v9016_v43 = vld [vmem:[%s29309_s2] sm:$0xff] }
 0x171   :  { %20596 = vmatmul.mubr.msk.f32.vlgmr.msra.gmra.mrb[4].mxu1 %vm89_vm2, %v19471_v54 }
 0x172   :  { %19494 = vmatpush1.msk.msra.mxu1 %vm96_vm1, %v5528_v36  ;;  %5694 = vmatprep.mubr.f32.mxu1 %v29414_v56  ;;  %v23271_v36 = vmov 0  }
 0x173   :  { %19491 = vmatmul.mubr.msk.f32.vlgmr.msra.gmra.mrb[0].mxu0 %vm89_vm2, %v19487_v45  ;;  %22658 = vset.pattern.permute.xlu0 %v23271_v36 }
 0x174   :  { %19498 = vmatpush1.msk.msra.mxu0 %vm96_vm1, %v5530_v13  ;;  %5623 = vmatprep.mubr.f32.mxu0 %v29414_v56  ;;  %v24814_v27 = vpop.permute.xlu0 %6251 }
 0x175   :  { %v5524_v4 = vpop.permute.xlu1 %5523  ;;  %19506 = vmatprep.subr.msk.mxu0 %vm96_vm1, %v5894_v5  ;;  %19495 = vmatmul.mubr.msk.f32.vlgmr.msra.gmra.mrb[0].mxu1 %vm89_vm2, %v19487_v45  ;;  %v6264_v5 = vsel %vm6259_vm9, %v24814_v27, %v24791_v37 }
 0x176   :  { %v5532_v39 = vsel %vm5525_vm7, %v24655_v51, %v5524_v4  ;;  %5700 = vmatprep.mubr.f32.mxu1 %v29414_v56  ;;  %v5898_v51 = vsel %vm5892_vm8, %v24723_v31, %v24731_v32  ;;  %v19505_v31 = vld [vmem:[%s29308_s1 + $0x108] sm:$0xf]  ;;  %9020 = vperm.xlu0 %22658, %v9016_v43  }
 0x177   :  { %19492 = vmatmul.mubr.msk.f32.gmra.mrb[2].mxu0 %vm89_vm2, %v19488_v40  ;;  %20598 = vmatprep.subr.msk.mxu1 %vm96_vm1, %v5532_v39 }
 0x178   :  { %5771 = vmatprep.mubr.f32.mxu0 %v29414_v56  ;;  %20599 = vmatpush3.msk.msra.mxu1 %vm96_vm1, %v5532_v39  ;;  %v24828_v1 = vpop.permute.xlu0 %6612 }
 0x179   :  { %v24833_v26 = vpop.permute.xlu1 %6614  ;;  %19496 = vmatmul.mubr.msk.f32.gmra.mrb[2].mxu1 %vm89_vm2, %v19488_v40  ;;  %22659 = vset.pattern.permute.xlu1 %v23271_v36 }
 0x17a   :  { %20600 = vmatprep.mubr.msk.f32.mxu1 %vm89_vm2, %v19487_v45  ;;  %v6628_v39 = vsel %vm6626_vm10, %v24828_v1, %v24833_v26 }
 0x17b   :  { %19499 = vmatmul.mubr.msk.f32.vlgmr.msra.gmra.mrb[4].mxu0 %vm89_vm2, %v19487_v45  ;;  %v9017_v45 = vld [vmem:[%s29309_s2 + $0x8] sm:$0xf] }
 0x17c   :  { %19507 = vmatpush1.msk.msra.mxu0 %vm96_vm1, %v5893_v0  ;;  %5777 = vmatprep.mubr.f32.mxu0 %v29414_v56  ;;  %v24843_v63 = vpop.permute.xlu0 %6610 }
 0x17d   :  { %v5883_v33 = vpop.permute.xlu1 %5882  ;;  %19514 = vmatprep.subr.msk.mxu0 %vm96_vm1, %v5898_v51  ;;  %20601 = vmatmul.mubr.msk.f32.vlgmr.msra.gmra.mrb[4].mxu1 %vm89_vm2, %v19488_v40 }
 0x17e   :  { %v5895_v17 = vsel %vm5892_vm8, %v24703_v22, %v5883_v33  ;;  %v5896_v14 = vsel %vm5892_vm8, %v5883_v33, %v24737_v57  ;;  %6061 = vmatprep.mubr.f32.mxu1 %v29414_v56  ;;  %v19504_v22 = vld [vmem:[%s29308_s1 + $0x100] sm:$0xff]  ;;  %9025 = vperm.xlu1 %22659, %v9017_v45  }
 0x17f   :  { %19500 = vmatmul.mubr.msk.f32.gmra.mrb[6].mxu0 %vm89_vm2, %v19488_v40  ;;  %19510 = vmatprep.subr.msk.mxu1 %vm96_vm1, %v5896_v14 }
 0x180   :  { %5984 = vmatprep.mubr.f32.mxu0 %v29414_v56  ;;  %19511 = vmatpush1.msk.msra.mxu1 %vm96_vm1, %v5895_v17  ;;  %v24856_v30 = vpop.permute.xlu0 %6620  ;;  %v19538_v17 = vld [vmem:[%s29308_s1 + $0x120] sm:$0xff] }
 0x181   :  { %v24864_v47 = vpop.permute.xlu1 %6622  ;;  %19512 = vmatmul.mubr.msk.f32.vlgmr.msra.gmra.mrb[0].mxu1 %vm89_vm2, %v19504_v22 }
 0x182   :  { %6067 = vmatprep.mubr.f32.mxu1 %v29414_v56  ;;  %v6632_v14 = vsel %vm6626_vm10, %v24856_v30, %v24864_v47 }
 0x183   :  { %19508 = vmatmul.mubr.msk.f32.vlgmr.msra.gmra.mrb[0].mxu0 %vm89_vm2, %v19504_v22 }
 0x184   :  { %19515 = vmatpush1.msk.msra.mxu0 %vm96_vm1, %v5897_v10  ;;  %5990 = vmatprep.mubr.f32.mxu0 %v29414_v56 }
 0x185   :  { %v24877_v57 = vpop.permute.xlu0 %6618  ;;  %19523 = vmatprep.subr.msk.mxu0 %vm96_vm1, %v6261_v7  ;;  %19513 = vmatmul.mubr.msk.f32.gmra.mrb[2].mxu1 %vm89_vm2, %v19505_v31 }
 0x186   :  { %v5891_v38 = vpop.permute.xlu1 %5890  ;;  %20605 = vmatprep.mubr.msk.f32.mxu1 %vm89_vm2, %v19504_v22 }
 0x187   :  { %19509 = vmatmul.mubr.msk.f32.gmra.mrb[2].mxu0 %vm89_vm2, %v19505_v31  ;;  %v5899_v54 = vsel %vm5892_vm8, %v24731_v32, %v5891_v38  ;;  %v6265_v32 = vsel %vm6259_vm9, %v24791_v37, %v24798_v58  ;;  %v19555_v38 = vld [vmem:[%s29308_s1 + $0x130] sm:$0xff] }
 0x188   :  { %20603 = vmatprep.subr.msk.mxu1 %vm96_vm1, %v5899_v54  ;;  %6138 = vmatprep.mubr.f32.mxu0 %v29414_v56 }
 0x189   :  { %20604 = vmatpush3.msk.msra.mxu1 %vm96_vm1, %v5899_v54  ;;  %v6250_v62 = vpop.permute.xlu0 %6249 }
 0x18a   :  { %v6262_v50 = vsel %vm6259_vm9, %v24765_v34, %v6250_v62  ;;  %v24893_v59 = vpop.permute.xlu1 %6979  ;;  %v6263_v61 = vsel %vm6259_vm9, %v6250_v62, %v24814_v27  ;;  %20606 = vmatmul.mubr.msk.f32.vlgmr.msra.gmra.mrb[4].mxu1 %vm89_vm2, %v19505_v31  ;;  %v6627_v27 = vsel %vm6626_vm10, %v24843_v63, %v24828_v1  ;;  %v19556_v62 = vld [vmem:[%s29308_s1 + $0x138] sm:$0xf] }
 0x18b   :  { %19516 = vmatmul.mubr.msk.f32.vlgmr.msra.gmra.mrb[4].mxu0 %vm89_vm2, %v19504_v22  ;;  %19527 = vmatprep.subr.msk.mxu1 %vm96_vm1, %v6263_v61  ;;  %v19539_v22 = vld [vmem:[%s29308_s1 + $0x128] sm:$0xf] }
 0x18c   :  { %19524 = vmatpush1.msk.msra.mxu0 %vm96_vm1, %v6260_v21  ;;  %6144 = vmatprep.mubr.f32.mxu0 %v29414_v56 }
 0x18d   :  { %19528 = vmatpush1.msk.msra.mxu1 %vm96_vm1, %v6262_v50  ;;  %v24909_v34 = vpop.permute.xlu0 %6981  ;;  %6428 = vmatprep.mubr.f32.mxu1 %v29414_v56 }
 0x18e   :  { %v24912_v48 = vpop.permute.xlu1 %6977  ;;  %19531 = vmatprep.subr.msk.mxu0 %vm96_vm1, %v6265_v32  ;;  %19529 = vmatmul.mubr.msk.f32.vlgmr.msra.gmra.mrb[0].mxu1 %vm89_vm2, %v19521_v29  ;;  %v6995_v7 = vsel %vm6993_vm12, %v24893_v59, %v24909_v34 }
 0x18f   :  { %19517 = vmatmul.mubr.msk.f32.gmra.mrb[6].mxu0 %vm89_vm2, %v19505_v31  ;;  %6434 = vmatprep.mubr.f32.mxu1 %v29414_v56  ;;  %v6994_v54 = vsel %vm6993_vm12, %v24912_v48, %v24893_v59 }
 0x190   :  { %6351 = vmatprep.mubr.f32.mxu0 %v29414_v56 }
 0x191   :  { %v6258_v13 = vpop.permute.xlu0 %6257 }
 0x192   :  { %v6266_v40 = vsel %vm6259_vm9, %v24798_v58, %v6258_v13  ;;  %v24933_v4 = vpop.permute.xlu1 %6987  ;;  %19530 = vmatmul.mubr.msk.f32.gmra.mrb[2].mxu1 %vm89_vm2, %v19522_v2 }
 0x193   :  { %19525 = vmatmul.mubr.msk.f32.vlgmr.msra.gmra.mrb[0].mxu0 %vm89_vm2, %v19521_v29  ;;  %20608 = vmatprep.subr.msk.mxu1 %vm96_vm1, %v6266_v40 }
 0x194   :  { %19532 = vmatpush1.msk.msra.mxu0 %vm96_vm1, %v6264_v5  ;;  %6357 = vmatprep.mubr.f32.mxu0 %v29414_v56 }
 0x195   :  { %20609 = vmatpush3.msk.msra.mxu1 %vm96_vm1, %v6266_v40  ;;  %v6990_v37 = vpop.permute.xlu0 %6989  ;;  %20610 = vmatprep.mubr.msk.f32.mxu1 %vm89_vm2, %v19521_v29 }
 0x196   :  { %v24945_v58 = vpop.permute.xlu1 %6985  ;;  %19540 = vmatprep.subr.msk.mxu0 %vm96_vm1, %v6628_v39  ;;  %20611 = vmatmul.mubr.msk.f32.vlgmr.msra.gmra.mrb[4].mxu1 %vm89_vm2, %v19522_v2  ;;  %v6999_v21 = vsel %vm6993_vm12, %v24933_v4, %v6990_v37 }
 0x197   :  { %19526 = vmatmul.mubr.msk.f32.gmra.mrb[2].mxu0 %vm89_vm2, %v19522_v2  ;;  %6795 = vmatprep.mubr.f32.mxu1 %v29414_v56  ;;  %v6998_v50 = vsel %vm6993_vm12, %v24945_v58, %v24933_v4 }
 0x198   :  { %6505 = vmatprep.mubr.f32.mxu0 %v29414_v56 }
 0x19a   :  { %v6617_v0 = vpop.permute.xlu0 %6616  ;;  %v6625_v1 = vpop.permute.xlu1 %6624 }
 0x19b   :  { %v6629_v51 = vsel %vm6626_vm10, %v24833_v26, %v6617_v0  ;;  %19533 = vmatmul.mubr.msk.f32.vlgmr.msra.gmra.mrb[4].mxu0 %vm89_vm2, %v19521_v29  ;;  %v6630_v33 = vsel %vm6626_vm10, %v6617_v0, %v24877_v57  ;;  %v6633_v26 = vsel %vm6626_vm10, %v24864_v47, %v6625_v1  ;;  %v6631_v47 = vsel %vm6626_vm10, %v24877_v57, %v24856_v30 }
 0x19c   :  { %19541 = vmatpush1.msk.msra.mxu0 %vm96_vm1, %v6627_v27  ;;  %19544 = vmatprep.subr.msk.mxu1 %vm96_vm1, %v6630_v33 }
 0x19d   :  { %6511 = vmatprep.mubr.f32.mxu0 %v29414_v56  ;;  %19545 = vmatpush1.msk.msra.mxu1 %vm96_vm1, %v6629_v51 }
 0x19e   :  { %v6984_v63 = vpop.permute.xlu0 %6983  ;;  %19546 = vmatmul.mubr.msk.f32.vlgmr.msra.gmra.mrb[0].mxu1 %vm89_vm2, %v19538_v17  ;;  %19548 = vmatprep.subr.msk.mxu0 %vm96_vm1, %v6632_v14 }
 0x19f   :  { %19534 = vmatmul.mubr.msk.f32.gmra.mrb[6].mxu0 %vm89_vm2, %v19522_v2  ;;  %6801 = vmatprep.mubr.f32.mxu1 %v29414_v56  ;;  %v6997_v10 = vsel %vm6993_vm12, %v6984_v63, %v24945_v58  ;;  %v6996_v31 = vsel %vm6993_vm12, %v24909_v34, %v6984_v63  ;;  %v6992_v30 = vpop.permute.xlu1 %6991 }
 0x1a0   :  { %6718 = vmatprep.mubr.f32.mxu0 %v29414_v56  ;;  %20613 = vmatprep.subr.msk.mxu1 %vm96_vm1, %v6633_v26  ;;  %v7000_v57 = vsel %vm6993_vm12, %v6990_v37, %v6992_v30 }
 0x1a1   :  { %20614 = vmatpush3.msk.msra.mxu1 %vm96_vm1, %v6633_v26 }
 0x1a2   :  { %19547 = vmatmul.mubr.msk.f32.gmra.mrb[2].mxu1 %vm89_vm2, %v19539_v22  ;;  %19561 = vmatprep.subr.msk.mxu1 %vm96_vm1, %v6997_v10 }
 0x1a3   :  { %19542 = vmatmul.mubr.msk.f32.vlgmr.msra.gmra.mrb[0].mxu0 %vm89_vm2, %v19538_v17  ;;  %20615 = vmatprep.mubr.msk.f32.mxu1 %vm89_vm2, %v19538_v17 }
 0x1a4   :  { %19549 = vmatpush1.msk.msra.mxu0 %vm96_vm1, %v6631_v47  ;;  %6724 = vmatprep.mubr.f32.mxu0 %v29414_v56 }
 0x1a5   :  { %19557 = vmatprep.subr.msk.mxu0 %vm96_vm1, %v6995_v7 }
 0x1a6   :  { %20616 = vmatmul.mubr.msk.f32.vlgmr.msra.gmra.mrb[4].mxu1 %vm89_vm2, %v19539_v22 }
 0x1a7   :  { %19543 = vmatmul.mubr.msk.f32.gmra.mrb[2].mxu0 %vm89_vm2, %v19539_v22  ;;  %19562 = vmatpush1.msk.msra.mxu1 %vm96_vm1, %v6996_v31 }
 0x1a8   :  { %6872 = vmatprep.mubr.f32.mxu0 %v29414_v56  ;;  %7162 = vmatprep.mubr.f32.mxu1 %v29414_v56 }
 0x1a9   :  { %20618 = vmatprep.subr.msk.mxu1 %vm96_vm1, %v7000_v57 }
 0x1aa   :  { %19563 = vmatmul.mubr.msk.f32.vlgmr.msra.gmra.mrb[0].mxu1 %vm89_vm2, %v19555_v38 }
 0x1ab   :  { %19550 = vmatmul.mubr.msk.f32.vlgmr.msra.gmra.mrb[4].mxu0 %vm89_vm2, %v19538_v17  ;;  %7168 = vmatprep.mubr.f32.mxu1 %v29414_v56 }
 0x1ac   :  { %19558 = vmatpush1.msk.msra.mxu0 %vm96_vm1, %v6994_v54  ;;  %6878 = vmatprep.mubr.f32.mxu0 %v29414_v56 }
 0x1ad   :  { %20619 = vmatpush3.msk.msra.mxu1 %vm96_vm1, %v7000_v57  ;;  %19565 = vmatprep.subr.msk.mxu0 %vm96_vm1, %v6999_v21 }
 0x1ae   :  { %19564 = vmatmul.mubr.msk.f32.gmra.mrb[2].mxu1 %vm89_vm2, %v19556_v62  ;;  %19578 = vmatprep.subr.msk.mxu1 %vm96_vm1, %v24452_v49  ;;  %v19572_v49 = vld [vmem:[%s29308_s1 + $0x140] sm:$0xff] }
 0x1af   :  { %19551 = vmatmul.mubr.msk.f32.gmra.mrb[6].mxu0 %vm89_vm2, %v19539_v22  ;;  %20620 = vmatprep.mubr.msk.f32.mxu1 %vm89_vm2, %v19555_v38 }
 0x1b0   :  { %7085 = vmatprep.mubr.f32.mxu0 %v29414_v56 }
 0x1b2   :  { %20621 = vmatmul.mubr.msk.f32.vlgmr.msra.gmra.mrb[4].mxu1 %vm89_vm2, %v19556_v62 }
 0x1b3   :  { %19559 = vmatmul.mubr.msk.f32.vlgmr.msra.gmra.mrb[0].mxu0 %vm89_vm2, %v19555_v38  ;;  %19579 = vmatpush1.msk.msra.mxu1 %vm96_vm1, %v24479_v24  ;;  %v19573_v24 = vld [vmem:[%s29308_s1 + $0x148] sm:$0xf] }
 0x1b4   :  { %19566 = vmatpush1.msk.msra.mxu0 %vm96_vm1, %v6998_v50  ;;  %7091 = vmatprep.mubr.f32.mxu0 %v29414_v56 }
 0x1b5   :  { %7493 = vmatprep.mubr.f32.mxu1 %v29414_v56  ;;  %20623 = vmatprep.subr.msk.mxu1 %vm96_vm1, %v24522_v15 }
 0x1b6   :  { %19580 = vmatmul.mubr.msk.f32.vlgmr.msra.gmra.mrb[0].mxu1 %vm89_vm2, %v19572_v49  ;;  %19574 = vmatprep.subr.msk.mxu0 %vm96_vm1, %v24387_v46  ;;  %v7676_v46 = vpop.permute.xlu0 %7675 }
 0x1b7   :  { %19560 = vmatmul.mubr.msk.f32.gmra.mrb[2].mxu0 %vm89_vm2, %v19556_v62  ;;  %20624 = vmatpush3.msk.msra.mxu1 %vm96_vm1, %v24522_v15 }
 0x1b8   :  { %19595 = vmatprep.subr.msk.mxu1 %vm96_vm1, %v23544_v18  ;;  %7239 = vmatprep.mubr.f32.mxu0 %v29414_v56  ;;  %v19589_v18 = vld [vmem:[%s29308_s1 + $0x150] sm:$0xff] }
 0x1b9   :  { %7499 = vmatprep.mubr.f32.mxu1 %v29414_v56 }
 0x1ba   :  { %19581 = vmatmul.mubr.msk.f32.gmra.mrb[2].mxu1 %vm89_vm2, %v19573_v24 }
 0x1bb   :  { %19567 = vmatmul.mubr.msk.f32.vlgmr.msra.gmra.mrb[4].mxu0 %vm89_vm2, %v19555_v38  ;;  %20625 = vmatprep.mubr.msk.f32.mxu1 %vm89_vm2, %v19572_v49 }
 0x1bc   :  { %7245 = vmatprep.mubr.f32.mxu0 %v29414_v56  ;;  %19575 = vmatpush1.msk.msra.mxu0 %vm96_vm1, %v24363_v60  ;;  %v8012_v60 = vpop.permute.xlu1 %8011 }
 0x1bd   :  { %19582 = vmatprep.subr.msk.mxu0 %vm96_vm1, %v24444_v3  ;;  %v29421_v3 = vld [vmem:[#allocation9_spill] sm:$0xff] }
 0x1be   :  { %20626 = vmatmul.mubr.msk.f32.vlgmr.msra.gmra.mrb[4].mxu1 %vm89_vm2, %v19573_v24 }
 0x1bf   :  { %19568 = vmatmul.mubr.msk.f32.gmra.mrb[6].mxu0 %vm89_vm2, %v19556_v62  ;;  %19596 = vmatpush1.msk.msra.mxu1 %vm96_vm1, %v23783_v9  ;;  %v19590_v9 = vld [vmem:[%s29308_s1 + $0x158] sm:$0xf] }
 0x1c0   :  { %7416 = vmatprep.mubr.f32.mxu0 %v29414_v56  ;;  %7829 = vmatprep.mubr.f32.mxu1 %v29414_v56 }
 0x1c1   :  { %20628 = vmatprep.subr.msk.mxu1 %vm96_vm1, %v7676_v46 }
 0x1c2   :  { %19597 = vmatmul.mubr.msk.f32.vlgmr.msra.gmra.mrb[0].mxu1 %vm89_vm2, %v19589_v18 }
 0x1c3   :  { %19576 = vmatmul.mubr.msk.f32.vlgmr.msra.gmra.mrb[0].mxu0 %vm89_vm2, %v19572_v49  ;;  %20629 = vmatpush3.msk.msra.mxu1 %vm96_vm1, %v7676_v46 }
 0x1c4   :  { %19583 = vmatpush1.msk.msra.mxu0 %vm96_vm1, %v24417_v6  ;;  %19612 = vmatprep.subr.msk.mxu1 %vm96_vm1, %v23662_v41  ;;  %v7677_v41 = vsel %vm82_vm0, %v23536_v16, %v7676_v46  ;;  %v8348_v16 = vpop.permute.xlu0 %8347 }
 0x1c5   :  { %19591 = vmatprep.subr.msk.mxu0 %vm96_vm1, %v23787_v11  ;;  %7422 = vmatprep.mubr.f32.mxu0 %v29414_v56  ;;  %v19606_v11 = vld [vmem:[%s29308_s1 + $0x160] sm:$0xff] }
 0x1c6   :  { %7835 = vmatprep.mubr.f32.mxu1 %v29414_v56 }
 0x1c7   :  { %19577 = vmatmul.mubr.msk.f32.gmra.mrb[2].mxu0 %vm89_vm2, %v19573_v24  ;;  %19598 = vmatmul.mubr.msk.f32.gmra.mrb[2].mxu1 %vm89_vm2, %v19590_v9 }
 0x1c8   :  { %7570 = vmatprep.mubr.f32.mxu0 %v29414_v56  ;;  %20630 = vmatprep.mubr.msk.f32.mxu1 %vm89_vm2, %v19589_v18 }
 0x1cb   :  { %19584 = vmatmul.mubr.msk.f32.vlgmr.msra.gmra.mrb[4].mxu0 %vm89_vm2, %v19572_v49  ;;  %20631 = vmatmul.mubr.msk.f32.vlgmr.msra.gmra.mrb[4].mxu1 %vm89_vm2, %v19590_v9 }
 0x1cc   :  { %19592 = vmatpush1.msk.msra.mxu0 %vm96_vm1, %v23516_v12  ;;  %19613 = vmatpush1.msk.msra.mxu1 %vm96_vm1, %v23910_v52  ;;  %v19607_v12 = vld [vmem:[%s29308_s1 + $0x168] sm:$0xf]  ;;  %v19624_v52 = vld [vmem:[%s29308_s1 + $0x178] sm:$0xf] }
 0x1cd   :  { %19599 = vmatprep.subr.msk.mxu0 %vm96_vm1, %v7677_v41  ;;  %7576 = vmatprep.mubr.f32.mxu0 %v29414_v56 }
 0x1ce   :  { %8165 = vmatprep.mubr.f32.mxu1 %v29414_v56  ;;  %20633 = vmatprep.subr.msk.mxu1 %vm96_vm1, %v8012_v60 }
 0x1cf   :  { %19585 = vmatmul.mubr.msk.f32.gmra.mrb[6].mxu0 %vm89_vm2, %v19573_v24  ;;  %19614 = vmatmul.mubr.msk.f32.vlgmr.msra.gmra.mrb[0].mxu1 %vm89_vm2, %v19606_v11 }
 0x1d0   :  { %20634 = vmatpush3.msk.msra.mxu1 %vm96_vm1, %v8012_v60  ;;  %7752 = vmatprep.mubr.f32.mxu0 %v29414_v56 }
 0x1d1   :  { %19629 = vmatprep.subr.msk.mxu1 %vm96_vm1, %v23734_v55  ;;  %8171 = vmatprep.mubr.f32.mxu1 %v29414_v56  ;;  %v8013_v55 = vsel %vm760_vm3, %v23586_v25, %v8012_v60  ;;  %v19640_v25 = vld [vmem:[%s29308_s1 + $0x180] sm:$0xff] }
 0x1d3   :  { %19593 = vmatmul.mubr.msk.f32.vlgmr.msra.gmra.mrb[0].mxu0 %vm89_vm2, %v19589_v18  ;;  %19615 = vmatmul.mubr.msk.f32.gmra.mrb[2].mxu1 %vm89_vm2, %v19607_v12 }
 0x1d4   :  { %19600 = vmatpush1.msk.msra.mxu0 %vm96_vm1, %v23548_v19  ;;  %7758 = vmatprep.mubr.f32.mxu0 %v29414_v56  ;;  %v19623_v19 = vld [vmem:[%s29308_s1 + $0x170] sm:$0xff] }
 0x1d5   :  { %19608 = vmatprep.subr.msk.mxu0 %vm96_vm1, %v23936_v20  ;;  %20635 = vmatprep.mubr.msk.f32.mxu1 %vm89_vm2, %v19606_v11 }
 0x1d7   :  { %19594 = vmatmul.mubr.msk.f32.gmra.mrb[2].mxu0 %vm89_vm2, %v19590_v9  ;;  %20636 = vmatmul.mubr.msk.f32.vlgmr.msra.gmra.mrb[4].mxu1 %vm89_vm2, %v19607_v12 }
 0x1d8   :  { %19630 = vmatpush1.msk.msra.mxu1 %vm96_vm1, %v23967_v44  ;;  %7906 = vmatprep.mubr.f32.mxu0 %v29414_v56  ;;  %v29417_v44 = vld [vmem:[#allocation7_spill] sm:$0xff] }
 0x1d9   :  { %8501 = vmatprep.mubr.f32.mxu1 %v29414_v56  ;;  %20638 = vmatprep.subr.msk.mxu1 %vm96_vm1, %v8348_v16 }
 0x1db   :  { %19601 = vmatmul.mubr.msk.f32.vlgmr.msra.gmra.mrb[4].mxu0 %vm89_vm2, %v19589_v18  ;;  %19631 = vmatmul.mubr.msk.f32.vlgmr.msra.gmra.mrb[0].mxu1 %vm89_vm2, %v19623_v19 }
 0x1dc   :  { %19609 = vmatpush1.msk.msra.mxu0 %vm96_vm1, %v23604_v28  ;;  %20639 = vmatpush3.msk.msra.mxu1 %vm96_vm1, %v8348_v16  ;;  %v8684_v28 = vpop.permute.xlu1 %8683 }
 0x1dd   :  { %19616 = vmatprep.subr.msk.mxu0 %vm96_vm1, %v8013_v55  ;;  %19646 = vmatprep.subr.msk.mxu1 %vm96_vm1, %v23826_v23  ;;  %v29416_v23 = vld [vmem:[#allocation5_spill] sm:$0xff] }
 0x1de   :  { %7912 = vmatprep.mubr.f32.mxu0 %v29414_v56  ;;  %8507 = vmatprep.mubr.f32.mxu1 %v29414_v56  ;;  %v8349_v20 = vsel %vm1124_vm4, %v29416_v23, %v8348_v16 }
 0x1df   :  { %19602 = vmatmul.mubr.msk.f32.gmra.mrb[6].mxu0 %vm89_vm2, %v19590_v9  ;;  %19632 = vmatmul.mubr.msk.f32.gmra.mrb[2].mxu1 %vm89_vm2, %v19624_v52 }
 0x1e0   :  { %8088 = vmatprep.mubr.f32.mxu0 %v29414_v56  ;;  %20640 = vmatprep.mubr.msk.f32.mxu1 %vm89_vm2, %v19623_v19 }
 0x1e3   :  { %19610 = vmatmul.mubr.msk.f32.vlgmr.msra.gmra.mrb[0].mxu0 %vm89_vm2, %v19606_v11  ;;  %20641 = vmatmul.mubr.msk.f32.vlgmr.msra.gmra.mrb[4].mxu1 %vm89_vm2, %v19624_v52 }
 0x1e4   :  { %19617 = vmatpush1.msk.msra.mxu0 %vm96_vm1, %v23634_v35  ;;  %19647 = vmatpush1.msk.msra.mxu1 %vm96_vm1, %v24064_v53  ;;  %v19641_v35 = vld [vmem:[%s29308_s1 + $0x188] sm:$0xf]  ;;  %s23276_s1 = smov 56  }
 0x1e5   :  { %19625 = vmatprep.subr.msk.mxu0 %vm96_vm1, %v24011_v8  ;;  %8094 = vmatprep.mubr.f32.mxu0 %v29414_v56  ;;  %v29419_v8 = vld [vmem:[#allocation8_spill] sm:$0xff]  ;;  %v29420_v53 = vld [vmem:[#allocation6_spill] sm:$0xff] }
 0x1e6   :  { %8837 = vmatprep.mubr.f32.mxu1 %v29414_v56  ;;  %20643 = vmatprep.subr.msk.mxu1 %vm96_vm1, %v8684_v28  ;;  %v8685_v6 = vsel %vm1488_vm5, %v29420_v53, %v8684_v28 }
 0x1e7   :  { %19611 = vmatmul.mubr.msk.f32.gmra.mrb[2].mxu0 %vm89_vm2, %v19607_v12  ;;  %19648 = vmatmul.mubr.msk.f32.vlgmr.msra.gmra.mrb[0].mxu1 %vm89_vm2, %v19640_v25 }
 0x1e8   :  { %8242 = vmatprep.mubr.f32.mxu0 %v29414_v56  ;;  %8843 = vmatprep.mubr.f32.mxu1 %v29414_v56 }
 0x1e9   :  { %20644 = vmatpush3.msk.msra.mxu1 %vm96_vm1, %v8684_v28 }
 0x1eb   :  { %19618 = vmatmul.mubr.msk.f32.vlgmr.msra.gmra.mrb[4].mxu0 %vm89_vm2, %v19606_v11  ;;  %19649 = vmatmul.mubr.msk.f32.gmra.mrb[2].mxu1 %vm89_vm2, %v19641_v35 }
 0x1ec   :  { %19626 = vmatpush1.msk.msra.mxu0 %vm96_vm1, %v23670_v42  ;;  %8248 = vmatprep.mubr.f32.mxu0 %v29414_v56  ;;  %v29418_v42 = vld [vmem:[#allocation10_spill] sm:$0xff] }
 0x1ed   :  { %19633 = vmatprep.subr.msk.mxu0 %vm96_vm1, %v8349_v20  ;;  %20645 = vmatprep.mubr.msk.f32.mxu1 %vm89_vm2, %v19640_v25 }
 0x1ef   :  { %19619 = vmatmul.mubr.msk.f32.gmra.mrb[6].mxu0 %vm89_vm2, %v19607_v12  ;;  %20646 = vmatmul.mubr.msk.f32.vlgmr.msra.gmra.mrb[4].mxu1 %vm89_vm2, %v19641_v35 }
 0x1f0   :  { %8424 = vmatprep.mubr.f32.mxu0 %v29414_v56 }
 0x1f3   :  { %19627 = vmatmul.mubr.msk.f32.vlgmr.msra.gmra.mrb[0].mxu0 %vm89_vm2, %v19623_v19 }
 0x1f4   :  { %19634 = vmatpush1.msk.msra.mxu0 %vm96_vm1, %v29417_v44  ;;  %8430 = vmatprep.mubr.f32.mxu0 %v29414_v56 }
 0x1f5   :  { %19642 = vmatprep.subr.msk.mxu0 %vm96_vm1, %v29418_v42  ;;  %v25217_v48 = vpop.permute.xlu0 %9020 }
 0x1f7   :  { %19628 = vmatmul.mubr.msk.f32.gmra.mrb[2].mxu0 %vm89_vm2, %v19624_v52 }
 0x1f8   :  { %8578 = vmatprep.mubr.f32.mxu0 %v29414_v56 }
 0x1fb   :  { %19635 = vmatmul.mubr.msk.f32.vlgmr.msra.gmra.mrb[4].mxu0 %vm89_vm2, %v19623_v19 }
 0x1fc   :  { %19643 = vmatpush1.msk.msra.mxu0 %vm96_vm1, %v29419_v8  ;;  %8584 = vmatprep.mubr.f32.mxu0 %v29414_v56 }
 0x1fd   :  { %19650 = vmatprep.subr.msk.mxu0 %vm96_vm1, %v8685_v6  ;;  %v25225_v45 = vpop.permute.xlu1 %9025 }
 0x1ff   :  { %19636 = vmatmul.mubr.msk.f32.gmra.mrb[6].mxu0 %vm89_vm2, %v19624_v52 }
 0x200   :  { %8760 = vmatprep.mubr.f32.mxu0 %v29414_v56 }
 0x203   :  { %19644 = vmatmul.mubr.msk.f32.vlgmr.msra.gmra.mrb[0].mxu0 %vm89_vm2, %v19640_v25 }
 0x204   :  { %19651 = vmatpush1.msk.msra.mxu0 %vm96_vm1, %v29421_v3  ;;  %8766 = vmatprep.mubr.f32.mxu0 %v29414_v56 }
 0x207   :  { %19645 = vmatmul.mubr.msk.f32.gmra.mrb[2].mxu0 %vm89_vm2, %v19641_v35 }
 0x208   :  { %8914 = vmatprep.mubr.f32.mxu0 %v29414_v56 }
 0x20b   :  { %19652 = vmatmul.mubr.msk.f32.vlgmr.msra.gmra.mrb[4].mxu0 %vm89_vm2, %v19640_v25 }
 0x20c   :  { %8920 = vmatprep.mubr.f32.mxu0 %v29414_v56 }
 0x20f   :  { %19653 = vmatmul.mubr.msk.f32.gmra.mrb[6].mxu0 %vm89_vm2, %v19641_v35 }
 0x210   :  { %9458 = vmatprep.mubr.f32.mxu0 %v29414_v56 }
 0x2ba   :  { %v8839_v15 = vpop.f32.mrb[0].mxu1 }
 0x2bb   :  { %v8841_v59 = vpop.f32.mrb[1].mxu1  ;;  %v25220_v2 = vadd.f32 %v25217_v48, %v8839_v15 }
 0x2bc   :  { %v25223_v43 = vadd.f32 %v25217_v48, %v8841_v59 }
 0x2bd   :  { %v9058_v40 = vmin.f32 %v25220_v2, 0.0 }
 0x2be   :  { %v8845_v61 = vpop.f32.mrb[2].mxu1  ;;  %v9059_v37 = vmin.f32 %v25223_v43, 0.0  ;;  %vm9045_vm2 = vcmp.gt.f32.partialorder %v25223_v43, 0.0 }
 0x2bf   :  { %v8847_v32 = vpop.f32.mrb[3].mxu1  ;;  %v25243_v58 = vadd.f32 %v25225_v45, %v8845_v61  ;;  %v9074_v33 = vmul.f32 1.442695, %v9058_v40 }
 0x2c0   :  { %v25237_v4 = vadd.f32 %v25225_v45, %v8847_v32  ;;  %v9076_v1 = vmul.f32 1.442695, %v9059_v37 }
 0x2c1   :  { %v9065_v26 = vmin.f32 %v25243_v58, 0.0  ;;  %23115 = vpow2.f32 %v9074_v33  ;;  %vm9051_vm1 = vcmp.gt.f32.partialorder %v25243_v58, 0.0 }
 0x2c2   :  { %v20647_v29 = vpop.f32.mrb[4].mxu1  ;;  %v9066_v17 = vmin.f32 %v25237_v4, 0.0  ;;  %23117 = vpow2.f32 %v9076_v1  ;;  %vm9052_vm4 = vcmp.gt.f32.partialorder %v25237_v4, 0.0 }
 0x2c3   :  { %v8993_v34 = vpop.f32.mrb[5].mxu1  ;;  %v25231_v5 = vadd.f32 %v20647_v29, %v25225_v45  ;;  %v9088_v57 = vmul.f32 1.442695, %v9065_v26 }
 0x2c4   :  { %v25228_v36 = vadd.f32 %v25217_v48, %v8993_v34  ;;  %v9090_v47 = vmul.f32 1.442695, %v9066_v17 }
 0x2c5   :  { %v9069_v0 = vmin.f32 %v25231_v5, 0.0  ;;  %vm9055_vm14 = vcmp.gt.f32.partialorder %v25231_v5, 0.0 }
 0x2c6   :  { %v9062_v27 = vmin.f32 %v25228_v36, 0.0  ;;  %vm9048_vm8 = vcmp.gt.f32.partialorder %v25228_v36, 0.0 }
 0x2c7   :  { %v9096_v22 = vmul.f32 1.442695, %v9069_v0 }
 0x2c8   :  { %v9082_v63 = vmul.f32 1.442695, %v9062_v27 }
 0x2ca   :  { %23119 = vpow2.f32 %v9082_v63 }
 0x2cb   :  { %23121 = vpow2.f32 %v9096_v22  ;;  %v23116_v60 = vpop.eup %23115 }
 0x2cc   :  { %23123 = vpow2.f32 %v9090_v47  ;;  %v23118_v12 = vpop.eup %23117  ;;  %v19659_v59 = vadd.f32 -1.0, %v23116_v60 }
 0x2cd   :  { %23125 = vpow2.f32 %v9088_v57  ;;  %v19660_v53 = vadd.f32 -1.0, %v23118_v12 }
 0x2cf   :  { %v9115_v1 = vmul.f32 1.6732632, %v19660_v53 }
 0x2d4   :  { %v23120_v16 = vpop.eup %23119 }
 0x2d5   :  { %v23122_v19 = vpop.eup %23121  ;;  %v19663_v25 = vadd.f32 -1.0, %v23120_v16 }
 0x2d6   :  { %v25233_v13 = vpop.f32.mrb[0].mxu0  ;;  %v23124_v55 = vpop.eup %23123  ;;  %v19670_v35 = vadd.f32 -1.0, %v23122_v19 }
 0x2d7   :  { %v25239_v39 = vpop.f32.mrb[1].mxu0  ;;  %v23126_v52 = vpop.eup %23125  ;;  %v19667_v20 = vadd.f32 -1.0, %v23124_v55  ;;  %v9118_v6 = vmul.f32 1.6732632, %v19663_v25 }
 0x2d8   :  { %v19666_v8 = vadd.f32 -1.0, %v23126_v52  ;;  %v9125_v61 = vmul.f32 1.6732632, %v19670_v35 }
 0x2d9   :  { %v9122_v34 = vmul.f32 1.6732632, %v19667_v20  ;;  %v9132_v26 = vsel %vm9048_vm8, %v25228_v36, %v9118_v6 }
 0x2da   :  { %v25247_v51 = vpop.f32.mrb[2].mxu0  ;;  %v9121_v17 = vmul.f32 1.6732632, %v19666_v8  ;;  %v9139_v47 = vsel %vm9055_vm14, %v25231_v5, %v9125_v61  ;;  %v25277_v36 = vmul.f32 1.050701, %v9132_v26  ;;  %vm9044_vm14 = vcmp.gt.f32.partialorder %v25220_v2, 0.0 }
 0x2db   :  { %v25250_v14 = vpop.f32.mrb[3].mxu0  ;;  %v9035_v60 = vadd.f32 %v25225_v45, %v25247_v51 }
 0x2dc   :  { %v9135_v5 = vsel %vm9051_vm1, %v25243_v58, %v9121_v17  ;;  %v9036_v12 = vadd.f32 %v25225_v45, %v25250_v14 }
 0x2dd   :  { %v9063_v55 = vmin.f32 %v9035_v60, 0.0 }
 0x2de   :  { %v8916_v10 = vpop.f32.mrb[4].mxu0  ;;  %v9064_v52 = vmin.f32 %v9036_v12, 0.0  ;;  %vm9050_vm8 = vcmp.gt.f32.partialorder %v9036_v12, 0.0 }
 0x2df   :  { %v9032_v7 = vadd.f32 %v25217_v48, %v8916_v10  ;;  %v8918_v31 = vpop.f32.mrb[5].mxu0  ;;  %v9114_v10 = vmul.f32 1.6732632, %v19659_v59  ;;  %v9084_v35 = vmul.f32 1.442695, %v9063_v55 }
 0x2e0   :  { %v9033_v30 = vadd.f32 %v25217_v48, %v8918_v31  ;;  %v9136_v31 = vsel %vm9052_vm4, %v25237_v4, %v9122_v34  ;;  %v9129_v4 = vsel %vm9045_vm2, %v25223_v43, %v9115_v1  ;;  %vm9049_vm4 = vcmp.gt.f32.partialorder %v9035_v60, 0.0 }
 0x2e1   :  { %v9060_v38 = vmin.f32 %v9032_v7, 0.0  ;;  %vm9046_vm9 = vcmp.gt.f32.partialorder %v9032_v7, 0.0 }
 0x2e2   :  { %v9061_v54 = vmin.f32 %v9033_v30, 0.0  ;;  %v8922_v21 = vpop.f32.mrb[6].mxu0  ;;  %vm9047_vm10 = vcmp.gt.f32.partialorder %v9033_v30, 0.0 }
 0x2e3   :  { %v9078_v62 = vmul.f32 1.442695, %v9060_v38  ;;  %v9039_v50 = vadd.f32 %v25225_v45, %v8922_v21  ;;  %v8924_v49 = vpop.f32.mrb[7].mxu0  ;;  %v25288_v21 = vmul.f32 1.050701, %v9139_v47 }
 0x2e4   :  { %v9080_v24 = vmul.f32 1.442695, %v9061_v54  ;;  %v9040_v18 = vadd.f32 %v25225_v45, %v8924_v49  ;;  %v25294_v49 = vmul.f32 1.050701, %v9136_v31 }
 0x2e5   :  { %23127 = vpow2.f32 %v9078_v62  ;;  %v9067_v46 = vmin.f32 %v9039_v50, 0.0  ;;  %vm9053_vm12 = vcmp.gt.f32.partialorder %v9039_v50, 0.0 }
 0x2e6   :  { %23129 = vpow2.f32 %v9080_v24  ;;  %v9068_v9 = vmin.f32 %v9040_v18, 0.0 }
 0x2e7   :  { %v9092_v41 = vmul.f32 1.442695, %v9067_v46  ;;  %v25302_v46 = vmul.f32 1.050701, %v9129_v4 }
 0x2e8   :  { %v9094_v11 = vmul.f32 1.442695, %v9068_v9 }
 0x2e9   :  { %23131 = vpow2.f32 %v9092_v41  ;;  %v9028_v41 = vadd.f32 %v25217_v48, %v25233_v13 }
 0x2ea   :  { %23133 = vpow2.f32 %v9094_v11  ;;  %v9029_v11 = vadd.f32 %v25217_v48, %v25239_v39 }
 0x2eb   :  { %v9056_v16 = vmin.f32 %v9028_v41, 0.0  ;;  %vm9042_vm1 = vcmp.gt.f32.partialorder %v9028_v41, 0.0 }
 0x2ec   :  { %v9057_v19 = vmin.f32 %v9029_v11, 0.0  ;;  %vm9043_vm2 = vcmp.gt.f32.partialorder %v9029_v11, 0.0 }
 0x2ed   :  { %v9070_v25 = vmul.f32 1.442695, %v9056_v16 }
 0x2ef   :  { %v23128_v28 = vpop.eup %23127  ;;  %23135 = vpow2.f32 %v9070_v25 }
 0x2f0   :  { %v23130_v23 = vpop.eup %23129  ;;  %v19661_v44 = vadd.f32 -1.0, %v23128_v28  ;;  %v9072_v28 = vmul.f32 1.442695, %v9057_v19 }
 0x2f1   :  { %v19662_v42 = vadd.f32 -1.0, %v23130_v23  ;;  %v9086_v23 = vmul.f32 1.442695, %v9064_v52 }
 0x2f2   :  { %v9116_v3 = vmul.f32 1.6732632, %v19661_v44  ;;  %23137 = vpow2.f32 %v9072_v28 }
 0x2f3   :  { %v23132_v15 = vpop.eup %23131  ;;  %v9117_v32 = vmul.f32 1.6732632, %v19662_v42  ;;  %23139 = vpow2.f32 %v9084_v35 }
 0x2f4   :  { %v23134_v29 = vpop.eup %23133  ;;  %v9130_v40 = vsel %vm9046_vm9, %v9032_v7, %v9116_v3  ;;  %v19668_v37 = vadd.f32 -1.0, %v23132_v15  ;;  %vm9054_vm9 = vcmp.gt.f32.partialorder %v9040_v18, 0.0  ;;  %23141 = vpow2.f32 %v9086_v23 }
 0x2f5   :  { %v25262_v27 = vmul.f32 1.050701, %v9130_v40  ;;  %v9131_v0 = vsel %vm9047_vm10, %v9033_v30, %v9117_v32  ;;  %v19669_v33 = vadd.f32 -1.0, %v23134_v29  ;;  %vm9370_vm10 = vcmask 97280  }
 0x2f6   :  { %v25267_v63 = vmul.f32 1.050701, %v9131_v0  ;;  %v9123_v22 = vmul.f32 1.6732632, %v19668_v37 }
 0x2f7   :  { %v9124_v7 = vmul.f32 1.6732632, %v19669_v33 }
 0x2f8   :  { %v22660_v30 = vpack.i.bf16 %v25267_v63, %v25262_v27  ;;  %v9137_v57 = vsel %vm9053_vm12, %v9039_v50, %v9123_v22  ;;  %v9128_v50 = vsel %vm9044_vm14, %v25220_v2, %v9114_v10  ;;  %v22675_v2 = vpack.i.bf16 %v25294_v49, %v25302_v46 }
 0x2f9   :  { %v25279_v38 = vmul.f32 1.050701, %v9137_v57  ;;  %v9138_v54 = vsel %vm9054_vm9, %v9040_v18, %v9124_v7  ;;  %v25300_v18 = vmul.f32 1.050701, %v9135_v5  ;;  %v25305_v43 = vmul.f32 1.050701, %v9128_v50  ;;  %v23136_v13 = vpop.eup %23135 }
 0x2fa   :  { %v25290_v62 = vmul.f32 1.050701, %v9138_v54  ;;  %22661 = vrot.lane.b32.xlu1 %v22660_v30, %s23251_s17  ;;  %v19657_v51 = vadd.f32 -1.0, %v23136_v13  ;;  %vm23274_vm12 = vmmov 1   ;;  %vm12401_vm14 = vcmask 457728  }
 0x2fb   :  { %v22665_v24 = vpack.i.bf16 %v25279_v38, %v25277_v36  ;;  %v22680_v9 = vpack.i.bf16 %v25300_v18, %v25305_v43 }
 0x2fc   :  { %v22670_v58 = vpack.i.bf16 %v25288_v21, %v25290_v62  ;;  %v23138_v48 = vpop.eup %23137  ;;  %v9112_v8 = vmul.f32 1.6732632, %v19657_v51 }
 0x2fd   :  { %22666 = vrot.lane.b32.xlu0 %v22665_v24, %s23251_s17  ;;  %v23140_v39 = vpop.eup %23139  ;;  %v19658_v44 = vadd.f32 -1.0, %v23138_v48 }
 0x2fe   :  { %22671 = vrot.lane.b32.xlu1 %v22670_v58, %s23251_s17  ;;  %v23142_v20 = vpop.eup %23141  ;;  %v19664_v42 = vadd.f32 -1.0, %v23140_v39  ;;  %v9126_v37 = vsel %vm9042_vm1, %v9028_v41, %v9112_v8  ;;  %vm10654_vm1 = vcmask 982016  }
 0x2ff   :  { %v19665_v45 = vadd.f32 -1.0, %v23142_v20  ;;  %v9113_v3 = vmul.f32 1.6732632, %v19658_v44  ;;  %v9140_v41 = vmul.f32 1.050701, %v9126_v37 }
 0x300   :  { %v9119_v15 = vmul.f32 1.6732632, %v19664_v42 }
 0x301   :  { %22676 = vrot.lane.b32.xlu0 %v22675_v2, %s23251_s17  ;;  %v9120_v59 = vmul.f32 1.6732632, %v19665_v45  ;;  %v9127_v17 = vsel %vm9043_vm2, %v9029_v11, %v9113_v3  ;;  %vm10310_vm2 = vcmask 998400  }
 0x302   :  { %22681 = vrot.lane.b32.xlu1 %v22680_v9, %s23251_s17  ;;  %v9133_v1 = vsel %vm9049_vm4, %v9035_v60, %v9119_v15  ;;  %v9141_v11 = vmul.f32 1.050701, %v9127_v17  ;;  %v19671_v15 = vld [vmem:[%s29310_s3 + $0x20] sm:$0xff] }
 0x303   :  { %v9134_v26 = vsel %vm9050_vm8, %v9036_v12, %v9120_v59  ;;  %v25334_v24 = vmul.f32 1.050701, %v9133_v1  ;;  %20652 = vmatprep.mubr.msk.f32.mxu1 %vm9370_vm10, %v19671_v15 }
 0x304   :  { %v9148_v58 = vmul.f32 1.050701, %v9134_v26 }
 0x306   :  { %v22695_v12 = vpack.i.bf16 %v9148_v58, %v9141_v11 }
 0x36c   :  { %v22662_v14 = vpop.permute.xlu1 %22661 }
 0x36d   :  { %v22664_v53 = vunpack.i.h.bf16 %v22662_v14  ;;  %v22663_v6 = vunpack.i.l.bf16 %v22662_v14 }
 0x36f   :  { %v22667_v61 = vpop.permute.xlu0 %22666  ;;  %v9200_v32 = vsel %vm82_vm0, %v22663_v6, %v22664_v53 }
 0x370   :  { %v22669_v29 = vunpack.i.h.bf16 %v22667_v61  ;;  %v22668_v34 = vunpack.i.l.bf16 %v22667_v61  ;;  %v22672_v40 = vpop.permute.xlu1 %22671  ;;  %v9226_v10 = vmax.f32 %v25262_v27, %v9200_v32 }
 0x371   :  { %v22674_v0 = vunpack.i.h.bf16 %v22672_v40  ;;  %v22673_v33 = vunpack.i.l.bf16 %v22672_v40 }
 0x372   :  { %v9201_v22 = vsel %vm82_vm0, %v22664_v53, %v22668_v34  ;;  %v25344_v16 = vmax.f32 %v25277_v36, %v22668_v34 }
 0x373   :  { %v25326_v47 = vmax.f32 %v25267_v63, %v9201_v22  ;;  %v9206_v7 = vsel %vm82_vm0, %v22669_v29, %v22673_v33  ;;  %v9207_v31 = vsel %vm82_vm0, %v22673_v33, %v22674_v0  ;;  %v22677_v30 = vpop.permute.xlu0 %22676  ;;  %v25347_v19 = vmax.f32 %v25288_v21, %v22674_v0 }
 0x374   :  { %v9233_v57 = vmax.f32 %v25279_v38, %v9206_v7  ;;  %v25332_v54 = vmax.f32 %v25290_v62, %v9207_v31  ;;  %v22679_v5 = vunpack.i.h.bf16 %v22677_v30  ;;  %v22678_v4 = vunpack.i.l.bf16 %v22677_v30  ;;  %v22682_v50 = vpop.permute.xlu1 %22681 }
 0x375   :  { %v22685_v27 = vpack.i.bf16 %v25326_v47, %v9226_v10  ;;  %v22684_v63 = vunpack.i.h.bf16 %v22682_v50  ;;  %v22683_v2 = vunpack.i.l.bf16 %v22682_v50  ;;  %v22700_v62 = vpack.i.bf16 %v25334_v24, %v9140_v41 }
 0x376   :  { %v22690_v9 = vpack.i.bf16 %v25332_v54, %v9233_v57  ;;  %v9205_v60 = vsel %vm82_vm0, %v22679_v5, %v22669_v29  ;;  %v9199_v38 = vsel %vm82_vm0, %v22678_v4, %v22663_v6  ;;  %v22705_v21 = vpack.i.bf16 %v25347_v19, %v25344_v16 }
 0x377   :  { %22686 = vrot.lane.b32.xlu0 %v22685_v27, %s23256_s29  ;;  %v9232_v55 = vmax.f32 %v25294_v49, %v9205_v60  ;;  %v9225_v52 = vmax.f32 %v25302_v46, %v9199_v38  ;;  %v9204_v25 = vsel %vm82_vm0, %v22684_v63, %v22679_v5  ;;  %v9198_v28 = vsel %vm82_vm0, %v22683_v2, %v22678_v4 }
 0x378   :  { %22691 = vrot.lane.b32.xlu1 %v22690_v9, %s23256_s29  ;;  %v25356_v35 = vmax.f32 %v25300_v18, %v9204_v25  ;;  %v25359_v36 = vmax.f32 %v25305_v43, %v9198_v28 }
 0x379   :  { %v22710_v49 = vpack.i.bf16 %v9232_v55, %v9225_v52 }
 0x37a   :  { %v22715_v46 = vpack.i.bf16 %v25356_v35, %v25359_v36 }
 0x37b   :  { %22696 = vrot.lane.b32.xlu0 %v22695_v12, %s23251_s17 }
 0x37c   :  { %22701 = vrot.lane.b32.xlu1 %v22700_v62, %s23251_s17 }
 0x37f   :  { %22706 = vrot.lane.b32.xlu0 %v22705_v21, %s23256_s29 }
 0x380   :  { %22711 = vrot.lane.b32.xlu1 %v22710_v49, %s23256_s29 }
 0x383   :  { %22716 = vrot.lane.b32.xlu0 %v22715_v46, %s23256_s29 }
 0x3e9   :  { %v22687_v23 = vpop.permute.xlu0 %22686 }
 0x3ea   :  { %v22689_v13 = vunpack.i.h.bf16 %v22687_v23  ;;  %v22688_v18 = vunpack.i.l.bf16 %v22687_v23  ;;  %v22692_v48 = vpop.permute.xlu1 %22691 }
 0x3eb   :  { %v22694_v39 = vunpack.i.h.bf16 %v22692_v48  ;;  %v22693_v43 = vunpack.i.l.bf16 %v22692_v48 }
 0x3ec   :  { %v9282_v20 = vsel %vm1855_vm6, %v22688_v18, %v22689_v13 }
 0x3ed   :  { %v9308_v51 = vmax.f32 %v9226_v10, %v9282_v20  ;;  %v9288_v44 = vsel %vm1855_vm6, %v22693_v43, %v22694_v39  ;;  %v22697_v42 = vpop.permute.xlu0 %22696 }
 0x3ee   :  { %v9315_v45 = vmax.f32 %v9233_v57, %v9288_v44  ;;  %v22699_v14 = vunpack.i.h.bf16 %v22697_v42  ;;  %v22698_v8 = vunpack.i.l.bf16 %v22697_v42  ;;  %v22702_v53 = vpop.permute.xlu1 %22701 }
 0x3ef   :  { %v22704_v6 = vunpack.i.h.bf16 %v22702_v53  ;;  %v22703_v3 = vunpack.i.l.bf16 %v22702_v53 }
 0x3f0   :  { %v9203_v59 = vsel %vm82_vm0, %v22699_v14, %v22684_v63  ;;  %v9197_v61 = vsel %vm82_vm0, %v22698_v8, %v22683_v2  ;;  %v22730_v32 = vpack.i.bf16 %v9315_v45, %v9308_v51 }
 0x3f1   :  { %v25376_v29 = vmax.f32 %v9148_v58, %v9203_v59  ;;  %v25378_v34 = vmax.f32 %v9141_v11, %v9197_v61  ;;  %v9196_v40 = vsel %vm82_vm0, %v22703_v3, %v22698_v8  ;;  %v9202_v37 = vsel %vm82_vm0, %v22704_v6, %v22699_v14  ;;  %v22707_v0 = vpop.permute.xlu0 %22706  ;;  %v25482_v6 = vld [vmem:[%s29310_s3 + $0x30] sm:$0xff] }
 0x3f2   :  { %v25382_v33 = vmax.f32 %v9140_v41, %v9196_v40  ;;  %v22709_v17 = vunpack.i.h.bf16 %v22707_v0  ;;  %v22708_v1 = vunpack.i.l.bf16 %v22707_v0  ;;  %22731 = vrot.lane.b32.xlu0 %v22730_v32, %s23255_s28  ;;  %22721 = vrot.lane.b32.xlu1 %v22730_v32, %s23253_s26  ;;  %v22712_v26 = vpop.permute.xlu1 %22711  ;;  %v25387_v22 = vmax.f32 %v25334_v24, %v9202_v37 }
 0x3f3   :  { %v22714_v10 = vunpack.i.h.bf16 %v22712_v26  ;;  %v22713_v7 = vunpack.i.l.bf16 %v22712_v26  ;;  %v22725_v31 = vpack.i.bf16 %v25376_v29, %v25378_v34  ;;  %vm9383_vm0 = vcmask 1043456  }
 0x3f4   :  { %v9289_v30 = vsel %vm1855_vm6, %v22694_v39, %v22709_v17  ;;  %v9283_v57 = vsel %vm1855_vm6, %v22689_v13, %v22708_v1  ;;  %v22735_v63 = vpack.i.bf16 %v25387_v22, %v25382_v33  ;;  %v9317_v9 = vmax.f32 %v25347_v19, %v22709_v17  ;;  %vm25455_vm9 = vmpackc.low %vm9383_vm0, %vm23274_vm12 }
 0x3f5   :  { %v9287_v5 = vsel %vm1855_vm6, %v22714_v10, %v22693_v43  ;;  %v9281_v4 = vsel %vm1855_vm6, %v22713_v7, %v22688_v18  ;;  %v9316_v50 = vmax.f32 %v25332_v54, %v9289_v30  ;;  %v9309_v58 = vmax.f32 %v25326_v47, %v9283_v57  ;;  %v22717_v2 = vpop.permute.xlu0 %22716  ;;  %v9320_v30 = vld [vmem:[%s29310_s3 + $0x10] sm:$0xff] }
 0x3f6   :  { %v25397_v27 = vmax.f32 %v9225_v52, %v9281_v4  ;;  %22726 = vrot.lane.b32.xlu1 %v22725_v31, %s23256_s29  ;;  %v25400_v24 = vmax.f32 %v9232_v55, %v9287_v5  ;;  %22736 = vrot.lane.b32.xlu0 %v22735_v63, %s23256_s29  ;;  %v9310_v41 = vmax.f32 %v25344_v16, %v22708_v1  ;;  %v22718_v60 = vunpack.i.l.bf16 %v22717_v2 }
 0x3f7   :  { %v25408_v47 = vpack.c.bf16 %v9315_v45, %v9308_v51  ;;  %v25413_v11 = vpack.i.bf16 %v9316_v50, %v9309_v58  ;;  %v22719_v62 = vunpack.i.h.bf16 %v22717_v2  ;;  %v22750_v12 = vpack.i.bf16 %v9309_v58, %v9308_v51 }
 0x3f8   :  { %v25411_v54 = vpack.i.bf16 %v9308_v51, %v25397_v27  ;;  %v25416_v38 = vpack.i.bf16 %v9315_v45, %v25400_v24  ;;  %v9280_v16 = vsel %vm1855_vm6, %v22718_v60, %v22713_v7  ;;  %v22755_v19 = vpack.i.bf16 %v9316_v50, %v9315_v45  ;;  %v25472_v45 = vld [vmem:[%s29310_s3 + $0x28] sm:$0xff] }
 0x3f9   :  { %v25421_v55 = vpack.i.bf16 %v9317_v9, %v9310_v41  ;;  %v9286_v52 = vsel %vm1855_vm6, %v22719_v62, %v22714_v10  ;;  %v25428_v25 = vpack.c.bf16 %v25400_v24, %v25397_v27  ;;  %v25430_v28 = vpack.c.bf16 %v9316_v50, %v9309_v58  ;;  %v9318_v10 = vld [vmem:[%s29310_s3] sm:$0xff]  ;;  %v9321_v50 = vld [vmem:[%s29310_s3 + $0x18] sm:$0xff] }
 0x3fa   :  { %22741 = vrot.lane.b32.xlu1 %v22730_v32, %s23272_s20  ;;  %22746 = vrot.lane.b32.xlu0 %v22730_v32, %s23273_s15  ;;  %v25432_v21 = vpack.c.bf16 %v9317_v9, %v9310_v41  ;;  %v25435_v49 = vmax.f32 %v25359_v36, %v9280_v16  ;;  %v25438_v46 = vmax.f32 %v25356_v35, %v9286_v52  ;;  %v19709_v58 = vld [vmem:[%s29310_s3 + $0x40] sm:$0xff]  ;;  %v19711_v16 = vld [vmem:[%s29310_s3 + $0x50] sm:$0xff] }
 0x3fc   :  { %29422 = vst [vmem:[#allocation5_spill] sm:$0xff] %v25432_v21  ;;  %v22780_v23 = vpack.i.bf16 %v25438_v46, %v25435_v49 }
 0x3fe   :  { %22751 = vrot.lane.b32.xlu1 %v22750_v12, %s23261_s21  ;;  %22756 = vrot.lane.b32.xlu0 %v22755_v19, %s23261_s21 }
 0x402   :  { %22761 = vrot.lane.b32.xlu1 %v22750_v12, %s23263_s23  ;;  %22766 = vrot.lane.b32.xlu0 %v22755_v19, %s23263_s23 }
 0x406   :  { %22771 = vrot.lane.b32.xlu1 %v25411_v54, %s23265_s24  ;;  %22776 = vrot.lane.b32.xlu0 %v25416_v38, %s23265_s24 }
 0x40a   :  { %22781 = vrot.lane.b32.xlu1 %v22780_v23, %s23265_s24  ;;  %22786 = vrot.lane.b32.xlu0 %v25413_v11, %s23265_s24 }
 0x464   :  { %v22722_v36 = vpop.permute.xlu1 %22721  ;;  %v22732_v35 = vpop.permute.xlu0 %22731 }
 0x465   :  { %v25450_v13 = vunpack.i.h.bf16 %v22722_v36  ;;  %v25452_v18 = vunpack.i.l.bf16 %v22722_v36  ;;  %v25461_v20 = vunpack.i.h.bf16 %v22732_v35  ;;  %v25463_v51 = vunpack.i.l.bf16 %v22732_v35 }
 0x467   :  { %v20968_v39 = vpack.c.bf16 %v25450_v13, %v25452_v18  ;;  %v21004_v32 = vpack.c.bf16 %v25461_v20, %v25463_v51 }
 0x468   :  { %v22727_v43 = vpop.permute.xlu1 %22726  ;;  %v22737_v14 = vpop.permute.xlu0 %22736 }
 0x469   :  { %v22729_v44 = vunpack.i.h.bf16 %v22727_v43  ;;  %v22728_v42 = vunpack.i.l.bf16 %v22727_v43  ;;  %20970 = vmatprep.subr.msk.bf16.mxu1 %vm25455_vm9, %v20968_v39  ;;  %v22739_v3 = vunpack.i.h.bf16 %v22737_v14  ;;  %v22738_v15 = vunpack.i.l.bf16 %v22737_v14  ;;  %v19730_v43 = vld [vmem:[%s29310_s3 + $0x60] sm:$0xff] }
 0x46a   :  { %20973 = vmatpush3.bf16.msk.msra.mxu1 %vm25455_vm9, %v20968_v39  ;;  %v19712_v39 = vld [vmem:[%s29310_s3 + $0x58] sm:$0xff] }
 0x46b   :  { %v9285_v8 = vsel %vm1855_vm6, %v22729_v44, %v22719_v62  ;;  %v9279_v53 = vsel %vm1855_vm6, %v22728_v42, %v22718_v60  ;;  %20988 = vmatprep.subr.msk.bf16.mxu1 %vm25455_vm9, %v25408_v47  ;;  %v9284_v40 = vsel %vm1855_vm6, %v22739_v3, %v22729_v44  ;;  %v9278_v37 = vsel %vm1855_vm6, %v22738_v15, %v22728_v42  ;;  %v19710_v60 = vld [vmem:[%s29310_s3 + $0x48] sm:$0xff] }
 0x46c   :  { %v9312_v59 = vmax.f32 %v25376_v29, %v9285_v8  ;;  %v9305_v61 = vmax.f32 %v25378_v34, %v9279_v53  ;;  %v22742_v0 = vpop.permute.xlu1 %22741  ;;  %v25501_v34 = vld [vmem:[%s29310_s3 + $0x38] sm:$0xff]  ;;  %v25504_v17 = vmax.f32 %v25387_v22, %v9284_v40  ;;  %v25507_v1 = vmax.f32 %v25382_v33, %v9278_v37  ;;  %v9319_v33 = vld [vmem:[%s29310_s3 + $0x8] sm:$0xff]  ;;  %v22747_v5 = vpop.permute.xlu0 %22746  ;;  %v19732_v53 = vld [vmem:[%s29310_s3 + $0x70] sm:$0xff] }
 0x46d   :  { %20653 = vmatmul.mubr.msk.f32.vlgmr.msra.gmra.mrb[6].mxu1 %vm9370_vm10, %v25472_v45  ;;  %v25516_v7 = vunpack.i.h.bf16 %v22742_v0  ;;  %v25518_v31 = vunpack.i.l.bf16 %v22742_v0  ;;  %v25560_v9 = vunpack.i.h.bf16 %v22747_v5  ;;  %v25562_v41 = vunpack.i.l.bf16 %v22747_v5  ;;  %v19751_v37 = vld [vmem:[%s29310_s3 + $0x80] sm:$0xff] }
 0x46e   :  { %20991 = vmatpush3.bf16.msk.msra.mxu1 %vm25455_vm9, %v25408_v47  ;;  %20655 = vmatprep.mubr.msk.f32.mxu1 %vm9370_vm10, %v25482_v6  ;;  %v22795_v29 = vpack.i.bf16 %v25438_v46, %v9312_v59  ;;  %v22790_v26 = vpack.i.bf16 %v25435_v49, %v9305_v61  ;;  %v25529_v22 = vpack.i.bf16 %v25504_v17, %v25507_v1  ;;  %vm12051_vm6 = vcmask 474112  }
 0x46f   :  { %21006 = vmatprep.subr.msk.bf16.mxu1 %vm25455_vm9, %v21004_v32  ;;  %v25534_v57 = vpack.i.bf16 %v9312_v59, %v9305_v61  ;;  %v21022_v4 = vpack.c.bf16 %v25516_v7, %v25518_v31  ;;  %v25556_v63 = vpack.c.bf16 %v9312_v59, %v9305_v61  ;;  %29425 = vst [vmem:[#allocation7_spill] sm:$0xff] %v25562_v41 }
 0x470   :  { %22796 = vrot.lane.b32.xlu0 %v22795_v29, %s23275_s18  ;;  %22791 = vrot.lane.b32.xlu1 %v22790_v26, %s23275_s18  ;;  %v25571_v62 = vpop.permute.xlu0 %22756  ;;  %v25573_v12 = vpop.permute.xlu1 %22751  ;;  %v21040_v19 = vpack.c.bf16 %v25560_v9, %v25562_v41  ;;  %v25633_v15 = vpack.i.bf16 %v25400_v24, %v25438_v46  ;;  %v25650_v24 = vpack.i.bf16 %v25397_v27, %v25435_v49 }
 0x471   :  { %20656 = vmatmul.mubr.msk.f32.gmra.mrb[8].mxu1 %vm9370_vm10, %v25501_v34  ;;  %29426 = vst [vmem:[#allocation10_spill] sm:$0xff] %v25571_v62  ;;  %29427 = vst [vmem:[#allocation8_spill] sm:$0xff] %v25573_v12  ;;  %v29337_v52 = vunpack.i.h.bf16 %v25571_v62  ;;  %v29343_v23 = vunpack.i.l.bf16 %v25571_v62  ;;  %v29336_v36 = vunpack.i.h.bf16 %v25573_v12  ;;  %v29342_v35 = vunpack.i.l.bf16 %v25573_v12 }
 0x472   :  { %20662 = vmatprep.mubr.msk.f32.mxu1 %vm9370_vm10, %v9318_v10 }
 0x473   :  { %v11013_v44 = vsel %vm3690_vm11, %v29343_v23, %v29337_v52  ;;  %v11008_v42 = vsel %vm3690_vm11, %v29342_v35, %v29336_v36 }
 0x474   :  { %22806 = vrot.lane.b32.xlu0 %v25411_v54, %s23275_s18  ;;  %22801 = vrot.lane.b32.xlu1 %v25529_v22, %s23275_s18  ;;  %v25617_v14 = vpop.permute.xlu0 %22766  ;;  %v25619_v8 = vpop.permute.xlu1 %22761  ;;  %v25626_v3 = vpack.c.bf16 %v11013_v44, %v11008_v42  ;;  %v19773_v44 = vld [vmem:[%s29310_s3 + $0xa8] sm:$0xff] }
 0x475   :  { %20663 = vmatmul.mubr.msk.f32.vlgmr.msra.gmra.mrb[6].mxu1 %vm9370_vm10, %v9319_v33  ;;  %29428 = vst [vmem:[#allocation6_spill] sm:$0xff] %v25617_v14  ;;  %29429 = vst [vmem:[#allocation9_spill] sm:$0xff] %v25619_v8  ;;  %v29335_v59 = vunpack.i.h.bf16 %v25617_v14  ;;  %v29341_v61 = vunpack.i.l.bf16 %v25617_v14  ;;  %v29340_v40 = vunpack.i.l.bf16 %v25619_v8  ;;  %v19753_v33 = vld [vmem:[%s29310_s3 + $0x90] sm:$0xff] }
 0x476   :  { %21009 = vmatpush3.bf16.msk.msra.mxu1 %vm25455_vm9, %v21004_v32  ;;  %20665 = vmatprep.mubr.msk.f32.mxu1 %vm9370_vm10, %v9320_v30  ;;  %29430 = vst [vmem:[#allocation11_spill] sm:$0xff] %v25626_v3  ;;  %v29334_v32 = vunpack.i.h.bf16 %v25619_v8 }
 0x477   :  { %21024 = vmatprep.subr.msk.bf16.mxu1 %vm25455_vm9, %v21022_v4  ;;  %v11362_v0 = vsel %vm4424_vm13, %v29341_v61, %v29335_v59 }
 0x478   :  { %22816 = vrot.lane.b32.xlu0 %v25413_v11, %s23275_s18  ;;  %22811 = vrot.lane.b32.xlu1 %v25416_v38, %s23275_s18  ;;  %v11357_v27 = vsel %vm4424_vm13, %v29340_v40, %v29334_v32  ;;  %v22772_v10 = vpop.permute.xlu1 %22771 }
 0x479   :  { %20666 = vmatmul.mubr.msk.f32.gmra.mrb[8].mxu1 %vm9370_vm10, %v9321_v50  ;;  %v25679_v30 = vpack.c.bf16 %v11362_v0, %v11357_v27  ;;  %v22774_v50 = vunpack.i.h.bf16 %v22772_v10 }
 0x47a   :  { %20672 = vmatprep.mubr.msk.f32.mxu1 %vm9370_vm10, %v19709_v58  ;;  %v22773_v58 = vunpack.i.l.bf16 %v22772_v10 }
 0x47b   :  { %29431 = vst [vmem:[#allocation12_spill] sm:$0xff] %v25679_v30 }
 0x47c   :  { %22826 = vrot.lane.b32.xlu0 %v22795_v29, %s23276_s1  ;;  %22821 = vrot.lane.b32.xlu1 %v22790_v26, %s23276_s1  ;;  %v19752_v29 = vld [vmem:[%s29310_s3 + $0x88] sm:$0xff]  ;;  %v22777_v26 = vpop.permute.xlu0 %22776 }
 0x47d   :  { %20673 = vmatmul.mubr.msk.f32.vlgmr.msra.gmra.mrb[6].mxu1 %vm9370_vm10, %v19710_v60  ;;  %v22779_v5 = vunpack.i.h.bf16 %v22777_v26  ;;  %v19754_v60 = vld [vmem:[%s29310_s3 + $0x98] sm:$0xff] }
 0x47e   :  { %21027 = vmatpush3.bf16.msk.msra.mxu1 %vm25455_vm9, %v21022_v4  ;;  %20675 = vmatprep.mubr.msk.f32.mxu1 %vm9370_vm10, %v19711_v16  ;;  %v22778_v4 = vunpack.i.l.bf16 %v22777_v26  ;;  %v19772_v16 = vld [vmem:[%s29310_s3 + $0xa0] sm:$0xff] }
 0x47f   :  { %21042 = vmatprep.subr.msk.bf16.mxu1 %vm25455_vm9, %v21040_v19  ;;  %v19793_v26 = vld [vmem:[%s29310_s3 + $0xc0] sm:$0xff] }
 0x480   :  { %22836 = vrot.lane.b32.xlu0 %v25411_v54, %s23276_s1  ;;  %22831 = vrot.lane.b32.xlu1 %v25529_v22, %s23276_s1  ;;  %v19731_v54 = vld [vmem:[%s29310_s3 + $0x68] sm:$0xff]  ;;  %v25710_v42 = vpop.permute.xlu0 %22786 }
 0x481   :  { %20676 = vmatmul.mubr.msk.f32.gmra.mrb[8].mxu1 %vm9370_vm10, %v19712_v39  ;;  %v11705_v39 = vsel %vm5158_vm15, %v22773_v58, %v22774_v50  ;;  %29433 = vst [vmem:[#allocation14_spill] sm:$0xff] %v25710_v42  ;;  %v29331_v0 = vunpack.i.h.bf16 %v25710_v42  ;;  %v29330_v27 = vunpack.i.l.bf16 %v25710_v42 }
 0x482   :  { %20682 = vmatprep.mubr.msk.f32.mxu1 %vm9370_vm10, %v19730_v43  ;;  %v25704_v43 = vpop.permute.xlu1 %22781 }
 0x483   :  { %29432 = vst [vmem:[#allocation13_spill] sm:$0xff] %v25704_v43 }
 0x484   :  { %22846 = vrot.lane.b32.xlu0 %v25413_v11, %s23276_s1  ;;  %22841 = vrot.lane.b32.xlu1 %v25416_v38, %s23276_s1  ;;  %v19733_v38 = vld [vmem:[%s29310_s3 + $0x78] sm:$0xff] }
 0x485   :  { %20683 = vmatmul.mubr.msk.f32.vlgmr.msra.gmra.mrb[6].mxu1 %vm9370_vm10, %v19731_v54  ;;  %v19774_v54 = vld [vmem:[%s29310_s3 + $0xb0] sm:$0xff] }
 0x486   :  { %21045 = vmatpush3.bf16.msk.msra.mxu1 %vm25455_vm9, %v21040_v19  ;;  %20685 = vmatprep.mubr.msk.f32.mxu1 %vm9370_vm10, %v19732_v53  ;;  %v11710_v19 = vsel %vm5158_vm15, %v22778_v4, %v22779_v5 }
 0x487   :  { %21060 = vmatprep.subr.msk.bf16.mxu1 %vm25455_vm9, %v25626_v3  ;;  %v25717_v53 = vpack.c.bf16 %v11710_v19, %v11705_v39  ;;  %v19814_v39 = vld [vmem:[%s29310_s3 + $0xe0] sm:$0xff] }
 0x488   :  { %22856 = vrot.lane.b32.xlu0 %v25633_v15, %s23253_s26  ;;  %22851 = vrot.lane.b32.xlu1 %v25650_v24, %s23253_s26 }
 0x489   :  { %20686 = vmatmul.mubr.msk.f32.gmra.mrb[8].mxu1 %vm9370_vm10, %v19733_v38  ;;  %29434 = vst [vmem:[#allocation15_spill] sm:$0xff] %v25717_v53  ;;  %v29338_v38 = vunpack.i.h.bf16 %v25704_v43 }
 0x48a   :  { %20692 = vmatprep.mubr.msk.f32.mxu1 %vm9370_vm10, %v19751_v37  ;;  %v29339_v37 = vunpack.i.l.bf16 %v25704_v43 }
 0x48b   :  { %v11709_v10 = vsel %vm5158_vm15, %v29338_v38, %v22778_v4  ;;  %v19794_v4 = vld [vmem:[%s29310_s3 + $0xc8] sm:$0xff] }
 0x48c   :  { %22866 = vrot.lane.b32.xlu0 %v25413_v11, %s23253_s26  ;;  %22861 = vrot.lane.b32.xlu1 %v25534_v57, %s23253_s26 }
 0x48d   :  { %20693 = vmatmul.mubr.msk.f32.vlgmr.msra.gmra.mrb[6].mxu1 %vm9370_vm10, %v19752_v29  ;;  %v19775_v29 = vld [vmem:[%s29310_s3 + $0xb8] sm:$0xff] }
 0x48e   :  { %21063 = vmatpush3.bf16.msk.msra.mxu1 %vm25455_vm9, %v25626_v3  ;;  %20695 = vmatprep.mubr.msk.f32.mxu1 %vm9370_vm10, %v19753_v33  ;;  %v11704_v33 = vsel %vm5158_vm15, %v29339_v37, %v22773_v58  ;;  %v19795_v58 = vld [vmem:[%s29310_s3 + $0xd0] sm:$0xff] }
 0x48f   :  { %21078 = vmatprep.subr.msk.bf16.mxu1 %vm25455_vm9, %v25679_v30  ;;  %v25763_v19 = vpack.c.bf16 %v11709_v10, %v11704_v33 }
 0x490   :  { %22876 = vrot.lane.b32.xlu0 %v25633_v15, %s23255_s28  ;;  %22871 = vrot.lane.b32.xlu1 %v25650_v24, %s23255_s28 }
 0x491   :  { %20696 = vmatmul.mubr.msk.f32.gmra.mrb[8].mxu1 %vm9370_vm10, %v19754_v60  ;;  %v11706_v60 = vsel %vm5158_vm15, %v22774_v50, %v29330_v27  ;;  %29435 = vst [vmem:[#allocation16_spill] sm:$0xff] %v25763_v19 }
 0x492   :  { %20702 = vmatprep.mubr.msk.f32.mxu1 %vm9370_vm10, %v19772_v16  ;;  %v11711_v16 = vsel %vm5158_vm15, %v22779_v5, %v29331_v0  ;;  %v19796_v5 = vld [vmem:[%s29310_s3 + $0xd8] sm:$0xff] }
 0x493   :  { %v25767_v50 = vpack.c.bf16 %v11711_v16, %v11706_v60 }
 0x494   :  { %22886 = vrot.lane.b32.xlu0 %v25413_v11, %s23255_s28  ;;  %22881 = vrot.lane.b32.xlu1 %v25534_v57, %s23255_s28 }
 0x495   :  { %20703 = vmatmul.mubr.msk.f32.vlgmr.msra.gmra.mrb[6].mxu1 %vm9370_vm10, %v19773_v44  ;;  %29436 = vst [vmem:[#allocation17_spill] sm:$0xff] %v25767_v50  ;;  %v19815_v44 = vld [vmem:[%s29310_s3 + $0xe8] sm:$0xff] }
 0x496   :  { %21081 = vmatpush3.bf16.msk.msra.mxu1 %vm25455_vm9, %v25679_v30  ;;  %20705 = vmatprep.mubr.msk.f32.mxu1 %vm9370_vm10, %v19774_v54  ;;  %v19817_v54 = vld [vmem:[%s29310_s3 + $0xf8] sm:$0xff] }
 0x497   :  { %21090 = vmatprep.subr.msk.bf16.mxu1 %vm25455_vm9, %v25717_v53 }
 0x498   :  { %22896 = vrot.lane.b32.xlu0 %v25633_v15, %s23272_s20  ;;  %22891 = vrot.lane.b32.xlu1 %v25650_v24, %s23272_s20 }
 0x499   :  { %20706 = vmatmul.mubr.msk.f32.gmra.mrb[8].mxu1 %vm9370_vm10, %v19775_v29 }
 0x49a   :  { %20712 = vmatprep.mubr.msk.f32.mxu1 %vm9370_vm10, %v19793_v26 }
 0x49c   :  { %22906 = vrot.lane.b32.xlu0 %v25413_v11, %s23272_s20  ;;  %22901 = vrot.lane.b32.xlu1 %v25534_v57, %s23272_s20 }
 0x49d   :  { %20713 = vmatmul.mubr.msk.f32.vlgmr.msra.gmra.mrb[6].mxu1 %vm9370_vm10, %v19794_v4 }
 0x49e   :  { %21093 = vmatpush1.bf16.msk.msra.mxu1 %vm25455_vm9, %v25763_v19  ;;  %20715 = vmatprep.mubr.msk.f32.mxu1 %vm9370_vm10, %v19795_v58 }
 0x49f   :  { %21096 = vmatprep.subr.msk.bf16.mxu1 %vm25455_vm9, %v25767_v50 }
 0x4a0   :  { %22916 = vrot.lane.b32.xlu0 %v25633_v15, %s23273_s15  ;;  %22911 = vrot.lane.b32.xlu1 %v25650_v24, %s23273_s15 }
 0x4a1   :  { %20716 = vmatmul.mubr.msk.f32.gmra.mrb[8].mxu1 %vm9370_vm10, %v19796_v5 }
 0x4a2   :  { %11892 = vmatprep.mubr.f32.mxu1 %v29414_v56 }
 0x4a4   :  { %22926 = vrot.lane.b32.xlu0 %v25413_v11, %s23273_s15  ;;  %22921 = vrot.lane.b32.xlu1 %v25534_v57, %s23273_s15  ;;  %v19816_v11 = vld [vmem:[%s29310_s3 + $0xf0] sm:$0xff] }
 0x4a5   :  { %19826 = vmatmul.mubr.msk.f32.vlgmr.msra.gmra.mrb[10].mxu1 %vm9370_vm10, %v19814_v39 }
 0x4a6   :  { %21099 = vmatpush3.bf16.msk.msra.mxu1 %vm25455_vm9, %v25767_v50  ;;  %11898 = vmatprep.mubr.f32.mxu1 %v29414_v56 }
 0x4a8   :  { %22936 = vrot.lane.b32.xlu0 %v25633_v15, %s23261_s21  ;;  %22931 = vrot.lane.b32.xlu1 %v25650_v24, %s23261_s21 }
 0x4a9   :  { %19827 = vmatmul.mubr.msk.f32.gmra.mrb[12].mxu1 %vm9370_vm10, %v19815_v44 }
 0x4aa   :  { %11904 = vmatprep.mubr.f32.mxu1 %v29414_v56 }
 0x4ac   :  { %22946 = vrot.lane.b32.xlu0 %v25421_v55, %s23261_s21  ;;  %22941 = vrot.lane.b32.xlu1 %v25534_v57, %s23261_s21 }
 0x4ad   :  { %19828 = vmatmul.mubr.msk.f32.gmra.mrb[14].mxu1 %vm9370_vm10, %v19816_v11 }
 0x4ae   :  { %11910 = vmatprep.mubr.f32.mxu1 %v29414_v56 }
 0x4b0   :  { %22956 = vrot.lane.b32.xlu0 %v25633_v15, %s23263_s23  ;;  %22951 = vrot.lane.b32.xlu1 %v25650_v24, %s23263_s23  ;;  %v17371_v15 = vld [vmem:[%s29311_s4 + $0x10] sm:$0xff]  ;;  %v17370_v24 = vld [vmem:[%s29311_s4 + $0x8] sm:$0xff] }
 0x4b1   :  { %19829 = vmatmul.mubr.msk.f32.gmra.mrb[16].mxu1 %vm9370_vm10, %v19817_v54 }
 0x4b2   :  { %20722 = vmatprep.mubr.msk.f32.mxu1 %vm9370_vm10, %v19814_v39 }
 0x4b4   :  { %22966 = vrot.lane.b32.xlu0 %v25421_v55, %s23263_s23  ;;  %22961 = vrot.lane.b32.xlu1 %v25534_v57, %s23263_s23 }
 0x4b5   :  { %20723 = vmatmul.mubr.msk.f32.vlgmr.msra.gmra.mrb[6].mxu1 %vm9370_vm10, %v19815_v44 }
 0x4b6   :  { %20725 = vmatprep.mubr.msk.f32.mxu1 %vm9370_vm10, %v19816_v11 }
 0x4b8   :  { %22976 = vrot.lane.b32.xlu0 %v25421_v55, %s23265_s24  ;;  %22971 = vrot.lane.b32.xlu1 %v25534_v57, %s23265_s24  ;;  %v17369_v57 = vld [vmem:[%s29311_s4] sm:$0xff] }
 0x4b9   :  { %20726 = vmatmul.mubr.msk.f32.gmra.mrb[8].mxu1 %vm9370_vm10, %v19817_v54 }
 0x4ba   :  { %12153 = vmatprep.mubr.f32.mxu1 %v29414_v56 }
 0x4bc   :  { %22986 = vrot.lane.b32.xlu0 %v25529_v22, %s23253_s26  ;;  %22981 = vrot.lane.b32.xlu1 %v25421_v55, %s23275_s18 }
 0x4c0   :  { %22996 = vrot.lane.b32.xlu0 %v25529_v22, %s23255_s28  ;;  %22991 = vrot.lane.b32.xlu1 %v25421_v55, %s23276_s1 }
 0x4c4   :  { %23006 = vrot.lane.b32.xlu0 %v25421_v55, %s23253_s26  ;;  %23001 = vrot.lane.b32.xlu1 %v25529_v22, %s23272_s20 }
 0x4c8   :  { %23016 = vrot.lane.b32.xlu0 %v25421_v55, %s23255_s28  ;;  %23011 = vrot.lane.b32.xlu1 %v25529_v22, %s23273_s15 }
 0x4cc   :  { %23026 = vrot.lane.b32.xlu0 %v25421_v55, %s23272_s20  ;;  %23021 = vrot.lane.b32.xlu1 %v25529_v22, %s23261_s21 }
 0x4d0   :  { %23036 = vrot.lane.b32.xlu0 %v25421_v55, %s23273_s15  ;;  %23031 = vrot.lane.b32.xlu1 %v25529_v22, %s23263_s23  ;;  %v17372_v55 = vld [vmem:[%s29311_s4 + $0x18] sm:$0xff] }
 0x4d4   :  { %17375 = vperm.xlu0 %22658, %v17369_v57   ;;  %23041 = vrot.lane.b32.xlu1 %v25529_v22, %s23265_s24 }
 0x4d8   :  { %17385 = vperm.xlu0 %22658, %v17371_v15   ;;  %17380 = vperm.xlu1 %22659, %v17370_v24  }
 0x4dc   :  { %17390 = vperm.xlu1 %22659, %v17372_v55  }
 0x4e2   :  { %v22797_v29 = vpop.permute.xlu0 %22796  ;;  %v22792_v22 = vpop.permute.xlu1 %22791 }
 0x4e3   :  { %v22799_v26 = vunpack.i.h.bf16 %v22797_v29  ;;  %v22798_v10 = vunpack.i.l.bf16 %v22797_v29  ;;  %v22794_v33 = vunpack.i.h.bf16 %v22792_v22  ;;  %v22793_v60 = vunpack.i.l.bf16 %v22792_v22 }
 0x4e5   :  { %v12058_v16 = vsel %vm12051_vm6, %v22798_v10, %v22799_v26  ;;  %v12053_v4 = vsel %vm12051_vm6, %v22793_v60, %v22794_v33 }
 0x4e6   :  { %v22807_v58 = vpop.permute.xlu0 %22806  ;;  %v25879_v5 = vpack.c.bf16 %v12058_v16, %v12053_v4  ;;  %v22802_v39 = vpop.permute.xlu1 %22801 }
 0x4e7   :  { %v22804_v44 = vunpack.i.h.bf16 %v22802_v39  ;;  %v22803_v11 = vunpack.i.l.bf16 %v22802_v39  ;;  %v22809_v54 = vunpack.i.h.bf16 %v22807_v58  ;;  %v22808_v57 = vunpack.i.l.bf16 %v22807_v58 }
 0x4e8   :  { %29437 = vst [vmem:[#allocation18_spill] sm:$0xff] %v25879_v5  ;;  %21102 = vmatprep.subr.msk.bf16.mxu1 %vm25455_vm9, %v25879_v5 }
 0x4e9   :  { %v12057_v15 = vsel %vm12051_vm6, %v22804_v44, %v22798_v10  ;;  %v12052_v24 = vsel %vm12051_vm6, %v22803_v11, %v22793_v60  ;;  %v12054_v58 = vsel %vm12051_vm6, %v22794_v33, %v22808_v57  ;;  %v12055_v0 = vsel %vm12051_vm6, %v22808_v57, %v22809_v54  ;;  %v25897_v10 = vld [vmem:[%s29310_s3 + $0x100] sm:$0xff] }
 0x4ea   :  { %v25886_v55 = vpop.permute.xlu0 %22816  ;;  %v21103_v29 = vpack.c.bf16 %v12057_v15, %v12052_v24  ;;  %v22812_v4 = vpop.permute.xlu1 %22811 }
 0x4eb   :  { %29438 = vst [vmem:[#allocation19_spill] sm:$0xff] %v25886_v55  ;;  %v29333_v22 = vunpack.i.h.bf16 %v25886_v55  ;;  %v29332_v16 = vunpack.i.l.bf16 %v25886_v55  ;;  %v22814_v27 = vunpack.i.h.bf16 %v22812_v4  ;;  %v22813_v39 = vunpack.i.l.bf16 %v22812_v4  ;;  %v19837_v4 = vld [vmem:[%s29310_s3 + $0x110] sm:$0xff] }
 0x4ec   :  { %21105 = vmatpush1.bf16.msk.msra.mxu1 %vm25455_vm9, %v21103_v29 }
 0x4ed   :  { %v12056_v60 = vsel %vm12051_vm6, %v22809_v54, %v29332_v16  ;;  %v12061_v44 = vsel %vm12051_vm6, %v22814_v27, %v29333_v22  ;;  %v12059_v33 = vsel %vm12051_vm6, %v22799_v26, %v22813_v39  ;;  %v12060_v11 = vsel %vm12051_vm6, %v22813_v39, %v22814_v27  ;;  %v19838_v16 = vld [vmem:[%s29310_s3 + $0x118] sm:$0xff] }
 0x4ee   :  { %v25907_v57 = vpop.permute.xlu0 %22826  ;;  %v25909_v15 = vpack.c.bf16 %v12060_v11, %v12055_v0  ;;  %v25911_v24 = vpack.c.bf16 %v12059_v33, %v12054_v58  ;;  %v25913_v29 = vpop.permute.xlu1 %22821  ;;  %v25917_v54 = vpack.c.bf16 %v12061_v44, %v12056_v60  ;;  %v25926_v0 = vld [vmem:[%s29310_s3 + $0x108] sm:$0xff] }
 0x4ef   :  { %19841 = vmatmul.mubr.msk.f32.vlgmr.msra.gmra.mrb[18].mxu1 %vm9370_vm10, %v25897_v10  ;;  %v29345_v60 = vunpack.i.h.bf16 %v25907_v57  ;;  %v22828_v44 = vunpack.i.l.bf16 %v25907_v57  ;;  %v29344_v33 = vunpack.i.h.bf16 %v25913_v29  ;;  %v22823_v11 = vunpack.i.l.bf16 %v25913_v29 }
 0x4f0   :  { %29439 = vst [vmem:[#allocation20_spill] sm:$0xff] %v25909_v15  ;;  %29440 = vst [vmem:[#allocation21_spill] sm:$0xff] %v25911_v24  ;;  %21108 = vmatprep.subr.msk.bf16.mxu1 %vm25455_vm9, %v25909_v15  ;;  %12159 = vmatprep.mubr.f32.mxu1 %v29414_v56 }
 0x4f1   :  { %29441 = vst [vmem:[#allocation22_spill] sm:$0xff] %v25917_v54  ;;  %21111 = vmatpush1.bf16.msk.msra.mxu1 %vm25455_vm9, %v25911_v24  ;;  %v12408_v59 = vsel %vm12401_vm14, %v22828_v44, %v29345_v60  ;;  %v12403_v36 = vsel %vm12401_vm14, %v22823_v11, %v29344_v33 }
 0x4f2   :  { %v25931_v27 = vpop.permute.xlu0 %22836  ;;  %v22832_v26 = vpop.permute.xlu1 %22831  ;;  %21114 = vmatprep.subr.msk.bf16.mxu1 %vm25455_vm9, %v25917_v54  ;;  %v25969_v38 = vpack.c.bf16 %v12408_v59, %v12403_v36 }
 0x4f3   :  { %19842 = vmatmul.mubr.msk.f32.gmra.mrb[20].mxu1 %vm9370_vm10, %v25926_v0  ;;  %v22838_v15 = vunpack.i.l.bf16 %v25931_v27 }
 0x4f4   :  { %12165 = vmatprep.mubr.f32.mxu1 %v29414_v56  ;;  %29442 = vst [vmem:[#allocation23_spill] sm:$0xff] %v25969_v38 }
 0x4f6   :  { %v25942_v39 = vpop.permute.xlu0 %22846  ;;  %v25944_v58 = vpop.permute.xlu1 %22841 }
 0x4f7   :  { %19843 = vmatmul.mubr.msk.f32.gmra.mrb[22].mxu1 %vm9370_vm10, %v19837_v4 }
 0x4f8   :  { %12171 = vmatprep.mubr.f32.mxu1 %v29414_v56 }
 0x4fa   :  { %v25955_v22 = vpop.permute.xlu0 %22856  ;;  %v25957_v32 = vpop.permute.xlu1 %22851 }
 0x4fb   :  { %19844 = vmatmul.mubr.msk.f32.gmra.mrb[24].mxu1 %vm9370_vm10, %v19838_v16  ;;  %v29347_v2 = vunpack.i.l.bf16 %v25955_v22  ;;  %v29346_v40 = vunpack.i.l.bf16 %v25957_v32 }
 0x4fc   :  { %12242 = vmatprep.mubr.f32.mxu1 %v29414_v56 }
 0x4fe   :  { %v25967_v52 = vpop.permute.xlu0 %22866  ;;  %v25971_v37 = vpop.permute.xlu1 %22861 }
 0x4ff   :  { %v29348_v61 = vunpack.i.h.bf16 %v25971_v37  ;;  %v29349_v35 = vunpack.i.l.bf16 %v25971_v37  ;;  %19847 = vmatmul.mubr.msk.f32.vlgmr.msra.gmra.mrb[10].mxu1 %vm9370_vm10, %v25897_v10 }
 0x500   :  { %21117 = vmatpush3.bf16.msk.msra.mxu1 %vm25455_vm9, %v25917_v54  ;;  %12248 = vmatprep.mubr.f32.mxu1 %v29414_v56 }
 0x501   :  { %v9362_v36 = vsel %vm760_vm3, %v29348_v61, %v29347_v2  ;;  %v9358_v59 = vsel %vm760_vm3, %v29349_v35, %v29346_v40  ;;  %21120 = vmatprep.subr.msk.bf16.mxu1 %vm25455_vm9, %v25969_v38  ;;  %v22834_v61 = vunpack.i.h.bf16 %v22832_v26  ;;  %v22833_v35 = vunpack.i.l.bf16 %v22832_v26 }
 0x502   :  { %v25996_v23 = vpop.permute.xlu0 %22876  ;;  %v25998_v33 = vpack.c.bf16 %v9362_v36, %v9358_v59  ;;  %v26000_v60 = vpop.permute.xlu1 %22871  ;;  %v22844_v36 = vunpack.i.h.bf16 %v25944_v58  ;;  %v22843_v59 = vunpack.i.l.bf16 %v25944_v58  ;;  %v22839_v38 = vunpack.i.h.bf16 %v25931_v27 }
 0x503   :  { %19848 = vmatmul.mubr.msk.f32.gmra.mrb[12].mxu1 %vm9370_vm10, %v25926_v0  ;;  %v12407_v54 = vsel %vm12401_vm14, %v22834_v61, %v22828_v44  ;;  %v12402_v26 = vsel %vm12401_vm14, %v22833_v35, %v22823_v11  ;;  %v29362_v35 = vunpack.i.h.bf16 %v25942_v39  ;;  %v29361_v61 = vunpack.i.l.bf16 %v25942_v39 }
 0x504   :  { %20958 = vmatprep.subr.msk.bf16.mxu0 %vm25455_vm9, %v25998_v33  ;;  %12254 = vmatprep.mubr.f32.mxu1 %v29414_v56  ;;  %v12410_v5 = vsel %vm12401_vm14, %v22843_v59, %v22844_v36  ;;  %v12405_v24 = vsel %vm12401_vm14, %v22838_v15, %v22839_v38  ;;  %v21121_v53 = vpack.c.bf16 %v12407_v54, %v12402_v26 }
 0x505   :  { %v26033_v27 = vpack.c.bf16 %v12410_v5, %v12405_v24  ;;  %v12406_v11 = vsel %vm12401_vm14, %v22839_v38, %v29361_v61  ;;  %v12411_v26 = vsel %vm12401_vm14, %v22844_v36, %v29362_v35  ;;  %v29446_v38 = vunpack.i.h.bf16 %v25913_v29 }
 0x506   :  { %v26008_v40 = vpop.permute.xlu0 %22886  ;;  %v26010_v2 = vpop.permute.xlu1 %22881  ;;  %v26092_v29 = vpack.c.bf16 %v12411_v26, %v12406_v11 }
 0x507   :  { %19849 = vmatmul.mubr.msk.f32.gmra.mrb[14].mxu1 %vm9370_vm10, %v19837_v4  ;;  %29443 = vst [vmem:[#allocation24_spill] sm:$0xff] %v26033_v27 }
 0x508   :  { %12260 = vmatprep.mubr.f32.mxu1 %v29414_v56  ;;  %29448 = vst [vmem:[#allocation26_spill] sm:$0xff] %v26092_v29 }
 0x50a   :  { %v26016_v21 = vpop.permute.xlu0 %22896  ;;  %v26020_v55 = vpop.permute.xlu1 %22891 }
 0x50b   :  { %19850 = vmatmul.mubr.msk.f32.gmra.mrb[16].mxu1 %vm9370_vm10, %v19838_v16 }
 0x50c   :  { %20732 = vmatprep.mubr.msk.f32.mxu1 %vm9370_vm10, %v25897_v10 }
 0x50e   :  { %v26028_v58 = vpop.permute.xlu0 %22906  ;;  %v26031_v42 = vpop.permute.xlu1 %22901 }
 0x50f   :  { %20733 = vmatmul.mubr.msk.f32.vlgmr.msra.gmra.mrb[6].mxu1 %vm9370_vm10, %v25926_v0  ;;  %v29444_v0 = vunpack.i.h.bf16 %v25907_v57 }
 0x510   :  { %21123 = vmatpush1.bf16.msk.msra.mxu1 %vm25455_vm9, %v21121_v53  ;;  %20735 = vmatprep.mubr.msk.f32.mxu1 %vm9370_vm10, %v19837_v4 }
 0x511   :  { %21126 = vmatprep.subr.msk.bf16.mxu1 %vm25455_vm9, %v26033_v27  ;;  %v12409_v44 = vsel %vm12401_vm14, %v29444_v0, %v22843_v59  ;;  %v12404_v0 = vsel %vm12401_vm14, %v29446_v38, %v22838_v15  ;;  %v26103_v15 = vld [vmem:[%s29310_s3 + $0x128] sm:$0xff] }
 0x512   :  { %v26045_v10 = vpop.permute.xlu0 %22916  ;;  %v26049_v54 = vpop.permute.xlu1 %22911 }
 0x513   :  { %v22919_v5 = vunpack.i.h.bf16 %v26045_v10  ;;  %v22914_v53 = vunpack.i.h.bf16 %v26049_v54  ;;  %v29365_v4 = vunpack.i.l.bf16 %v26049_v54  ;;  %20736 = vmatmul.mubr.msk.f32.gmra.mrb[8].mxu1 %vm9370_vm10, %v19838_v16  ;;  %v29445_v57 = vunpack.i.l.bf16 %v26045_v10  ;;  %v26072_v16 = vld [vmem:[%s29310_s3 + $0x120] sm:$0xff] }
 0x514   :  { %12503 = vmatprep.mubr.f32.mxu1 %v29414_v56 }
 0x515   :  { %v10662_v24 = vsel %vm10654_vm1, %v22919_v5, %v25560_v9  ;;  %v10661_v59 = vsel %vm10654_vm1, %v29445_v57, %v22919_v5  ;;  %v10658_v36 = vsel %vm10654_vm1, %v22914_v53, %v25562_v41  ;;  %v10657_v61 = vsel %vm10654_vm1, %v29365_v4, %v22914_v53 }
 0x516   :  { %v26082_v35 = vpop.permute.xlu0 %22926  ;;  %v26084_v5 = vpack.c.bf16 %v12409_v44, %v12404_v0  ;;  %v26086_v57 = vpack.c.bf16 %v10662_v24, %v10658_v36  ;;  %v26088_v27 = vpack.c.bf16 %v10661_v59, %v10657_v61  ;;  %v26090_v50 = vpop.permute.xlu1 %22921  ;;  %v29449_v59 = vunpack.i.l.bf16 %v25571_v62  ;;  %v26118_v36 = vld [vmem:[%s29310_s3 + $0x130] sm:$0xff] }
 0x517   :  { %19862 = vmatmul.mubr.msk.f32.vlgmr.msra.gmra.mrb[18].mxu1 %vm9370_vm10, %v26072_v16 }
 0x518   :  { %29447 = vst [vmem:[#allocation25_spill] sm:$0xff] %v26084_v5  ;;  %21129 = vmatpush1.bf16.msk.msra.mxu1 %vm25455_vm9, %v26084_v5  ;;  %12509 = vmatprep.mubr.f32.mxu1 %v29414_v56 }
 0x519   :  { %21132 = vmatprep.subr.msk.bf16.mxu1 %vm25455_vm9, %v26092_v29 }
 0x51a   :  { %v22937_v61 = vpop.permute.xlu0 %22936  ;;  %v22932_v53 = vpop.permute.xlu1 %22931 }
 0x51b   :  { %v22939_v24 = vunpack.i.h.bf16 %v22937_v61  ;;  %v22938_v44 = vunpack.i.l.bf16 %v22937_v61  ;;  %v22934_v11 = vunpack.i.h.bf16 %v22932_v53  ;;  %v22933_v26 = vunpack.i.l.bf16 %v22932_v53  ;;  %19863 = vmatmul.mubr.msk.f32.gmra.mrb[20].mxu1 %vm9370_vm10, %v26103_v15 }
 0x51c   :  { %12515 = vmatprep.mubr.f32.mxu1 %v29414_v56  ;;  %v29450_v61 = vunpack.i.l.bf16 %v25573_v12 }
 0x51d   :  { %v11012_v38 = vsel %vm3690_vm11, %v22939_v24, %v29449_v59  ;;  %v11011_v0 = vsel %vm3690_vm11, %v22938_v44, %v22939_v24  ;;  %v11006_v4 = vsel %vm3690_vm11, %v22933_v26, %v22934_v11 }
 0x51e   :  { %v11007_v53 = vsel %vm3690_vm11, %v22934_v11, %v29450_v61  ;;  %v26124_v5 = vpop.permute.xlu0 %22946  ;;  %v26128_v59 = vpack.c.bf16 %v11011_v0, %v11006_v4  ;;  %v26130_v24 = vpop.permute.xlu1 %22941  ;;  %v26140_v11 = vld [vmem:[%s29310_s3 + $0x138] sm:$0xff] }
 0x51f   :  { %29451 = vst [vmem:[#allocation27_spill] sm:$0xff] %v26124_v5  ;;  %v26126_v19 = vpack.c.bf16 %v11012_v38, %v11007_v53  ;;  %v29377_v30 = vunpack.i.h.bf16 %v26130_v24  ;;  %v29378_v62 = vunpack.i.l.bf16 %v26130_v24  ;;  %19864 = vmatmul.mubr.msk.f32.gmra.mrb[22].mxu1 %vm9370_vm10, %v26118_v36 }
 0x520   :  { %29452 = vst [vmem:[#allocation28_spill] sm:$0xff] %v26128_v59  ;;  %12521 = vmatprep.mubr.f32.mxu1 %v29414_v56  ;;  %v29453_v59 = vunpack.i.l.bf16 %v25617_v14 }
 0x521   :  { %v11010_v4 = vsel %vm3690_vm11, %v29377_v30, %v22938_v44  ;;  %v11005_v38 = vsel %vm3690_vm11, %v29378_v62, %v22933_v26  ;;  %v29454_v26 = vunpack.i.l.bf16 %v25619_v8  ;;  %v29463_v8 = vunpack.i.h.bf16 %v25971_v37 }
 0x522   :  { %v22957_v0 = vpop.permute.xlu0 %22956  ;;  %v26148_v61 = vpack.c.bf16 %v11010_v4, %v11005_v38  ;;  %v22952_v3 = vpop.permute.xlu1 %22951 }
 0x523   :  { %v22959_v53 = vunpack.i.h.bf16 %v22957_v0  ;;  %v22958_v12 = vunpack.i.l.bf16 %v22957_v0  ;;  %v22954_v5 = vunpack.i.h.bf16 %v22952_v3  ;;  %v22953_v43 = vunpack.i.l.bf16 %v22952_v3  ;;  %19865 = vmatmul.mubr.msk.f32.gmra.mrb[24].mxu1 %vm9370_vm10, %v26140_v11 }
 0x524   :  { %12592 = vmatprep.mubr.f32.mxu1 %v29414_v56 }
 0x525   :  { %v11361_v41 = vsel %vm4424_vm13, %v22959_v53, %v29453_v59  ;;  %v11360_v44 = vsel %vm4424_vm13, %v22958_v12, %v22959_v53  ;;  %v11356_v4 = vsel %vm4424_vm13, %v22954_v5, %v29454_v26  ;;  %v11355_v38 = vsel %vm4424_vm13, %v22953_v43, %v22954_v5 }
 0x526   :  { %v26161_v0 = vpop.permute.xlu0 %22966  ;;  %v26163_v3 = vpack.c.bf16 %v11361_v41, %v11356_v4  ;;  %v26165_v30 = vpack.c.bf16 %v11360_v44, %v11355_v38  ;;  %v26167_v62 = vpop.permute.xlu1 %22961  ;;  %v26175_v26 = vpack.c.bf16 %v25438_v46, %v25435_v49  ;;  %v22859_v4 = vunpack.i.h.bf16 %v25955_v22 }
 0x527   :  { %29455 = vst [vmem:[#allocation29_spill] sm:$0xff] %v26161_v0  ;;  %29458 = vst [vmem:[#allocation32_spill] sm:$0xff] %v26167_v62  ;;  %v29379_v59 = vunpack.i.h.bf16 %v26167_v62  ;;  %v29380_v53 = vunpack.i.l.bf16 %v26167_v62  ;;  %19868 = vmatmul.mubr.msk.f32.vlgmr.msra.gmra.mrb[10].mxu1 %vm9370_vm10, %v26072_v16  ;;  %v22854_v38 = vunpack.i.h.bf16 %v25957_v32  ;;  %v29464_v0 = vunpack.i.l.bf16 %v25955_v22 }
 0x528   :  { %29456 = vst [vmem:[#allocation30_spill] sm:$0xff] %v26163_v3  ;;  %29457 = vst [vmem:[#allocation31_spill] sm:$0xff] %v26165_v30  ;;  %21135 = vmatpush3.bf16.msk.msra.mxu1 %vm25455_vm9, %v26092_v29  ;;  %12598 = vmatprep.mubr.f32.mxu1 %v29414_v56  ;;  %v29462_v29 = vunpack.i.l.bf16 %v25971_v37  ;;  %v29465_v3 = vunpack.i.l.bf16 %v25957_v32  ;;  %v29466_v32 = vunpack.i.h.bf16 %v25942_v39 }
 0x529   :  { %v11359_v41 = vsel %vm4424_vm13, %v29379_v59, %v22958_v12  ;;  %v11354_v5 = vsel %vm4424_vm13, %v29380_v53, %v22953_v43  ;;  %21138 = vmatprep.subr.msk.bf16.mxu1 %vm25455_vm9, %v26175_v26  ;;  %v9363_v30 = vsel %vm760_vm3, %v29464_v0, %v22859_v4  ;;  %v29467_v0 = vunpack.i.l.bf16 %v25942_v39 }
 0x52a   :  { %v26190_v49 = vpop.permute.xlu0 %22976  ;;  %v26192_v46 = vpack.c.bf16 %v11359_v41, %v11354_v5  ;;  %v26194_v44 = vpop.permute.xlu1 %22971  ;;  %v9364_v41 = vsel %vm760_vm3, %v22859_v4, %v25450_v13  ;;  %v9360_v5 = vsel %vm760_vm3, %v22854_v38, %v25452_v18  ;;  %v9359_v62 = vsel %vm760_vm3, %v29465_v3, %v22854_v38 }
 0x52b   :  { %29459 = vst [vmem:[#allocation33_spill] sm:$0xff] %v26190_v49  ;;  %29460 = vst [vmem:[#allocation34_spill] sm:$0xff] %v26194_v44  ;;  %19869 = vmatmul.mubr.msk.f32.gmra.mrb[12].mxu1 %vm9370_vm10, %v26103_v15  ;;  %v26221_v44 = vpack.c.bf16 %v9364_v41, %v9360_v5  ;;  %v26249_v4 = vunpack.i.l.bf16 %v25967_v52  ;;  %v26291_v41 = vunpack.i.h.bf16 %v26008_v40  ;;  %v26294_v5 = vunpack.i.l.bf16 %v26008_v40 }
 0x52c   :  { %12604 = vmatprep.mubr.f32.mxu1 %v29414_v56 }
 0x52e   :  { %v22987_v12 = vpop.permute.xlu0 %22986  ;;  %v26201_v53 = vpop.permute.xlu1 %22981 }
 0x52f   :  { %v22989_v43 = vunpack.i.h.bf16 %v22987_v12  ;;  %v22988_v59 = vunpack.i.l.bf16 %v22987_v12  ;;  %29461 = vst [vmem:[#allocation35_spill] sm:$0xff] %v26201_v53  ;;  %19870 = vmatmul.mubr.msk.f32.gmra.mrb[14].mxu1 %vm9370_vm10, %v26118_v36 }
 0x530   :  { %12610 = vmatprep.mubr.f32.mxu1 %v29414_v56 }
 0x531   :  { %v9357_v49 = vsel %vm760_vm3, %v22988_v59, %v29462_v29  ;;  %v9361_v14 = vsel %vm760_vm3, %v22989_v43, %v29463_v8  ;;  %v26238_v8 = vunpack.i.h.bf16 %v25967_v52 }
 0x532   :  { %v20959_v12 = vpack.c.bf16 %v9361_v14, %v9357_v49  ;;  %v26216_v53 = vpop.permute.xlu0 %22996  ;;  %v22992_v29 = vpop.permute.xlu1 %22991  ;;  %v26235_v14 = vpack.c.bf16 %v9363_v30, %v9359_v62 }
 0x533   :  { %v22994_v59 = vunpack.i.h.bf16 %v22992_v29  ;;  %v22993_v37 = vunpack.i.l.bf16 %v22992_v29  ;;  %19871 = vmatmul.mubr.msk.f32.gmra.mrb[16].mxu1 %vm9370_vm10, %v26140_v11 }
 0x534   :  { %20961 = vmatpush1.bf16.msk.msra.mxu0 %vm25455_vm9, %v20959_v12  ;;  %20742 = vmatprep.mubr.msk.f32.mxu1 %vm9370_vm10, %v26072_v16  ;;  %v23195_v16 = vld [vmem:[%s29310_s3 + $0x20] sm:$0xff] }
 0x535   :  { %20964 = vmatprep.subr.msk.bf16.mxu0 %vm25455_vm9, %v26221_v44  ;;  %v15520_v22 = vsel %vm12401_vm14, %v29466_v32, %v22994_v59  ;;  %v15519_v3 = vsel %vm12401_vm14, %v29467_v0, %v22993_v37  ;;  %v26328_v59 = vunpack.i.h.bf16 %v26028_v58  ;;  %v26331_v37 = vunpack.i.l.bf16 %v26028_v58 }
 0x536   :  { %v26246_v49 = vpop.permute.xlu0 %23006  ;;  %v26251_v38 = vpack.c.bf16 %v15520_v22, %v15519_v3 }
 0x537   :  { %v29396_v62 = vunpack.i.h.bf16 %v26246_v49  ;;  %v29399_v30 = vunpack.i.l.bf16 %v26246_v49  ;;  %19677 = vmatmul.mubr.msk.f32.vlgmr.msra.gmra.mrb[8].mxu0 %vm9370_vm10, %v23195_v16  ;;  %20743 = vmatmul.mubr.msk.f32.vlgmr.msra.gmra.mrb[6].mxu1 %vm9370_vm10, %v26103_v15 }
 0x538   :  { %20967 = vmatpush1.bf16.msk.msra.mxu0 %vm25455_vm9, %v26235_v14  ;;  %21141 = vmatpush1.bf16.msk.msra.mxu1 %vm25455_vm9, %v25556_v63 }
 0x539   :  { %v26268_v52 = vsel %vm760_vm3, %v26249_v4, %v29399_v30  ;;  %v26274_v39 = vsel %vm760_vm3, %v26238_v8, %v29396_v62  ;;  %20976 = vmatprep.subr.msk.bf16.mxu0 %vm25455_vm9, %v25556_v63  ;;  %21144 = vmatprep.subr.msk.bf16.mxu1 %vm25455_vm9, %v25408_v47  ;;  %v29400_v62 = vunpack.i.l.bf16 %v26000_v60 }
 0x53a   :  { %v26287_v43 = vpop.permute.xlu0 %23016  ;;  %9464 = vmatprep.mubr.f32.mxu0 %v29414_v56  ;;  %20745 = vmatprep.mubr.msk.f32.mxu1 %vm9370_vm10, %v26118_v36 }
 0x53b   :  { %v29394_v12 = vunpack.i.h.bf16 %v26287_v43  ;;  %v29395_v63 = vunpack.i.l.bf16 %v26287_v43  ;;  %19678 = vmatmul.mubr.msk.f32.gmra.mrb[10].mxu0 %vm9370_vm10, %v25472_v45  ;;  %20746 = vmatmul.mubr.msk.f32.gmra.mrb[8].mxu1 %vm9370_vm10, %v26140_v11  ;;  %v26321_v45 = vld [vmem:[%s29310_s3 + $0x140] sm:$0xff] }
 0x53c   :  { %9470 = vmatprep.mubr.f32.mxu0 %v29414_v56  ;;  %12805 = vmatprep.mubr.f32.mxu1 %v29414_v56 }
 0x53d   :  { %v26309_v40 = vsel %vm1488_vm5, %v26294_v5, %v29395_v63  ;;  %v26315_v29 = vsel %vm1488_vm5, %v26291_v41, %v29394_v12  ;;  %v26372_v12 = vunpack.i.l.bf16 %v26082_v35 }
 0x53e   :  { %v26325_v11 = vpop.permute.xlu0 %23026 }
 0x53f   :  { %29468 = vst [vmem:[#allocation36_spill] sm:$0xff] %v26325_v11  ;;  %v29392_v32 = vunpack.i.h.bf16 %v26325_v11  ;;  %v29393_v22 = vunpack.i.l.bf16 %v26325_v11  ;;  %19679 = vmatmul.mubr.msk.f32.gmra.mrb[12].mxu0 %vm9370_vm10, %v25482_v6  ;;  %19883 = vmatmul.mubr.msk.f32.vlgmr.msra.gmra.mrb[18].mxu1 %vm9370_vm10, %v26321_v45  ;;  %v26359_v6 = vld [vmem:[%s29310_s3 + $0x148] sm:$0xff]  ;;  %v22874_v11 = vunpack.i.h.bf16 %v26000_v60 }
 0x540   :  { %9476 = vmatprep.mubr.f32.mxu0 %v29414_v56  ;;  %21147 = vmatpush1.bf16.msk.msra.mxu1 %vm25455_vm9, %v25428_v25 }
 0x541   :  { %v26344_v0 = vsel %vm10310_vm2, %v26331_v37, %v29393_v22  ;;  %v26350_v58 = vsel %vm10310_vm2, %v26328_v59, %v29392_v32  ;;  %12811 = vmatprep.mubr.f32.mxu1 %v29414_v56  ;;  %21150 = vmatprep.subr.msk.bf16.mxu1 %vm25455_vm9, %v25430_v28  ;;  %v26369_v22 = vunpack.i.h.bf16 %v26082_v35 }
 0x542   :  { %v26366_v32 = vpop.permute.xlu0 %23036 }
 0x543   :  { %29469 = vst [vmem:[#allocation37_spill] sm:$0xff] %v26366_v32  ;;  %v29398_v63 = vunpack.i.h.bf16 %v26366_v32  ;;  %v29397_v36 = vunpack.i.l.bf16 %v26366_v32  ;;  %19680 = vmatmul.mubr.msk.f32.gmra.mrb[14].mxu0 %vm9370_vm10, %v25501_v34  ;;  %19884 = vmatmul.mubr.msk.f32.gmra.mrb[20].mxu1 %vm9370_vm10, %v26359_v6  ;;  %v19879_v34 = vld [vmem:[%s29310_s3 + $0x150] sm:$0xff]  ;;  %v22998_v32 = vunpack.i.l.bf16 %v26216_v53 }
 0x544   :  { %9547 = vmatprep.mubr.f32.mxu0 %v29414_v56  ;;  %12817 = vmatprep.mubr.f32.mxu1 %v29414_v56 }
 0x545   :  { %v26385_v3 = vsel %vm10654_vm1, %v26372_v12, %v29397_v36  ;;  %v26391_v35 = vsel %vm10654_vm1, %v26369_v22, %v29398_v63  ;;  %v29472_v36 = vpack.c.bf16 %v25504_v17, %v25507_v1  ;;  %v19880_v63 = vld [vmem:[%s29310_s3 + $0x158] sm:$0xff]  ;;  %v23196_v17 = vld [vmem:[%s29310_s3 + $0x28] sm:$0xff]  ;;  %v23197_v1 = vld [vmem:[%s29310_s3 + $0x30] sm:$0xff] }
 0x546   :  { %29470 = vst [vmem:[#allocation38_spill] sm:$0xff] %v26385_v3  ;;  %29471 = vst [vmem:[#allocation39_spill] sm:$0xff] %v26391_v35  ;;  %v23201_v3 = vld [vmem:[%s29310_s3 + $0x10] sm:$0xff] }
 0x547   :  { %19683 = vmatmul.mubr.msk.f32.vlgmr.msra.gmra.mrb[16].mxu0 %vm9370_vm10, %v23195_v16  ;;  %19885 = vmatmul.mubr.msk.f32.gmra.mrb[22].mxu1 %vm9370_vm10, %v19879_v34  ;;  %v22884_v16 = vunpack.i.h.bf16 %v26010_v2 }
 0x548   :  { %20979 = vmatpush1.bf16.msk.msra.mxu0 %vm25455_vm9, %v29472_v36  ;;  %9553 = vmatprep.mubr.f32.mxu0 %v29414_v56  ;;  %v22883_v36 = vunpack.i.l.bf16 %v26010_v2  ;;  %v23198_v2 = vld [vmem:[%s29310_s3 + $0x38] sm:$0xff] }
 0x549   :  { %20982 = vmatprep.subr.msk.bf16.mxu0 %vm25455_vm9, %v25428_v25  ;;  %12823 = vmatprep.mubr.f32.mxu1 %v29414_v56 }
 0x54a   :  { %v9968_v30 = vsel %vm1488_vm5, %v22883_v36, %v29400_v62  ;;  %v13033_v62 = vsel %vm760_vm3, %v25452_v18, %v26249_v4  ;;  %v9967_v18 = vsel %vm1488_vm5, %v22998_v32, %v22883_v36  ;;  %v26518_v32 = vld [vmem:[%s29310_s3 + $0x160] sm:$0xff]  ;;  %v22903_v36 = vunpack.i.l.bf16 %v26031_v42 }
 0x54b   :  { %19684 = vmatmul.mubr.msk.f32.gmra.mrb[18].mxu0 %vm9370_vm10, %v23196_v17  ;;  %19886 = vmatmul.mubr.msk.f32.gmra.mrb[24].mxu1 %vm9370_vm10, %v19880_v63  ;;  %v29401_v17 = vunpack.i.l.bf16 %v25996_v23 }
 0x54c   :  { %9559 = vmatprep.mubr.f32.mxu0 %v29414_v56  ;;  %12894 = vmatprep.mubr.f32.mxu1 %v29414_v56 }
 0x54f   :  { %19685 = vmatmul.mubr.msk.f32.gmra.mrb[20].mxu0 %vm9370_vm10, %v23197_v1  ;;  %19889 = vmatmul.mubr.msk.f32.vlgmr.msra.gmra.mrb[10].mxu1 %vm9370_vm10, %v26321_v45  ;;  %v9972_v1 = vsel %vm1488_vm5, %v22884_v16, %v29401_v17  ;;  %v22999_v17 = vunpack.i.h.bf16 %v26216_v53 }
 0x550   :  { %9565 = vmatprep.mubr.f32.mxu0 %v29414_v56  ;;  %21153 = vmatpush3.bf16.msk.msra.mxu1 %vm25455_vm9, %v25430_v28  ;;  %v26453_v15 = vpack.c.bf16 %v9972_v1, %v9968_v30  ;;  %v23200_v30 = vld [vmem:[%s29310_s3 + $0x8] sm:$0xff]  ;;  %v13034_v1 = vsel %vm760_vm3, %v25450_v13, %v26238_v8  ;;  %v22879_v13 = vunpack.i.h.bf16 %v25996_v23 }
 0x551   :  { %12900 = vmatprep.mubr.f32.mxu1 %v29414_v56  ;;  %21156 = vmatprep.subr.msk.bf16.mxu1 %vm25455_vm9, %v26235_v14  ;;  %v26488_v35 = vpack.c.bf16 %v13034_v1, %v13033_v62  ;;  %v9971_v53 = vsel %vm1488_vm5, %v22999_v17, %v22884_v16  ;;  %v23202_v62 = vld [vmem:[%s29310_s3 + $0x18] sm:$0xff]  ;;  %v21166_v16 = vpack.c.bf16 %v26238_v8, %v26249_v4  ;;  %v26552_v8 = vld [vmem:[%s29310_s3 + $0x170] sm:$0xff]  ;;  %v22904_v4 = vunpack.i.h.bf16 %v26031_v42 }
 0x552   :  { %v19901_v17 = vld [vmem:[%s29310_s3 + $0x178] sm:$0xff]  ;;  %v29474_v42 = vunpack.i.l.bf16 %v26000_v60 }
 0x553   :  { %19686 = vmatmul.mubr.msk.f32.gmra.mrb[22].mxu0 %vm9370_vm10, %v23198_v2  ;;  %19890 = vmatmul.mubr.msk.f32.gmra.mrb[12].mxu1 %vm9370_vm10, %v26359_v6  ;;  %v23199_v2 = vld [vmem:[%s29310_s3] sm:$0xff] }
 0x554   :  { %9743 = vmatprep.mubr.f32.mxu0 %v29414_v56  ;;  %12906 = vmatprep.mubr.f32.mxu1 %v29414_v56 }
 0x557   :  { %19694 = vmatmul.mubr.msk.f32.vlgmr.msra.gmra.mrb[8].mxu0 %vm9370_vm10, %v23199_v2  ;;  %19891 = vmatmul.mubr.msk.f32.gmra.mrb[14].mxu1 %vm9370_vm10, %v19879_v34 }
 0x558   :  { %20985 = vmatpush1.bf16.msk.msra.mxu0 %vm25455_vm9, %v26175_v26  ;;  %9749 = vmatprep.mubr.f32.mxu0 %v29414_v56 }
 0x559   :  { %20994 = vmatprep.subr.msk.bf16.mxu0 %vm25455_vm9, %v26453_v15  ;;  %12912 = vmatprep.mubr.f32.mxu1 %v29414_v56 }
 0x55b   :  { %19695 = vmatmul.mubr.msk.f32.gmra.mrb[10].mxu0 %vm9370_vm10, %v23200_v30  ;;  %19892 = vmatmul.mubr.msk.f32.gmra.mrb[16].mxu1 %vm9370_vm10, %v19880_v63 }
 0x55c   :  { %9755 = vmatprep.mubr.f32.mxu0 %v29414_v56  ;;  %20752 = vmatprep.mubr.msk.f32.mxu1 %vm9370_vm10, %v26321_v45  ;;  %v9974_v45 = vsel %vm1488_vm5, %v22879_v13, %v25461_v20 }
 0x55f   :  { %19696 = vmatmul.mubr.msk.f32.gmra.mrb[12].mxu0 %vm9370_vm10, %v23201_v3  ;;  %20753 = vmatmul.mubr.msk.f32.vlgmr.msra.gmra.mrb[6].mxu1 %vm9370_vm10, %v26359_v6  ;;  %v20995_v6 = vpack.c.bf16 %v9971_v53, %v9967_v18  ;;  %v9969_v18 = vsel %vm1488_vm5, %v29474_v42, %v22874_v11 }
 0x560   :  { %9761 = vmatprep.mubr.f32.mxu0 %v29414_v56  ;;  %21159 = vmatpush1.bf16.msk.msra.mxu1 %vm25455_vm9, %v25998_v33  ;;  %v9970_v33 = vsel %vm1488_vm5, %v22874_v11, %v25463_v51  ;;  %v23203_v11 = vld [vmem:[%s29310_s3 + $0x40] sm:$0xff] }
 0x561   :  { %20755 = vmatprep.mubr.msk.f32.mxu1 %vm9370_vm10, %v19879_v34  ;;  %21162 = vmatprep.subr.msk.bf16.mxu1 %vm25455_vm9, %v26488_v35  ;;  %v26520_v34 = vpack.c.bf16 %v9974_v45, %v9970_v33 }
 0x563   :  { %19697 = vmatmul.mubr.msk.f32.gmra.mrb[14].mxu0 %vm9370_vm10, %v23202_v62  ;;  %20756 = vmatmul.mubr.msk.f32.gmra.mrb[8].mxu1 %vm9370_vm10, %v19880_v63  ;;  %v26538_v63 = vld [vmem:[%s29310_s3 + $0x168] sm:$0xff] }
 0x564   :  { %9832 = vmatprep.mubr.f32.mxu0 %v29414_v56  ;;  %13117 = vmatprep.mubr.f32.mxu1 %v29414_v56 }
 0x567   :  { %19700 = vmatmul.mubr.msk.f32.vlgmr.msra.gmra.mrb[16].mxu0 %vm9370_vm10, %v23199_v2  ;;  %19904 = vmatmul.mubr.msk.f32.vlgmr.msra.gmra.mrb[18].mxu1 %vm9370_vm10, %v26518_v32  ;;  %v22898_v2 = vunpack.i.l.bf16 %v26016_v21 }
 0x568   :  { %20997 = vmatpush1.bf16.msk.msra.mxu0 %vm25455_vm9, %v20995_v6  ;;  %21165 = vmatpush1.bf16.msk.msra.mxu1 %vm25455_vm9, %v26221_v44 }
 0x569   :  { %21000 = vmatprep.subr.msk.bf16.mxu0 %vm25455_vm9, %v26520_v34  ;;  %21168 = vmatprep.subr.msk.bf16.mxu1 %vm25455_vm9, %v21166_v16  ;;  %v10316_v53 = vsel %vm10310_vm2, %v22904_v4, %v22898_v2 }
 0x56a   :  { %9838 = vmatprep.mubr.f32.mxu0 %v29414_v56  ;;  %13123 = vmatprep.mubr.f32.mxu1 %v29414_v56 }
 0x56b   :  { %19701 = vmatmul.mubr.msk.f32.gmra.mrb[18].mxu0 %vm9370_vm10, %v23200_v30  ;;  %19905 = vmatmul.mubr.msk.f32.gmra.mrb[20].mxu1 %vm9370_vm10, %v26538_v63  ;;  %v29408_v30 = vunpack.i.l.bf16 %v26020_v55 }
 0x56c   :  { %9844 = vmatprep.mubr.f32.mxu0 %v29414_v56  ;;  %13129 = vmatprep.mubr.f32.mxu1 %v29414_v56 }
 0x56d   :  { %v10312_v45 = vsel %vm10310_vm2, %v22903_v36, %v29408_v30 }
 0x56e   :  { %v26584_v60 = vpack.c.bf16 %v10316_v53, %v10312_v45  ;;  %v23206_v53 = vld [vmem:[%s29310_s3 + $0x58] sm:$0xff] }
 0x56f   :  { %19702 = vmatmul.mubr.msk.f32.gmra.mrb[20].mxu0 %vm9370_vm10, %v23201_v3  ;;  %19906 = vmatmul.mubr.msk.f32.gmra.mrb[22].mxu1 %vm9370_vm10, %v26552_v8  ;;  %v29473_v3 = vunpack.i.l.bf16 %v25996_v23 }
 0x570   :  { %9850 = vmatprep.mubr.f32.mxu0 %v29414_v56  ;;  %13135 = vmatprep.mubr.f32.mxu1 %v29414_v56 }
 0x571   :  { %v9973_v1 = vsel %vm1488_vm5, %v29473_v3, %v22879_v13  ;;  %v23204_v13 = vld [vmem:[%s29310_s3 + $0x48] sm:$0xff]  ;;  %v22899_v3 = vunpack.i.h.bf16 %v26016_v21  ;;  %v19921_v21 = vld [vmem:[%s29310_s3 + $0x190] sm:$0xff] }
 0x572   :  { %v26582_v23 = vpack.c.bf16 %v9973_v1, %v9969_v18  ;;  %v22894_v1 = vunpack.i.h.bf16 %v26020_v55 }
 0x573   :  { %19703 = vmatmul.mubr.msk.f32.gmra.mrb[22].mxu0 %vm9370_vm10, %v23202_v62  ;;  %19907 = vmatmul.mubr.msk.f32.gmra.mrb[24].mxu1 %vm9370_vm10, %v19901_v17  ;;  %v23002_v62 = vpop.permute.xlu1 %23001  ;;  %v10318_v45 = vsel %vm10310_vm2, %v22899_v3, %v25516_v7 }
 0x574   :  { %10066 = vmatprep.mubr.f32.mxu0 %v29414_v56  ;;  %13206 = vmatprep.mubr.f32.mxu1 %v29414_v56  ;;  %v23004_v33 = vunpack.i.h.bf16 %v23002_v62  ;;  %v23003_v6 = vunpack.i.l.bf16 %v23002_v62  ;;  %v10314_v62 = vsel %vm10310_vm2, %v22894_v1, %v25518_v31 }
 0x576   :  { %v10311_v42 = vsel %vm10310_vm2, %v23003_v6, %v22903_v36  ;;  %v10315_v18 = vsel %vm10310_vm2, %v23004_v33, %v22904_v4  ;;  %v13346_v4 = vsel %vm1488_vm5, %v25461_v20, %v26291_v41  ;;  %v13345_v36 = vsel %vm1488_vm5, %v25463_v51, %v26294_v5  ;;  %v26671_v20 = vld [vmem:[%s29310_s3 + $0x180] sm:$0xff] }
 0x577   :  { %19715 = vmatmul.mubr.msk.f32.vlgmr.msra.gmra.mrb[8].mxu0 %vm9370_vm10, %v23203_v11  ;;  %19910 = vmatmul.mubr.msk.f32.vlgmr.msra.gmra.mrb[10].mxu1 %vm9370_vm10, %v26518_v32  ;;  %v21013_v33 = vpack.c.bf16 %v10315_v18, %v10311_v42  ;;  %v26643_v6 = vpack.c.bf16 %v10318_v45, %v10314_v62  ;;  %v26646_v30 = vpack.c.bf16 %v13346_v4, %v13345_v36  ;;  %v23209_v18 = vld [vmem:[%s29310_s3 + $0x70] sm:$0xff]  ;;  %v23210_v62 = vld [vmem:[%s29310_s3 + $0x78] sm:$0xff] }
 0x578   :  { %21003 = vmatpush1.bf16.msk.msra.mxu0 %vm25455_vm9, %v26582_v23  ;;  %21171 = vmatpush3.bf16.msk.msra.mxu1 %vm25455_vm9, %v21166_v16  ;;  %v23205_v16 = vld [vmem:[%s29310_s3 + $0x50] sm:$0xff]  ;;  %v21184_v51 = vpack.c.bf16 %v26291_v41, %v26294_v5  ;;  %v29475_v41 = vunpack.i.l.bf16 %v26020_v55  ;;  %v13658_v36 = vsel %vm10310_vm2, %v25516_v7, %v26328_v59  ;;  %v19940_v7 = vld [vmem:[%s29310_s3 + $0x1a0] sm:$0xff] }
 0x579   :  { %21012 = vmatprep.subr.msk.bf16.mxu0 %vm25455_vm9, %v26584_v60  ;;  %21174 = vmatprep.subr.msk.bf16.mxu1 %vm25455_vm9, %v26582_v23 }
 0x57a   :  { %10072 = vmatprep.mubr.f32.mxu0 %v29414_v56  ;;  %13212 = vmatprep.mubr.f32.mxu1 %v29414_v56  ;;  %v10313_v5 = vsel %vm10310_vm2, %v29475_v41, %v22894_v1  ;;  %v19943_v41 = vld [vmem:[%s29310_s3 + $0x1b8] sm:$0xff] }
 0x57b   :  { %19716 = vmatmul.mubr.msk.f32.gmra.mrb[10].mxu0 %vm9370_vm10, %v23204_v13  ;;  %19911 = vmatmul.mubr.msk.f32.gmra.mrb[12].mxu1 %vm9370_vm10, %v26538_v63 }
 0x57c   :  { %10078 = vmatprep.mubr.f32.mxu0 %v29414_v56  ;;  %13218 = vmatprep.mubr.f32.mxu1 %v29414_v56 }
 0x57f   :  { %19717 = vmatmul.mubr.msk.f32.gmra.mrb[12].mxu0 %vm9370_vm10, %v23205_v16  ;;  %19912 = vmatmul.mubr.msk.f32.gmra.mrb[14].mxu1 %vm9370_vm10, %v26552_v8 }
 0x580   :  { %10084 = vmatprep.mubr.f32.mxu0 %v29414_v56  ;;  %13224 = vmatprep.mubr.f32.mxu1 %v29414_v56 }
 0x583   :  { %19718 = vmatmul.mubr.msk.f32.gmra.mrb[14].mxu0 %vm9370_vm10, %v23206_v53  ;;  %19913 = vmatmul.mubr.msk.f32.gmra.mrb[16].mxu1 %vm9370_vm10, %v19901_v17 }
 0x584   :  { %10155 = vmatprep.mubr.f32.mxu0 %v29414_v56  ;;  %20762 = vmatprep.mubr.msk.f32.mxu1 %vm9370_vm10, %v26518_v32  ;;  %v22923_v32 = vunpack.i.l.bf16 %v26090_v50 }
 0x587   :  { %19721 = vmatmul.mubr.msk.f32.vlgmr.msra.gmra.mrb[16].mxu0 %vm9370_vm10, %v23203_v11  ;;  %20763 = vmatmul.mubr.msk.f32.vlgmr.msra.gmra.mrb[6].mxu1 %vm9370_vm10, %v26538_v63  ;;  %v19920_v63 = vld [vmem:[%s29310_s3 + $0x188] sm:$0xff]  ;;  %v29477_v11 = vunpack.i.l.bf16 %v26049_v54  ;;  %v19922_v54 = vld [vmem:[%s29310_s3 + $0x198] sm:$0xff] }
 0x588   :  { %21015 = vmatpush1.bf16.msk.msra.mxu0 %vm25455_vm9, %v21013_v33  ;;  %21177 = vmatpush1.bf16.msk.msra.mxu1 %vm25455_vm9, %v26453_v15  ;;  %v22924_v15 = vunpack.i.h.bf16 %v26090_v50  ;;  %v10317_v50 = vsel %vm10310_vm2, %v22898_v2, %v22899_v3  ;;  %v23012_v3 = vpop.permute.xlu1 %23011  ;;  %v13657_v33 = vsel %vm10310_vm2, %v25518_v31, %v26331_v37  ;;  %v23211_v31 = vld [vmem:[%s29310_s3 + $0x80] sm:$0xff] }
 0x589   :  { %21018 = vmatprep.subr.msk.bf16.mxu0 %vm25455_vm9, %v26643_v6  ;;  %21180 = vmatprep.subr.msk.bf16.mxu1 %vm25455_vm9, %v26646_v30  ;;  %v26709_v55 = vpack.c.bf16 %v10317_v50, %v10313_v5  ;;  %v23014_v1 = vunpack.i.h.bf16 %v23012_v3  ;;  %v23013_v42 = vunpack.i.l.bf16 %v23012_v3  ;;  %v23213_v50 = vld [vmem:[%s29310_s3 + $0x90] sm:$0xff]  ;;  %v29478_v5 = vunpack.i.l.bf16 %v26130_v24 }
 0x58a   :  { %10161 = vmatprep.mubr.f32.mxu0 %v29414_v56  ;;  %20765 = vmatprep.mubr.msk.f32.mxu1 %vm9370_vm10, %v26552_v8  ;;  %v29476_v8 = vunpack.i.l.bf16 %v26045_v10  ;;  %v23207_v10 = vld [vmem:[%s29310_s3 + $0x60] sm:$0xff] }
 0x58b   :  { %19722 = vmatmul.mubr.msk.f32.gmra.mrb[18].mxu0 %vm9370_vm10, %v23204_v13  ;;  %20766 = vmatmul.mubr.msk.f32.gmra.mrb[8].mxu1 %vm9370_vm10, %v19901_v17  ;;  %v10656_v13 = vsel %vm10654_vm1, %v22923_v32, %v29477_v11  ;;  %v10659_v45 = vsel %vm10654_vm1, %v23014_v1, %v22924_v15  ;;  %v29481_v1 = vld [vmem:[#allocation28_spill] sm:$0xff] }
 0x58c   :  { %10167 = vmatprep.mubr.f32.mxu0 %v29414_v56  ;;  %13429 = vmatprep.mubr.f32.mxu1 %v29414_v56  ;;  %v10660_v17 = vsel %vm10654_vm1, %v22924_v15, %v29476_v8  ;;  %v19942_v15 = vld [vmem:[%s29310_s3 + $0x1b0] sm:$0xff] }
 0x58d   :  { %v26711_v2 = vpack.c.bf16 %v10660_v17, %v10656_v13  ;;  %v29479_v17 = vunpack.i.h.bf16 %v26130_v24  ;;  %v23214_v13 = vld [vmem:[%s29310_s3 + $0x98] sm:$0xff]  ;;  %v13970_v24 = vsel %vm10654_vm1, %v25560_v9, %v26369_v22  ;;  %v23216_v9 = vld [vmem:[%s29310_s3 + $0xa8] sm:$0xff] }
 0x58f   :  { %19723 = vmatmul.mubr.msk.f32.gmra.mrb[20].mxu0 %vm9370_vm10, %v23205_v16  ;;  %19925 = vmatmul.mubr.msk.f32.vlgmr.msra.gmra.mrb[18].mxu1 %vm9370_vm10, %v26671_v20  ;;  %v23208_v16 = vld [vmem:[%s29310_s3 + $0x68] sm:$0xff] }
 0x590   :  { %10173 = vmatprep.mubr.f32.mxu0 %v29414_v56  ;;  %21183 = vmatpush1.bf16.msk.msra.mxu1 %vm25455_vm9, %v26520_v34 }
 0x591   :  { %13435 = vmatprep.mubr.f32.mxu1 %v29414_v56  ;;  %21186 = vmatprep.subr.msk.bf16.mxu1 %vm25455_vm9, %v21184_v51 }
 0x593   :  { %19724 = vmatmul.mubr.msk.f32.gmra.mrb[22].mxu0 %vm9370_vm10, %v23206_v53  ;;  %19926 = vmatmul.mubr.msk.f32.gmra.mrb[20].mxu1 %vm9370_vm10, %v19920_v63  ;;  %v10655_v53 = vsel %vm10654_vm1, %v23013_v42, %v22923_v32 }
 0x594   :  { %10410 = vmatprep.mubr.f32.mxu0 %v29414_v56  ;;  %13441 = vmatprep.mubr.f32.mxu1 %v29414_v56  ;;  %v21031_v4 = vpack.c.bf16 %v10659_v45, %v10655_v53  ;;  %v23217_v45 = vld [vmem:[%s29310_s3 + $0xb0] sm:$0xff] }
 0x597   :  { %19736 = vmatmul.mubr.msk.f32.vlgmr.msra.gmra.mrb[8].mxu0 %vm9370_vm10, %v23207_v10  ;;  %19927 = vmatmul.mubr.msk.f32.gmra.mrb[22].mxu1 %vm9370_vm10, %v19921_v21 }
 0x598   :  { %21021 = vmatpush1.bf16.msk.msra.mxu0 %vm25455_vm9, %v26709_v55  ;;  %10416 = vmatprep.mubr.f32.mxu0 %v29414_v56 }
 0x599   :  { %21030 = vmatprep.subr.msk.bf16.mxu0 %vm25455_vm9, %v26711_v2  ;;  %13447 = vmatprep.mubr.f32.mxu1 %v29414_v56 }
 0x59b   :  { %19737 = vmatmul.mubr.msk.f32.gmra.mrb[10].mxu0 %vm9370_vm10, %v23208_v16  ;;  %19928 = vmatmul.mubr.msk.f32.gmra.mrb[24].mxu1 %vm9370_vm10, %v19922_v54 }
 0x59c   :  { %10422 = vmatprep.mubr.f32.mxu0 %v29414_v56  ;;  %13518 = vmatprep.mubr.f32.mxu1 %v29414_v56 }
 0x59f   :  { %19738 = vmatmul.mubr.msk.f32.gmra.mrb[12].mxu0 %vm9370_vm10, %v23209_v18  ;;  %19931 = vmatmul.mubr.msk.f32.vlgmr.msra.gmra.mrb[10].mxu1 %vm9370_vm10, %v26671_v20 }
 0x5a0   :  { %10428 = vmatprep.mubr.f32.mxu0 %v29414_v56  ;;  %21189 = vmatpush3.bf16.msk.msra.mxu1 %vm25455_vm9, %v21184_v51  ;;  %v26779_v51 = vpack.c.bf16 %v13658_v36, %v13657_v33  ;;  %v29482_v36 = vld [vmem:[#allocation32_spill] sm:$0xff] }
 0x5a1   :  { %13524 = vmatprep.mubr.f32.mxu1 %v29414_v56  ;;  %21192 = vmatprep.subr.msk.bf16.mxu1 %vm25455_vm9, %v26709_v55  ;;  %v29483_v33 = vunpack.i.l.bf16 %v29482_v36 }
 0x5a3   :  { %19739 = vmatmul.mubr.msk.f32.gmra.mrb[14].mxu0 %vm9370_vm10, %v23210_v62  ;;  %19932 = vmatmul.mubr.msk.f32.gmra.mrb[12].mxu1 %vm9370_vm10, %v19920_v63 }
 0x5a4   :  { %10499 = vmatprep.mubr.f32.mxu0 %v29414_v56  ;;  %13530 = vmatprep.mubr.f32.mxu1 %v29414_v56 }
 0x5a7   :  { %19742 = vmatmul.mubr.msk.f32.vlgmr.msra.gmra.mrb[16].mxu0 %vm9370_vm10, %v23207_v10  ;;  %19933 = vmatmul.mubr.msk.f32.gmra.mrb[14].mxu1 %vm9370_vm10, %v19921_v21  ;;  %v29480_v10 = vld [vmem:[#allocation7_spill] sm:$0xff] }
 0x5a8   :  { %21033 = vmatpush1.bf16.msk.msra.mxu0 %vm25455_vm9, %v21031_v4  ;;  %10505 = vmatprep.mubr.f32.mxu0 %v29414_v56  ;;  %v19962_v4 = vld [vmem:[%s29310_s3 + $0x1c8] sm:$0xff] }
 0x5a9   :  { %21036 = vmatprep.subr.msk.bf16.mxu0 %vm25455_vm9, %v26086_v57  ;;  %13536 = vmatprep.mubr.f32.mxu1 %v29414_v56 }
 0x5ab   :  { %19743 = vmatmul.mubr.msk.f32.gmra.mrb[18].mxu0 %vm9370_vm10, %v23208_v16  ;;  %19934 = vmatmul.mubr.msk.f32.gmra.mrb[16].mxu1 %vm9370_vm10, %v19922_v54  ;;  %v23215_v16 = vld [vmem:[%s29310_s3 + $0xa0] sm:$0xff] }
 0x5ac   :  { %10511 = vmatprep.mubr.f32.mxu0 %v29414_v56  ;;  %20772 = vmatprep.mubr.msk.f32.mxu1 %vm9370_vm10, %v26671_v20  ;;  %v19941_v20 = vld [vmem:[%s29310_s3 + $0x1a8] sm:$0xff] }
 0x5af   :  { %19744 = vmatmul.mubr.msk.f32.gmra.mrb[20].mxu0 %vm9370_vm10, %v23209_v18  ;;  %20773 = vmatmul.mubr.msk.f32.vlgmr.msra.gmra.mrb[6].mxu1 %vm9370_vm10, %v19920_v63 }
 0x5b0   :  { %10517 = vmatprep.mubr.f32.mxu0 %v29414_v56  ;;  %21195 = vmatpush1.bf16.msk.msra.mxu1 %vm25455_vm9, %v26584_v60  ;;  %v21202_v60 = vpack.c.bf16 %v26328_v59, %v26331_v37  ;;  %v23212_v59 = vld [vmem:[%s29310_s3 + $0x88] sm:$0xff]  ;;  %v23022_v37 = vpop.permute.xlu1 %23021 }
 0x5b1   :  { %20775 = vmatprep.mubr.msk.f32.mxu1 %vm9370_vm10, %v19921_v21  ;;  %21198 = vmatprep.subr.msk.bf16.mxu1 %vm25455_vm9, %v26779_v51  ;;  %v23024_v32 = vunpack.i.h.bf16 %v23022_v37  ;;  %v23023_v63 = vunpack.i.l.bf16 %v23022_v37  ;;  %v19964_v37 = vld [vmem:[%s29310_s3 + $0x1d8] sm:$0xff] }
 0x5b3   :  { %19745 = vmatmul.mubr.msk.f32.gmra.mrb[22].mxu0 %vm9370_vm10, %v23210_v62  ;;  %20776 = vmatmul.mubr.msk.f32.gmra.mrb[8].mxu1 %vm9370_vm10, %v19922_v54  ;;  %v11004_v8 = vsel %vm3690_vm11, %v23023_v63, %v29478_v5  ;;  %v11009_v11 = vsel %vm3690_vm11, %v23024_v32, %v29479_v17  ;;  %v13969_v54 = vsel %vm10654_vm1, %v29480_v10, %v26372_v12 }
 0x5b4   :  { %10754 = vmatprep.mubr.f32.mxu0 %v29414_v56  ;;  %13741 = vmatprep.mubr.f32.mxu1 %v29414_v56  ;;  %v21049_v21 = vpack.c.bf16 %v11009_v11, %v11004_v8  ;;  %v26889_v3 = vpack.c.bf16 %v13970_v24, %v13969_v54  ;;  %v23032_v42 = vpop.permute.xlu1 %23031  ;;  %v21220_v62 = vpack.c.bf16 %v26369_v22, %v26372_v12  ;;  %v29484_v22 = vunpack.i.h.bf16 %v29482_v36  ;;  %v23220_v24 = vld [vmem:[%s29310_s3 + $0xc8] sm:$0xff] }
 0x5b5   :  { %v23034_v18 = vunpack.i.h.bf16 %v23032_v42  ;;  %v23033_v53 = vunpack.i.l.bf16 %v23032_v42 }
 0x5b7   :  { %19757 = vmatmul.mubr.msk.f32.vlgmr.msra.gmra.mrb[8].mxu0 %vm9370_vm10, %v23211_v31  ;;  %19946 = vmatmul.mubr.msk.f32.vlgmr.msra.gmra.mrb[18].mxu1 %vm9370_vm10, %v19940_v7  ;;  %v11353_v12 = vsel %vm4424_vm13, %v23033_v53, %v29483_v33  ;;  %v29495_v33 = vld [vmem:[#allocation8_spill] sm:$0xff] }
 0x5b8   :  { %21039 = vmatpush1.bf16.msk.msra.mxu0 %vm25455_vm9, %v26088_v27  ;;  %21201 = vmatpush1.bf16.msk.msra.mxu1 %vm25455_vm9, %v26643_v6  ;;  %v23042_v10 = vpop.permute.xlu1 %23041 }
 0x5b9   :  { %21048 = vmatprep.subr.msk.bf16.mxu0 %vm25455_vm9, %v26148_v61  ;;  %21204 = vmatprep.subr.msk.bf16.mxu1 %vm25455_vm9, %v21202_v60  ;;  %v23044_v54 = vunpack.i.h.bf16 %v23042_v10 }
 0x5ba   :  { %10760 = vmatprep.mubr.f32.mxu0 %v29414_v56  ;;  %13747 = vmatprep.mubr.f32.mxu1 %v29414_v56 }
 0x5bb   :  { %19758 = vmatmul.mubr.msk.f32.gmra.mrb[10].mxu0 %vm9370_vm10, %v23212_v59  ;;  %19947 = vmatmul.mubr.msk.f32.gmra.mrb[20].mxu1 %vm9370_vm10, %v19941_v20 }
 0x5bc   :  { %10766 = vmatprep.mubr.f32.mxu0 %v29414_v56  ;;  %13753 = vmatprep.mubr.f32.mxu1 %v29414_v56 }
 0x5bf   :  { %19759 = vmatmul.mubr.msk.f32.gmra.mrb[12].mxu0 %vm9370_vm10, %v23213_v50  ;;  %19948 = vmatmul.mubr.msk.f32.gmra.mrb[22].mxu1 %vm9370_vm10, %v19942_v15 }
 0x5c0   :  { %10772 = vmatprep.mubr.f32.mxu0 %v29414_v56  ;;  %13759 = vmatprep.mubr.f32.mxu1 %v29414_v56 }
 0x5c3   :  { %19760 = vmatmul.mubr.msk.f32.gmra.mrb[14].mxu0 %vm9370_vm10, %v23214_v13  ;;  %19949 = vmatmul.mubr.msk.f32.gmra.mrb[24].mxu1 %vm9370_vm10, %v19943_v41 }
 0x5c4   :  { %10843 = vmatprep.mubr.f32.mxu0 %v29414_v56  ;;  %13830 = vmatprep.mubr.f32.mxu1 %v29414_v56 }
 0x5c7   :  { %19763 = vmatmul.mubr.msk.f32.vlgmr.msra.gmra.mrb[16].mxu0 %vm9370_vm10, %v23211_v31  ;;  %19952 = vmatmul.mubr.msk.f32.vlgmr.msra.gmra.mrb[10].mxu1 %vm9370_vm10, %v19940_v7  ;;  %v23218_v31 = vld [vmem:[%s29310_s3 + $0xb8] sm:$0xff] }
 0x5c8   :  { %21051 = vmatpush1.bf16.msk.msra.mxu0 %vm25455_vm9, %v21049_v21  ;;  %21207 = vmatpush3.bf16.msk.msra.mxu1 %vm25455_vm9, %v21202_v60  ;;  %v19963_v60 = vld [vmem:[%s29310_s3 + $0x1d0] sm:$0xff] }
 0x5c9   :  { %21054 = vmatprep.subr.msk.bf16.mxu0 %vm25455_vm9, %v26126_v19  ;;  %21210 = vmatprep.subr.msk.bf16.mxu1 %vm25455_vm9, %v26088_v27  ;;  %v29490_v21 = vld [vmem:[#allocation31_spill] sm:$0xff] }
 0x5ca   :  { %10849 = vmatprep.mubr.f32.mxu0 %v29414_v56  ;;  %13836 = vmatprep.mubr.f32.mxu1 %v29414_v56 }
 0x5cb   :  { %19764 = vmatmul.mubr.msk.f32.gmra.mrb[18].mxu0 %vm9370_vm10, %v23212_v59  ;;  %19953 = vmatmul.mubr.msk.f32.gmra.mrb[12].mxu1 %vm9370_vm10, %v19941_v20  ;;  %v29485_v59 = vld [vmem:[#allocation30_spill] sm:$0xff] }
 0x5cc   :  { %10855 = vmatprep.mubr.f32.mxu0 %v29414_v56  ;;  %13842 = vmatprep.mubr.f32.mxu1 %v29414_v56 }
 0x5cf   :  { %19765 = vmatmul.mubr.msk.f32.gmra.mrb[20].mxu0 %vm9370_vm10, %v23213_v50  ;;  %19954 = vmatmul.mubr.msk.f32.gmra.mrb[14].mxu1 %vm9370_vm10, %v19942_v15  ;;  %v29487_v50 = vld [vmem:[#allocation13_spill] sm:$0xff] }
 0x5d0   :  { %10861 = vmatprep.mubr.f32.mxu0 %v29414_v56  ;;  %13848 = vmatprep.mubr.f32.mxu1 %v29414_v56  ;;  %v29489_v8 = vunpack.i.h.bf16 %v29487_v50 }
 0x5d3   :  { %19766 = vmatmul.mubr.msk.f32.gmra.mrb[22].mxu0 %vm9370_vm10, %v23214_v13  ;;  %19955 = vmatmul.mubr.msk.f32.gmra.mrb[16].mxu1 %vm9370_vm10, %v19943_v41  ;;  %v23219_v13 = vld [vmem:[%s29310_s3 + $0xc0] sm:$0xff] }
 0x5d4   :  { %11105 = vmatprep.mubr.f32.mxu0 %v29414_v56  ;;  %20782 = vmatprep.mubr.msk.f32.mxu1 %vm9370_vm10, %v19940_v7  ;;  %v11358_v7 = vsel %vm4424_vm13, %v23034_v18, %v29484_v22 }
 0x5d7   :  { %19778 = vmatmul.mubr.msk.f32.vlgmr.msra.gmra.mrb[8].mxu0 %vm9370_vm10, %v23215_v16  ;;  %20783 = vmatmul.mubr.msk.f32.vlgmr.msra.gmra.mrb[6].mxu1 %vm9370_vm10, %v19941_v20  ;;  %v21067_v20 = vpack.c.bf16 %v11358_v7, %v11353_v12  ;;  %v29496_v12 = vunpack.i.h.bf16 %v29495_v33  ;;  %v19982_v7 = vld [vmem:[%s29310_s3 + $0x1e0] sm:$0xff] }
 0x5d8   :  { %21057 = vmatpush1.bf16.msk.msra.mxu0 %vm25455_vm9, %v29481_v1  ;;  %21213 = vmatpush1.bf16.msk.msra.mxu1 %vm25455_vm9, %v26711_v2  ;;  %v19961_v2 = vld [vmem:[%s29310_s3 + $0x1c0] sm:$0xff] }
 0x5d9   :  { %21066 = vmatprep.subr.msk.bf16.mxu0 %vm25455_vm9, %v26192_v46  ;;  %21216 = vmatprep.subr.msk.bf16.mxu1 %vm25455_vm9, %v26889_v3 }
 0x5da   :  { %11111 = vmatprep.mubr.f32.mxu0 %v29414_v56  ;;  %20785 = vmatprep.mubr.msk.f32.mxu1 %vm9370_vm10, %v19942_v15  ;;  %v29486_v15 = vld [vmem:[#allocation34_spill] sm:$0xff] }
 0x5db   :  { %19779 = vmatmul.mubr.msk.f32.gmra.mrb[10].mxu0 %vm9370_vm10, %v23216_v9  ;;  %20786 = vmatmul.mubr.msk.f32.gmra.mrb[8].mxu1 %vm9370_vm10, %v19943_v41  ;;  %v22974_v32 = vunpack.i.h.bf16 %v29486_v15  ;;  %v22973_v63 = vunpack.i.l.bf16 %v29486_v15  ;;  %v29488_v41 = vunpack.i.l.bf16 %v29487_v50  ;;  %v23223_v15 = vld [vmem:[%s29310_s3 + $0xe0] sm:$0xff]  ;;  %v23226_v50 = vld [vmem:[%s29310_s3 + $0xf8] sm:$0xff] }
 0x5dc   :  { %11117 = vmatprep.mubr.f32.mxu0 %v29414_v56  ;;  %14053 = vmatprep.mubr.f32.mxu1 %v29414_v56 }
 0x5dd   :  { %v11703_v5 = vsel %vm5158_vm15, %v22973_v63, %v29488_v41  ;;  %v11708_v17 = vsel %vm5158_vm15, %v22974_v32, %v29489_v8  ;;  %v29497_v41 = vld [vmem:[#allocation29_spill] sm:$0xff] }
 0x5de   :  { %v26986_v11 = vpack.c.bf16 %v11708_v17, %v11703_v5  ;;  %v22969_v5 = vunpack.i.h.bf16 %v29497_v41  ;;  %v22968_v8 = vunpack.i.l.bf16 %v29497_v41  ;;  %v29498_v17 = vld [vmem:[#allocation12_spill] sm:$0xff]  ;;  %v29514_v41 = vld [vmem:[#allocation19_spill] sm:$0xff] }
 0x5df   :  { %19780 = vmatmul.mubr.msk.f32.gmra.mrb[12].mxu0 %vm9370_vm10, %v23217_v45  ;;  %19967 = vmatmul.mubr.msk.f32.vlgmr.msra.gmra.mrb[18].mxu1 %vm9370_vm10, %v19961_v2 }
 0x5e0   :  { %11123 = vmatprep.mubr.f32.mxu0 %v29414_v56  ;;  %21219 = vmatpush1.bf16.msk.msra.mxu1 %vm25455_vm9, %v26086_v57 }
 0x5e1   :  { %14059 = vmatprep.mubr.f32.mxu1 %v29414_v56  ;;  %21222 = vmatprep.subr.msk.bf16.mxu1 %vm25455_vm9, %v21220_v62 }
 0x5e3   :  { %19781 = vmatmul.mubr.msk.f32.gmra.mrb[14].mxu0 %vm9370_vm10, %v23218_v31  ;;  %19968 = vmatmul.mubr.msk.f32.gmra.mrb[20].mxu1 %vm9370_vm10, %v19962_v4 }
 0x5e4   :  { %11194 = vmatprep.mubr.f32.mxu0 %v29414_v56  ;;  %14065 = vmatprep.mubr.f32.mxu1 %v29414_v56 }
 0x5e7   :  { %19784 = vmatmul.mubr.msk.f32.vlgmr.msra.gmra.mrb[16].mxu0 %vm9370_vm10, %v23215_v16  ;;  %19969 = vmatmul.mubr.msk.f32.gmra.mrb[22].mxu1 %vm9370_vm10, %v19963_v60  ;;  %v23043_v16 = vunpack.i.l.bf16 %v23042_v10  ;;  %v29501_v10 = vld [vmem:[#allocation9_spill] sm:$0xff] }
 0x5e8   :  { %21069 = vmatpush1.bf16.msk.msra.mxu0 %vm25455_vm9, %v21067_v20  ;;  %11200 = vmatprep.mubr.f32.mxu0 %v29414_v56  ;;  %v19983_v20 = vld [vmem:[%s29310_s3 + $0x1e8] sm:$0xff] }
 0x5e9   :  { %21072 = vmatprep.subr.msk.bf16.mxu0 %vm25455_vm9, %v29485_v59  ;;  %14071 = vmatprep.mubr.f32.mxu1 %v29414_v56  ;;  %v11702_v53 = vsel %vm5158_vm15, %v23043_v16, %v22973_v63  ;;  %v23225_v63 = vld [vmem:[%s29310_s3 + $0xf0] sm:$0xff] }
 0x5eb   :  { %19785 = vmatmul.mubr.msk.f32.gmra.mrb[18].mxu0 %vm9370_vm10, %v23216_v9  ;;  %19970 = vmatmul.mubr.msk.f32.gmra.mrb[24].mxu1 %vm9370_vm10, %v19964_v37  ;;  %v29491_v9 = vld [vmem:[#allocation27_spill] sm:$0xff] }
 0x5ec   :  { %11206 = vmatprep.mubr.f32.mxu0 %v29414_v56  ;;  %14142 = vmatprep.mubr.f32.mxu1 %v29414_v56  ;;  %v22949_v42 = vunpack.i.h.bf16 %v29491_v9  ;;  %v22948_v18 = vunpack.i.l.bf16 %v29491_v9  ;;  %v20004_v9 = vld [vmem:[%s29310_s3 + $0x208] sm:$0xff] }
 0x5ee   :  { %v14283_v22 = vsel %vm3690_vm11, %v29496_v12, %v22948_v18  ;;  %v29503_v18 = vld [vmem:[#allocation16_spill] sm:$0xff] }
 0x5ef   :  { %19786 = vmatmul.mubr.msk.f32.gmra.mrb[20].mxu0 %vm9370_vm10, %v23217_v45  ;;  %19973 = vmatmul.mubr.msk.f32.vlgmr.msra.gmra.mrb[10].mxu1 %vm9370_vm10, %v19961_v2  ;;  %v11707_v45 = vsel %vm5158_vm15, %v23044_v54, %v22974_v32  ;;  %v23224_v32 = vld [vmem:[%s29310_s3 + $0xe8] sm:$0xff]  ;;  %v29502_v54 = vunpack.i.h.bf16 %v29501_v10  ;;  %v29517_v10 = vld [vmem:[#allocation20_spill] sm:$0xff] }
 0x5f0   :  { %11212 = vmatprep.mubr.f32.mxu0 %v29414_v56  ;;  %21225 = vmatpush3.bf16.msk.msra.mxu1 %vm25455_vm9, %v21220_v62  ;;  %v23222_v62 = vld [vmem:[%s29310_s3 + $0xd8] sm:$0xff] }
 0x5f1   :  { %14148 = vmatprep.mubr.f32.mxu1 %v29414_v56  ;;  %21228 = vmatprep.subr.msk.bf16.mxu1 %vm25455_vm9, %v29481_v1  ;;  %v23221_v1 = vld [vmem:[%s29310_s3 + $0xd0] sm:$0xff]  ;;  %v14592_v16 = vsel %vm4424_vm13, %v29502_v54, %v22968_v8  ;;  %v20046_v54 = vld [vmem:[%s29310_s3 + $0x248] sm:$0xff] }
 0x5f3   :  { %19787 = vmatmul.mubr.msk.f32.gmra.mrb[22].mxu0 %vm9370_vm10, %v23218_v31  ;;  %19974 = vmatmul.mubr.msk.f32.gmra.mrb[12].mxu1 %vm9370_vm10, %v19962_v4  ;;  %v21085_v31 = vpack.c.bf16 %v11707_v45, %v11702_v53 }
 0x5f4   :  { %11454 = vmatprep.mubr.f32.mxu0 %v29414_v56  ;;  %14154 = vmatprep.mubr.f32.mxu1 %v29414_v56 }
 0x5f7   :  { %19799 = vmatmul.mubr.msk.f32.vlgmr.msra.gmra.mrb[8].mxu0 %vm9370_vm10, %v23219_v13  ;;  %19975 = vmatmul.mubr.msk.f32.gmra.mrb[14].mxu1 %vm9370_vm10, %v19963_v60 }
 0x5f8   :  { %21075 = vmatpush1.bf16.msk.msra.mxu0 %vm25455_vm9, %v29490_v21  ;;  %11460 = vmatprep.mubr.f32.mxu0 %v29414_v56 }
 0x5f9   :  { %21084 = vmatprep.subr.msk.bf16.mxu0 %vm25455_vm9, %v26986_v11  ;;  %14160 = vmatprep.mubr.f32.mxu1 %v29414_v56 }
 0x5fb   :  { %19800 = vmatmul.mubr.msk.f32.gmra.mrb[10].mxu0 %vm9370_vm10, %v23220_v24  ;;  %19976 = vmatmul.mubr.msk.f32.gmra.mrb[16].mxu1 %vm9370_vm10, %v19964_v37 }
 0x5fc   :  { %11466 = vmatprep.mubr.f32.mxu0 %v29414_v56  ;;  %20792 = vmatprep.mubr.msk.f32.mxu1 %vm9370_vm10, %v19961_v2  ;;  %v29492_v2 = vld [vmem:[#allocation11_spill] sm:$0xff] }
 0x5ff   :  { %19801 = vmatmul.mubr.msk.f32.gmra.mrb[12].mxu0 %vm9370_vm10, %v23221_v1  ;;  %20793 = vmatmul.mubr.msk.f32.vlgmr.msra.gmra.mrb[6].mxu1 %vm9370_vm10, %v19962_v4 }
 0x600   :  { %11472 = vmatprep.mubr.f32.mxu0 %v29414_v56  ;;  %21231 = vmatpush1.bf16.msk.msra.mxu1 %vm25455_vm9, %v26148_v61  ;;  %v29493_v61 = vld [vmem:[#allocation10_spill] sm:$0xff] }
 0x601   :  { %20795 = vmatprep.mubr.msk.f32.mxu1 %vm9370_vm10, %v19963_v60  ;;  %21234 = vmatprep.subr.msk.bf16.mxu1 %vm25455_vm9, %v29492_v2  ;;  %v29494_v4 = vunpack.i.h.bf16 %v29493_v61  ;;  %v29504_v2 = vld [vmem:[#allocation33_spill] sm:$0xff]  ;;  %v29506_v61 = vld [vmem:[#allocation14_spill] sm:$0xff] }
 0x602   :  { %v22979_v53 = vunpack.i.h.bf16 %v29504_v2  ;;  %v22978_v45 = vunpack.i.l.bf16 %v29504_v2  ;;  %v29508_v33 = vunpack.i.l.bf16 %v29506_v61  ;;  %v20067_v2 = vld [vmem:[%s29310_s3 + $0x268] sm:$0xff] }
 0x603   :  { %19802 = vmatmul.mubr.msk.f32.gmra.mrb[14].mxu0 %vm9370_vm10, %v23222_v62  ;;  %20796 = vmatmul.mubr.msk.f32.gmra.mrb[8].mxu1 %vm9370_vm10, %v19964_v37  ;;  %v14284_v36 = vsel %vm3690_vm11, %v29494_v4, %v22949_v42  ;;  %v19985_v37 = vld [vmem:[%s29310_s3 + $0x1f8] sm:$0xff]  ;;  %v20005_v42 = vld [vmem:[%s29310_s3 + $0x210] sm:$0xff]  ;;  %v29507_v4 = vunpack.i.h.bf16 %v29506_v61 }
 0x604   :  { %11543 = vmatprep.mubr.f32.mxu0 %v29414_v56  ;;  %14364 = vmatprep.mubr.f32.mxu1 %v29414_v56  ;;  %v21238_v60 = vpack.c.bf16 %v14284_v36, %v14283_v22  ;;  %v14901_v12 = vsel %vm5158_vm15, %v29508_v33, %v22978_v45  ;;  %v20069_v45 = vld [vmem:[%s29310_s3 + $0x278] sm:$0xff] }
 0x605   :  { %v14902_v36 = vsel %vm5158_vm15, %v29507_v4, %v22979_v53  ;;  %v20068_v53 = vld [vmem:[%s29310_s3 + $0x270] sm:$0xff] }
 0x606   :  { %v21274_v22 = vpack.c.bf16 %v14902_v36, %v14901_v12  ;;  %v29523_v36 = vpack.c.bf16 %v26274_v39, %v26268_v52 }
 0x607   :  { %19805 = vmatmul.mubr.msk.f32.vlgmr.msra.gmra.mrb[16].mxu0 %vm9370_vm10, %v23219_v13  ;;  %19988 = vmatmul.mubr.msk.f32.vlgmr.msra.gmra.mrb[18].mxu1 %vm9370_vm10, %v19982_v7  ;;  %v29499_v13 = vld [vmem:[#allocation6_spill] sm:$0xff] }
 0x608   :  { %21087 = vmatpush1.bf16.msk.msra.mxu0 %vm25455_vm9, %v21085_v31  ;;  %21237 = vmatpush1.bf16.msk.msra.mxu1 %vm25455_vm9, %v26126_v19  ;;  %v19984_v19 = vld [vmem:[%s29310_s3 + $0x1f0] sm:$0xff]  ;;  %v20025_v31 = vld [vmem:[%s29310_s3 + $0x228] sm:$0xff] }
 0x609   :  { %14370 = vmatprep.mubr.f32.mxu1 %v29414_v56  ;;  %21240 = vmatprep.subr.msk.bf16.mxu1 %vm25455_vm9, %v21238_v60 }
 0x60a   :  { %11549 = vmatprep.mubr.f32.mxu0 %v29414_v56 }
 0x60b   :  { %19806 = vmatmul.mubr.msk.f32.gmra.mrb[18].mxu0 %vm9370_vm10, %v23220_v24  ;;  %19989 = vmatmul.mubr.msk.f32.gmra.mrb[20].mxu1 %vm9370_vm10, %v19983_v20 }
 0x60c   :  { %11555 = vmatprep.mubr.f32.mxu0 %v29414_v56  ;;  %14376 = vmatprep.mubr.f32.mxu1 %v29414_v56 }
 0x60f   :  { %19807 = vmatmul.mubr.msk.f32.gmra.mrb[20].mxu0 %vm9370_vm10, %v23221_v1  ;;  %19990 = vmatmul.mubr.msk.f32.gmra.mrb[22].mxu1 %vm9370_vm10, %v19984_v19 }
 0x610   :  { %11561 = vmatprep.mubr.f32.mxu0 %v29414_v56  ;;  %14382 = vmatprep.mubr.f32.mxu1 %v29414_v56 }
 0x613   :  { %19808 = vmatmul.mubr.msk.f32.gmra.mrb[22].mxu0 %vm9370_vm10, %v23222_v62  ;;  %19991 = vmatmul.mubr.msk.f32.gmra.mrb[24].mxu1 %vm9370_vm10, %v19985_v37  ;;  %v29505_v62 = vld [vmem:[#allocation17_spill] sm:$0xff] }
 0x614   :  { %11803 = vmatprep.mubr.f32.mxu0 %v29414_v56  ;;  %14453 = vmatprep.mubr.f32.mxu1 %v29414_v56 }
 0x617   :  { %19820 = vmatmul.mubr.msk.f32.vlgmr.msra.gmra.mrb[8].mxu0 %vm9370_vm10, %v23223_v15  ;;  %19994 = vmatmul.mubr.msk.f32.vlgmr.msra.gmra.mrb[10].mxu1 %vm9370_vm10, %v19982_v7 }
 0x618   :  { %11809 = vmatprep.mubr.f32.mxu0 %v29414_v56  ;;  %21243 = vmatpush3.bf16.msk.msra.mxu1 %vm25455_vm9, %v21238_v60  ;;  %v20026_v60 = vld [vmem:[%s29310_s3 + $0x230] sm:$0xff] }
 0x619   :  { %14459 = vmatprep.mubr.f32.mxu1 %v29414_v56  ;;  %21246 = vmatprep.subr.msk.bf16.mxu1 %vm25455_vm9, %v29490_v21  ;;  %v29500_v21 = vunpack.i.h.bf16 %v29499_v13 }
 0x61b   :  { %19821 = vmatmul.mubr.msk.f32.gmra.mrb[10].mxu0 %vm9370_vm10, %v23224_v32  ;;  %19995 = vmatmul.mubr.msk.f32.gmra.mrb[12].mxu1 %vm9370_vm10, %v19983_v20  ;;  %v14593_v24 = vsel %vm4424_vm13, %v29500_v21, %v22969_v5  ;;  %v29515_v5 = vunpack.i.h.bf16 %v29514_v41  ;;  %v20045_v21 = vld [vmem:[%s29310_s3 + $0x240] sm:$0xff] }
 0x61c   :  { %11815 = vmatprep.mubr.f32.mxu0 %v29414_v56  ;;  %14465 = vmatprep.mubr.f32.mxu1 %v29414_v56  ;;  %v21256_v1 = vpack.c.bf16 %v14593_v24, %v14592_v16  ;;  %v20047_v16 = vld [vmem:[%s29310_s3 + $0x250] sm:$0xff] }
 0x61f   :  { %19822 = vmatmul.mubr.msk.f32.gmra.mrb[12].mxu0 %vm9370_vm10, %v23225_v63  ;;  %19996 = vmatmul.mubr.msk.f32.gmra.mrb[14].mxu1 %vm9370_vm10, %v19984_v19  ;;  %v29512_v63 = vld [vmem:[#allocation18_spill] sm:$0xff] }
 0x620   :  { %11821 = vmatprep.mubr.f32.mxu0 %v29414_v56  ;;  %14471 = vmatprep.mubr.f32.mxu1 %v29414_v56 }
 0x623   :  { %19823 = vmatmul.mubr.msk.f32.gmra.mrb[14].mxu0 %vm9370_vm10, %v23226_v50  ;;  %19997 = vmatmul.mubr.msk.f32.gmra.mrb[16].mxu1 %vm9370_vm10, %v19985_v37  ;;  %v29513_v50 = vld [vmem:[#allocation22_spill] sm:$0xff] }
 0x624   :  { %20802 = vmatprep.mubr.msk.f32.mxu1 %vm9370_vm10, %v19982_v7  ;;  %v29509_v7 = vld [vmem:[#allocation15_spill] sm:$0xff] }
 0x627   :  { %20803 = vmatmul.mubr.msk.f32.vlgmr.msra.gmra.mrb[6].mxu1 %vm9370_vm10, %v19983_v20  ;;  %v20027_v20 = vld [vmem:[%s29310_s3 + $0x238] sm:$0xff] }
 0x628   :  { %21249 = vmatpush1.bf16.msk.msra.mxu1 %vm25455_vm9, %v26192_v46  ;;  %20805 = vmatprep.mubr.msk.f32.mxu1 %vm9370_vm10, %v19984_v19  ;;  %v20003_v46 = vld [vmem:[%s29310_s3 + $0x200] sm:$0xff] }
 0x629   :  { %21252 = vmatprep.subr.msk.bf16.mxu1 %vm25455_vm9, %v29498_v17  ;;  %v29510_v19 = vld [vmem:[#allocation21_spill] sm:$0xff]  ;;  %v29516_v17 = vunpack.i.l.bf16 %v29514_v41 }
 0x62a   :  { %v20129_v41 = vld [vmem:[%s29310_s3 + $0x2c0] sm:$0xff] }
 0x62b   :  { %20806 = vmatmul.mubr.msk.f32.gmra.mrb[8].mxu1 %vm9370_vm10, %v19985_v37  ;;  %v29511_v37 = vld [vmem:[#allocation35_spill] sm:$0xff] }
 0x62c   :  { %14673 = vmatprep.mubr.f32.mxu1 %v29414_v56  ;;  %v22984_v15 = vunpack.i.h.bf16 %v29511_v37  ;;  %v22983_v32 = vunpack.i.l.bf16 %v29511_v37 }
 0x62e   :  { %v15211_v8 = vsel %vm12051_vm6, %v29515_v5, %v22984_v15  ;;  %v15210_v13 = vsel %vm12051_vm6, %v29516_v17, %v22983_v32  ;;  %v20111_v32 = vld [vmem:[%s29310_s3 + $0x2b8] sm:$0xff]  ;;  %v29527_v5 = vunpack.i.l.bf16 %v26287_v43 }
 0x62f   :  { %20009 = vmatmul.mubr.msk.f32.vlgmr.msra.gmra.mrb[18].mxu1 %vm9370_vm10, %v20003_v46  ;;  %v21292_v24 = vpack.c.bf16 %v15211_v8, %v15210_v13  ;;  %v29530_v17 = vld [vmem:[#allocation36_spill] sm:$0xff] }
 0x630   :  { %21255 = vmatpush1.bf16.msk.msra.mxu1 %vm25455_vm9, %v29485_v59  ;;  %14679 = vmatprep.mubr.f32.mxu1 %v29414_v56  ;;  %v20006_v59 = vld [vmem:[%s29310_s3 + $0x218] sm:$0xff]  ;;  %v29531_v13 = vunpack.i.l.bf16 %v29530_v17 }
 0x631   :  { %21258 = vmatprep.subr.msk.bf16.mxu1 %vm25455_vm9, %v21256_v1 }
 0x633   :  { %20010 = vmatmul.mubr.msk.f32.gmra.mrb[20].mxu1 %vm9370_vm10, %v20004_v9 }
 0x634   :  { %14685 = vmatprep.mubr.f32.mxu1 %v29414_v56 }
 0x637   :  { %20011 = vmatmul.mubr.msk.f32.gmra.mrb[22].mxu1 %vm9370_vm10, %v20005_v42 }
 0x638   :  { %14691 = vmatprep.mubr.f32.mxu1 %v29414_v56 }
 0x63b   :  { %20012 = vmatmul.mubr.msk.f32.gmra.mrb[24].mxu1 %vm9370_vm10, %v20006_v59 }
 0x63c   :  { %14762 = vmatprep.mubr.f32.mxu1 %v29414_v56 }
 0x63f   :  { %20015 = vmatmul.mubr.msk.f32.vlgmr.msra.gmra.mrb[10].mxu1 %vm9370_vm10, %v20003_v46 }
 0x640   :  { %21261 = vmatpush3.bf16.msk.msra.mxu1 %vm25455_vm9, %v21256_v1  ;;  %14768 = vmatprep.mubr.f32.mxu1 %v29414_v56  ;;  %v29518_v1 = vld [vmem:[#allocation25_spill] sm:$0xff] }
 0x641   :  { %21264 = vmatprep.subr.msk.bf16.mxu1 %vm25455_vm9, %v29503_v18  ;;  %v29521_v18 = vld [vmem:[#allocation24_spill] sm:$0xff] }
 0x643   :  { %20016 = vmatmul.mubr.msk.f32.gmra.mrb[12].mxu1 %vm9370_vm10, %v20004_v9 }
 0x644   :  { %14774 = vmatprep.mubr.f32.mxu1 %v29414_v56 }
 0x647   :  { %20017 = vmatmul.mubr.msk.f32.gmra.mrb[14].mxu1 %vm9370_vm10, %v20005_v42 }
 0x648   :  { %14780 = vmatprep.mubr.f32.mxu1 %v29414_v56 }
 0x64b   :  { %20018 = vmatmul.mubr.msk.f32.gmra.mrb[16].mxu1 %vm9370_vm10, %v20006_v59 }
 0x64c   :  { %20812 = vmatprep.mubr.msk.f32.mxu1 %vm9370_vm10, %v20003_v46  ;;  %v20048_v46 = vld [vmem:[%s29310_s3 + $0x258] sm:$0xff] }
 0x64f   :  { %20813 = vmatmul.mubr.msk.f32.vlgmr.msra.gmra.mrb[6].mxu1 %vm9370_vm10, %v20004_v9  ;;  %v29519_v9 = vld [vmem:[#allocation23_spill] sm:$0xff] }
 0x650   :  { %21267 = vmatpush1.bf16.msk.msra.mxu1 %vm25455_vm9, %v26986_v11  ;;  %20815 = vmatprep.mubr.msk.f32.mxu1 %vm9370_vm10, %v20005_v42  ;;  %v20024_v11 = vld [vmem:[%s29310_s3 + $0x220] sm:$0xff]  ;;  %v29520_v42 = vld [vmem:[#allocation26_spill] sm:$0xff] }
 0x651   :  { %21270 = vmatprep.subr.msk.bf16.mxu1 %vm25455_vm9, %v29505_v62 }
 0x653   :  { %20816 = vmatmul.mubr.msk.f32.gmra.mrb[8].mxu1 %vm9370_vm10, %v20006_v59  ;;  %v20066_v59 = vld [vmem:[%s29310_s3 + $0x260] sm:$0xff] }
 0x654   :  { %14982 = vmatprep.mubr.f32.mxu1 %v29414_v56 }
 0x657   :  { %20030 = vmatmul.mubr.msk.f32.vlgmr.msra.gmra.mrb[18].mxu1 %vm9370_vm10, %v20024_v11 }
 0x658   :  { %21273 = vmatpush1.bf16.msk.msra.mxu1 %vm25455_vm9, %v29509_v7  ;;  %14988 = vmatprep.mubr.f32.mxu1 %v29414_v56  ;;  %v29524_v7 = vunpack.i.l.bf16 %v26246_v49 }
 0x659   :  { %21276 = vmatprep.subr.msk.bf16.mxu1 %vm25455_vm9, %v21274_v22 }
 0x65b   :  { %20031 = vmatmul.mubr.msk.f32.gmra.mrb[20].mxu1 %vm9370_vm10, %v20025_v31 }
 0x65c   :  { %14994 = vmatprep.mubr.f32.mxu1 %v29414_v56 }
 0x65f   :  { %20032 = vmatmul.mubr.msk.f32.gmra.mrb[22].mxu1 %vm9370_vm10, %v20026_v60 }
 0x660   :  { %15000 = vmatprep.mubr.f32.mxu1 %v29414_v56 }
 0x663   :  { %20033 = vmatmul.mubr.msk.f32.gmra.mrb[24].mxu1 %vm9370_vm10, %v20027_v20 }
 0x664   :  { %15071 = vmatprep.mubr.f32.mxu1 %v29414_v56 }
 0x667   :  { %20036 = vmatmul.mubr.msk.f32.vlgmr.msra.gmra.mrb[10].mxu1 %vm9370_vm10, %v20024_v11 }
 0x668   :  { %21279 = vmatpush3.bf16.msk.msra.mxu1 %vm25455_vm9, %v21274_v22  ;;  %15077 = vmatprep.mubr.f32.mxu1 %v29414_v56 }
 0x669   :  { %21282 = vmatprep.subr.msk.bf16.mxu1 %vm25455_vm9, %v29510_v19  ;;  %v20109_v19 = vld [vmem:[%s29310_s3 + $0x2a8] sm:$0xff] }
 0x66b   :  { %20037 = vmatmul.mubr.msk.f32.gmra.mrb[12].mxu1 %vm9370_vm10, %v20025_v31 }
 0x66c   :  { %15083 = vmatprep.mubr.f32.mxu1 %v29414_v56 }
 0x66f   :  { %20038 = vmatmul.mubr.msk.f32.gmra.mrb[14].mxu1 %vm9370_vm10, %v20026_v60 }
 0x670   :  { %15089 = vmatprep.mubr.f32.mxu1 %v29414_v56 }
 0x673   :  { %20039 = vmatmul.mubr.msk.f32.gmra.mrb[16].mxu1 %vm9370_vm10, %v20027_v20 }
 0x674   :  { %20822 = vmatprep.mubr.msk.f32.mxu1 %vm9370_vm10, %v20024_v11 }
 0x677   :  { %20823 = vmatmul.mubr.msk.f32.vlgmr.msra.gmra.mrb[6].mxu1 %vm9370_vm10, %v20025_v31  ;;  %v29525_v31 = vunpack.i.h.bf16 %v26246_v49 }
 0x678   :  { %21285 = vmatpush1.bf16.msk.msra.mxu1 %vm25455_vm9, %v29512_v63  ;;  %20825 = vmatprep.mubr.msk.f32.mxu1 %vm9370_vm10, %v20026_v60 }
 0x679   :  { %21288 = vmatprep.subr.msk.bf16.mxu1 %vm25455_vm9, %v29513_v50  ;;  %v21346_v60 = vpack.c.bf16 %v29525_v31, %v29524_v7  ;;  %v27635_v7 = vpop.permute.xlu1 %17380 }
 0x67b   :  { %20826 = vmatmul.mubr.msk.f32.gmra.mrb[8].mxu1 %vm9370_vm10, %v20027_v20 }
 0x67c   :  { %15291 = vmatprep.mubr.f32.mxu1 %v29414_v56 }
 0x67f   :  { %20051 = vmatmul.mubr.msk.f32.vlgmr.msra.gmra.mrb[18].mxu1 %vm9370_vm10, %v20045_v21 }
 0x680   :  { %21291 = vmatpush1.bf16.msk.msra.mxu1 %vm25455_vm9, %v29517_v10  ;;  %15297 = vmatprep.mubr.f32.mxu1 %v29414_v56 }
 0x681   :  { %21294 = vmatprep.subr.msk.bf16.mxu1 %vm25455_vm9, %v21292_v24 }
 0x683   :  { %20052 = vmatmul.mubr.msk.f32.gmra.mrb[20].mxu1 %vm9370_vm10, %v20046_v54 }
 0x684   :  { %15303 = vmatprep.mubr.f32.mxu1 %v29414_v56 }
 0x687   :  { %20053 = vmatmul.mubr.msk.f32.gmra.mrb[22].mxu1 %vm9370_vm10, %v20047_v16 }
 0x688   :  { %15309 = vmatprep.mubr.f32.mxu1 %v29414_v56 }
 0x68b   :  { %20054 = vmatmul.mubr.msk.f32.gmra.mrb[24].mxu1 %vm9370_vm10, %v20048_v46 }
 0x68c   :  { %15380 = vmatprep.mubr.f32.mxu1 %v29414_v56 }
 0x68f   :  { %20057 = vmatmul.mubr.msk.f32.vlgmr.msra.gmra.mrb[10].mxu1 %vm9370_vm10, %v20045_v21 }
 0x690   :  { %21297 = vmatpush3.bf16.msk.msra.mxu1 %vm25455_vm9, %v21292_v24  ;;  %15386 = vmatprep.mubr.f32.mxu1 %v29414_v56  ;;  %v29534_v24 = vld [vmem:[#allocation38_spill] sm:$0xff] }
 0x691   :  { %21300 = vmatprep.subr.msk.bf16.mxu1 %vm25455_vm9, %v29518_v1 }
 0x693   :  { %20058 = vmatmul.mubr.msk.f32.gmra.mrb[12].mxu1 %vm9370_vm10, %v20046_v54 }
 0x694   :  { %15392 = vmatprep.mubr.f32.mxu1 %v29414_v56 }
 0x697   :  { %20059 = vmatmul.mubr.msk.f32.gmra.mrb[14].mxu1 %vm9370_vm10, %v20047_v16 }
 0x698   :  { %15398 = vmatprep.mubr.f32.mxu1 %v29414_v56 }
 0x69b   :  { %20060 = vmatmul.mubr.msk.f32.gmra.mrb[16].mxu1 %vm9370_vm10, %v20048_v46 }
 0x69c   :  { %20832 = vmatprep.mubr.msk.f32.mxu1 %vm9370_vm10, %v20045_v21 }
 0x69f   :  { %20833 = vmatmul.mubr.msk.f32.vlgmr.msra.gmra.mrb[6].mxu1 %vm9370_vm10, %v20046_v54  ;;  %v20171_v54 = vld [vmem:[%s29310_s3 + $0x300] sm:$0xff] }
 0x6a0   :  { %21303 = vmatpush1.bf16.msk.msra.mxu1 %vm25455_vm9, %v29519_v9  ;;  %20835 = vmatprep.mubr.msk.f32.mxu1 %vm9370_vm10, %v20047_v16  ;;  %v29536_v16 = vld [vmem:[#allocation37_spill] sm:$0xff] }
 0x6a1   :  { %21306 = vmatprep.subr.msk.bf16.mxu1 %vm25455_vm9, %v29520_v42  ;;  %v20172_v9 = vld [vmem:[%s29310_s3 + $0x308] sm:$0xff]  ;;  %v20173_v42 = vld [vmem:[%s29310_s3 + $0x310] sm:$0xff] }
 0x6a3   :  { %20836 = vmatmul.mubr.msk.f32.gmra.mrb[8].mxu1 %vm9370_vm10, %v20048_v46  ;;  %v29537_v46 = vunpack.i.l.bf16 %v29536_v16 }
 0x6a4   :  { %15600 = vmatprep.mubr.f32.mxu1 %v29414_v56 }
 0x6a7   :  { %20072 = vmatmul.mubr.msk.f32.vlgmr.msra.gmra.mrb[18].mxu1 %vm9370_vm10, %v20066_v59 }
 0x6a8   :  { %21309 = vmatpush1.bf16.msk.msra.mxu1 %vm25455_vm9, %v29521_v18  ;;  %15606 = vmatprep.mubr.f32.mxu1 %v29414_v56 }
 0x6a9   :  { %21312 = vmatprep.subr.msk.bf16.mxu1 %vm25455_vm9, %v26251_v38 }
 0x6ab   :  { %20073 = vmatmul.mubr.msk.f32.gmra.mrb[20].mxu1 %vm9370_vm10, %v20067_v2 }
 0x6ac   :  { %15612 = vmatprep.mubr.f32.mxu1 %v29414_v56 }
 0x6af   :  { %20074 = vmatmul.mubr.msk.f32.gmra.mrb[22].mxu1 %vm9370_vm10, %v20068_v53 }
 0x6b0   :  { %15618 = vmatprep.mubr.f32.mxu1 %v29414_v56 }
 0x6b3   :  { %20075 = vmatmul.mubr.msk.f32.gmra.mrb[24].mxu1 %vm9370_vm10, %v20069_v45 }
 0x6b4   :  { %15689 = vmatprep.mubr.f32.mxu1 %v29414_v56 }
 0x6b7   :  { %20078 = vmatmul.mubr.msk.f32.vlgmr.msra.gmra.mrb[10].mxu1 %vm9370_vm10, %v20066_v59 }
 0x6b8   :  { %21315 = vmatpush3.bf16.msk.msra.mxu1 %vm25455_vm9, %v26251_v38  ;;  %15695 = vmatprep.mubr.f32.mxu1 %v29414_v56  ;;  %v20089_v38 = vld [vmem:[%s29310_s3 + $0x290] sm:$0xff] }
 0x6b9   :  { %21318 = vmatprep.subr.msk.bf16.mxu1 %vm25455_vm9, %v25428_v25  ;;  %v20087_v25 = vld [vmem:[%s29310_s3 + $0x280] sm:$0xff] }
 0x6bb   :  { %20079 = vmatmul.mubr.msk.f32.gmra.mrb[12].mxu1 %vm9370_vm10, %v20067_v2 }
 0x6bc   :  { %15701 = vmatprep.mubr.f32.mxu1 %v29414_v56 }
 0x6bf   :  { %20080 = vmatmul.mubr.msk.f32.gmra.mrb[14].mxu1 %vm9370_vm10, %v20068_v53 }
 0x6c0   :  { %15707 = vmatprep.mubr.f32.mxu1 %v29414_v56 }
 0x6c3   :  { %20081 = vmatmul.mubr.msk.f32.gmra.mrb[16].mxu1 %vm9370_vm10, %v20069_v45 }
 0x6c4   :  { %20842 = vmatprep.mubr.msk.f32.mxu1 %vm9370_vm10, %v20066_v59 }
 0x6c7   :  { %20843 = vmatmul.mubr.msk.f32.vlgmr.msra.gmra.mrb[6].mxu1 %vm9370_vm10, %v20067_v2 }
 0x6c8   :  { %21321 = vmatpush1.bf16.msk.msra.mxu1 %vm25455_vm9, %v26175_v26  ;;  %20845 = vmatprep.mubr.msk.f32.mxu1 %vm9370_vm10, %v20068_v53  ;;  %v29522_v26 = vld [vmem:[#allocation5_spill] sm:$0xff]  ;;  %v27623_v53 = vpop.permute.xlu0 %17375 }
 0x6c9   :  { %21324 = vmatprep.subr.msk.bf16.mxu1 %vm25455_vm9, %v25430_v28  ;;  %v20088_v28 = vld [vmem:[%s29310_s3 + $0x288] sm:$0xff] }
 0x6cb   :  { %20846 = vmatmul.mubr.msk.f32.gmra.mrb[8].mxu1 %vm9370_vm10, %v20069_v45 }
 0x6cc   :  { %15902 = vmatprep.mubr.f32.mxu1 %v29414_v56 }
 0x6cf   :  { %20093 = vmatmul.mubr.msk.f32.vlgmr.msra.gmra.mrb[18].mxu1 %vm9370_vm10, %v20087_v25 }
 0x6d0   :  { %21327 = vmatpush1.bf16.msk.msra.mxu1 %vm25455_vm9, %v25408_v47  ;;  %15908 = vmatprep.mubr.f32.mxu1 %v29414_v56  ;;  %v20090_v47 = vld [vmem:[%s29310_s3 + $0x298] sm:$0xff] }
 0x6d1   :  { %21330 = vmatprep.subr.msk.bf16.mxu1 %vm25455_vm9, %v29522_v26 }
 0x6d3   :  { %20094 = vmatmul.mubr.msk.f32.gmra.mrb[20].mxu1 %vm9370_vm10, %v20088_v28 }
 0x6d4   :  { %15914 = vmatprep.mubr.f32.mxu1 %v29414_v56 }
 0x6d7   :  { %20095 = vmatmul.mubr.msk.f32.gmra.mrb[22].mxu1 %vm9370_vm10, %v20089_v38 }
 0x6d8   :  { %15920 = vmatprep.mubr.f32.mxu1 %v29414_v56 }
 0x6da   :  { %v27372_v62 = vpop.f32.mrb[16].mxu0 }
 0x6db   :  { %20096 = vmatmul.mubr.msk.f32.gmra.mrb[24].mxu1 %vm9370_vm10, %v20090_v47  ;;  %v27375_v61 = vpop.f32.mrb[17].mxu0 }
 0x6dc   :  { %15991 = vmatprep.mubr.f32.mxu1 %v29414_v56 }
 0x6de   :  { %v27377_v4 = vpop.f32.mrb[18].mxu0 }
 0x6df   :  { %20099 = vmatmul.mubr.msk.f32.vlgmr.msra.gmra.mrb[10].mxu1 %vm9370_vm10, %v20087_v25 }
 0x6e0   :  { %21333 = vmatpush3.bf16.msk.msra.mxu1 %vm25455_vm9, %v29522_v26  ;;  %15997 = vmatprep.mubr.f32.mxu1 %v29414_v56 }
 0x6e1   :  { %21336 = vmatprep.subr.msk.bf16.mxu1 %vm25455_vm9, %v26221_v44  ;;  %v27384_v44 = vpop.f32.mrb[19].mxu0 }
 0x6e2   :  { %v27391_v33 = vpop.f32.mrb[20].mxu0 }
 0x6e3   :  { %20100 = vmatmul.mubr.msk.f32.gmra.mrb[12].mxu1 %vm9370_vm10, %v20088_v28  ;;  %v27393_v12 = vpop.f32.mrb[21].mxu0 }
 0x6e4   :  { %16003 = vmatprep.mubr.f32.mxu1 %v29414_v56 }
 0x6e6   :  { %v27396_v11 = vpop.f32.mrb[22].mxu0 }
 0x6e7   :  { %20101 = vmatmul.mubr.msk.f32.gmra.mrb[14].mxu1 %vm9370_vm10, %v20089_v38  ;;  %v27402_v22 = vpop.f32.mrb[23].mxu0 }
 0x6e8   :  { %16009 = vmatprep.mubr.f32.mxu1 %v29414_v56 }
 0x6ea   :  { %v27404_v52 = vpop.f32.mrb[8].mxu0 }
 0x6eb   :  { %20102 = vmatmul.mubr.msk.f32.gmra.mrb[16].mxu1 %vm9370_vm10, %v20090_v47  ;;  %v27406_v39 = vpop.f32.mrb[9].mxu0 }
 0x6ec   :  { %20852 = vmatprep.mubr.msk.f32.mxu1 %vm9370_vm10, %v20087_v25 }
 0x6ee   :  { %v27413_v20 = vpop.f32.mrb[10].mxu0 }
 0x6ef   :  { %20853 = vmatmul.mubr.msk.f32.vlgmr.msra.gmra.mrb[6].mxu1 %vm9370_vm10, %v20088_v28  ;;  %v27422_v37 = vpop.f32.mrb[11].mxu0 }
 0x6f0   :  { %21339 = vmatpush1.bf16.msk.msra.mxu1 %vm25455_vm9, %v26235_v14  ;;  %20855 = vmatprep.mubr.msk.f32.mxu1 %vm9370_vm10, %v20089_v38  ;;  %v20108_v14 = vld [vmem:[%s29310_s3 + $0x2a0] sm:$0xff] }
 0x6f1   :  { %21342 = vmatprep.subr.msk.bf16.mxu1 %vm25455_vm9, %v29523_v36 }
 0x6f2   :  { %v27427_v49 = vpop.f32.mrb[12].mxu0 }
 0x6f3   :  { %20856 = vmatmul.mubr.msk.f32.gmra.mrb[8].mxu1 %vm9370_vm10, %v20090_v47  ;;  %v27433_v15 = vpop.f32.mrb[13].mxu0 }
 0x6f4   :  { %16214 = vmatprep.mubr.f32.mxu1 %v29414_v56 }
 0x6f6   :  { %v27440_v63 = vpop.f32.mrb[14].mxu0 }
 0x6f7   :  { %20114 = vmatmul.mubr.msk.f32.vlgmr.msra.gmra.mrb[18].mxu1 %vm9370_vm10, %v20108_v14  ;;  %v27442_v50 = vpop.f32.mrb[15].mxu0 }
 0x6f8   :  { %21345 = vmatpush1.bf16.msk.msra.mxu1 %vm25455_vm9, %v26488_v35  ;;  %16220 = vmatprep.mubr.f32.mxu1 %v29414_v56  ;;  %v20110_v35 = vld [vmem:[%s29310_s3 + $0x2b0] sm:$0xff] }
 0x6f9   :  { %21348 = vmatprep.subr.msk.bf16.mxu1 %vm25455_vm9, %v21346_v60 }
 0x6fb   :  { %20115 = vmatmul.mubr.msk.f32.gmra.mrb[20].mxu1 %vm9370_vm10, %v20109_v19 }
 0x6fc   :  { %16226 = vmatprep.mubr.f32.mxu1 %v29414_v56 }
 0x6ff   :  { %20116 = vmatmul.mubr.msk.f32.gmra.mrb[22].mxu1 %vm9370_vm10, %v20110_v35 }
 0x700   :  { %16232 = vmatprep.mubr.f32.mxu1 %v29414_v56 }
 0x703   :  { %20117 = vmatmul.mubr.msk.f32.gmra.mrb[24].mxu1 %vm9370_vm10, %v20111_v32 }
 0x704   :  { %16303 = vmatprep.mubr.f32.mxu1 %v29414_v56 }
 0x707   :  { %20120 = vmatmul.mubr.msk.f32.vlgmr.msra.gmra.mrb[10].mxu1 %vm9370_vm10, %v20108_v14 }
 0x708   :  { %21351 = vmatpush3.bf16.msk.msra.mxu1 %vm25455_vm9, %v21346_v60  ;;  %16309 = vmatprep.mubr.f32.mxu1 %v29414_v56 }
 0x709   :  { %21354 = vmatprep.subr.msk.bf16.mxu1 %vm25455_vm9, %v26520_v34  ;;  %v29526_v34 = vpack.c.bf16 %v26315_v29, %v26309_v40  ;;  %v20130_v40 = vld [vmem:[%s29310_s3 + $0x2c8] sm:$0xff]  ;;  %v20132_v29 = vld [vmem:[%s29310_s3 + $0x2d8] sm:$0xff] }
 0x70b   :  { %20121 = vmatmul.mubr.msk.f32.gmra.mrb[12].mxu1 %vm9370_vm10, %v20109_v19 }
 0x70c   :  { %16315 = vmatprep.mubr.f32.mxu1 %v29414_v56 }
 0x70f   :  { %20122 = vmatmul.mubr.msk.f32.gmra.mrb[14].mxu1 %vm9370_vm10, %v20110_v35 }
 0x710   :  { %16321 = vmatprep.mubr.f32.mxu1 %v29414_v56 }
 0x713   :  { %20123 = vmatmul.mubr.msk.f32.gmra.mrb[16].mxu1 %vm9370_vm10, %v20111_v32 }
 0x714   :  { %20862 = vmatprep.mubr.msk.f32.mxu1 %vm9370_vm10, %v20108_v14 }
 0x717   :  { %20863 = vmatmul.mubr.msk.f32.vlgmr.msra.gmra.mrb[6].mxu1 %vm9370_vm10, %v20109_v19 }
 0x718   :  { %21357 = vmatpush1.bf16.msk.msra.mxu1 %vm25455_vm9, %v26582_v23  ;;  %20865 = vmatprep.mubr.msk.f32.mxu1 %vm9370_vm10, %v20110_v35  ;;  %v29528_v23 = vunpack.i.h.bf16 %v26287_v43  ;;  %v20131_v43 = vld [vmem:[%s29310_s3 + $0x2d0] sm:$0xff] }
 0x719   :  { %21360 = vmatprep.subr.msk.bf16.mxu1 %vm25455_vm9, %v29526_v34 }
 0x71a   :  { %v21364_v8 = vpack.c.bf16 %v29528_v23, %v29527_v5  ;;  %v27647_v5 = vpop.permute.xlu0 %17385 }
 0x71b   :  { %20866 = vmatmul.mubr.msk.f32.gmra.mrb[8].mxu1 %vm9370_vm10, %v20111_v32 }
 0x71c   :  { %16526 = vmatprep.mubr.f32.mxu1 %v29414_v56 }
 0x71f   :  { %20135 = vmatmul.mubr.msk.f32.vlgmr.msra.gmra.mrb[18].mxu1 %vm9370_vm10, %v20129_v41 }
 0x720   :  { %21363 = vmatpush1.bf16.msk.msra.mxu1 %vm25455_vm9, %v26646_v30  ;;  %16532 = vmatprep.mubr.f32.mxu1 %v29414_v56  ;;  %v29529_v30 = vpack.c.bf16 %v26350_v58, %v26344_v0  ;;  %v20151_v0 = vld [vmem:[%s29310_s3 + $0x2e8] sm:$0xff]  ;;  %v20152_v58 = vld [vmem:[%s29310_s3 + $0x2f0] sm:$0xff] }
 0x721   :  { %21366 = vmatprep.subr.msk.bf16.mxu1 %vm25455_vm9, %v21364_v8 }
 0x723   :  { %20136 = vmatmul.mubr.msk.f32.gmra.mrb[20].mxu1 %vm9370_vm10, %v20130_v40 }
 0x724   :  { %16538 = vmatprep.mubr.f32.mxu1 %v29414_v56 }
 0x727   :  { %20137 = vmatmul.mubr.msk.f32.gmra.mrb[22].mxu1 %vm9370_vm10, %v20131_v43 }
 0x728   :  { %16544 = vmatprep.mubr.f32.mxu1 %v29414_v56 }
 0x72b   :  { %20138 = vmatmul.mubr.msk.f32.gmra.mrb[24].mxu1 %vm9370_vm10, %v20132_v29 }
 0x72c   :  { %16615 = vmatprep.mubr.f32.mxu1 %v29414_v56 }
 0x72f   :  { %20141 = vmatmul.mubr.msk.f32.vlgmr.msra.gmra.mrb[10].mxu1 %vm9370_vm10, %v20129_v41 }
 0x730   :  { %21369 = vmatpush3.bf16.msk.msra.mxu1 %vm25455_vm9, %v21364_v8  ;;  %16621 = vmatprep.mubr.f32.mxu1 %v29414_v56 }
 0x731   :  { %21372 = vmatprep.subr.msk.bf16.mxu1 %vm25455_vm9, %v26643_v6  ;;  %v20150_v6 = vld [vmem:[%s29310_s3 + $0x2e0] sm:$0xff] }
 0x733   :  { %20142 = vmatmul.mubr.msk.f32.gmra.mrb[12].mxu1 %vm9370_vm10, %v20130_v40 }
 0x734   :  { %16627 = vmatprep.mubr.f32.mxu1 %v29414_v56 }
 0x737   :  { %20143 = vmatmul.mubr.msk.f32.gmra.mrb[14].mxu1 %vm9370_vm10, %v20131_v43 }
 0x738   :  { %16633 = vmatprep.mubr.f32.mxu1 %v29414_v56 }
 0x73b   :  { %20144 = vmatmul.mubr.msk.f32.gmra.mrb[16].mxu1 %vm9370_vm10, %v20132_v29 }
 0x73c   :  { %20872 = vmatprep.mubr.msk.f32.mxu1 %vm9370_vm10, %v20129_v41 }
 0x73f   :  { %20873 = vmatmul.mubr.msk.f32.vlgmr.msra.gmra.mrb[6].mxu1 %vm9370_vm10, %v20130_v40 }
 0x740   :  { %21375 = vmatpush1.bf16.msk.msra.mxu1 %vm25455_vm9, %v26709_v55  ;;  %20875 = vmatprep.mubr.msk.f32.mxu1 %vm9370_vm10, %v20131_v43  ;;  %v29532_v55 = vunpack.i.h.bf16 %v29530_v17 }
 0x741   :  { %21378 = vmatprep.subr.msk.bf16.mxu1 %vm25455_vm9, %v29529_v30 }
 0x742   :  { %v21382_v21 = vpack.c.bf16 %v29532_v55, %v29531_v13 }
 0x743   :  { %20876 = vmatmul.mubr.msk.f32.gmra.mrb[8].mxu1 %vm9370_vm10, %v20132_v29 }
 0x744   :  { %16838 = vmatprep.mubr.f32.mxu1 %v29414_v56 }
 0x747   :  { %20156 = vmatmul.mubr.msk.f32.vlgmr.msra.gmra.mrb[18].mxu1 %vm9370_vm10, %v20150_v6 }
 0x748   :  { %21381 = vmatpush1.bf16.msk.msra.mxu1 %vm25455_vm9, %v26779_v51  ;;  %16844 = vmatprep.mubr.f32.mxu1 %v29414_v56  ;;  %v20153_v51 = vld [vmem:[%s29310_s3 + $0x2f8] sm:$0xff] }
 0x749   :  { %21384 = vmatprep.subr.msk.bf16.mxu1 %vm25455_vm9, %v21382_v21 }
 0x74b   :  { %20157 = vmatmul.mubr.msk.f32.gmra.mrb[20].mxu1 %vm9370_vm10, %v20151_v0 }
 0x74c   :  { %16850 = vmatprep.mubr.f32.mxu1 %v29414_v56 }
 0x74f   :  { %20158 = vmatmul.mubr.msk.f32.gmra.mrb[22].mxu1 %vm9370_vm10, %v20152_v58 }
 0x750   :  { %16856 = vmatprep.mubr.f32.mxu1 %v29414_v56 }
 0x753   :  { %20159 = vmatmul.mubr.msk.f32.gmra.mrb[24].mxu1 %vm9370_vm10, %v20153_v51 }
 0x754   :  { %16927 = vmatprep.mubr.f32.mxu1 %v29414_v56 }
 0x757   :  { %20162 = vmatmul.mubr.msk.f32.vlgmr.msra.gmra.mrb[10].mxu1 %vm9370_vm10, %v20150_v6 }
 0x758   :  { %21387 = vmatpush3.bf16.msk.msra.mxu1 %vm25455_vm9, %v21382_v21  ;;  %16933 = vmatprep.mubr.f32.mxu1 %v29414_v56 }
 0x759   :  { %21390 = vmatprep.subr.msk.bf16.mxu1 %vm25455_vm9, %v26086_v57  ;;  %v29533_v57 = vld [vmem:[#allocation39_spill] sm:$0xff] }
 0x75a   :  { %v29535_v10 = vpack.c.bf16 %v29533_v57, %v29534_v24 }
 0x75b   :  { %20163 = vmatmul.mubr.msk.f32.gmra.mrb[12].mxu1 %vm9370_vm10, %v20151_v0 }
 0x75c   :  { %16939 = vmatprep.mubr.f32.mxu1 %v29414_v56 }
 0x75f   :  { %20164 = vmatmul.mubr.msk.f32.gmra.mrb[14].mxu1 %vm9370_vm10, %v20152_v58 }
 0x760   :  { %16945 = vmatprep.mubr.f32.mxu1 %v29414_v56 }
 0x763   :  { %20165 = vmatmul.mubr.msk.f32.gmra.mrb[16].mxu1 %vm9370_vm10, %v20153_v51 }
 0x764   :  { %20882 = vmatprep.mubr.msk.f32.mxu1 %vm9370_vm10, %v20150_v6 }
 0x767   :  { %20883 = vmatmul.mubr.msk.f32.vlgmr.msra.gmra.mrb[6].mxu1 %vm9370_vm10, %v20151_v0  ;;  %v27666_v0 = vpop.permute.xlu1 %17390 }
 0x768   :  { %21393 = vmatpush1.bf16.msk.msra.mxu1 %vm25455_vm9, %v26088_v27  ;;  %20885 = vmatprep.mubr.msk.f32.mxu1 %vm9370_vm10, %v20152_v58  ;;  %v29538_v27 = vunpack.i.h.bf16 %v29536_v16 }
 0x769   :  { %21396 = vmatprep.subr.msk.bf16.mxu1 %vm25455_vm9, %v29535_v10 }
 0x76a   :  { %v21400_v1 = vpack.c.bf16 %v29538_v27, %v29537_v46 }
 0x76b   :  { %20886 = vmatmul.mubr.msk.f32.gmra.mrb[8].mxu1 %vm9370_vm10, %v20153_v51 }
 0x76c   :  { %17150 = vmatprep.mubr.f32.mxu1 %v29414_v56 }
 0x76f   :  { %20177 = vmatmul.mubr.msk.f32.vlgmr.msra.gmra.mrb[18].mxu1 %vm9370_vm10, %v20171_v54 }
 0x770   :  { %21399 = vmatpush1.bf16.msk.msra.mxu1 %vm25455_vm9, %v26889_v3  ;;  %17156 = vmatprep.mubr.f32.mxu1 %v29414_v56  ;;  %v20174_v3 = vld [vmem:[%s29310_s3 + $0x318] sm:$0xff] }
 0x771   :  { %21402 = vmatprep.subr.msk.bf16.mxu1 %vm25455_vm9, %v21400_v1 }
 0x773   :  { %20178 = vmatmul.mubr.msk.f32.gmra.mrb[20].mxu1 %vm9370_vm10, %v20172_v9 }
 0x774   :  { %17162 = vmatprep.mubr.f32.mxu1 %v29414_v56 }
 0x777   :  { %20179 = vmatmul.mubr.msk.f32.gmra.mrb[22].mxu1 %vm9370_vm10, %v20173_v42 }
 0x778   :  { %17168 = vmatprep.mubr.f32.mxu1 %v29414_v56 }
 0x77b   :  { %20180 = vmatmul.mubr.msk.f32.gmra.mrb[24].mxu1 %vm9370_vm10, %v20174_v3 }
 0x77c   :  { %17239 = vmatprep.mubr.f32.mxu1 %v29414_v56 }
 0x77f   :  { %20183 = vmatmul.mubr.msk.f32.vlgmr.msra.gmra.mrb[10].mxu1 %vm9370_vm10, %v20171_v54 }
 0x780   :  { %21405 = vmatpush3.bf16.msk.msra.mxu1 %vm25455_vm9, %v21400_v1  ;;  %17245 = vmatprep.mubr.f32.mxu1 %v29414_v56 }
 0x783   :  { %20184 = vmatmul.mubr.msk.f32.gmra.mrb[12].mxu1 %vm9370_vm10, %v20172_v9 }
 0x784   :  { %17251 = vmatprep.mubr.f32.mxu1 %v29414_v56 }
 0x787   :  { %20185 = vmatmul.mubr.msk.f32.gmra.mrb[14].mxu1 %vm9370_vm10, %v20173_v42 }
 0x788   :  { %17257 = vmatprep.mubr.f32.mxu1 %v29414_v56 }
 0x78b   :  { %20186 = vmatmul.mubr.msk.f32.gmra.mrb[16].mxu1 %vm9370_vm10, %v20174_v3 }
 0x78c   :  { %20892 = vmatprep.mubr.msk.f32.mxu1 %vm9370_vm10, %v20171_v54 }
 0x78f   :  { %20893 = vmatmul.mubr.msk.f32.vlgmr.msra.gmra.mrb[6].mxu1 %vm9370_vm10, %v20172_v9 }
 0x790   :  { %20895 = vmatprep.mubr.msk.f32.mxu1 %vm9370_vm10, %v20173_v42 }
 0x793   :  { %20896 = vmatmul.mubr.msk.f32.gmra.mrb[8].mxu1 %vm9370_vm10, %v20174_v3 }
 0x842   :  { %v17152_v48 = vpop.f32.mrb[18].mxu1 }
 0x843   :  { %v21781_v59 = vadd.f32 %v17152_v48, %v27404_v52  ;;  %v17154_v18 = vpop.f32.mrb[19].mxu1 }
 0x844   :  { %v21782_v2 = vadd.f32 %v17154_v18, %v27406_v39 }
 0x845   :  { %v27630_v38 = vadd.f32 %v21781_v59, %v27623_v53 }
 0x846   :  { %v17158_v45 = vpop.f32.mrb[20].mxu1  ;;  %v27626_v25 = vadd.f32 %v21782_v2, %v27623_v53 }
 0x847   :  { %v21783_v28 = vadd.f32 %v17158_v45, %v27413_v20  ;;  %v17160_v26 = vpop.f32.mrb[21].mxu1  ;;  %v17433_v31 = vmin.f32 %v27630_v38, 0.0  ;;  %vm17413_vm5 = vcmp.gt.f32.partialorder %v27630_v38, 0.0 }
 0x848   :  { %v21784_v47 = vadd.f32 %v17160_v26, %v27422_v37  ;;  %v17434_v14 = vmin.f32 %v27626_v25, 0.0  ;;  %vm17414_vm13 = vcmp.gt.f32.partialorder %v27626_v25, 0.0 }
 0x849   :  { %v27643_v19 = vadd.f32 %v21783_v28, %v27635_v7  ;;  %v17453_v41 = vmul.f32 1.442695, %v17433_v31 }
 0x84a   :  { %v17164_v36 = vpop.f32.mrb[22].mxu1  ;;  %v27640_v20 = vadd.f32 %v21784_v47, %v27635_v7  ;;  %v17455_v37 = vmul.f32 1.442695, %v17434_v14 }
 0x84b   :  { %v21785_v52 = vadd.f32 %v17164_v36, %v27427_v49  ;;  %v17166_v39 = vpop.f32.mrb[23].mxu1  ;;  %vm17418_vm10 = vcmp.gt.f32.partialorder %v27643_v19, 0.0 }
 0x84c   :  { %v21786_v60 = vadd.f32 %v17166_v39, %v27433_v15  ;;  %v17439_v23 = vmin.f32 %v27640_v20, 0.0  ;;  %v17438_v15 = vmin.f32 %v27643_v19, 0.0  ;;  %23143 = vpow2.f32 %v17455_v37 }
 0x84d   :  { %v27652_v8 = vadd.f32 %v21785_v52, %v27647_v5  ;;  %23145 = vpow2.f32 %v17453_v41  ;;  %vm17419_vm8 = vcmp.gt.f32.partialorder %v27640_v20, 0.0 }
 0x84e   :  { %v17170_v35 = vpop.f32.mrb[24].mxu1  ;;  %v27655_v43 = vadd.f32 %v21786_v60, %v27647_v5  ;;  %v17465_v30 = vmul.f32 1.442695, %v17439_v23  ;;  %v17463_v17 = vmul.f32 1.442695, %v17438_v15 }
 0x84f   :  { %v21787_v32 = vadd.f32 %v17170_v35, %v27440_v63  ;;  %v17172_v34 = vpop.f32.mrb[25].mxu1  ;;  %v17443_v13 = vmin.f32 %v27652_v8, 0.0  ;;  %vm17423_vm9 = vcmp.gt.f32.partialorder %v27652_v8, 0.0 }
 0x850   :  { %v21788_v49 = vadd.f32 %v17172_v34, %v27442_v50  ;;  %v17444_v58 = vmin.f32 %v27655_v43, 0.0  ;;  %23147 = vpow2.f32 %v17465_v30  ;;  %vm17424_vm6 = vcmp.gt.f32.partialorder %v27655_v43, 0.0 }
 0x851   :  { %23149 = vpow2.f32 %v17463_v17  ;;  %v17473_v16 = vmul.f32 1.442695, %v17443_v13  ;;  %v27677_v9 = vadd.f32 %v21787_v32, %v27666_v0 }
 0x852   :  { %v17241_v40 = vpop.f32.mrb[10].mxu1  ;;  %v17475_v1 = vmul.f32 1.442695, %v17444_v58 }
 0x853   :  { %v21789_v63 = vadd.f32 %v17241_v40, %v27372_v62  ;;  %v17243_v29 = vpop.f32.mrb[11].mxu1  ;;  %v17448_v26 = vmin.f32 %v27677_v9, 0.0 }
 0x854   :  { %v21790_v50 = vadd.f32 %v17243_v29, %v27375_v61  ;;  %v27671_v61 = vadd.f32 %v21788_v49, %v27666_v0 }
 0x855   :  { %v27660_v6 = vadd.f32 %v21789_v63, %v27623_v53  ;;  %v17483_v32 = vmul.f32 1.442695, %v17448_v26 }
 0x856   :  { %v27664_v55 = vadd.f32 %v21790_v50, %v27623_v53  ;;  %v17247_v21 = vpop.f32.mrb[12].mxu1  ;;  %v17449_v3 = vmin.f32 %v27671_v61, 0.0  ;;  %v23144_v59 = vpop.eup %23143 }
 0x857   :  { %v17435_v62 = vmin.f32 %v27660_v6, 0.0  ;;  %v17249_v51 = vpop.f32.mrb[13].mxu1  ;;  %v21791_v10 = vadd.f32 %v17247_v21, %v27377_v4  ;;  %v23146_v2 = vpop.eup %23145  ;;  %v20193_v36 = vadd.f32 -1.0, %v23144_v59  ;;  %vm17415_vm15 = vcmp.gt.f32.partialorder %v27660_v6, 0.0 }
 0x858   :  { %v17436_v57 = vmin.f32 %v27664_v55, 0.0  ;;  %v21792_v54 = vadd.f32 %v17249_v51, %v27384_v44  ;;  %v17485_v14 = vmul.f32 1.442695, %v17449_v3  ;;  %v20192_v31 = vadd.f32 -1.0, %v23146_v2 }
 0x859   :  { %v17457_v24 = vmul.f32 1.442695, %v17435_v62  ;;  %v27681_v48 = vadd.f32 %v21791_v10, %v27635_v7  ;;  %v17514_v23 = vmul.f32 1.6732632, %v20193_v36  ;;  %vm17416_vm4 = vcmp.gt.f32.partialorder %v27664_v55, 0.0 }
 0x85a   :  { %v17459_v46 = vmul.f32 1.442695, %v17436_v57  ;;  %v17253_v27 = vpop.f32.mrb[14].mxu1  ;;  %v27684_v4 = vadd.f32 %v21792_v54, %v27635_v7  ;;  %v23148_v37 = vpop.eup %23147  ;;  %v17513_v63 = vmul.f32 1.6732632, %v20192_v31 }
 0x85b   :  { %23151 = vpow2.f32 %v17457_v24  ;;  %v17255_v42 = vpop.f32.mrb[15].mxu1  ;;  %v21793_v44 = vadd.f32 %v17253_v27, %v27391_v33  ;;  %v17440_v45 = vmin.f32 %v27681_v48, 0.0  ;;  %v23150_v49 = vpop.eup %23149  ;;  %v20198_v30 = vadd.f32 -1.0, %v23148_v37 }
 0x85c   :  { %23153 = vpow2.f32 %v17459_v46  ;;  %v21794_v18 = vadd.f32 %v17255_v42, %v27393_v12  ;;  %v17441_v33 = vmin.f32 %v27684_v4, 0.0  ;;  %v20197_v62 = vadd.f32 -1.0, %v23150_v49 }
 0x85d   :  { %23155 = vpow2.f32 %v17473_v16  ;;  %v17467_v52 = vmul.f32 1.442695, %v17440_v45  ;;  %v27691_v39 = vadd.f32 %v21793_v44, %v27647_v5  ;;  %v17534_v54 = vsel %vm17414_vm13, %v27626_v25, %v17514_v23 }
 0x85e   :  { %v17259_v28 = vpop.f32.mrb[16].mxu1  ;;  %23157 = vpow2.f32 %v17475_v1  ;;  %v27695_v12 = vadd.f32 %v21794_v18, %v27647_v5  ;;  %v17469_v34 = vmul.f32 1.442695, %v17441_v33  ;;  %v17533_v42 = vsel %vm17413_vm5, %v27630_v38, %v17513_v63 }
 0x85f   :  { %v17261_v47 = vpop.f32.mrb[17].mxu1  ;;  %v21795_v60 = vadd.f32 %v17259_v28, %v27396_v11  ;;  %23159 = vpow2.f32 %v17467_v52  ;;  %v17445_v15 = vmin.f32 %v27691_v39, 0.0  ;;  %v17519_v3 = vmul.f32 1.6732632, %v20198_v30 }
 0x860   :  { %23161 = vpow2.f32 %v17485_v14  ;;  %v17446_v11 = vmin.f32 %v27695_v12, 0.0  ;;  %v21796_v21 = vadd.f32 %v17261_v47, %v27402_v22  ;;  %v17518_v25 = vmul.f32 1.6732632, %v20197_v62 }
 0x861   :  { %23163 = vpow2.f32 %v17469_v34  ;;  %v27707_v29 = vadd.f32 %v21795_v60, %v27666_v0  ;;  %v17477_v13 = vmul.f32 1.442695, %v17445_v15  ;;  %v27730_v28 = vmul.f32 1.050701, %v17534_v54 }
 0x862   :  { %v27698_v35 = vpop.f32.mrb[6].mxu1  ;;  %23165 = vpow2.f32 %v17483_v32  ;;  %v17479_v57 = vmul.f32 1.442695, %v17446_v11  ;;  %v27720_v1 = vadd.f32 %v21796_v21, %v27666_v0  ;;  %v27736_v52 = vmul.f32 1.050701, %v17533_v42 }
 0x863   :  { %v27701_v41 = vpop.f32.mrb[7].mxu1  ;;  %23167 = vpow2.f32 %v17477_v13  ;;  %v17450_v22 = vmin.f32 %v27707_v29, 0.0  ;;  %v17538_v60 = vsel %vm17418_vm10, %v27643_v19, %v17518_v25  ;;  %vm17420_vm12 = vcmp.gt.f32.partialorder %v27681_v48, 0.0 }
 0x864   :  { %23169 = vpow2.f32 %v17479_v57  ;;  %v17451_v38 = vmin.f32 %v27720_v1, 0.0  ;;  %vm17421_vm14 = vcmp.gt.f32.partialorder %v27684_v4, 0.0  ;;  %v27756_v21 = vmul.f32 1.050701, %v17538_v60  ;;  %v17806_v60 = vld [vmem:[%s29312_s5 + $0x8] sm:$0xff] }
 0x865   :  { %v23152_v40 = vpop.eup %23151  ;;  %v17487_v2 = vmul.f32 1.442695, %v17450_v22  ;;  %vm17425_vm2 = vcmp.gt.f32.partialorder %v27691_v39, 0.0  ;;  %vm17429_vm5 = vcmp.gt.f32.partialorder %v27671_v61, 0.0  ;;  %vm17426_vm13 = vcmp.gt.f32.partialorder %v27695_v12, 0.0 }
 0x866   :  { %v23154_v50 = vpop.eup %23153  ;;  %v20194_v17 = vadd.f32 -1.0, %v23152_v40  ;;  %v27710_v58 = vpop.f32.mrb[8].mxu1  ;;  %v17489_v31 = vmul.f32 1.442695, %v17451_v38 }
 0x867   :  { %v20195_v51 = vadd.f32 -1.0, %v23154_v50  ;;  %v27712_v24 = vpop.f32.mrb[9].mxu1  ;;  %v23156_v10 = vpop.eup %23155  ;;  %23171 = vpow2.f32 %v17487_v2 }
 0x868   :  { %v17515_v16 = vmul.f32 1.6732632, %v20194_v17  ;;  %v23158_v46 = vpop.eup %23157  ;;  %v20202_v47 = vadd.f32 -1.0, %v23156_v10  ;;  %23173 = vpow2.f32 %v17489_v31 }
 0x869   :  { %v17516_v27 = vmul.f32 1.6732632, %v20195_v51  ;;  %v23160_v45 = vpop.eup %23159  ;;  %v20203_v36 = vadd.f32 -1.0, %v23158_v46 }
 0x86a   :  { %v17535_v59 = vsel %vm17415_vm15, %v27660_v6, %v17515_v16  ;;  %v20199_v6 = vadd.f32 -1.0, %v23160_v45  ;;  %v23162_v14 = vpop.eup %23161  ;;  %v17523_v40 = vmul.f32 1.6732632, %v20202_v47  ;;  %vm17430_vm15 = vcmp.gt.f32.partialorder %v27707_v29, 0.0 }
 0x86b   :  { %v27727_v44 = vmul.f32 1.050701, %v17535_v59  ;;  %v17536_v18 = vsel %vm17416_vm4, %v27664_v55, %v17516_v27  ;;  %v17539_v55 = vsel %vm17419_vm8, %v27640_v20, %v17519_v3  ;;  %v23164_v33 = vpop.eup %23163  ;;  %v17524_v20 = vmul.f32 1.6732632, %v20203_v36 }
 0x86c   :  { %v27733_v26 = vmul.f32 1.050701, %v17536_v18  ;;  %v17520_v37 = vmul.f32 1.6732632, %v20199_v6  ;;  %v20200_v34 = vadd.f32 -1.0, %v23164_v33  ;;  %v23166_v23 = vpop.eup %23165  ;;  %v20208_v11 = vadd.f32 -1.0, %v23162_v14 }
 0x86d   :  { %v23045_v32 = vpack.i.bf16 %v27727_v44, %v27730_v28  ;;  %v27746_v15 = vmul.f32 1.050701, %v17539_v55  ;;  %v23168_v19 = vpop.eup %23167  ;;  %v17544_v57 = vsel %vm17424_vm6, %v27655_v43, %v17524_v20  ;;  %v20207_v10 = vadd.f32 -1.0, %v23166_v23  ;;  %v17814_v23 = vld [vmem:[%s29312_s5 + $0x48] sm:$0xff] }
 0x86e   :  { %v23050_v49 = vpack.i.bf16 %v27736_v52, %v27733_v26  ;;  %v17540_v63 = vsel %vm17420_vm12, %v27681_v48, %v17520_v37  ;;  %v17521_v30 = vmul.f32 1.6732632, %v20200_v34  ;;  %v23170_v17 = vpop.eup %23169  ;;  %v20204_v13 = vadd.f32 -1.0, %v23168_v19 }
 0x86f   :  { %23046 = vrot.lane.b32.xlu0 %v23045_v32, %s23253_s26  ;;  %v27750_v50 = vmul.f32 1.050701, %v17540_v63  ;;  %v20205_v62 = vadd.f32 -1.0, %v23170_v17  ;;  %v17543_v46 = vsel %vm17423_vm9, %v27652_v8, %v17523_v40  ;;  %v17529_v27 = vmul.f32 1.6732632, %v20208_v11  ;;  %v17818_v40 = vld [vmem:[%s29312_s5 + $0x68] sm:$0xff] }
 0x870   :  { %23051 = vrot.lane.b32.xlu1 %v23050_v49, %s23253_s26  ;;  %v17541_v48 = vsel %vm17421_vm14, %v27684_v4, %v17521_v30  ;;  %v17525_v16 = vmul.f32 1.6732632, %v20204_v13  ;;  %v27772_v3 = vmul.f32 1.050701, %v17544_v57  ;;  %v27777_v18 = vmul.f32 1.050701, %v17543_v46 }
 0x871   :  { %v23055_v51 = vpack.i.bf16 %v27750_v50, %v27746_v15  ;;  %v27762_v54 = vmul.f32 1.050701, %v17541_v48  ;;  %v17526_v22 = vmul.f32 1.6732632, %v20205_v62  ;;  %v23172_v42 = vpop.eup %23171  ;;  %v17528_v2 = vmul.f32 1.6732632, %v20207_v10 }
 0x872   :  { %v17545_v4 = vsel %vm17425_vm2, %v27691_v39, %v17525_v16  ;;  %v20209_v25 = vadd.f32 -1.0, %v23172_v42  ;;  %v23174_v39 = vpop.eup %23173  ;;  %v17549_v38 = vsel %vm17429_vm5, %v27671_v61, %v17529_v27  ;;  %vm17428_vm4 = vcmp.gt.f32.partialorder %v27677_v9, 0.0  ;;  %v17809_v49 = vld [vmem:[%s29312_s5 + $0x20] sm:$0xff]  ;;  %v17822_v17 = vld [vmem:[%s29312_s5 + $0x88] sm:$0xff] }
 0x873   :  { %23056 = vrot.lane.b32.xlu0 %v23055_v51, %s23253_s26  ;;  %v23060_v43 = vpack.i.bf16 %v27756_v21, %v27762_v54  ;;  %v27774_v59 = vmul.f32 1.050701, %v17545_v4  ;;  %v17546_v8 = vsel %vm17426_vm13, %v27695_v12, %v17526_v22  ;;  %v20210_v6 = vadd.f32 -1.0, %v23174_v39  ;;  %v17817_v30 = vld [vmem:[%s29312_s5 + $0x60] sm:$0xff]  ;;  %v17826_v13 = vld [vmem:[%s29312_s5 + $0xa8] sm:$0xff] }
 0x874   :  { %v27779_v45 = vmul.f32 1.050701, %v17546_v8  ;;  %v17530_v47 = vmul.f32 1.6732632, %v20209_v25  ;;  %v17548_v55 = vsel %vm17428_vm4, %v27677_v9, %v17528_v2  ;;  %v27792_v31 = vmul.f32 1.050701, %v17549_v38 }
 0x875   :  { %23061 = vrot.lane.b32.xlu1 %v23060_v43, %s23253_s26  ;;  %v23065_v36 = vpack.i.bf16 %v27774_v59, %v27772_v3  ;;  %v17531_v33 = vmul.f32 1.6732632, %v20210_v6  ;;  %vm17431_vm8 = vcmp.gt.f32.partialorder %v27720_v1, 0.0  ;;  %v17805_v9 = vld [vmem:[%s29312_s5] sm:$0xff]  ;;  %v27819_v20 = vmul.f32 1.050701, %v17548_v55 }
 0x876   :  { %v23070_v12 = vpack.i.bf16 %v27777_v18, %v27779_v45  ;;  %v17550_v14 = vsel %vm17430_vm15, %v27707_v29, %v17530_v47  ;;  %v17810_v29 = vld [vmem:[%s29312_s5 + $0x28] sm:$0xff]  ;;  %v21408_v19 = vpack.c.bf16 %v17809_v49, %v17805_v9  ;;  %v21410_v11 = vpack.c.bf16 %v17818_v40, %v17814_v23  ;;  %v17821_v57 = vld [vmem:[%s29312_s5 + $0x80] sm:$0xff] }
 0x877   :  { %23066 = vrot.lane.b32.xlu0 %v23065_v36, %s23253_s26  ;;  %v27794_v61 = vmul.f32 1.050701, %v17550_v14  ;;  %v17551_v37 = vsel %vm17431_vm8, %v27720_v1, %v17531_v33  ;;  %v21406_v34 = vpack.c.bf16 %v17810_v29, %v17806_v60  ;;  %v17813_v1 = vld [vmem:[%s29312_s5 + $0x40] sm:$0xff]  ;;  %v21414_v51 = vpack.c.bf16 %v17826_v13, %v17822_v17  ;;  %v17830_v16 = vld [vmem:[%s29312_s5 + $0xc8] sm:$0xff] }
 0x878   :  { %v27821_v63 = vmul.f32 1.050701, %v17551_v37  ;;  %v21412_v62 = vpack.c.bf16 %v17817_v30, %v17813_v1  ;;  %v17825_v10 = vld [vmem:[%s29312_s5 + $0xa0] sm:$0xff]  ;;  %v17834_v46 = vld [vmem:[%s29312_s5 + $0xe8] sm:$0xff]  ;;  %vm23278_vm14 = vmmov 0   ;;  %vm19141_vm5 = vcmask 687104  }
 0x879   :  { %23071 = vrot.lane.b32.xlu1 %v23070_v12, %s23253_s26  ;;  %v23075_v32 = vpack.i.bf16 %v27794_v61, %v27792_v31  ;;  %21407 = vmatprep.subr.bf16.mxu0 %v21406_v34  ;;  %v21416_v27 = vpack.c.bf16 %v17825_v10, %v17821_v57  ;;  %v21418_v22 = vpack.c.bf16 %v17834_v46, %v17830_v16  ;;  %v17829_v42 = vld [vmem:[%s29312_s5 + $0xc0] sm:$0xff]  ;;  %v17838_v43 = vld [vmem:[%s29312_s5 + $0x108] sm:$0xff] }
 0x87a   :  { %v23080_v48 = vpack.i.bf16 %v27819_v20, %v27821_v63  ;;  %21409 = vmatpush1.bf16.msra.mxu0 %v21408_v19  ;;  %v17833_v4 = vld [vmem:[%s29312_s5 + $0xe0] sm:$0xff]  ;;  %v17842_v8 = vld [vmem:[%s29312_s5 + $0x128] sm:$0xff] }
 0x87b   :  { %23076 = vrot.lane.b32.xlu0 %v23075_v32, %s23253_s26  ;;  %21411 = vmatprep.subr.bf16.mxu0 %v21410_v11  ;;  %v21420_v25 = vpack.c.bf16 %v17833_v4, %v17829_v42  ;;  %v21422_v2 = vpack.c.bf16 %v17842_v8, %v17838_v43  ;;  %v17837_v39 = vld [vmem:[%s29312_s5 + $0x100] sm:$0xff]  ;;  %v17846_v47 = vld [vmem:[%s29312_s5 + $0x148] sm:$0xff] }
 0x87c   :  { %v17841_v38 = vld [vmem:[%s29312_s5 + $0x120] sm:$0xff]  ;;  %v17850_v36 = vld [vmem:[%s29312_s5 + $0x168] sm:$0xff] }
 0x87d   :  { %23081 = vrot.lane.b32.xlu1 %v23080_v48, %s23253_s26  ;;  %v21424_v6 = vpack.c.bf16 %v17841_v38, %v17837_v39  ;;  %v21426_v12 = vpack.c.bf16 %v17850_v36, %v17846_v47  ;;  %v17845_v14 = vld [vmem:[%s29312_s5 + $0x140] sm:$0xff]  ;;  %v17854_v33 = vld [vmem:[%s29312_s5 + $0x188] sm:$0xff] }
 0x87e   :  { %21413 = vmatpush1.bf16.msra.mxu0 %v21412_v62  ;;  %v17849_v55 = vld [vmem:[%s29312_s5 + $0x160] sm:$0xff]  ;;  %v17858_v60 = vld [vmem:[%s29312_s5 + $0x1a8] sm:$0xff] }
 0x87f   :  { %21415 = vmatprep.subr.bf16.mxu0 %v21414_v51  ;;  %v21428_v29 = vpack.c.bf16 %v17849_v55, %v17845_v14  ;;  %v21430_v9 = vpack.c.bf16 %v17858_v60, %v17854_v33  ;;  %v17853_v37 = vld [vmem:[%s29312_s5 + $0x180] sm:$0xff]  ;;  %v17862_v34 = vld [vmem:[%s29312_s5 + $0x1c8] sm:$0xff] }
 0x880   :  { %v17857_v32 = vld [vmem:[%s29312_s5 + $0x1a0] sm:$0xff]  ;;  %v17866_v49 = vld [vmem:[%s29312_s5 + $0x1e8] sm:$0xff] }
 0x881   :  { %v21432_v23 = vpack.c.bf16 %v17857_v32, %v17853_v37  ;;  %v21434_v40 = vpack.c.bf16 %v17866_v49, %v17862_v34  ;;  %v17861_v1 = vld [vmem:[%s29312_s5 + $0x1c0] sm:$0xff]  ;;  %v17870_v11 = vld [vmem:[%s29312_s5 + $0x208] sm:$0xff] }
 0x882   :  { %21417 = vmatpush1.bf16.msra.mxu0 %v21416_v27  ;;  %v17865_v19 = vld [vmem:[%s29312_s5 + $0x1e0] sm:$0xff]  ;;  %v17874_v30 = vld [vmem:[%s29312_s5 + $0x228] sm:$0xff] }
 0x883   :  { %21419 = vmatprep.subr.bf16.mxu0 %v21418_v22  ;;  %v21436_v17 = vpack.c.bf16 %v17865_v19, %v17861_v1  ;;  %v21438_v13 = vpack.c.bf16 %v17874_v30, %v17870_v11  ;;  %v17869_v48 = vld [vmem:[%s29312_s5 + $0x200] sm:$0xff]  ;;  %v17878_v51 = vld [vmem:[%s29312_s5 + $0x248] sm:$0xff]  ;;  %v17402_v1 = vadd.f32 %v27698_v35, %v27635_v7  ;;  %v27981_v19 = vadd.f32 %v27623_v53, %v27701_v41 }
 0x884   :  { %v17873_v62 = vld [vmem:[%s29312_s5 + $0x220] sm:$0xff]  ;;  %v17882_v57 = vld [vmem:[%s29312_s5 + $0x268] sm:$0xff]  ;;  %v27985_v30 = vadd.f32 %v27710_v58, %v27666_v0 }
 0x885   :  { %v21440_v10 = vpack.c.bf16 %v17873_v62, %v17869_v48  ;;  %v21442_v16 = vpack.c.bf16 %v17882_v57, %v17878_v51  ;;  %v17877_v46 = vld [vmem:[%s29312_s5 + $0x240] sm:$0xff]  ;;  %v17886_v22 = vld [vmem:[%s29312_s5 + $0x288] sm:$0xff]  ;;  %v17442_v11 = vmin.f32 %v17402_v1, 0.0  ;;  %vm17422_vm10 = vcmp.gt.f32.partialorder %v17402_v1, 0.0 }
 0x886   :  { %21421 = vmatpush1.bf16.msra.mxu0 %v21420_v25  ;;  %v17881_v27 = vld [vmem:[%s29312_s5 + $0x260] sm:$0xff]  ;;  %v17890_v42 = vld [vmem:[%s29312_s5 + $0x2a8] sm:$0xff]  ;;  %v17452_v62 = vmin.f32 %v27985_v30, 0.0  ;;  %vm17417_vm12 = vcmp.gt.f32.partialorder %v27981_v19, 0.0  ;;  %vm17432_vm9 = vcmp.gt.f32.partialorder %v27985_v30, 0.0 }
 0x887   :  { %21423 = vmatprep.subr.bf16.mxu0 %v21422_v2  ;;  %v21444_v4 = vpack.c.bf16 %v17881_v27, %v17877_v46  ;;  %v21446_v43 = vpack.c.bf16 %v17890_v42, %v17886_v22  ;;  %v17885_v8 = vld [vmem:[%s29312_s5 + $0x280] sm:$0xff]  ;;  %v17894_v2 = vld [vmem:[%s29312_s5 + $0x2c8] sm:$0xff]  ;;  %v17471_v48 = vmul.f32 1.442695, %v17442_v11 }
 0x888   :  { %v17889_v25 = vld [vmem:[%s29312_s5 + $0x2a0] sm:$0xff]  ;;  %v17898_v39 = vld [vmem:[%s29312_s5 + $0x2e8] sm:$0xff]  ;;  %v17491_v53 = vmul.f32 1.442695, %v17452_v62 }
 0x889   :  { %v21448_v38 = vpack.c.bf16 %v17889_v25, %v17885_v8  ;;  %v21450_v47 = vpack.c.bf16 %v17898_v39, %v17894_v2  ;;  %v17893_v36 = vld [vmem:[%s29312_s5 + $0x2c0] sm:$0xff]  ;;  %v17906_v14 = vld [vmem:[%s29312_s5 + $0x328] sm:$0xff]  ;;  %23175 = vpow2.f32 %v17471_v48 }
 0x88a   :  { %21425 = vmatpush1.bf16.msra.mxu0 %v21424_v6  ;;  %v17897_v6 = vld [vmem:[%s29312_s5 + $0x2e0] sm:$0xff]  ;;  %v17914_v37 = vld [vmem:[%s29312_s5 + $0x368] sm:$0xff] }
 0x88b   :  { %21427 = vmatprep.subr.bf16.mxu0 %v21426_v12  ;;  %v17902_v12 = vld [vmem:[%s29312_s5 + $0x308] sm:$0xff]  ;;  %v21452_v55 = vpack.c.bf16 %v17897_v6, %v17893_v36  ;;  %v17901_v60 = vld [vmem:[%s29312_s5 + $0x300] sm:$0xff] }
 0x88c   :  { %v21454_v33 = vpack.c.bf16 %v17906_v14, %v17902_v12  ;;  %v17909_v49 = vld [vmem:[%s29312_s5 + $0x340] sm:$0xff]  ;;  %v17918_v0 = vld [vmem:[%s29312_s5 + $0x388] sm:$0xff] }
 0x88d   :  { %v17917_v58 = vld [vmem:[%s29312_s5 + $0x380] sm:$0xff]  ;;  %v17926_v22 = vld [vmem:[%s29312_s5 + $0x3c8] sm:$0xff] }
 0x88e   :  { %21429 = vmatpush1.bf16.msra.mxu0 %v21428_v29  ;;  %v17905_v29 = vld [vmem:[%s29312_s5 + $0x320] sm:$0xff]  ;;  %v17930_v42 = vld [vmem:[%s29312_s5 + $0x3e8] sm:$0xff] }
 0x88f   :  { %21431 = vmatprep.subr.bf16.mxu0 %v21430_v9  ;;  %v17910_v9 = vld [vmem:[%s29312_s5 + $0x348] sm:$0xff]  ;;  %v21456_v32 = vpack.c.bf16 %v17905_v29, %v17901_v60  ;;  %v17921_v51 = vld [vmem:[%s29312_s5 + $0x3a0] sm:$0xff]  ;;  %v21466_v2 = vpack.c.bf16 %v17930_v42, %v17926_v22 }
 0x890   :  { %v21458_v34 = vpack.c.bf16 %v17914_v37, %v17910_v9  ;;  %v17929_v39 = vld [vmem:[%s29312_s5 + $0x3e0] sm:$0xff] }
 0x892   :  { %21433 = vmatpush1.bf16.msra.mxu0 %v21432_v23  ;;  %v17913_v23 = vld [vmem:[%s29312_s5 + $0x360] sm:$0xff] }
 0x893   :  { %21435 = vmatprep.subr.bf16.mxu0 %v21434_v40  ;;  %v21460_v40 = vpack.c.bf16 %v17913_v23, %v17909_v49  ;;  %v23176_v57 = vpop.eup %23175 }
 0x894   :  { %v20201_v46 = vadd.f32 -1.0, %v23176_v57 }
 0x896   :  { %21437 = vmatpush1.bf16.msra.mxu0 %v21436_v17  ;;  %v27989_v17 = vadd.f32 %v27647_v5, %v27712_v24  ;;  %v17922_v5 = vld [vmem:[%s29312_s5 + $0x3a8] sm:$0xff]  ;;  %v17522_v12 = vmul.f32 1.6732632, %v20201_v46 }
 0x897   :  { %21439 = vmatprep.subr.bf16.mxu0 %v21438_v13  ;;  %v17437_v13 = vmin.f32 %v27981_v19, 0.0  ;;  %v21462_v24 = vpack.c.bf16 %v17922_v5, %v17918_v0 }
 0x898   :  { %v17447_v7 = vmin.f32 %v27989_v17, 0.0  ;;  %v17542_v11 = vsel %vm17422_vm10, %v17402_v1, %v17522_v12  ;;  %vm17427_vm6 = vcmp.gt.f32.partialorder %v27989_v17, 0.0 }
 0x899   :  { %v17461_v35 = vmul.f32 1.442695, %v17437_v13 }
 0x89a   :  { %21441 = vmatpush1.bf16.msra.mxu0 %v21440_v10  ;;  %v17481_v41 = vmul.f32 1.442695, %v17447_v7  ;;  %v21464_v10 = vpack.c.bf16 %v17921_v51, %v17917_v58 }
 0x89b   :  { %21443 = vmatprep.subr.bf16.mxu0 %v21442_v16  ;;  %23177 = vpow2.f32 %v17461_v35 }
 0x89c   :  { %23179 = vpow2.f32 %v17491_v53 }
 0x89d   :  { %23181 = vpow2.f32 %v17481_v41 }
 0x89e   :  { %21445 = vmatpush1.bf16.msra.mxu0 %v21444_v4  ;;  %v17925_v4 = vld [vmem:[%s29312_s5 + $0x3c0] sm:$0xff] }
 0x89f   :  { %21447 = vmatprep.subr.bf16.mxu0 %v21446_v43  ;;  %v21468_v6 = vpack.c.bf16 %v17929_v39, %v17925_v4 }
 0x8a2   :  { %21449 = vmatpush1.bf16.msra.mxu0 %v21448_v38 }
 0x8a3   :  { %21451 = vmatprep.subr.bf16.mxu0 %v21450_v47 }
 0x8a5   :  { %v23178_v16 = vpop.eup %23177 }
 0x8a6   :  { %21453 = vmatpush1.bf16.msra.mxu0 %v21452_v55  ;;  %v23180_v27 = vpop.eup %23179  ;;  %v20196_v8 = vadd.f32 -1.0, %v23178_v16 }
 0x8a7   :  { %21455 = vmatprep.subr.bf16.mxu0 %v21454_v33  ;;  %v23182_v43 = vpop.eup %23181  ;;  %v20211_v14 = vadd.f32 -1.0, %v23180_v27 }
 0x8a8   :  { %v20206_v60 = vadd.f32 -1.0, %v23182_v43  ;;  %v17517_v9 = vmul.f32 1.6732632, %v20196_v8 }
 0x8a9   :  { %v17532_v13 = vmul.f32 1.6732632, %v20211_v14  ;;  %v17934_v14 = vld [vmem:[%s29312_s5 + $0x408] sm:$0xff] }
 0x8aa   :  { %21457 = vmatpush1.bf16.msra.mxu0 %v21456_v32 }
 0x8ab   :  { %21459 = vmatprep.subr.bf16.mxu0 %v21458_v34  ;;  %v17552_v41 = vsel %vm17432_vm9, %v27985_v30, %v17532_v13 }
 0x8ac   :  { %v28064_v16 = vmul.f32 1.050701, %v17552_v41 }
 0x8ae   :  { %21461 = vmatpush1.bf16.msra.mxu0 %v21460_v40 }
 0x8af   :  { %21463 = vmatprep.subr.bf16.mxu0 %v21462_v24 }
 0x8b2   :  { %21465 = vmatpush1.bf16.msra.mxu0 %v21464_v10 }
 0x8b3   :  { %21467 = vmatprep.subr.bf16.mxu0 %v21466_v2 }
 0x8b6   :  { %21469 = vmatpush1.bf16.msra.mxu0 %v21468_v6 }
 0x8e1   :  { %v23047_v25 = vpop.permute.xlu0 %23046 }
 0x8e2   :  { %v23049_v38 = vunpack.i.h.bf16 %v23047_v25  ;;  %v23048_v47 = vunpack.i.l.bf16 %v23047_v25  ;;  %v28018_v36 = vpop.permute.xlu1 %23051 }
 0x8e3   :  { %v23054_v55 = vunpack.i.h.bf16 %v28018_v36  ;;  %v23053_v33 = vunpack.i.l.bf16 %v28018_v36 }
 0x8e4   :  { %v17634_v29 = vsel %vm760_vm3, %v23048_v47, %v23049_v38 }
 0x8e5   :  { %v28024_v37 = vmax.f32 %v27730_v28, %v17634_v29  ;;  %v17633_v32 = vsel %vm760_vm3, %v23054_v55, %v23048_v47  ;;  %v17635_v34 = vsel %vm760_vm3, %v23049_v38, %v23053_v33  ;;  %v23057_v40 = vpop.permute.xlu0 %23056  ;;  %v17527_v28 = vmul.f32 1.6732632, %v20206_v60 }
 0x8e6   :  { %v28031_v49 = vmax.f32 %v27736_v52, %v17633_v32  ;;  %v28034_v23 = vmax.f32 %v27727_v44, %v17635_v34  ;;  %v23059_v48 = vunpack.i.h.bf16 %v23057_v40  ;;  %v23058_v62 = vunpack.i.l.bf16 %v23057_v40 }
 0x8e7   :  { %v17537_v52 = vsel %vm17417_vm12, %v27981_v19, %v17517_v9  ;;  %v28042_v35 = vpop.permute.xlu1 %23061  ;;  %v28044_v44 = vmul.f32 1.050701, %v17542_v11  ;;  %v17547_v19 = vsel %vm17427_vm6, %v27989_v17, %v17527_v28  ;;  %v17933_v28 = vld [vmem:[%s29312_s5 + $0x400] sm:$0xff] }
 0x8e8   :  { %17709 = vrot.lane.b32.xlu1 %v28031_v49, %s23261_s21  ;;  %v23085_v7 = vpack.i.bf16 %v28034_v23, %v28024_v37  ;;  %v23064_v1 = vunpack.i.h.bf16 %v28042_v35  ;;  %v23063_v53 = vunpack.i.l.bf16 %v28042_v35  ;;  %v28052_v0 = vmul.f32 1.050701, %v17537_v52  ;;  %v17946_v52 = vld [vmem:[%s29312_s5 + $0x468] sm:$0xff] }
 0x8e9   :  { %v17638_v5 = vsel %vm760_vm3, %v23058_v62, %v23059_v48  ;;  %v23067_v58 = vpop.permute.xlu0 %23066  ;;  %v28070_v27 = vmul.f32 1.050701, %v17547_v19 }
 0x8ea   :  { %23086 = vrot.lane.b32.xlu0 %v23085_v7, %s23261_s21  ;;  %v17637_v24 = vsel %vm760_vm3, %v23064_v1, %v23058_v62  ;;  %v17639_v51 = vsel %vm760_vm3, %v23059_v48, %v23063_v53  ;;  %v23069_v57 = vunpack.i.h.bf16 %v23067_v58  ;;  %v23068_v30 = vunpack.i.l.bf16 %v23067_v58  ;;  %v17937_v48 = vld [vmem:[%s29312_s5 + $0x420] sm:$0xff]  ;;  %v17942_v7 = vld [vmem:[%s29312_s5 + $0x448] sm:$0xff] }
 0x8eb   :  { %v28062_v10 = vpop.permute.xlu1 %23071  ;;  %v28074_v42 = vmax.f32 %v27746_v15, %v17638_v5  ;;  %v28077_v4 = vmax.f32 %v27756_v21, %v17637_v24  ;;  %v28080_v43 = vmax.f32 %v27750_v50, %v17639_v51  ;;  %v21472_v51 = vpack.c.bf16 %v17937_v48, %v17933_v28 }
 0x8ec   :  { %17611 = vrot.lane.b32.xlu1 %v28044_v44, %s23253_s26  ;;  %v23074_v17 = vunpack.i.h.bf16 %v28062_v10  ;;  %v23073_v46 = vunpack.i.l.bf16 %v28062_v10  ;;  %v17642_v22 = vsel %vm760_vm3, %v23068_v30, %v23069_v57 }
 0x8ed   :  { %v28083_v8 = vmax.f32 %v27772_v3, %v17642_v22  ;;  %v23077_v15 = vpop.permute.xlu0 %23076  ;;  %v23090_v12 = vpack.i.bf16 %v28080_v43, %v28074_v42  ;;  %v17941_v22 = vld [vmem:[%s29312_s5 + $0x440] sm:$0xff] }
 0x8ee   :  { %17601 = vrot.lane.b32.xlu0 %v28052_v0, %s23253_s26  ;;  %v17641_v25 = vsel %vm760_vm3, %v23074_v17, %v23068_v30  ;;  %v17643_v2 = vsel %vm760_vm3, %v23069_v57, %v23073_v46  ;;  %v23079_v39 = vunpack.i.h.bf16 %v23077_v15  ;;  %v23078_v38 = vunpack.i.l.bf16 %v23077_v15  ;;  %v17949_v15 = vld [vmem:[%s29312_s5 + $0x480] sm:$0xff] }
 0x8ef   :  { %v23095_v50 = vpack.i.bf16 %v28083_v8, %v28077_v4  ;;  %v28096_v21 = vmax.f32 %v27777_v18, %v17641_v25  ;;  %v28099_v3 = vmax.f32 %v27774_v59, %v17643_v2  ;;  %v28102_v6 = vpop.permute.xlu1 %23081  ;;  %v17938_v18 = vld [vmem:[%s29312_s5 + $0x428] sm:$0xff]  ;;  %v21474_v17 = vpack.c.bf16 %v17946_v52, %v17942_v7 }
 0x8f0   :  { %17631 = vrot.lane.b32.xlu1 %v28064_v16, %s23253_s26  ;;  %v17646_v47 = vsel %vm760_vm3, %v23078_v38, %v23079_v39  ;;  %v23083_v59 = vunpack.i.l.bf16 %v28102_v6  ;;  %v21470_v55 = vpack.c.bf16 %v17938_v18, %v17934_v14  ;;  %v23084_v40 = vunpack.i.h.bf16 %v28102_v6  ;;  %v17962_v14 = vld [vmem:[%s29312_s5 + $0x4e8] sm:$0xff] }
 0x8f1   :  { %v28115_v60 = vmax.f32 %v27792_v31, %v17646_v47  ;;  %v23100_v32 = vpack.i.bf16 %v28096_v21, %v28099_v3  ;;  %v17953_v47 = vld [vmem:[%s29312_s5 + $0x4a0] sm:$0xff] }
 0x8f2   :  { %17621 = vrot.lane.b32.xlu0 %v28070_v27, %s23253_s26  ;;  %v17647_v29 = vsel %vm760_vm3, %v23079_v39, %v23083_v59  ;;  %21471 = vmatprep.subr.bf16.mxu0 %v21470_v55  ;;  %v17645_v1 = vsel %vm760_vm3, %v23084_v40, %v23078_v38 }
 0x8f3   :  { %v28122_v9 = vmax.f32 %v27794_v61, %v17647_v29  ;;  %v28174_v25 = vmax.f32 %v27819_v20, %v17645_v1  ;;  %v21480_v29 = vpack.c.bf16 %v17953_v47, %v17949_v15 }
 0x8f4   :  { %23096 = vrot.lane.b32.xlu1 %v23095_v50, %s23261_s21 }
 0x8f5   :  { %v23105_v34 = vpack.i.bf16 %v28122_v9, %v28115_v60 }
 0x8f6   :  { %23091 = vrot.lane.b32.xlu0 %v23090_v12, %s23261_s21  ;;  %v17958_v12 = vld [vmem:[%s29312_s5 + $0x4c8] sm:$0xff] }
 0x8f8   :  { %23106 = vrot.lane.b32.xlu1 %v23105_v34, %s23261_s21  ;;  %v17961_v34 = vld [vmem:[%s29312_s5 + $0x4e0] sm:$0xff] }
 0x8fa   :  { %23101 = vrot.lane.b32.xlu0 %v23100_v32, %s23261_s21  ;;  %v21482_v32 = vpack.c.bf16 %v17962_v14, %v17958_v12  ;;  %v17985_v14 = vld [vmem:[%s29312_s5 + $0x5a0] sm:$0xff] }
 0x95a   :  { %v17710_v31 = vpop.permute.xlu1 %17709 }
 0x95c   :  { %v28131_v11 = vpop.permute.xlu0 %23086 }
 0x95d   :  { %v23089_v13 = vunpack.i.h.bf16 %v28131_v11  ;;  %v23088_v61 = vunpack.i.l.bf16 %v28131_v11 }
 0x95e   :  { %v17612_v62 = vpop.permute.xlu1 %17611 }
 0x95f   :  { %v17749_v41 = vsel %vm3690_vm11, %v17710_v31, %v23088_v61  ;;  %v17750_v19 = vsel %vm3690_vm11, %v23088_v61, %v23089_v13  ;;  %v17640_v39 = vsel %vm760_vm3, %v23063_v53, %v17612_v62  ;;  %v28195_v38 = vmax.f32 %v28044_v44, %v17612_v62  ;;  %v17957_v44 = vld [vmem:[%s29312_s5 + $0x4c0] sm:$0xff]  ;;  %v17966_v31 = vld [vmem:[%s29312_s5 + $0x508] sm:$0xff] }
 0x960   :  { %v28153_v5 = vmax.f32 %v28031_v49, %v17749_v41  ;;  %v17602_v58 = vpop.permute.xlu0 %17601  ;;  %v28156_v24 = vmax.f32 %v28024_v37, %v17750_v19  ;;  %v17945_v49 = vld [vmem:[%s29312_s5 + $0x460] sm:$0xff]  ;;  %v28213_v53 = vmax.f32 %v27762_v54, %v17640_v39  ;;  %v17970_v54 = vld [vmem:[%s29312_s5 + $0x528] sm:$0xff] }
 0x961   :  { %v17636_v57 = vsel %vm760_vm3, %v23053_v33, %v17602_v58  ;;  %v28162_v30 = vmax.f32 %v28052_v0, %v17602_v58  ;;  %v17950_v33 = vld [vmem:[%s29312_s5 + $0x488] sm:$0xff]  ;;  %v21476_v2 = vpack.c.bf16 %v17945_v49, %v17941_v22  ;;  %v21486_v62 = vpack.c.bf16 %v17970_v54, %v17966_v31 }
 0x962   :  { %v28171_v37 = vmax.f32 %v27733_v26, %v17636_v57  ;;  %v17632_v36 = vpop.permute.xlu1 %17631  ;;  %18163 = vmatprep.mubr.f32.mxu0 %v28156_v24  ;;  %v17954_v0 = vld [vmem:[%s29312_s5 + $0x4a8] sm:$0xff] }
 0x963   :  { %18164 = vmatmul.mubr.f32.vlgmr.msra.gmra.mrb[24].mxu0 %v28153_v5  ;;  %17717 = vrot.lane.b32.xlu1 %v28162_v30, %s23261_s21  ;;  %v21478_v50 = vpack.c.bf16 %v17954_v0, %v17950_v33  ;;  %v17648_v7 = vsel %vm760_vm3, %v23083_v59, %v17632_v36  ;;  %v28257_v58 = vmax.f32 %v28064_v16, %v17632_v36  ;;  %v17974_v16 = vld [vmem:[%s29312_s5 + $0x548] sm:$0xff] }
 0x964   :  { %v23110_v26 = vpack.i.bf16 %v28171_v37, %v28174_v25  ;;  %v17622_v20 = vpop.permute.xlu0 %17621  ;;  %21473 = vmatpush1.bf16.msra.mxu0 %v21472_v51  ;;  %v17978_v57 = vld [vmem:[%s29312_s5 + $0x568] sm:$0xff]  ;;  %v28288_v33 = vmax.f32 %v27821_v63, %v17648_v7  ;;  %v17973_v63 = vld [vmem:[%s29312_s5 + $0x540] sm:$0xff] }
 0x965   :  { %21475 = vmatprep.subr.bf16.mxu0 %v21474_v17  ;;  %v17644_v18 = vsel %vm760_vm3, %v23073_v46, %v17622_v20  ;;  %v28230_v10 = vmax.f32 %v28070_v27, %v17622_v20  ;;  %v21484_v27 = vpack.c.bf16 %v17961_v34, %v17957_v44  ;;  %v21490_v15 = vpack.c.bf16 %v17978_v57, %v17974_v16  ;;  %v17982_v39 = vld [vmem:[%s29312_s5 + $0x588] sm:$0xff]  ;;  %v17993_v34 = vld [vmem:[%s29312_s5 + $0x5e0] sm:$0xff] }
 0x966   :  { %v23097_v35 = vpop.permute.xlu1 %23096  ;;  %23111 = vrot.lane.b32.xlu0 %v23110_v26, %s23261_s21  ;;  %v28246_v52 = vmax.f32 %v27779_v45, %v17644_v18  ;;  %v17965_v45 = vld [vmem:[%s29312_s5 + $0x500] sm:$0xff]  ;;  %v17994_v44 = vld [vmem:[%s29312_s5 + $0x5e8] sm:$0xff]  ;;  %vm18086_vm3 = vcmask 1040384  }
 0x967   :  { %17727 = vrot.lane.b32.xlu1 %v28195_v38, %s23261_s21  ;;  %v23098_v46 = vunpack.i.l.bf16 %v23097_v35  ;;  %v23099_v51 = vunpack.i.h.bf16 %v23097_v35  ;;  %v17990_v35 = vld [vmem:[%s29312_s5 + $0x5c8] sm:$0xff] }
 0x968   :  { %v28218_v55 = vpop.permute.xlu0 %23091  ;;  %21477 = vmatpush1.bf16.msra.mxu0 %v21476_v2  ;;  %v17998_v31 = vld [vmem:[%s29312_s5 + $0x608] sm:$0xff] }
 0x969   :  { %v23094_v40 = vunpack.i.h.bf16 %v28218_v55  ;;  %v23093_v61 = vunpack.i.l.bf16 %v28218_v55  ;;  %21479 = vmatprep.subr.bf16.mxu0 %v21478_v50  ;;  %v17986_v50 = vld [vmem:[%s29312_s5 + $0x5a8] sm:$0xff] }
 0x96a   :  { %17725 = vrot.lane.b32.xlu0 %v28213_v53, %s23261_s21  ;;  %v21494_v12 = vpack.c.bf16 %v17986_v50, %v17982_v39  ;;  %v18002_v54 = vld [vmem:[%s29312_s5 + $0x628] sm:$0xff]  ;;  %v18021_v39 = vld [vmem:[%s29312_s5 + $0x6c0] sm:$0xff] }
 0x96b   :  { %17737 = vrot.lane.b32.xlu1 %v28230_v10, %s23261_s21  ;;  %v17754_v28 = vsel %vm3690_vm11, %v23093_v61, %v23094_v40  ;;  %v17753_v48 = vsel %vm3690_vm11, %v23098_v46, %v23093_v61  ;;  %v21502_v61 = vpack.c.bf16 %v18002_v54, %v17998_v31  ;;  %v18018_v16 = vld [vmem:[%s29312_s5 + $0x6a8] sm:$0xff]  ;;  %v18025_v50 = vld [vmem:[%s29312_s5 + $0x6e0] sm:$0xff] }
 0x96c   :  { %v28248_v1 = vpop.permute.xlu0 %23101  ;;  %v28251_v41 = vmax.f32 %v28074_v42, %v17754_v28  ;;  %v28254_v19 = vmax.f32 %v28077_v4, %v17753_v48  ;;  %21481 = vmatpush1.bf16.msra.mxu0 %v21480_v29  ;;  %v17969_v42 = vld [vmem:[%s29312_s5 + $0x520] sm:$0xff]  ;;  %v28267_v4 = vpop.permute.xlu1 %23106  ;;  %v21498_v29 = vpack.c.bf16 %v17994_v44, %v17990_v35 }
 0x96d   :  { %v23104_v6 = vunpack.i.h.bf16 %v28248_v1  ;;  %v23103_v59 = vunpack.i.l.bf16 %v28248_v1  ;;  %21483 = vmatprep.subr.bf16.mxu0 %v21482_v32  ;;  %v23109_v17 = vunpack.i.h.bf16 %v28267_v4  ;;  %v23108_v22 = vunpack.i.l.bf16 %v28267_v4  ;;  %v17989_v32 = vld [vmem:[%s29312_s5 + $0x5c0] sm:$0xff]  ;;  %v17811_v4 = vld [vmem:[%s29312_s5 + $0x30] sm:$0xff] }
 0x96e   :  { %18169 = vmatprep.mubr.f32.mxu0 %v28251_v41  ;;  %17735 = vrot.lane.b32.xlu0 %v28246_v52, %s23261_s21  ;;  %v21488_v20 = vpack.c.bf16 %v17969_v42, %v17965_v45  ;;  %v21500_v46 = vpack.c.bf16 %v17993_v34, %v17989_v32  ;;  %v17997_v28 = vld [vmem:[%s29312_s5 + $0x600] sm:$0xff]  ;;  %v18014_v42 = vld [vmem:[%s29312_s5 + $0x688] sm:$0xff] }
 0x96f   :  { %18170 = vmatmul.mubr.f32.gmra.mrb[26].mxu0 %v28254_v19  ;;  %17747 = vrot.lane.b32.xlu1 %v28257_v58, %s23261_s21  ;;  %v17758_v49 = vsel %vm3690_vm11, %v23099_v51, %v23103_v59  ;;  %v17757_v36 = vsel %vm3690_vm11, %v23104_v6, %v23099_v51  ;;  %v17762_v2 = vsel %vm3690_vm11, %v23108_v22, %v23109_v17  ;;  %v18001_v48 = vld [vmem:[%s29312_s5 + $0x620] sm:$0xff] }
 0x970   :  { %v28291_v0 = vmax.f32 %v28083_v8, %v17758_v49  ;;  %v28294_v26 = vmax.f32 %v28096_v21, %v17757_v36  ;;  %21485 = vmatpush1.bf16.msra.mxu0 %v21484_v27  ;;  %v17977_v8 = vld [vmem:[%s29312_s5 + $0x560] sm:$0xff]  ;;  %v28311_v21 = vmax.f32 %v28115_v60, %v17762_v2  ;;  %v18006_v27 = vld [vmem:[%s29312_s5 + $0x648] sm:$0xff]  ;;  %v21504_v7 = vpack.c.bf16 %v18001_v48, %v17997_v28 }
 0x971   :  { %21487 = vmatprep.subr.bf16.mxu0 %v21486_v62  ;;  %v21492_v47 = vpack.c.bf16 %v17977_v8, %v17973_v63  ;;  %v17981_v60 = vld [vmem:[%s29312_s5 + $0x580] sm:$0xff]  ;;  %v18010_v62 = vld [vmem:[%s29312_s5 + $0x668] sm:$0xff]  ;;  %v21510_v49 = vpack.c.bf16 %v18018_v16, %v18014_v42 }
 0x972   :  { %18175 = vmatprep.mubr.f32.mxu0 %v28291_v0  ;;  %17745 = vrot.lane.b32.xlu0 %v28288_v33, %s23261_s21  ;;  %v21496_v18 = vpack.c.bf16 %v17985_v14, %v17981_v60  ;;  %v21506_v51 = vpack.c.bf16 %v18010_v62, %v18006_v27  ;;  %v18005_v6 = vld [vmem:[%s29312_s5 + $0x640] sm:$0xff]  ;;  %v18022_v2 = vld [vmem:[%s29312_s5 + $0x6c8] sm:$0xff]  ;;  %v21516_v60 = vpack.c.bf16 %v18025_v50, %v18021_v39 }
 0x973   :  { %18176 = vmatmul.mubr.f32.gmra.mrb[28].mxu0 %v28294_v26  ;;  %v18009_v45 = vld [vmem:[%s29312_s5 + $0x660] sm:$0xff] }
 0x974   :  { %18181 = vmatprep.mubr.f32.mxu0 %v28311_v21  ;;  %21489 = vmatpush1.bf16.msra.mxu0 %v21488_v20  ;;  %v21508_v57 = vpack.c.bf16 %v18009_v45, %v18005_v6  ;;  %v18013_v36 = vld [vmem:[%s29312_s5 + $0x680] sm:$0xff] }
 0x975   :  { %21491 = vmatprep.subr.bf16.mxu0 %v21490_v15  ;;  %v18017_v20 = vld [vmem:[%s29312_s5 + $0x6a0] sm:$0xff]  ;;  %v18026_v15 = vld [vmem:[%s29312_s5 + $0x6e8] sm:$0xff] }
 0x976   :  { %v21512_v63 = vpack.c.bf16 %v18017_v20, %v18013_v36  ;;  %v21514_v8 = vpack.c.bf16 %v18026_v15, %v18022_v2  ;;  %v18029_v35 = vld [vmem:[%s29312_s5 + $0x700] sm:$0xff] }
 0x977   :  { %v18033_v44 = vld [vmem:[%s29312_s5 + $0x720] sm:$0xff] }
 0x978   :  { %21493 = vmatpush1.bf16.msra.mxu0 %v21492_v47  ;;  %v18030_v47 = vld [vmem:[%s29312_s5 + $0x708] sm:$0xff]  ;;  %v21520_v32 = vpack.c.bf16 %v18033_v44, %v18029_v35  ;;  %v18037_v31 = vld [vmem:[%s29312_s5 + $0x740] sm:$0xff] }
 0x979   :  { %21495 = vmatprep.subr.bf16.mxu0 %v21494_v12  ;;  %v18034_v12 = vld [vmem:[%s29312_s5 + $0x728] sm:$0xff]  ;;  %v18041_v54 = vld [vmem:[%s29312_s5 + $0x760] sm:$0xff] }
 0x97a   :  { %v21518_v14 = vpack.c.bf16 %v18034_v12, %v18030_v47  ;;  %v21524_v28 = vpack.c.bf16 %v18041_v54, %v18037_v31  ;;  %v18045_v27 = vld [vmem:[%s29312_s5 + $0x780] sm:$0xff]  ;;  %v17808_v31 = vld [vmem:[%s29312_s5 + $0x18] sm:$0xff] }
 0x97b   :  { %v18049_v62 = vld [vmem:[%s29312_s5 + $0x7a0] sm:$0xff] }
 0x97c   :  { %21497 = vmatpush1.bf16.msra.mxu0 %v21496_v18  ;;  %v18038_v18 = vld [vmem:[%s29312_s5 + $0x748] sm:$0xff]  ;;  %v21528_v6 = vpack.c.bf16 %v18049_v62, %v18045_v27  ;;  %v18053_v42 = vld [vmem:[%s29312_s5 + $0x7c0] sm:$0xff] }
 0x97d   :  { %21499 = vmatprep.subr.bf16.mxu0 %v21498_v29  ;;  %v18042_v29 = vld [vmem:[%s29312_s5 + $0x768] sm:$0xff]  ;;  %v18057_v16 = vld [vmem:[%s29312_s5 + $0x7e0] sm:$0xff] }
 0x97e   :  { %v21522_v34 = vpack.c.bf16 %v18042_v29, %v18038_v18  ;;  %v21532_v36 = vpack.c.bf16 %v18057_v16, %v18053_v42  ;;  %v18061_v35 = vld [vmem:[%s29312_s5 + $0x800] sm:$0xff]  ;;  %v17828_v42 = vld [vmem:[%s29312_s5 + $0xb8] sm:$0xff] }
 0x97f   :  { %v18065_v44 = vld [vmem:[%s29312_s5 + $0x820] sm:$0xff] }
 0x980   :  { %21501 = vmatpush1.bf16.msra.mxu0 %v21500_v46  ;;  %v18046_v46 = vld [vmem:[%s29312_s5 + $0x788] sm:$0xff]  ;;  %v18069_v54 = vld [vmem:[%s29312_s5 + $0x840] sm:$0x1] }
 0x981   :  { %21503 = vmatprep.subr.bf16.mxu0 %v21502_v61  ;;  %v18050_v61 = vld [vmem:[%s29312_s5 + $0x7a8] sm:$0xff] }
 0x982   :  { %v21526_v48 = vpack.c.bf16 %v18050_v61, %v18046_v46 }
 0x984   :  { %21505 = vmatpush1.bf16.msra.mxu0 %v21504_v7  ;;  %v18054_v7 = vld [vmem:[%s29312_s5 + $0x7c8] sm:$0xff] }
 0x985   :  { %21507 = vmatprep.subr.bf16.mxu0 %v21506_v51  ;;  %v18058_v51 = vld [vmem:[%s29312_s5 + $0x7e8] sm:$0xff] }
 0x986   :  { %v21530_v45 = vpack.c.bf16 %v18058_v51, %v18054_v7  ;;  %v17815_v51 = vld [vmem:[%s29312_s5 + $0x50] sm:$0xff] }
 0x988   :  { %21509 = vmatpush1.bf16.msra.mxu0 %v21508_v57  ;;  %v18062_v57 = vld [vmem:[%s29312_s5 + $0x808] sm:$0xff] }
 0x989   :  { %21511 = vmatprep.subr.bf16.mxu0 %v21510_v49  ;;  %v18066_v49 = vld [vmem:[%s29312_s5 + $0x828] sm:$0xff] }
 0x98a   :  { %v21534_v20 = vpack.c.bf16 %v18066_v49, %v18062_v57  ;;  %v17823_v49 = vld [vmem:[%s29312_s5 + $0x90] sm:$0xff] }
 0x98c   :  { %21513 = vmatpush1.bf16.msra.mxu0 %v21512_v63 }
 0x98d   :  { %21515 = vmatprep.subr.bf16.mxu0 %v21514_v8 }
 0x990   :  { %21517 = vmatpush1.bf16.msra.mxu0 %v21516_v60 }
 0x991   :  { %21519 = vmatprep.subr.bf16.mxu0 %v21518_v14 }
 0x994   :  { %21521 = vmatpush1.bf16.msra.mxu0 %v21520_v32 }
 0x995   :  { %21523 = vmatprep.subr.bf16.mxu0 %v21522_v34  ;;  %v18070_v34 = vld [vmem:[%s29312_s5 + $0x848] sm:$0x1] }
 0x998   :  { %21525 = vmatpush1.bf16.msra.mxu0 %v21524_v28 }
 0x999   :  { %21527 = vmatprep.subr.bf16.mxu0 %v21526_v48 }
 0x99c   :  { %21529 = vmatpush1.bf16.msra.mxu0 %v21528_v6  ;;  %v17819_v6 = vld [vmem:[%s29312_s5 + $0x70] sm:$0xff] }
 0x99d   :  { %21531 = vmatprep.subr.bf16.mxu0 %v21530_v45  ;;  %v17824_v45 = vld [vmem:[%s29312_s5 + $0x98] sm:$0xff] }
 0x99e   :  { %v21546_v57 = vpack.c.bf16 %v17828_v42, %v17824_v45 }
 0x9a0   :  { %21533 = vmatpush1.bf16.msra.mxu0 %v21532_v36  ;;  %v17827_v36 = vld [vmem:[%s29312_s5 + $0xb0] sm:$0xff] }
 0x9a1   :  { %21535 = vmatprep.subr.bf16.mxu0 %v21534_v20  ;;  %v17832_v20 = vld [vmem:[%s29312_s5 + $0xd8] sm:$0xff] }
 0x9d5   :  { %v17718_v2 = vpop.permute.xlu1 %17717 }
 0x9d6   :  { %v28536_v62 = vmax.f32 %v28162_v30, %v17718_v2  ;;  %v21544_v30 = vpack.c.bf16 %v17819_v6, %v17815_v51  ;;  %v17880_v51 = vld [vmem:[%s29312_s5 + $0x258] sm:$0xff] }
 0x9d7   :  { %v17884_v6 = vld [vmem:[%s29312_s5 + $0x278] sm:$0xff] }
 0x9d8   :  { %v23112_v15 = vpop.permute.xlu0 %23111  ;;  %v21574_v42 = vpack.c.bf16 %v17884_v6, %v17880_v51 }
 0x9d9   :  { %v23114_v63 = vunpack.i.h.bf16 %v23112_v15  ;;  %v23113_v8 = vunpack.i.l.bf16 %v23112_v15  ;;  %v28441_v39 = vpop.permute.xlu1 %17727 }
 0x9da   :  { %v28555_v16 = vmax.f32 %v28195_v38, %v28441_v39  ;;  %v21548_v38 = vpack.c.bf16 %v17827_v36, %v17823_v49  ;;  %v17888_v49 = vld [vmem:[%s29312_s5 + $0x298] sm:$0xff] }
 0x9db   :  { %v17761_v50 = vsel %vm3690_vm11, %v23113_v8, %v23108_v22  ;;  %v17752_v47 = vsel %vm3690_vm11, %v23114_v63, %v17718_v2  ;;  %v17751_v22 = vsel %vm3690_vm11, %v23089_v13, %v23114_v63  ;;  %v17836_v2 = vld [vmem:[%s29312_s5 + $0xf8] sm:$0xff]  ;;  %v17831_v8 = vld [vmem:[%s29312_s5 + $0xd0] sm:$0xff] }
 0x9dc   :  { %v17726_v12 = vpop.permute.xlu0 %17725  ;;  %v28448_v60 = vmax.f32 %v28174_v25, %v17761_v50  ;;  %v28451_v14 = vmax.f32 %v28171_v37, %v17752_v47  ;;  %v21536_v37 = vpack.c.bf16 %v18065_v44, %v18061_v35  ;;  %v28469_v29 = vmax.f32 %v28034_v23, %v17751_v22  ;;  %v17812_v23 = vld [vmem:[%s29312_s5 + $0x38] sm:$0xff]  ;;  %v17839_v44 = vld [vmem:[%s29312_s5 + $0x110] sm:$0xff] }
 0x9dd   :  { %v17756_v18 = vsel %vm3690_vm11, %v17726_v12, %v28441_v39  ;;  %v28465_v25 = vpop.permute.xlu1 %17737  ;;  %v17755_v11 = vsel %vm3690_vm11, %v23094_v40, %v17726_v12  ;;  %v21538_v46 = vpack.c.bf16 %v17812_v23, %v17808_v31  ;;  %v21550_v63 = vpack.c.bf16 %v17836_v2, %v17832_v20  ;;  %v17835_v39 = vld [vmem:[%s29312_s5 + $0xf0] sm:$0xff]  ;;  %v17840_v50 = vld [vmem:[%s29312_s5 + $0x118] sm:$0xff] }
 0x9de   :  { %18182 = vmatmul.mubr.f32.gmra.mrb[30].mxu0 %v28448_v60  ;;  %v28475_v13 = vmax.f32 %v28213_v53, %v17756_v18  ;;  %v28491_v53 = vmax.f32 %v28080_v43, %v17755_v11  ;;  %v28574_v15 = vmax.f32 %v28230_v10, %v28465_v25  ;;  %v17844_v47 = vld [vmem:[%s29312_s5 + $0x138] sm:$0xff]  ;;  %v21552_v10 = vpack.c.bf16 %v17835_v39, %v17831_v8  ;;  %v17843_v22 = vld [vmem:[%s29312_s5 + $0x130] sm:$0xff] }
 0x9df   :  { %18252 = vmatprep.mubr.f32.mxu0 %v28451_v14  ;;  %v21554_v35 = vpack.c.bf16 %v17844_v47, %v17840_v50  ;;  %v17848_v18 = vld [vmem:[%s29312_s5 + $0x158] sm:$0xff]  ;;  %v17851_v11 = vld [vmem:[%s29312_s5 + $0x170] sm:$0xff] }
 0x9e0   :  { %v17736_v32 = vpop.permute.xlu0 %17735  ;;  %v17860_v31 = vld [vmem:[%s29312_s5 + $0x1b8] sm:$0xff] }
 0x9e1   :  { %v17760_v55 = vsel %vm3690_vm11, %v17736_v32, %v28465_v25  ;;  %v17759_v61 = vsel %vm3690_vm11, %v23103_v59, %v17736_v32  ;;  %v17748_v48 = vpop.permute.xlu1 %17747  ;;  %v17852_v25 = vld [vmem:[%s29312_s5 + $0x178] sm:$0xff]  ;;  %v17847_v32 = vld [vmem:[%s29312_s5 + $0x150] sm:$0xff] }
 0x9e2   :  { %18253 = vmatmul.mubr.f32.vlgmr.msra.gmra.mrb[24].mxu0 %v28469_v29  ;;  %v28501_v28 = vmax.f32 %v28246_v52, %v17760_v55  ;;  %v28508_v43 = vmax.f32 %v28099_v3, %v17759_v61  ;;  %v17807_v3 = vld [vmem:[%s29312_s5 + $0x10] sm:$0xff]  ;;  %v28592_v12 = vmax.f32 %v28257_v58, %v17748_v48  ;;  %v21556_v58 = vpack.c.bf16 %v17843_v22, %v17839_v44  ;;  %v17892_v36 = vld [vmem:[%s29312_s5 + $0x2b8] sm:$0xff] }
 0x9e3   :  { %18258 = vmatprep.mubr.f32.mxu0 %v28475_v13  ;;  %21537 = vmatpush1.bf16.msra.mxu0 %v21536_v37  ;;  %v21558_v37 = vpack.c.bf16 %v17852_v25, %v17848_v18  ;;  %v17855_v55 = vld [vmem:[%s29312_s5 + $0x190] sm:$0xff]  ;;  %v21578_v2 = vpack.c.bf16 %v17892_v36, %v17888_v49  ;;  %v17896_v8 = vld [vmem:[%s29312_s5 + $0x2d8] sm:$0xff] }
 0x9e4   :  { %v17746_v40 = vpop.permute.xlu0 %17745  ;;  %20212 = vmatprep.subr.msk.mxu0 %vm18086_vm3, %v18070_v34  ;;  %v17856_v34 = vld [vmem:[%s29312_s5 + $0x198] sm:$0xff] }
 0x9e5   :  { %v17764_v27 = vsel %vm3690_vm11, %v17746_v40, %v17748_v48  ;;  %v17763_v1 = vsel %vm3690_vm11, %v23109_v17, %v17746_v40  ;;  %v17816_v17 = vld [vmem:[%s29312_s5 + $0x58] sm:$0xff]  ;;  %vm18073_vm11 = vcmask 138240   ;;  %v21562_v23 = vpack.c.bf16 %v17860_v31, %v17856_v34  ;;  %v17859_v40 = vld [vmem:[%s29312_s5 + $0x1b0] sm:$0xff] }
 0x9e6   :  { %18259 = vmatmul.mubr.f32.gmra.mrb[26].mxu0 %v28491_v53  ;;  %v28514_v52 = vmax.f32 %v28288_v33, %v17764_v27  ;;  %v28519_v59 = vmax.f32 %v28122_v9, %v17763_v1  ;;  %v17820_v33 = vld [vmem:[%s29312_s5 + $0x78] sm:$0xff]  ;;  %v21540_v9 = vpack.c.bf16 %v17811_v4, %v17807_v3  ;;  %v21564_v61 = vpack.c.bf16 %v17859_v40, %v17855_v55  ;;  %v17863_v27 = vld [vmem:[%s29312_s5 + $0x1d0] sm:$0xff] }
 0x9e7   :  { %18264 = vmatprep.mubr.f32.mxu0 %v28501_v28  ;;  %20213 = vmatpush1.msk.msra.mxu0 %vm18086_vm3, %v18069_v54  ;;  %v21542_v7 = vpack.c.bf16 %v17820_v33, %v17816_v17  ;;  %v17864_v54 = vld [vmem:[%s29312_s5 + $0x1d8] sm:$0xff]  ;;  %v17867_v1 = vld [vmem:[%s29312_s5 + $0x1f0] sm:$0xff] }
 0x9e8   :  { %21539 = vmatprep.subr.bf16.mxu0 %v21538_v46  ;;  %v17868_v46 = vld [vmem:[%s29312_s5 + $0x1f8] sm:$0xff]  ;;  %v21568_v17 = vpack.c.bf16 %v17867_v1, %v17863_v27 }
 0x9e9   :  { %v21566_v48 = vpack.c.bf16 %v17868_v46, %v17864_v54  ;;  %v17872_v3 = vld [vmem:[%s29312_s5 + $0x218] sm:$0xff] }
 0x9ea   :  { %18265 = vmatmul.mubr.f32.gmra.mrb[28].mxu0 %v28508_v43  ;;  %v17876_v4 = vld [vmem:[%s29312_s5 + $0x238] sm:$0xff] }
 0x9eb   :  { %18270 = vmatprep.mubr.f32.mxu0 %v28514_v52  ;;  %v21570_v33 = vpack.c.bf16 %v17876_v4, %v17872_v3  ;;  %v17900_v39 = vld [vmem:[%s29312_s5 + $0x2f8] sm:$0xff] }
 0x9ec   :  { %v21582_v47 = vpack.c.bf16 %v17900_v39, %v17896_v8  ;;  %v17904_v44 = vld [vmem:[%s29312_s5 + $0x318] sm:$0xff] }
 0x9ed   :  { %v17908_v22 = vld [vmem:[%s29312_s5 + $0x338] sm:$0xff] }
 0x9ee   :  { %18271 = vmatmul.mubr.f32.gmra.mrb[30].mxu0 %v28519_v59  ;;  %v21586_v25 = vpack.c.bf16 %v17908_v22, %v17904_v44  ;;  %v17920_v55 = vld [vmem:[%s29312_s5 + $0x398] sm:$0xff]  ;;  %v17959_v44 = vld [vmem:[%s29312_s5 + $0x4d0] sm:$0xff] }
 0x9ef   :  { %18341 = vmatprep.mubr.f32.mxu0 %v29414_v56  ;;  %v17924_v40 = vld [vmem:[%s29312_s5 + $0x3b8] sm:$0xff]  ;;  %v17963_v22 = vld [vmem:[%s29312_s5 + $0x4f0] sm:$0xff] }
 0x9f0   :  { %v21594_v46 = vpack.c.bf16 %v17924_v40, %v17920_v55  ;;  %v17928_v27 = vld [vmem:[%s29312_s5 + $0x3d8] sm:$0xff]  ;;  %v17983_v55 = vld [vmem:[%s29312_s5 + $0x590] sm:$0xff] }
 0x9f1   :  { %v17932_v1 = vld [vmem:[%s29312_s5 + $0x3f8] sm:$0xff]  ;;  %v17987_v40 = vld [vmem:[%s29312_s5 + $0x5b0] sm:$0xff] }
 0x9f2   :  { %20214 = vmatmul.mubr.msk.f32.vlgmr.msra.gmra.mrb[24].mxu0 %vm18073_vm11, %v28536_v62  ;;  %v21598_v4 = vpack.c.bf16 %v17932_v1, %v17928_v27  ;;  %v17991_v27 = vld [vmem:[%s29312_s5 + $0x5d0] sm:$0xff] }
 0x9f3   :  { %21541 = vmatpush1.bf16.msra.mxu0 %v21540_v9  ;;  %18347 = vmatprep.mubr.f32.mxu0 %v29414_v56  ;;  %v17871_v9 = vld [vmem:[%s29312_s5 + $0x210] sm:$0xff] }
 0x9f4   :  { %21543 = vmatprep.subr.bf16.mxu0 %v21542_v7  ;;  %v17875_v7 = vld [vmem:[%s29312_s5 + $0x230] sm:$0xff] }
 0x9f5   :  { %v21572_v45 = vpack.c.bf16 %v17875_v7, %v17871_v9  ;;  %v17936_v9 = vld [vmem:[%s29312_s5 + $0x418] sm:$0xff]  ;;  %v17995_v1 = vld [vmem:[%s29312_s5 + $0x5f0] sm:$0xff] }
 0x9f6   :  { %20215 = vmatmul.mubr.msk.f32.gmra.mrb[26].mxu0 %vm18073_vm11, %v28555_v16  ;;  %v17940_v7 = vld [vmem:[%s29312_s5 + $0x438] sm:$0xff] }
 0x9f7   :  { %21545 = vmatpush1.bf16.msra.mxu0 %v21544_v30  ;;  %18353 = vmatprep.mubr.f32.mxu0 %v29414_v56  ;;  %v17879_v30 = vld [vmem:[%s29312_s5 + $0x250] sm:$0xff]  ;;  %v21602_v6 = vpack.c.bf16 %v17940_v7, %v17936_v9 }
 0x9f8   :  { %21547 = vmatprep.subr.bf16.mxu0 %v21546_v57  ;;  %v17883_v57 = vld [vmem:[%s29312_s5 + $0x270] sm:$0xff] }
 0x9f9   :  { %v21576_v20 = vpack.c.bf16 %v17883_v57, %v17879_v30  ;;  %v17944_v30 = vld [vmem:[%s29312_s5 + $0x458] sm:$0xff]  ;;  %v17999_v9 = vld [vmem:[%s29312_s5 + $0x610] sm:$0xff] }
 0x9fa   :  { %20216 = vmatmul.mubr.msk.f32.gmra.mrb[28].mxu0 %vm18073_vm11, %v28574_v15  ;;  %v17948_v57 = vld [vmem:[%s29312_s5 + $0x478] sm:$0xff]  ;;  %v18003_v7 = vld [vmem:[%s29312_s5 + $0x630] sm:$0xff] }
 0x9fb   :  { %21549 = vmatpush1.bf16.msra.mxu0 %v21548_v38  ;;  %18359 = vmatprep.mubr.f32.mxu0 %v29414_v56  ;;  %v17887_v38 = vld [vmem:[%s29312_s5 + $0x290] sm:$0xff]  ;;  %v21606_v36 = vpack.c.bf16 %v17948_v57, %v17944_v30 }
 0x9fc   :  { %21551 = vmatprep.subr.bf16.mxu0 %v21550_v63  ;;  %v17891_v63 = vld [vmem:[%s29312_s5 + $0x2b0] sm:$0xff] }
 0x9fd   :  { %v21580_v50 = vpack.c.bf16 %v17891_v63, %v17887_v38  ;;  %v17952_v38 = vld [vmem:[%s29312_s5 + $0x498] sm:$0xff]  ;;  %v18007_v30 = vld [vmem:[%s29312_s5 + $0x650] sm:$0xff] }
 0x9fe   :  { %20217 = vmatmul.mubr.msk.f32.gmra.mrb[30].mxu0 %vm18073_vm11, %v28592_v12  ;;  %v17956_v63 = vld [vmem:[%s29312_s5 + $0x4b8] sm:$0xff]  ;;  %v18011_v57 = vld [vmem:[%s29312_s5 + $0x670] sm:$0xff] }
 0x9ff   :  { %21553 = vmatpush1.bf16.msra.mxu0 %v21552_v10  ;;  %18430 = vmatprep.mubr.f32.mxu0 %v28156_v24  ;;  %v21560_v24 = vpack.c.bf16 %v17851_v11, %v17847_v32  ;;  %v17895_v10 = vld [vmem:[%s29312_s5 + $0x2d0] sm:$0xff]  ;;  %v17912_v32 = vld [vmem:[%s29312_s5 + $0x358] sm:$0xff]  ;;  %v21610_v39 = vpack.c.bf16 %v17956_v63, %v17952_v38 }
 0xa00   :  { %21555 = vmatprep.subr.bf16.mxu0 %v21554_v35  ;;  %v17899_v35 = vld [vmem:[%s29312_s5 + $0x2f0] sm:$0xff]  ;;  %v17916_v11 = vld [vmem:[%s29312_s5 + $0x378] sm:$0xff] }
 0xa01   :  { %v21584_v18 = vpack.c.bf16 %v17899_v35, %v17895_v10  ;;  %v21590_v31 = vpack.c.bf16 %v17916_v11, %v17912_v32  ;;  %v17960_v10 = vld [vmem:[%s29312_s5 + $0x4d8] sm:$0xff]  ;;  %v18015_v38 = vld [vmem:[%s29312_s5 + $0x690] sm:$0xff] }
 0xa02   :  { %v17976_v32 = vld [vmem:[%s29312_s5 + $0x558] sm:$0xff]  ;;  %v18019_v63 = vld [vmem:[%s29312_s5 + $0x6b0] sm:$0xff] }
 0xa03   :  { %21557 = vmatpush1.bf16.msra.mxu0 %v21556_v58  ;;  %v17903_v58 = vld [vmem:[%s29312_s5 + $0x310] sm:$0xff] }
 0xa04   :  { %21559 = vmatprep.subr.bf16.mxu0 %v21558_v37  ;;  %v17907_v37 = vld [vmem:[%s29312_s5 + $0x330] sm:$0xff] }
 0xa05   :  { %v21588_v34 = vpack.c.bf16 %v17907_v37, %v17903_v58  ;;  %v17967_v58 = vld [vmem:[%s29312_s5 + $0x510] sm:$0xff] }
 0xa06   :  { %v17971_v37 = vld [vmem:[%s29312_s5 + $0x530] sm:$0xff] }
 0xa07   :  { %21561 = vmatpush1.bf16.msra.mxu0 %v21560_v24  ;;  %v17911_v24 = vld [vmem:[%s29312_s5 + $0x350] sm:$0xff] }
 0xa08   :  { %21563 = vmatprep.subr.bf16.mxu0 %v21562_v23  ;;  %v17915_v23 = vld [vmem:[%s29312_s5 + $0x370] sm:$0xff] }
 0xa09   :  { %v21592_v54 = vpack.c.bf16 %v17915_v23, %v17911_v24  ;;  %v17984_v24 = vld [vmem:[%s29312_s5 + $0x598] sm:$0xff] }
 0xa0b   :  { %21565 = vmatpush1.bf16.msra.mxu0 %v21564_v61  ;;  %v17919_v61 = vld [vmem:[%s29312_s5 + $0x390] sm:$0xff] }
 0xa0c   :  { %21567 = vmatprep.subr.bf16.mxu0 %v21566_v48  ;;  %v17923_v48 = vld [vmem:[%s29312_s5 + $0x3b0] sm:$0xff] }
 0xa0d   :  { %v21596_v3 = vpack.c.bf16 %v17923_v48, %v17919_v61  ;;  %v21628_v61 = vpack.c.bf16 %v17987_v40, %v17983_v55 }
 0xa0f   :  { %21569 = vmatpush1.bf16.msra.mxu0 %v21568_v17  ;;  %v17927_v17 = vld [vmem:[%s29312_s5 + $0x3d0] sm:$0xff] }
 0xa10   :  { %21571 = vmatprep.subr.bf16.mxu0 %v21570_v33  ;;  %v17931_v33 = vld [vmem:[%s29312_s5 + $0x3f0] sm:$0xff] }
 0xa11   :  { %v21600_v51 = vpack.c.bf16 %v17931_v33, %v17927_v17  ;;  %v21632_v17 = vpack.c.bf16 %v17995_v1, %v17991_v27 }
 0xa13   :  { %21573 = vmatpush1.bf16.msra.mxu0 %v21572_v45  ;;  %v17935_v45 = vld [vmem:[%s29312_s5 + $0x410] sm:$0xff] }
 0xa14   :  { %21575 = vmatprep.subr.bf16.mxu0 %v21574_v42  ;;  %v17939_v42 = vld [vmem:[%s29312_s5 + $0x430] sm:$0xff] }
 0xa15   :  { %v21604_v49 = vpack.c.bf16 %v17939_v42, %v17935_v45  ;;  %v21636_v45 = vpack.c.bf16 %v18003_v7, %v17999_v9  ;;  %v18071_v9 = vld [vmem:[%s29312_s5 + $0x850] sm:$0x1] }
 0xa17   :  { %21577 = vmatpush1.bf16.msra.mxu0 %v21576_v20  ;;  %v17943_v20 = vld [vmem:[%s29312_s5 + $0x450] sm:$0xff] }
 0xa18   :  { %21579 = vmatprep.subr.bf16.mxu0 %v21578_v2  ;;  %v17947_v2 = vld [vmem:[%s29312_s5 + $0x470] sm:$0xff] }
 0xa19   :  { %v21608_v8 = vpack.c.bf16 %v17947_v2, %v17943_v20  ;;  %v21640_v20 = vpack.c.bf16 %v18011_v57, %v18007_v30  ;;  %v18642_v30 = vld [vmem:[%s29313_s6 + $0x40] sm:$0xff] }
 0xa1a   :  { %v18646_v57 = vld [vmem:[%s29313_s6 + $0x60] sm:$0xff] }
 0xa1b   :  { %21581 = vmatpush1.bf16.msra.mxu0 %v21580_v50  ;;  %v17951_v50 = vld [vmem:[%s29312_s5 + $0x490] sm:$0xff] }
 0xa1c   :  { %21583 = vmatprep.subr.bf16.mxu0 %v21582_v47  ;;  %v17955_v47 = vld [vmem:[%s29312_s5 + $0x4b0] sm:$0xff] }
 0xa1f   :  { %21585 = vmatpush1.bf16.msra.mxu0 %v21584_v18  ;;  %v17968_v18 = vld [vmem:[%s29312_s5 + $0x518] sm:$0xff] }
 0xa20   :  { %21587 = vmatprep.subr.bf16.mxu0 %v21586_v25 }
 0xa23   :  { %21589 = vmatpush1.bf16.msra.mxu0 %v21588_v34  ;;  %v17975_v34 = vld [vmem:[%s29312_s5 + $0x550] sm:$0xff] }
 0xa24   :  { %21591 = vmatprep.subr.bf16.mxu0 %v21590_v31  ;;  %v17979_v31 = vld [vmem:[%s29312_s5 + $0x570] sm:$0xff] }
 0xa27   :  { %21593 = vmatpush1.bf16.msra.mxu0 %v21592_v54  ;;  %v17992_v54 = vld [vmem:[%s29312_s5 + $0x5d8] sm:$0xff] }
 0xa28   :  { %21595 = vmatprep.subr.bf16.mxu0 %v21594_v46  ;;  %v17996_v46 = vld [vmem:[%s29312_s5 + $0x5f8] sm:$0xff] }
 0xa29   :  { %v21630_v48 = vpack.c.bf16 %v17996_v46, %v17992_v54  ;;  %v18055_v54 = vld [vmem:[%s29312_s5 + $0x7d0] sm:$0xff] }
 0xa2a   :  { %v18059_v46 = vld [vmem:[%s29312_s5 + $0x7f0] sm:$0xff] }
 0xa2b   :  { %21597 = vmatpush1.bf16.msra.mxu0 %v21596_v3  ;;  %v18000_v3 = vld [vmem:[%s29312_s5 + $0x618] sm:$0xff]  ;;  %v21664_v27 = vpack.c.bf16 %v18059_v46, %v18055_v54  ;;  %v18827_v46 = vld [vmem:[%s29315_s8 + $0x80] sm:$0xff] }
 0xa2c   :  { %21599 = vmatprep.subr.bf16.mxu0 %v21598_v4  ;;  %v18004_v4 = vld [vmem:[%s29312_s5 + $0x638] sm:$0xff] }
 0xa2d   :  { %v21634_v33 = vpack.c.bf16 %v18004_v4, %v18000_v3  ;;  %v18063_v3 = vld [vmem:[%s29312_s5 + $0x810] sm:$0xff] }
 0xa2e   :  { %v18067_v4 = vld [vmem:[%s29312_s5 + $0x830] sm:$0xff] }
 0xa2f   :  { %21601 = vmatpush1.bf16.msra.mxu0 %v21600_v51  ;;  %v18008_v51 = vld [vmem:[%s29312_s5 + $0x658] sm:$0xff] }
 0xa30   :  { %21603 = vmatprep.subr.bf16.mxu0 %v21602_v6  ;;  %v18012_v6 = vld [vmem:[%s29312_s5 + $0x678] sm:$0xff] }
 0xa31   :  { %v21638_v42 = vpack.c.bf16 %v18012_v6, %v18008_v51 }
 0xa32   :  { %18431 = vmatmul.mubr.f32.vlgmr.msra.gmra.mrb[32].mxu0 %v28153_v5  ;;  %v17964_v5 = vld [vmem:[%s29312_s5 + $0x4f8] sm:$0xff] }
 0xa33   :  { %18436 = vmatprep.mubr.f32.mxu0 %v28251_v41  ;;  %21605 = vmatpush1.bf16.msra.mxu0 %v21604_v49  ;;  %v21612_v41 = vpack.c.bf16 %v17955_v47, %v17951_v50  ;;  %v21614_v35 = vpack.c.bf16 %v17964_v5, %v17960_v10  ;;  %v18016_v49 = vld [vmem:[%s29312_s5 + $0x698] sm:$0xff]  ;;  %v21644_v50 = vpack.c.bf16 %v18019_v63, %v18015_v38  ;;  %v18023_v10 = vld [vmem:[%s29312_s5 + $0x6d0] sm:$0xff] }
 0xa34   :  { %21607 = vmatprep.subr.bf16.mxu0 %v21606_v36  ;;  %v18020_v36 = vld [vmem:[%s29312_s5 + $0x6b8] sm:$0xff]  ;;  %v18027_v5 = vld [vmem:[%s29312_s5 + $0x6f0] sm:$0xff] }
 0xa35   :  { %v21642_v2 = vpack.c.bf16 %v18020_v36, %v18016_v49  ;;  %v18643_v49 = vld [vmem:[%s29313_s6 + $0x48] sm:$0xff] }
 0xa36   :  { %18437 = vmatmul.mubr.f32.gmra.mrb[34].mxu0 %v28254_v19  ;;  %v17972_v19 = vld [vmem:[%s29312_s5 + $0x538] sm:$0xff]  ;;  %v18647_v36 = vld [vmem:[%s29313_s6 + $0x68] sm:$0xff] }
 0xa37   :  { %18442 = vmatprep.mubr.f32.mxu0 %v28291_v0  ;;  %21609 = vmatpush1.bf16.msra.mxu0 %v21608_v8  ;;  %v21616_v0 = vpack.c.bf16 %v17963_v22, %v17959_v44  ;;  %v21618_v25 = vpack.c.bf16 %v17972_v19, %v17968_v18  ;;  %v18024_v8 = vld [vmem:[%s29312_s5 + $0x6d8] sm:$0xff]  ;;  %v21648_v44 = vpack.c.bf16 %v18027_v5, %v18023_v10  ;;  %v18031_v18 = vld [vmem:[%s29312_s5 + $0x710] sm:$0xff]  ;;  %v18633_v10 = vld [vmem:[%s29314_s7] sm:$0x3] }
 0xa38   :  { %21611 = vmatprep.subr.bf16.mxu0 %v21610_v39  ;;  %v18028_v39 = vld [vmem:[%s29312_s5 + $0x6f8] sm:$0xff]  ;;  %v18035_v19 = vld [vmem:[%s29312_s5 + $0x730] sm:$0xff] }
 0xa39   :  { %v21646_v47 = vpack.c.bf16 %v18028_v39, %v18024_v8 }
 0xa3a   :  { %18443 = vmatmul.mubr.f32.gmra.mrb[36].mxu0 %v28294_v26  ;;  %v17980_v26 = vld [vmem:[%s29312_s5 + $0x578] sm:$0xff] }
 0xa3b   :  { %18448 = vmatprep.mubr.f32.mxu0 %v28311_v21  ;;  %21613 = vmatpush1.bf16.msra.mxu0 %v21612_v41  ;;  %v21620_v21 = vpack.c.bf16 %v17971_v37, %v17967_v58  ;;  %v21622_v11 = vpack.c.bf16 %v17980_v26, %v17976_v32  ;;  %v18032_v41 = vld [vmem:[%s29312_s5 + $0x718] sm:$0xff]  ;;  %v21652_v58 = vpack.c.bf16 %v18035_v19, %v18031_v18  ;;  %v18039_v32 = vld [vmem:[%s29312_s5 + $0x750] sm:$0xff] }
 0xa3c   :  { %21615 = vmatprep.subr.bf16.mxu0 %v21614_v35  ;;  %v18036_v35 = vld [vmem:[%s29312_s5 + $0x738] sm:$0xff]  ;;  %v18043_v26 = vld [vmem:[%s29312_s5 + $0x770] sm:$0xff] }
 0xa3d   :  { %v21650_v22 = vpack.c.bf16 %v18036_v35, %v18032_v41  ;;  %v18636_v35 = vld [vmem:[%s29313_s6 + $0x10] sm:$0xff]  ;;  %v18641_v18 = vld [vmem:[%s29313_s6 + $0x38] sm:$0xff] }
 0xa3e   :  { %18449 = vmatmul.mubr.f32.gmra.mrb[38].mxu0 %v28448_v60  ;;  %v17988_v60 = vld [vmem:[%s29312_s5 + $0x5b8] sm:$0xff] }
 0xa3f   :  { %21617 = vmatpush1.bf16.msra.mxu0 %v21616_v0  ;;  %18519 = vmatprep.mubr.f32.mxu0 %v28451_v14  ;;  %v21624_v14 = vpack.c.bf16 %v17979_v31, %v17975_v34  ;;  %v21626_v23 = vpack.c.bf16 %v17988_v60, %v17984_v24  ;;  %v18040_v0 = vld [vmem:[%s29312_s5 + $0x758] sm:$0xff]  ;;  %v21656_v34 = vpack.c.bf16 %v18043_v26, %v18039_v32  ;;  %v18047_v24 = vld [vmem:[%s29312_s5 + $0x790] sm:$0xff] }
 0xa40   :  { %21619 = vmatprep.subr.bf16.mxu0 %v21618_v25  ;;  %v18044_v25 = vld [vmem:[%s29312_s5 + $0x778] sm:$0xff]  ;;  %v18051_v60 = vld [vmem:[%s29312_s5 + $0x7b0] sm:$0xff] }
 0xa41   :  { %v21654_v37 = vpack.c.bf16 %v18044_v25, %v18040_v0  ;;  %v21660_v55 = vpack.c.bf16 %v18051_v60, %v18047_v24  ;;  %v18648_v24 = vld [vmem:[%s29313_s6 + $0x70] sm:$0xff]  ;;  %v18645_v60 = vld [vmem:[%s29313_s6 + $0x58] sm:$0xff] }
 0xa43   :  { %21621 = vmatpush1.bf16.msra.mxu0 %v21620_v21  ;;  %v18048_v21 = vld [vmem:[%s29312_s5 + $0x798] sm:$0xff] }
 0xa44   :  { %21623 = vmatprep.subr.bf16.mxu0 %v21622_v11  ;;  %v18052_v11 = vld [vmem:[%s29312_s5 + $0x7b8] sm:$0xff] }
 0xa45   :  { %v21658_v31 = vpack.c.bf16 %v18052_v11, %v18048_v21 }
 0xa47   :  { %21625 = vmatpush1.bf16.msra.mxu0 %v21624_v14  ;;  %v18056_v14 = vld [vmem:[%s29312_s5 + $0x7d8] sm:$0xff] }
 0xa48   :  { %21627 = vmatprep.subr.bf16.mxu0 %v21626_v23  ;;  %v18060_v23 = vld [vmem:[%s29312_s5 + $0x7f8] sm:$0xff] }
 0xa49   :  { %v21662_v40 = vpack.c.bf16 %v18060_v23, %v18056_v14  ;;  %v18649_v14 = vld [vmem:[%s29313_s6 + $0x78] sm:$0xff] }
 0xa4b   :  { %21629 = vmatpush1.bf16.msra.mxu0 %v21628_v61  ;;  %v18064_v61 = vld [vmem:[%s29312_s5 + $0x818] sm:$0xff] }
 0xa4c   :  { %21631 = vmatprep.subr.bf16.mxu0 %v21630_v48  ;;  %v18068_v48 = vld [vmem:[%s29312_s5 + $0x838] sm:$0xff] }
 0xa4d   :  { %v21666_v1 = vpack.c.bf16 %v18068_v48, %v18064_v61  ;;  %v18828_v61 = vld [vmem:[%s29315_s8 + $0x88] sm:$0xff] }
 0xa4f   :  { %21633 = vmatpush1.bf16.msra.mxu0 %v21632_v17  ;;  %v21668_v17 = vpack.c.bf16 %v18067_v4, %v18063_v3  ;;  %v21686_v4 = vpack.c.bf16 %v18828_v61, %v18827_v46  ;;  %v18849_v61 = vld [vmem:[%s29315_s8 + $0x130] sm:$0xff] }
 0xa50   :  { %21635 = vmatprep.subr.bf16.mxu0 %v21634_v33  ;;  %v18072_v33 = vld [vmem:[%s29312_s5 + $0x858] sm:$0x1] }
 0xa53   :  { %21637 = vmatpush1.bf16.msra.mxu0 %v21636_v45 }
 0xa54   :  { %21639 = vmatprep.subr.bf16.mxu0 %v21638_v42 }
 0xa57   :  { %21641 = vmatpush1.bf16.msra.mxu0 %v21640_v20 }
 0xa58   :  { %21643 = vmatprep.subr.bf16.mxu0 %v21642_v2 }
 0xa5b   :  { %21645 = vmatpush1.bf16.msra.mxu0 %v21644_v50 }
 0xa5c   :  { %21647 = vmatprep.subr.bf16.mxu0 %v21646_v47 }
 0xa5f   :  { %21649 = vmatpush1.bf16.msra.mxu0 %v21648_v44  ;;  %v18640_v44 = vld [vmem:[%s29313_s6 + $0x30] sm:$0xff] }
 0xa60   :  { %21651 = vmatprep.subr.bf16.mxu0 %v21650_v22  ;;  %v18637_v22 = vld [vmem:[%s29313_s6 + $0x18] sm:$0xff] }
 0xa63   :  { %21653 = vmatpush1.bf16.msra.mxu0 %v21652_v58 }
 0xa64   :  { %21655 = vmatprep.subr.bf16.mxu0 %v21654_v37 }
 0xa67   :  { %21657 = vmatpush1.bf16.msra.mxu0 %v21656_v34 }
 0xa68   :  { %21659 = vmatprep.subr.bf16.mxu0 %v21658_v31  ;;  %v18644_v31 = vld [vmem:[%s29313_s6 + $0x50] sm:$0xff] }
 0xa6b   :  { %21661 = vmatpush1.bf16.msra.mxu0 %v21660_v55 }
 0xa6c   :  { %21663 = vmatprep.subr.bf16.mxu0 %v21662_v40 }
 0xa6f   :  { %21665 = vmatpush1.bf16.msra.mxu0 %v21664_v27 }
 0xa70   :  { %21667 = vmatprep.subr.bf16.mxu0 %v21666_v1 }
 0xa72   :  { %18520 = vmatmul.mubr.f32.vlgmr.msra.gmra.mrb[32].mxu0 %v28469_v29 }
 0xa73   :  { %18525 = vmatprep.mubr.f32.mxu0 %v28475_v13  ;;  %21669 = vmatpush1.bf16.msra.mxu0 %v21668_v17  ;;  %v18811_v17 = vld [vmem:[%s29315_s8] sm:$0xff] }
 0xa74   :  { %20218 = vmatprep.subr.msk.mxu0 %vm18086_vm3, %v18072_v33  ;;  %v18812_v33 = vld [vmem:[%s29315_s8 + $0x8] sm:$0xff] }
 0xa76   :  { %18526 = vmatmul.mubr.f32.gmra.mrb[34].mxu0 %v28491_v53  ;;  %v18634_v53 = vld [vmem:[%s29313_s6] sm:$0xff] }
 0xa77   :  { %18531 = vmatprep.mubr.f32.mxu0 %v28501_v28  ;;  %20219 = vmatpush1.msk.msra.mxu0 %vm18086_vm3, %v18071_v9  ;;  %v18638_v28 = vld [vmem:[%s29313_s6 + $0x20] sm:$0xff]  ;;  %v18829_v9 = vld [vmem:[%s29315_s8 + $0x90] sm:$0xff] }
 0xa7a   :  { %18532 = vmatmul.mubr.f32.gmra.mrb[36].mxu0 %v28508_v43  ;;  %v18635_v43 = vld [vmem:[%s29313_s6 + $0x8] sm:$0xff] }
 0xa7b   :  { %18537 = vmatprep.mubr.f32.mxu0 %v28514_v52  ;;  %v18639_v52 = vld [vmem:[%s29313_s6 + $0x28] sm:$0xff] }
 0xa7e   :  { %18538 = vmatmul.mubr.f32.gmra.mrb[38].mxu0 %v28519_v59 }
 0xa7f   :  { %18608 = vmatprep.mubr.f32.mxu0 %v29414_v56 }
 0xa82   :  { %20220 = vmatmul.mubr.msk.f32.vlgmr.msra.gmra.mrb[32].mxu0 %vm18073_vm11, %v28536_v62 }
 0xa83   :  { %18614 = vmatprep.mubr.f32.mxu0 %v29414_v56 }
 0xa86   :  { %20221 = vmatmul.mubr.msk.f32.gmra.mrb[34].mxu0 %vm18073_vm11, %v28555_v16 }
 0xa87   :  { %18620 = vmatprep.mubr.f32.mxu0 %v29414_v56 }
 0xa8a   :  { %20222 = vmatmul.mubr.msk.f32.gmra.mrb[36].mxu0 %vm18073_vm11, %v28574_v15 }
 0xa8b   :  { %18626 = vmatprep.mubr.f32.mxu0 %v29414_v56 }
 0xa8e   :  { %20223 = vmatmul.mubr.msk.f32.gmra.mrb[38].mxu0 %vm18073_vm11, %v28592_v12 }
 0xa8f   :  { %18733 = vmatprep.mubr.f32.mxu0 %v29414_v56 }
 0xac5   :  { %v18343_v29 = vpop.f32.mrb[24].mxu0 }
 0xac6   :  { %v18345_v13 = vpop.f32.mrb[25].mxu0  ;;  %v18650_v62 = vmul.f32 %v18634_v53, %v18343_v29  ;;  %v18830_v29 = vld [vmem:[%s29315_s8 + $0x98] sm:$0xff] }
 0xac7   :  { %v18651_v12 = vmul.f32 %v18635_v43, %v18345_v13  ;;  %v21688_v13 = vpack.c.bf16 %v18812_v33, %v18811_v17  ;;  %v21690_v53 = vpack.c.bf16 %v18830_v29, %v18829_v9  ;;  %v18814_v43 = vld [vmem:[%s29315_s8 + $0x18] sm:$0xff]  ;;  %v18853_v17 = vld [vmem:[%s29315_s8 + $0x150] sm:$0xff]  ;;  %v18855_v29 = vld [vmem:[%s29315_s8 + $0x160] sm:$0xff] }
 0xac8   :  { %v18854_v33 = vld [vmem:[%s29315_s8 + $0x158] sm:$0xff] }
 0xac9   :  { %v18349_v59 = vpop.f32.mrb[26].mxu0  ;;  %v21734_v9 = vpack.c.bf16 %v18854_v33, %v18853_v17  ;;  %v19131_v33 = vld [vmem:[%s29319_s12 + $0x40] sm:$0xff] }
 0xaca   :  { %v18654_v16 = vmul.f32 %v18638_v28, %v18349_v59  ;;  %v18351_v15 = vpop.f32.mrb[27].mxu0  ;;  %v18813_v28 = vld [vmem:[%s29315_s8 + $0x10] sm:$0xff]  ;;  %v18832_v59 = vld [vmem:[%s29315_s8 + $0xa8] sm:$0xff] }
 0xacb   :  { %v18655_v7 = vmul.f32 %v18639_v52, %v18351_v15  ;;  %v18831_v52 = vld [vmem:[%s29315_s8 + $0xa0] sm:$0xff] }
 0xacc   :  { %v21672_v51 = vpack.c.bf16 %v18654_v16, %v18650_v62  ;;  %v21692_v62 = vpack.c.bf16 %v18814_v43, %v18813_v28  ;;  %v21694_v16 = vpack.c.bf16 %v18832_v59, %v18831_v52  ;;  %v18815_v15 = vld [vmem:[%s29315_s8 + $0x20] sm:$0xff]  ;;  %v18857_v28 = vld [vmem:[%s29315_s8 + $0x170] sm:$0xff]  ;;  %v18858_v43 = vld [vmem:[%s29315_s8 + $0x178] sm:$0xff] }
 0xacd   :  { %v21670_v6 = vpack.c.bf16 %v18655_v7, %v18651_v12  ;;  %v18355_v45 = vpop.f32.mrb[28].mxu0  ;;  %v18816_v12 = vld [vmem:[%s29315_s8 + $0x28] sm:$0xff]  ;;  %v18833_v7 = vld [vmem:[%s29315_s8 + $0xb0] sm:$0xff]  ;;  %v21740_v52 = vpack.c.bf16 %v18858_v43, %v18857_v28  ;;  %v18859_v59 = vld [vmem:[%s29315_s8 + $0x180] sm:$0xff] }
 0xace   :  { %v18357_v42 = vpop.f32.mrb[29].mxu0  ;;  %v18658_v2 = vmul.f32 %v18642_v30, %v18355_v45  ;;  %v18818_v30 = vld [vmem:[%s29315_s8 + $0x38] sm:$0xff] }
 0xacf   :  { %21671 = vmatprep.subr.bf16.mxu0 %v21670_v6  ;;  %v18659_v8 = vmul.f32 %v18643_v49, %v18357_v42  ;;  %v21696_v6 = vpack.c.bf16 %v18816_v12, %v18815_v15  ;;  %v18817_v42 = vld [vmem:[%s29315_s8 + $0x30] sm:$0xff]  ;;  %v18836_v49 = vld [vmem:[%s29315_s8 + $0xc8] sm:$0xff]  ;;  %v19020_v15 = vld [vmem:[%s29317_s10] sm:$0xff] }
 0xad0   :  { %21673 = vmatpush1.bf16.msra.mxu0 %v21672_v51  ;;  %v18834_v51 = vld [vmem:[%s29315_s8 + $0xb8] sm:$0xff]  ;;  %v19021_v12 = vld [vmem:[%s29317_s10 + $0x8] sm:$0xff] }
 0xad1   :  { %v18361_v20 = vpop.f32.mrb[30].mxu0  ;;  %v21698_v45 = vpack.c.bf16 %v18834_v51, %v18833_v7  ;;  %v21746_v51 = vpack.c.bf16 %v19021_v12, %v19020_v15 }
 0xad2   :  { %v18662_v38 = vmul.f32 %v18646_v57, %v18361_v20  ;;  %v18363_v63 = vpop.f32.mrb[31].mxu0  ;;  %v18835_v57 = vld [vmem:[%s29315_s8 + $0xc0] sm:$0xff] }
 0xad3   :  { %v18663_v39 = vmul.f32 %v18647_v36, %v18363_v63  ;;  %v21700_v36 = vpack.c.bf16 %v18818_v30, %v18817_v42  ;;  %v21702_v20 = vpack.c.bf16 %v18836_v49, %v18835_v57  ;;  %v18837_v63 = vld [vmem:[%s29315_s8 + $0xd0] sm:$0xff]  ;;  %v19023_v49 = vld [vmem:[%s29317_s10 + $0x18] sm:$0xff] }
 0xad4   :  { %v21676_v50 = vpack.c.bf16 %v18662_v38, %v18658_v2  ;;  %v18819_v2 = vld [vmem:[%s29315_s8 + $0x40] sm:$0xff]  ;;  %v18820_v38 = vld [vmem:[%s29315_s8 + $0x48] sm:$0xff]  ;;  %v19022_v57 = vld [vmem:[%s29317_s10 + $0x10] sm:$0xff] }
 0xad5   :  { %v21674_v47 = vpack.c.bf16 %v18663_v39, %v18659_v8  ;;  %v18838_v8 = vld [vmem:[%s29315_s8 + $0xd8] sm:$0xff]  ;;  %v21704_v39 = vpack.c.bf16 %v18820_v38, %v18819_v2  ;;  %v19025_v2 = vld [vmem:[%s29317_s10 + $0x28] sm:$0xff] }
 0xad7   :  { %21675 = vmatprep.subr.bf16.mxu0 %v21674_v47  ;;  %v18821_v47 = vld [vmem:[%s29315_s8 + $0x50] sm:$0xff] }
 0xad8   :  { %21677 = vmatpush1.bf16.msra.mxu0 %v21676_v50  ;;  %v21706_v50 = vpack.c.bf16 %v18838_v8, %v18837_v63  ;;  %v19026_v63 = vld [vmem:[%s29317_s10 + $0x30] sm:$0xff]  ;;  %v19027_v8 = vld [vmem:[%s29317_s10 + $0x38] sm:$0xff] }
 0xadb   :  { %20224 = vmatmul.mubr.msk.f32.vlgmr.msra.gmra.mrb[40].mxu0 %vm5525_vm7, %v18633_v10 }
 0xadc   :  { %18804 = vmatprep.mubr.f32.mxu0 %v29414_v56 }
 0xb55   :  { %v18610_v5 = vpop.f32.mrb[32].mxu0 }
 0xb56   :  { %v18612_v41 = vpop.f32.mrb[33].mxu0  ;;  %v18652_v0 = vmul.f32 %v18636_v35, %v18610_v5  ;;  %v18839_v5 = vld [vmem:[%s29315_s8 + $0xe0] sm:$0xff] }
 0xb57   :  { %v18653_v37 = vmul.f32 %v18637_v22, %v18612_v41  ;;  %v18840_v41 = vld [vmem:[%s29315_s8 + $0xe8] sm:$0xff]  ;;  %v18823_v22 = vld [vmem:[%s29315_s8 + $0x60] sm:$0xff] }
 0xb59   :  { %v18616_v19 = vpop.f32.mrb[34].mxu0 }
 0xb5a   :  { %v18656_v25 = vmul.f32 %v18640_v44, %v18616_v19  ;;  %v18618_v58 = vpop.f32.mrb[35].mxu0  ;;  %v21710_v44 = vpack.c.bf16 %v18840_v41, %v18839_v5  ;;  %v18841_v19 = vld [vmem:[%s29315_s8 + $0xf0] sm:$0xff]  ;;  %v19031_v41 = vld [vmem:[%s29317_s10 + $0x58] sm:$0xff] }
 0xb5b   :  { %v18657_v32 = vmul.f32 %v18641_v18, %v18618_v58  ;;  %v18824_v18 = vld [vmem:[%s29315_s8 + $0x68] sm:$0xff]  ;;  %v19030_v5 = vld [vmem:[%s29317_s10 + $0x50] sm:$0xff] }
 0xb5c   :  { %v21680_v26 = vpack.c.bf16 %v18656_v25, %v18652_v0  ;;  %v18842_v0 = vld [vmem:[%s29315_s8 + $0xf8] sm:$0xff]  ;;  %v21712_v25 = vpack.c.bf16 %v18824_v18, %v18823_v22  ;;  %v19033_v22 = vld [vmem:[%s29317_s10 + $0x68] sm:$0xff] }
 0xb5d   :  { %v21678_v21 = vpack.c.bf16 %v18657_v32, %v18653_v37  ;;  %v18622_v11 = vpop.f32.mrb[36].mxu0  ;;  %v21714_v58 = vpack.c.bf16 %v18842_v0, %v18841_v19  ;;  %v18825_v37 = vld [vmem:[%s29315_s8 + $0x70] sm:$0xff]  ;;  %v18826_v32 = vld [vmem:[%s29315_s8 + $0x78] sm:$0xff]  ;;  %v20226_v0 = vld [vmem:[%s29316_s9] ss:$0 sm:$0xff] }
 0xb5e   :  { %v18624_v34 = vpop.f32.mrb[37].mxu0  ;;  %v18660_v55 = vmul.f32 %v18644_v31, %v18622_v11  ;;  %v18843_v11 = vld [vmem:[%s29315_s8 + $0x100] sm:$0xff]  ;;  %v19034_v19 = vld [vmem:[%s29317_s10 + $0x70] sm:$0xff] }
 0xb5f   :  { %21679 = vmatprep.subr.bf16.mxu0 %v21678_v21  ;;  %v18661_v48 = vmul.f32 %v18645_v60, %v18624_v34  ;;  %v23277_v21 = vmov 0.0|0.0   ;;  %v18844_v34 = vld [vmem:[%s29315_s8 + $0x108] sm:$0xff] }
 0xb60   :  { %21681 = vmatpush1.bf16.msra.mxu0 %v21680_v26  ;;  %v21716_v26 = vpack.c.bf16 %v18826_v32, %v18825_v37 }
 0xb61   :  { %v18628_v23 = vpop.f32.mrb[38].mxu0 }
 0xb62   :  { %v18664_v40 = vmul.f32 %v18648_v24, %v18628_v23  ;;  %v18630_v54 = vpop.f32.mrb[39].mxu0  ;;  %v21719_v24 = vpack.c.bf16 %v18844_v34, %v18843_v11  ;;  %v18846_v23 = vld [vmem:[%s29315_s8 + $0x118] sm:$0xff] }
 0xb63   :  { %v18665_v27 = vmul.f32 %v18649_v14, %v18630_v54  ;;  %v18845_v14 = vld [vmem:[%s29315_s8 + $0x110] sm:$0xff]  ;;  %v18848_v54 = vld [vmem:[%s29315_s8 + $0x128] sm:$0xff] }
 0xb64   :  { %v21684_v1 = vpack.c.bf16 %v18664_v40, %v18660_v55  ;;  %v21722_v55 = vpack.c.bf16 %v18846_v23, %v18845_v14  ;;  %v18847_v40 = vld [vmem:[%s29315_s8 + $0x120] sm:$0xff] }
 0xb65   :  { %v21682_v3 = vpack.c.bf16 %v18665_v27, %v18661_v48  ;;  %v21725_v46 = vpack.c.bf16 %v18848_v54, %v18847_v40  ;;  %v18850_v48 = vld [vmem:[%s29315_s8 + $0x138] sm:$0xff]  ;;  %v19123_v23 = vld [vmem:[%s29319_s12] sm:$0xff]  ;;  %v19125_v54 = vld [vmem:[%s29319_s12 + $0x10] sm:$0xff] }
 0xb66   :  { %v21728_v27 = vpack.c.bf16 %v18850_v48, %v18849_v61  ;;  %v19127_v48 = vld [vmem:[%s29319_s12 + $0x20] sm:$0xff] }
 0xb67   :  { %21683 = vmatprep.subr.bf16.mxu0 %v21682_v3  ;;  %v18852_v3 = vld [vmem:[%s29315_s8 + $0x148] sm:$0xff] }
 0xb68   :  { %21685 = vmatpush1.bf16.msra.mxu0 %v21684_v1  ;;  %v18851_v1 = vld [vmem:[%s29315_s8 + $0x140] sm:$0xff] }
 0xb69   :  { %21687 = vmatprep.subr.bf16.mxu0 %v21686_v4  ;;  %v21731_v4 = vpack.c.bf16 %v18852_v3, %v18851_v1  ;;  %v19129_v3 = vld [vmem:[%s29319_s12 + $0x30] sm:$0xff] }
 0xb6b   :  { %20225 = vmatmul.mubr.msk.f32.vlgmr.msra.gmra.mrb[42].mxu0 %vm5525_vm7, %v18633_v10  ;;  %v18822_v10 = vld [vmem:[%s29315_s8 + $0x58] sm:$0xff]  ;;  %vm18868_vm7 = vcmask 130048  }
 0xb6c   :  { %21689 = vmatpush3.bf16.msra.mxu0 %v21688_v13  ;;  %v21708_v35 = vpack.c.bf16 %v18822_v10, %v18821_v47  ;;  %v18856_v13 = vld [vmem:[%s29315_s8 + $0x168] sm:$0xff] }
 0xb6d   :  { %21691 = vmatprep.subr.bf16.mxu0 %v21690_v53  ;;  %v21737_v53 = vpack.c.bf16 %v18856_v13, %v18855_v29  ;;  %v19029_v47 = vld [vmem:[%s29317_s10 + $0x48] sm:$0xff]  ;;  %v19133_v13 = vld [vmem:[%s29319_s12 + $0x50] sm:$0xf] }
 0xb70   :  { %21693 = vmatpush3.bf16.msra.mxu0 %v21692_v62  ;;  %v18860_v62 = vld [vmem:[%s29315_s8 + $0x188] sm:$0xff] }
 0xb71   :  { %21695 = vmatprep.subr.bf16.mxu0 %v21694_v16  ;;  %v21743_v16 = vpack.c.bf16 %v18860_v62, %v18859_v59 }
 0xb74   :  { %21697 = vmatpush3.bf16.msra.mxu0 %v21696_v6 }
 0xb75   :  { %21699 = vmatprep.subr.bf16.mxu0 %v21698_v45 }
 0xb78   :  { %21701 = vmatpush3.bf16.msra.mxu0 %v21700_v36  ;;  %v21749_v36 = vpack.c.bf16 %v19023_v49, %v19022_v57 }
 0xb79   :  { %21703 = vmatprep.subr.bf16.mxu0 %v21702_v20  ;;  %v19024_v20 = vld [vmem:[%s29317_s10 + $0x20] sm:$0xff] }
 0xb7a   :  { %v21752_v38 = vpack.c.bf16 %v19025_v2, %v19024_v20 }
 0xb7c   :  { %21705 = vmatpush3.bf16.msra.mxu0 %v21704_v39  ;;  %v21755_v39 = vpack.c.bf16 %v19027_v8, %v19026_v63 }
 0xb7d   :  { %21707 = vmatprep.subr.bf16.mxu0 %v21706_v50  ;;  %v19028_v50 = vld [vmem:[%s29317_s10 + $0x40] sm:$0xff] }
 0xb7e   :  { %v21758_v10 = vpack.c.bf16 %v19029_v47, %v19028_v50 }
 0xb80   :  { %21709 = vmatpush3.bf16.msra.mxu0 %v21708_v35  ;;  %v21761_v35 = vpack.c.bf16 %v19031_v41, %v19030_v5 }
 0xb81   :  { %21711 = vmatprep.subr.bf16.mxu0 %v21710_v44  ;;  %v19032_v44 = vld [vmem:[%s29317_s10 + $0x60] sm:$0xff] }
 0xb82   :  { %v21764_v18 = vpack.c.bf16 %v19033_v22, %v19032_v44 }
 0xb84   :  { %21713 = vmatpush3.bf16.msra.mxu0 %v21712_v25 }
 0xb85   :  { %21715 = vmatprep.subr.bf16.mxu0 %v21714_v58 }
 0xb88   :  { %21717 = vmatpush3.bf16.msra.mxu0 %v21716_v26 }
 0xb89   :  { %21718 = vmatprep.subr.bf16.mxu0 %v23277_v21 }
 0xbae   :  { %v18735_v31 = vpop.f32.mrb[40].mxu0 }
 0xbaf   :  { %v18737_v60 = vpop.f32.mrb[41].mxu0 }
 0xbb0   :  { %18936 = vmatprep.mubr.f32.mxu0 %v18737_v60 }
 0xbb1   :  { %18937 = vmatmul.mubr.f32.vlgmr.msra.gmra.mrb[44].mxu0 %v18735_v31 }
 0xbb2   :  { %21720 = vmatpush1.bf16.msra.mxu0 %v21719_v24 }
 0xbb3   :  { %21721 = vmatprep.subr.bf16.mxu0 %v23277_v21 }
 0xbb6   :  { %21723 = vmatpush1.bf16.msra.mxu0 %v21722_v55  ;;  %v19124_v55 = vld [vmem:[%s29319_s12 + $0x8] sm:$0xff] }
 0xbb7   :  { %21724 = vmatprep.subr.bf16.mxu0 %v23277_v21  ;;  %v21767_v40 = vpack.c.bf16 %v19124_v55, %v19123_v23 }
 0xbba   :  { %21726 = vmatpush1.bf16.msra.mxu0 %v21725_v46  ;;  %v19126_v46 = vld [vmem:[%s29319_s12 + $0x18] sm:$0xff] }
 0xbbb   :  { %21727 = vmatprep.subr.bf16.mxu0 %v23277_v21  ;;  %v21770_v61 = vpack.c.bf16 %v19126_v46, %v19125_v54 }
 0xbbe   :  { %21729 = vmatpush1.bf16.msra.mxu0 %v21728_v27  ;;  %v19128_v27 = vld [vmem:[%s29319_s12 + $0x28] sm:$0xff] }
 0xbbf   :  { %21730 = vmatprep.subr.bf16.mxu0 %v23277_v21  ;;  %v21773_v1 = vpack.c.bf16 %v19128_v27, %v19127_v48 }
 0xbc2   :  { %21732 = vmatpush1.bf16.msra.mxu0 %v21731_v4  ;;  %v19130_v4 = vld [vmem:[%s29319_s12 + $0x38] sm:$0xff] }
 0xbc3   :  { %21733 = vmatprep.subr.bf16.mxu0 %v23277_v21  ;;  %v21776_v17 = vpack.c.bf16 %v19130_v4, %v19129_v3 }
 0xbc6   :  { %21735 = vmatpush1.bf16.msra.mxu0 %v21734_v9  ;;  %v19132_v9 = vld [vmem:[%s29319_s12 + $0x48] sm:$0xff] }
 0xbc7   :  { %21736 = vmatprep.subr.bf16.mxu0 %v23277_v21  ;;  %v21779_v29 = vpack.c.bf16 %v19132_v9, %v19131_v33 }
 0xbca   :  { %21738 = vmatpush1.bf16.msra.mxu0 %v21737_v53  ;;  %v20229_v53 = vld [vmem:[%s29318_s11] ss:$0 sm:$0xff]  ;;  %s19226_s11 = sshll.u32 %s23279_s16, 4  ;;  %s19227_s11 = int_to_ptr.vmem [resolvable:$true] %s19226_s11 }
 0xbcb   :  { %21739 = vmatprep.subr.bf16.mxu0 %v23277_v21  ;;  %s23227_s2 = scalar_lea.vmem %s19227_s11, 32  ;;  %p23232_p1 = scmp.lt.s32.totalorder %s19227_s11, %s19227_s11 }
 0xbcc   :  { %p23228_p0 = scmp.ne.s32.totalorder %s19227_s11, %s23227_s2  ;;  %p23233_p2 = scmp.lt.s32.totalorder %s23227_s2, %s23227_s2 }
 0xbce   :  { %21741 = vmatpush1.bf16.msra.mxu0 %v21740_v52  ;;  %p23234_p3 = por %p23233_p2, %p23232_p1 }
 0xbcf   :  { %21742 = vmatprep.subr.bf16.mxu0 %v23277_v21 }
 0xbd0   :  { %p23235_p4 = pnand %p23234_p3, %p23228_p0 }
 0xbd2   :  { %21744 = vmatpush1.bf16.msra.mxu0 %v21743_v16 }
 0xbd3   :  { %21745 = vmatprep.subr.bf16.mxu0 %v23277_v21 }
 0xc3e   :  { %v18806_v7 = vpop.f32.mrb[42].mxu0 }
 0xc3f   :  { %v18808_v6 = vpop.f32.mrb[43].mxu0 }
 0xc40   :  { %20227 = vmatprep.mubr.msk.f32.mxu0 %vm18868_vm7, %v18808_v6 }
 0xc41   :  { %19007 = vmatmul.mubr.f32.vlgmr.msra.gmra.mrb[46].mxu0 %v18806_v7  ;;  %v20232_v7 = vld [vmem:[%s29320_s13] ss:$0 sm:$0xff] }
 0xc42   :  { %21747 = vmatpush3.bf16.msra.mxu0 %v21746_v51  ;;  %20928 = vmatprep.mubr.msk.f32.mxu0 %vm23278_vm14, %v29414_v56 }
 0xc43   :  { %21748 = vmatprep.subr.bf16.mxu0 %v23277_v21 }
 0xc46   :  { %21750 = vmatpush3.bf16.msra.mxu0 %v21749_v36 }
 0xc47   :  { %21751 = vmatprep.subr.bf16.mxu0 %v23277_v21 }
 0xc4a   :  { %21753 = vmatpush3.bf16.msra.mxu0 %v21752_v38 }
 0xc4b   :  { %21754 = vmatprep.subr.bf16.mxu0 %v23277_v21 }
 0xc4e   :  { %21756 = vmatpush3.bf16.msra.mxu0 %v21755_v39 }
 0xc4f   :  { %21757 = vmatprep.subr.bf16.mxu0 %v23277_v21 }
 0xc52   :  { %21759 = vmatpush3.bf16.msra.mxu0 %v21758_v10 }
 0xc53   :  { %21760 = vmatprep.subr.bf16.mxu0 %v23277_v21 }
 0xc56   :  { %21762 = vmatpush3.bf16.msra.mxu0 %v21761_v35 }
 0xc57   :  { %21763 = vmatprep.subr.bf16.mxu0 %v23277_v21 }
 0xc5a   :  { %21765 = vmatpush3.bf16.msra.mxu0 %v21764_v18 }
 0xc5b   :  { %20926 = vmatprep.subr.mxu0 %v29414_v56 }
 0xc5e   :  { %20927 = vmatpush3.msra.mxu0 %v19034_v19 }
 0xc5f   :  { %21766 = vmatprep.subr.bf16.mxu0 %v23277_v21 }
 0xc84   :  { %v20492_v45 = vpop.f32.mrb[44].mxu0 }
 0xc85   :  { %v20493_v42 = vpop.f32.mrb[45].mxu0 }
 0xc86   :  { %v20494_v30 = vadd.f32 %v20493_v42, %v20492_v45 }
 0xc88   :  { %v18939_v25 = vadd.f32 %v20494_v30, %v20226_v0 }
 0xd14   :  { %v19008_v58 = vpop.f32.mrb[46].mxu0 }
 0xd15   :  { %v19009_v37 = vadd.f32 %v19008_v58, %v18939_v25  ;;  %v19010_v32 = vpop.f32.mrb[47].mxu0 }
 0xd17   :  { %v19013_v26 = vmin.f32 %v19009_v37, 0.0  ;;  %vm19012_vm2 = vcmp.gt.f32.partialorder %v19009_v37, 0.0 }
 0xd19   :  { %v19014_v11 = vmul.f32 1.442695, %v19013_v26 }
 0xd1b   :  { %23183 = vpow2.f32 %v19014_v11 }
 0xd25   :  { %v23184_v34 = vpop.eup %23183 }
 0xd26   :  { %v20228_v31 = vadd.f32 -1.0, %v23184_v34 }
 0xd28   :  { %v19017_v24 = vmul.f32 1.6732632, %v20228_v31 }
 0xd2a   :  { %v19018_v60 = vsel %vm19012_vm2, %v19009_v37, %v19017_v24 }
 0xd2b   :  { %v19019_v14 = vmul.f32 1.050701, %v19018_v60 }
 0xd2d   :  { %20929 = vmatmul.mubr.msk.f32.vlgmr.msra.gmra.mrb[48].mxu0 %vm10654_vm1, %v19019_v14 }
 0xd2e   :  { %20953 = vmatprep.mubr.msk.f32.mxu0 %vm23278_vm14, %v29414_v56  ;;  %21768 = vmatpush3.bf16.msra.mxu0 %v21767_v40 }
 0xd2f   :  { %21769 = vmatprep.subr.bf16.mxu0 %v23277_v21 }
 0xd32   :  { %21771 = vmatpush3.bf16.msra.mxu0 %v21770_v61 }
 0xd33   :  { %21772 = vmatprep.subr.bf16.mxu0 %v23277_v21 }
 0xd36   :  { %21774 = vmatpush3.bf16.msra.mxu0 %v21773_v1 }
 0xd37   :  { %21775 = vmatprep.subr.bf16.mxu0 %v23277_v21 }
 0xd3a   :  { %21777 = vmatpush3.bf16.msra.mxu0 %v21776_v17 }
 0xd3b   :  { %21778 = vmatprep.subr.bf16.mxu0 %v23277_v21 }
 0xd3e   :  { %21780 = vmatpush3.bf16.msra.mxu0 %v21779_v29 }
 0xd3f   :  { %20951 = vmatprep.subr.mxu0 %v29414_v56 }
 0xd42   :  { %20952 = vmatpush3.msk.msra.mxu0 %vm9383_vm0, %v19133_v13  ;;  %vm19218_vm0 = vcmask 156672  }
 0xe00   :  { %v19111_v28 = vpop.f32.mrb[48].mxu0 }
 0xe01   :  { %v19112_v43 = vadd.f32 %v20229_v53, %v19111_v28  ;;  %v20930_v52 = vpop.f32.mrb[49].mxu0 }
 0xe03   :  { %v19116_v59 = vmin.f32 %v19112_v43, 0.0  ;;  %vm19115_vm1 = vcmp.gt.f32.partialorder %v19112_v43, 0.0 }
 0xe05   :  { %v19117_v62 = vmul.f32 1.442695, %v19116_v59 }
 0xe07   :  { %23185 = vpow2.f32 %v19117_v62 }
 0xe11   :  { %v23186_v21 = vpop.eup %23185 }
 0xe12   :  { %v20231_v16 = vadd.f32 -1.0, %v23186_v21 }
 0xe14   :  { %v19120_v15 = vmul.f32 1.6732632, %v20231_v16 }
 0xe16   :  { %v19121_v56 = vsel %vm19115_vm1, %v19112_v43, %v19120_v15 }
 0xe17   :  { %v19122_v12 = vmul.f32 1.050701, %v19121_v56 }
 0xe19   :  { %20954 = vmatmul.mubr.msk.f32.vlgmr.msra.gmra.mrb[50].mxu0 %vm19141_vm5, %v19122_v12 }
 0xeec   :  { %v19214_v51 = vpop.f32.mrb[50].mxu0 }
 0xeed   :  { %v19215_v6 = vadd.f32 %v20232_v7, %v19214_v51  ;;  %v20955_v45 = vpop.f32.mrb[51].mxu0 }
 0xeef   :  { %19219 = vst.msk [vmem:[#allocation2] sm:$0x3] %vm19218_vm0, %v19215_v6 }
 0xef0   :  { %23238 = shalt.err (!%p23235_p4)
}
 0xef1   :  { %s23239_s0 = scalar_lea.hbm %s29321_s14, 32 }
 0xef2   :  { %p23240_p5 = scmp.ne.s32.totalorder %s29321_s14, %s23239_s0  ;;  %p23243_p6 = scmp.lt.u32.totalorder %s23239_s0, %s29321_s14 }
 0xef4   :  { %p23245_p7 = pnand %p23243_p6, %p23240_p5 }
 0xef6   :  { %23248 = shalt.err (!%p23245_p7)
}
 0xef7   :  { %19229 = dma.vmem_to_hbm [thread:$0]  %s19227_s11, 32, %s29321_s14, [#allocation3]  }
 0xef8   :  { %23249 = dma.done.wait [#allocation3], 32  }
 0xef9   :  { %23250 = vsyncadd [#allocation3], 4294967264 }
 0xefa   :  { %19233 = vsyncpa [#allocation3], 1 }

</bundles_post_ra>
